<compile_context>
chip_gen: v6e
topology: v6e:2x2x1
jax: 0.10.0
libtpu: 0.0.40
codegen_flags: <defaults>
</compile_context>

<pallas_src>
import numpy as np
import jax
import jax.numpy as jnp
from jax import lax
from jax.experimental import pallas as pl
from jax.experimental.pallas import tpu as pltpu

LANES = 128      # TPU lane width; every activation buffer is lane-dense (rows, 128)
NEG = -1e30      # max-pool padding value (Python float -> jaxpr literal, NOT a captured const)


def _round_up(x, m):
    return ((x + m - 1) // m) * m


def _geometry(H, W, CIN, C):
    """Static layout constants for the flat, lane-packed layout."""
    CG = max(CIN, C)                 # per-image lane group (channels zero-padded up to CG)
    assert LANES % CG == 0, f"channel group {CG} must divide {LANES}"
    NB = LANES // CG                 # images packed side by side on the lane axis
    Wp = W + 2                       # flat row period (width + left/right pad)
    Ho, Wo = (H + 1) // 2, (W + 1) // 2
    L0 = H * Wp                      # conv0 output rows
    L1 = Ho * Wp                     # pooled / residual-stage output rows
    Lh = 2 * L1 + 2 * Wp             # rows of the horizontal-max staging buffer
    T_in = _round_up(L0 + 2 * Wp + 2, 8)     # input buffer rows (covers all conv taps)
    T_q = _round_up(Lh + 2, 8)               # -BIG padded conv0-output staging rows
    T_h = _round_up(Lh, 8)                   # horizontal-max staging rows
    T_r = _round_up(L1 + 2 * Wp + 2, 8)      # zero-padded residual-stage staging rows
    # Geometry sanity (all borders strictly positive, all reads in-bounds).
    assert T_in >= (H + 2) * Wp
    assert T_q > Wp + 1 + L0
    assert T_r > Wp + 1 + L1
    assert 2 * Wp + 2 * (L1 - 1) < T_h
    return dict(CG=CG, NB=NB, Wp=Wp, Ho=Ho, Wo=Wo, L0=L0, L1=L1, Lh=Lh,
                T_in=T_in, T_q=T_q, T_h=T_h, T_r=T_r)


def _make_kernel(H, W, CIN, C):
    g = _geometry(H, W, CIN, C)
    Wp, L0, L1, Lh = g["Wp"], g["L0"], g["L1"], g["Lh"]
    T_q, T_r = g["T_q"], g["T_r"]
    offs = [kh * Wp + kw for kh in range(3) for kw in range(3)]   # 3x3 conv tap offsets

    def conv3x3(src_ref, L, w_ref, b_ref):
        # One MXU matmul per conv: 9 taps read as static ref slices (plain vlds), each tap
        # exactly 128 lanes -> relayout-free lane concat; weight is block-diagonal over the
        # NB images sharing the lane axis.
        patch = jnp.concatenate([src_ref[pl.ds(o, L), :] for o in offs], axis=-1)
        return jnp.dot(patch, w_ref[...], preferred_element_type=jnp.float32) + b_ref[...]

    def kernel(x_ref, mq_ref, mr_ref,
               w0_ref, b0_ref,
               wa0_ref, ba0_ref, wb0_ref, bb0_ref,
               wa1_ref, ba1_ref, wb1_ref, bb1_ref,
               o_ref, qf_ref, hm_ref, rp_ref):
        mask_y = mq_ref[...] > 0.5      # (L0,1): column-in-period < W   (conv0 validity)
        mask_r = mr_ref[...] > 0.5      # (L1,1): column-in-period < Wo  (pooled validity)

        # ---- conv(3x3, pad 1): single matmul straight off the zero-padded input block ----
        y = conv3x3(x_ref, L0, w0_ref, b0_ref)                    # (L0, 128)

        # ---- stage for max_pool2d: small borders/slack -> -BIG (re-done every step since
        #      scratch persists per-core), then ONE masked window store at offset Wp+1 -----
        qf_ref[pl.ds(0, Wp + 1), :] = jnp.full((Wp + 1, LANES), NEG, jnp.float32)
        qf_ref[pl.ds(Wp + 1 + L0, T_q - Wp - 1 - L0), :] = (
            jnp.full((T_q - Wp - 1 - L0, LANES), NEG, jnp.float32))
        qf_ref[pl.ds(Wp + 1, L0), :] = jnp.where(mask_y, y, NEG)

        # ---- max_pool2d(3, stride 2, pad 1): contiguous horizontal 3-max, then vertical
        #      3-max fused with the stride-2 row subsample (3 strided reads instead of 9) --
        hm = jnp.maximum(jnp.maximum(qf_ref[pl.ds(0, Lh), :], qf_ref[pl.ds(1, Lh), :]),
                         qf_ref[pl.ds(2, Lh), :])
        hm_ref[pl.ds(0, Lh), :] = hm
        pooled = jnp.maximum(
            jnp.maximum(hm_ref[pl.ds(0, L1, 2), :], hm_ref[pl.ds(Wp, L1, 2), :]),
            hm_ref[pl.ds(2 * Wp, L1, 2), :])                      # (L1, 128)

        # ---- residual blocks: zero-padded staging scratch, borders re-zeroed per step ----
        rp_ref[pl.ds(0, Wp + 1), :] = jnp.zeros((Wp + 1, LANES), jnp.float32)
        rp_ref[pl.ds(Wp + 1 + L1, T_r - Wp - 1 - L1), :] = (
            jnp.zeros((T_r - Wp - 1 - L1, LANES), jnp.float32))

        def stage_relu(v):              # pad(relu(v)) -> rp scratch (masked window only)
            rp_ref[pl.ds(Wp + 1, L1), :] = jnp.where(mask_r, jnp.maximum(v, 0.0), 0.0)

        def res_block(xv, wa, ba, wb, bb):
            stage_relu(xv)
            h = conv3x3(rp_ref, L1, wa, ba)     # conv0(relu(x))
            stage_relu(h)
            h = conv3x3(rp_ref, L1, wb, bb)     # conv1(relu(.))
            return h + xv                        # residual add

        z = res_block(pooled, wa0_ref, ba0_ref, wb0_ref, bb0_ref)
        z = res_block(z, wa1_ref, ba1_ref, wb1_ref, bb1_ref)
        o_ref[...] = z                            # lane-dense (L1, 128) store

    return kernel, g


def _conv_sequence_forward_impl(x_nchw, params):
    """Pallas implementation of ConvSequence.forward. x_nchw: (N, CIN, H, W) float32."""
    N, CIN, H, W = x_nchw.shape
    C = params["w0"].shape[-1]
    kernel, g = _make_kernel(H, W, CIN, C)
    CG, NB, Wp, Ho, Wo = g["CG"], g["NB"], g["Wp"], g["Ho"], g["Wo"]
    L0, L1 = g["L0"], g["L1"]
    T_in, T_q, T_h, T_r = g["T_in"], g["T_q"], g["T_h"], g["T_r"]

    NPAD = _round_up(N, NB)
    G = NPAD // NB
    # NOTE(v7x): with N >= 2*NB the "parallel" grid gets >= 2 steps so both TensorCores run;
    # for the tiny test batch (N=2) the whole problem is one step.

    # ---- input glue: NCHW -> (G, T_in, 128) flat channels-last, batch folded onto lanes --
    x_nhwc = jnp.transpose(x_nchw, (0, 2, 3, 1)).astype(jnp.float32)          # (N,H,W,CIN)
    xp = jnp.pad(x_nhwc, ((0, NPAD - N), (1, 1), (1, 1), (0, CG - CIN)))      # pad b/sp/ch
    xf = xp.reshape(G, NB, (H + 2) * Wp, CG)
    xf = jnp.transpose(xf, (0, 2, 1, 3)).reshape(G, (H + 2) * Wp, NB * CG)
    xf = jnp.pad(xf, ((0, 0), (0, T_in - (H + 2) * Wp), (0, 0)))              # (G,T_in,128)
    # TODO(synk): for large N/H/W pull this pad/relayout glue into the kernel (DMA raw NHWC
    # and scatter into a pre-zeroed scratch) so it overlaps with compute.

    # ---- small static validity masks: one column per flat row period ----
    mq = jnp.asarray((np.arange(L0) % Wp < W).astype(np.float32).reshape(L0, 1))
    mr = jnp.asarray((np.arange(L1) % Wp < Wo).astype(np.float32).reshape(L1, 1))

    # ---- block-diagonal weights: lane layout (image, channel), weights shared per image --
    eye = jnp.eye(NB, dtype=jnp.float32)

    def big_w(w):                    # (3,3,cin,cout) HWIO -> (9*128, 128) block-diagonal
        cin, cout = w.shape[2], w.shape[3]
        small = jnp.zeros((9, CG, CG), jnp.float32).at[:, :cin, :cout].set(
            w.reshape(9, cin, cout).astype(jnp.float32))
        big = small[:, None, :, None, :] * eye[None, :, None, :, None]
        return big.reshape(9 * LANES, LANES)

    def big_b(b):                    # (cout,) -> (1, 128) tiled per image
        bb = jnp.zeros((NB, CG), jnp.float32).at[:, :b.shape[0]].set(
            b.astype(jnp.float32)[None, :])
        return bb.reshape(1, LANES)

    args = (xf, mq, mr,
            big_w(params["w0"]), big_b(params["b0"]),
            big_w(params["r0a_w"]), big_b(params["r0a_b"]),
            big_w(params["r0b_w"]), big_b(params["r0b_b"]),
            big_w(params["r1a_w"]), big_b(params["r1a_b"]),
            big_w(params["r1b_w"]), big_b(params["r1b_b"]))

    def bcast(shape):
        return pl.BlockSpec(shape, lambda gi: (0,) * len(shape))

    in_specs = [pl.BlockSpec((None, T_in, LANES), lambda gi: (gi, 0, 0)),
                bcast((L0, 1)), bcast((L1, 1))]
    for _ in range(5):
        in_specs += [bcast((9 * LANES, LANES)), bcast((1, LANES))]
    # TODO(synk): mark these grid-invariant operands single-buffered (pl.Buffered(1)) once
    # pipeline_mode support is confirmed on the deployment jax version.

    out_flat = pl.pallas_call(
        kernel,
        out_shape=jax.ShapeDtypeStruct((G, L1, LANES), jnp.float32),
        grid_spec=pltpu.PrefetchScalarGridSpec(
            num_scalar_prefetch=0,
            grid=(G,),
            in_specs=in_specs,
            out_specs=pl.BlockSpec((None, L1, LANES), lambda gi: (gi, 0, 0)),
            scratch_shapes=[pltpu.VMEM((T_q, LANES), jnp.float32),
                            pltpu.VMEM((T_h, LANES), jnp.float32),
                            pltpu.VMEM((T_r, LANES), jnp.float32)]),
        compiler_params=pltpu.CompilerParams(
            dimension_semantics=("parallel",),
            vmem_limit_bytes=32 * 1024 * 1024),
    )(*args)

    # ---- output glue: (G, L1, 128) -> (N, C, Ho, Wo) ----
    out = out_flat.reshape(G, Ho, Wp, NB, CG)[:, :, :Wo, :, :C]
    out = jnp.transpose(out, (0, 3, 4, 1, 2)).reshape(NPAD, C, Ho, Wo)
    return out[:N]


conv_sequence_forward = jax.jit(_conv_sequence_forward_impl)


def conv_sequence_reference(x, params):
    """Pure-JAX reference matching the PyTorch module (NCHW)."""
    dn = ("NCHW", "HWIO", "NCHW")

    def conv(z, w, b):
        y = lax.conv_general_dilated(z, w, (1, 1), ((1, 1), (1, 1)), dimension_numbers=dn)
        return y + b.reshape(1, -1, 1, 1)

    y = conv(x, params["w0"], params["b0"])
    y = lax.reduce_window(y, -jnp.inf, lax.max, (1, 1, 3, 3), (1, 1, 2, 2),
                          ((0, 0), (0, 0), (1, 1), (1, 1)))

    def res(z, wa, ba, wb, bb):
        h = conv(jax.nn.relu(z), wa, ba)
        h = conv(jax.nn.relu(h), wb, bb)
        return h + z

    y = res(y, params["r0a_w"], params["r0a_b"], params["r0b_w"], params["r0b_b"])
    y = res(y, params["r1a_w"], params["r1a_b"], params["r1b_w"], params["r1b_b"])
    return y


def init_params(key, cin, cout):
    """Deterministic synthetic parameters (HWIO conv weights + biases)."""
    ks = jax.random.split(key, 10)
    return {
        "w0": 0.1 * jax.random.normal(ks[0], (3, 3, cin, cout), jnp.float32),
        "b0": 0.1 * jax.random.normal(ks[1], (cout,), jnp.float32),
        "r0a_w": 0.1 * jax.random.normal(ks[2], (3, 3, cout, cout), jnp.float32),
        "r0a_b": 0.1 * jax.random.normal(ks[3], (cout,), jnp.float32),
        "r0b_w": 0.1 * jax.random.normal(ks[4], (3, 3, cout, cout), jnp.float32),
        "r0b_b": 0.1 * jax.random.normal(ks[5], (cout,), jnp.float32),
        "r1a_w": 0.1 * jax.random.normal(ks[6], (3, 3, cout, cout), jnp.float32),
        "r1a_b": 0.1 * jax.random.normal(ks[7], (cout,), jnp.float32),
        "r1b_w": 0.1 * jax.random.normal(ks[8], (3, 3, cout, cout), jnp.float32),
        "r1b_b": 0.1 * jax.random.normal(ks[9], (cout,), jnp.float32),
    }


if __name__ == "__main__":
    # ConvSequence(input_shape=(4, 16, 16), out_channels=8), batch = 2
    N, CIN, H, W = 2, 4, 16, 16
    OUT_CH = 8

    key = jax.random.PRNGKey(0)
    kx, kp = jax.random.split(key)
    x = jax.random.normal(kx, (N, CIN, H, W), jnp.float32)     # NCHW, like PyTorch
    params = init_params(kp, CIN, OUT_CH)

    out = jax.block_until_ready(conv_sequence_forward(x, params))

    expected_shape = (N, OUT_CH, (H + 1) // 2, (W + 1) // 2)   # get_output_shape()
    assert out.shape == expected_shape, (out.shape, expected_shape)

    ref = jax.block_until_ready(conv_sequence_reference(x, params))
    np.testing.assert_allclose(np.asarray(out), np.asarray(ref), rtol=2e-3, atol=2e-3)

    print("KERNEL_OK")
</pallas_src>

<mosaic_0001>
module attributes {stable_mosaic.version = 11 : i64} {
  func.func @kernel(%arg0: i32, %arg1: memref<1x328x128xf32, #tpu.memory_space<vmem>>, %arg2: memref<288x1xf32, #tpu.memory_space<vmem>>, %arg3: memref<144x1xf32, #tpu.memory_space<vmem>>, %arg4: memref<1152x128xf32, #tpu.memory_space<vmem>>, %arg5: memref<1x128xf32, #tpu.memory_space<vmem>>, %arg6: memref<1152x128xf32, #tpu.memory_space<vmem>>, %arg7: memref<1x128xf32, #tpu.memory_space<vmem>>, %arg8: memref<1152x128xf32, #tpu.memory_space<vmem>>, %arg9: memref<1x128xf32, #tpu.memory_space<vmem>>, %arg10: memref<1152x128xf32, #tpu.memory_space<vmem>>, %arg11: memref<1x128xf32, #tpu.memory_space<vmem>>, %arg12: memref<1152x128xf32, #tpu.memory_space<vmem>>, %arg13: memref<1x128xf32, #tpu.memory_space<vmem>>, %arg14: memref<1x144x128xf32, #tpu.memory_space<vmem>>, %arg15: memref<328x128xf32, #tpu.memory_space<vmem>>, %arg16: memref<328x128xf32, #tpu.memory_space<vmem>>, %arg17: memref<184x128xf32, #tpu.memory_space<vmem>>) attributes {dimension_semantics = [#tpu.dimension_semantics<parallel>], iteration_bounds = array<i64: 1>, scalar_prefetch = 0 : i64, scratch_operands = 3 : i64, tpu.core_type = #tpu.core_type<tc>, window_params = [{transform_indices = @transform_0, window_bounds = array<i64: 1, 328, 128>}, {pipeline_mode = #tpu.pipeline_mode<synchronous>, transform_indices = @transform_1, window_bounds = array<i64: 288, 1>}, {pipeline_mode = #tpu.pipeline_mode<synchronous>, transform_indices = @transform_2, window_bounds = array<i64: 144, 1>}, {pipeline_mode = #tpu.pipeline_mode<synchronous>, transform_indices = @transform_3, window_bounds = array<i64: 1152, 128>}, {pipeline_mode = #tpu.pipeline_mode<synchronous>, transform_indices = @transform_4, window_bounds = array<i64: 1, 128>}, {pipeline_mode = #tpu.pipeline_mode<synchronous>, transform_indices = @transform_5, window_bounds = array<i64: 1152, 128>}, {pipeline_mode = #tpu.pipeline_mode<synchronous>, transform_indices = @transform_6, window_bounds = array<i64: 1, 128>}, {pipeline_mode = #tpu.pipeline_mode<synchronous>, transform_indices = @transform_7, window_bounds = array<i64: 1152, 128>}, {pipeline_mode = #tpu.pipeline_mode<synchronous>, transform_indices = @transform_8, window_bounds = array<i64: 1, 128>}, {pipeline_mode = #tpu.pipeline_mode<synchronous>, transform_indices = @transform_9, window_bounds = array<i64: 1152, 128>}, {pipeline_mode = #tpu.pipeline_mode<synchronous>, transform_indices = @transform_10, window_bounds = array<i64: 1, 128>}, {pipeline_mode = #tpu.pipeline_mode<synchronous>, transform_indices = @transform_11, window_bounds = array<i64: 1152, 128>}, {pipeline_mode = #tpu.pipeline_mode<synchronous>, transform_indices = @transform_12, window_bounds = array<i64: 1, 128>}, {transform_indices = @transform_13, window_bounds = array<i64: 1, 144, 128>}]} {
    %c0 = arith.constant 0 : index
    %c0_0 = arith.constant 0 : index
    %0 = vector.load %arg2[%c0, %c0_0] : memref<288x1xf32, #tpu.memory_space<vmem>>, vector<288x1xf32>
    %cst = arith.constant 5.000000e-01 : f32
    %1 = vector.broadcast %cst : f32 to vector<288x1xf32>
    %2 = arith.cmpf ogt, %0, %1 : vector<288x1xf32>
    %c0_1 = arith.constant 0 : index
    %c0_2 = arith.constant 0 : index
    %3 = vector.load %arg3[%c0_1, %c0_2] : memref<144x1xf32, #tpu.memory_space<vmem>>, vector<144x1xf32>
    %cst_3 = arith.constant 5.000000e-01 : f32
    %4 = vector.broadcast %cst_3 : f32 to vector<144x1xf32>
    %5 = arith.cmpf ogt, %3, %4 : vector<144x1xf32>
    %c0_4 = arith.constant 0 : index
    %c0_5 = arith.constant 0 : index
    %c0_6 = arith.constant 0 : index
    %6 = vector.load %arg1[%c0_4, %c0_5, %c0_6] : memref<1x328x128xf32, #tpu.memory_space<vmem>>, vector<1x288x128xf32>
    %7 = vector.shape_cast %6 : vector<1x288x128xf32> to vector<288x128xf32>
    %c0_7 = arith.constant 0 : index
    %c1 = arith.constant 1 : index
    %c0_8 = arith.constant 0 : index
    %8 = vector.load %arg1[%c0_7, %c1, %c0_8] : memref<1x328x128xf32, #tpu.memory_space<vmem>>, vector<1x288x128xf32>
    %9 = vector.shape_cast %8 : vector<1x288x128xf32> to vector<288x128xf32>
    %c0_9 = arith.constant 0 : index
    %c2 = arith.constant 2 : index
    %c0_10 = arith.constant 0 : index
    %10 = vector.load %arg1[%c0_9, %c2, %c0_10] : memref<1x328x128xf32, #tpu.memory_space<vmem>>, vector<1x288x128xf32>
    %11 = vector.shape_cast %10 : vector<1x288x128xf32> to vector<288x128xf32>
    %c0_11 = arith.constant 0 : index
    %c18 = arith.constant 18 : index
    %c0_12 = arith.constant 0 : index
    %12 = vector.load %arg1[%c0_11, %c18, %c0_12] : memref<1x328x128xf32, #tpu.memory_space<vmem>>, vector<1x288x128xf32>
    %13 = vector.shape_cast %12 : vector<1x288x128xf32> to vector<288x128xf32>
    %c0_13 = arith.constant 0 : index
    %c19 = arith.constant 19 : index
    %c0_14 = arith.constant 0 : index
    %14 = vector.load %arg1[%c0_13, %c19, %c0_14] : memref<1x328x128xf32, #tpu.memory_space<vmem>>, vector<1x288x128xf32>
    %15 = vector.shape_cast %14 : vector<1x288x128xf32> to vector<288x128xf32>
    %c0_15 = arith.constant 0 : index
    %c20 = arith.constant 20 : index
    %c0_16 = arith.constant 0 : index
    %16 = vector.load %arg1[%c0_15, %c20, %c0_16] : memref<1x328x128xf32, #tpu.memory_space<vmem>>, vector<1x288x128xf32>
    %17 = vector.shape_cast %16 : vector<1x288x128xf32> to vector<288x128xf32>
    %c0_17 = arith.constant 0 : index
    %c36 = arith.constant 36 : index
    %c0_18 = arith.constant 0 : index
    %18 = vector.load %arg1[%c0_17, %c36, %c0_18] : memref<1x328x128xf32, #tpu.memory_space<vmem>>, vector<1x288x128xf32>
    %19 = vector.shape_cast %18 : vector<1x288x128xf32> to vector<288x128xf32>
    %c0_19 = arith.constant 0 : index
    %c37 = arith.constant 37 : index
    %c0_20 = arith.constant 0 : index
    %20 = vector.load %arg1[%c0_19, %c37, %c0_20] : memref<1x328x128xf32, #tpu.memory_space<vmem>>, vector<1x288x128xf32>
    %21 = vector.shape_cast %20 : vector<1x288x128xf32> to vector<288x128xf32>
    %c0_21 = arith.constant 0 : index
    %c38 = arith.constant 38 : index
    %c0_22 = arith.constant 0 : index
    %22 = vector.load %arg1[%c0_21, %c38, %c0_22] : memref<1x328x128xf32, #tpu.memory_space<vmem>>, vector<1x288x128xf32>
    %23 = vector.shape_cast %22 : vector<1x288x128xf32> to vector<288x128xf32>
    %24 = tpu.concatenate %7, %9, %11, %13, %15, %17, %19, %21, %23 in 1 : vector<288x128xf32>, vector<288x128xf32>, vector<288x128xf32>, vector<288x128xf32>, vector<288x128xf32>, vector<288x128xf32>, vector<288x128xf32>, vector<288x128xf32>, vector<288x128xf32> -> vector<288x1152xf32>
    %c0_23 = arith.constant 0 : index
    %c0_24 = arith.constant 0 : index
    %25 = vector.load %arg4[%c0_23, %c0_24] : memref<1152x128xf32, #tpu.memory_space<vmem>>, vector<1152x128xf32>
    %cst_25 = arith.constant dense<0.000000e+00> : vector<288x128xf32>
    %26 = tpu.matmul %24, %25, %cst_25 {dimension_numbers = #tpu.dot_dimension_numbers<[1], [0], [0], [1], [0, 0, 1, 1], [], []>} : vector<288x1152xf32>, vector<1152x128xf32>, vector<288x128xf32> -> vector<288x128xf32>
    %c0_26 = arith.constant 0 : index
    %c0_27 = arith.constant 0 : index
    %27 = vector.load %arg5[%c0_26, %c0_27] : memref<1x128xf32, #tpu.memory_space<vmem>>, vector<1x128xf32>
    %28 = vector.broadcast %27 : vector<1x128xf32> to vector<288x128xf32>
    %29 = arith.addf %26, %28 : vector<288x128xf32>
    %cst_28 = arith.constant -1.000000e+30 : f32
    %30 = vector.broadcast %cst_28 : f32 to vector<19x128xf32>
    %c0_29 = arith.constant 0 : index
    %c0_30 = arith.constant 0 : index
    %31 = vector.load %arg15[%c0_29, %c0_30] : memref<328x128xf32, #tpu.memory_space<vmem>>, vector<19x128xf32>
    tpu.vector_store %arg15[%c0_29, %c0_30], %30 {strides = array<i32>} : memref<328x128xf32, #tpu.memory_space<vmem>>, vector<19x128xf32>,
    %cst_31 = arith.constant -1.000000e+30 : f32
    %32 = vector.broadcast %cst_31 : f32 to vector<21x128xf32>
    %c307 = arith.constant 307 : index
    %c0_32 = arith.constant 0 : index
    %33 = vector.load %arg15[%c307, %c0_32] : memref<328x128xf32, #tpu.memory_space<vmem>>, vector<21x128xf32>
    tpu.vector_store %arg15[%c307, %c0_32], %32 {strides = array<i32>} : memref<328x128xf32, #tpu.memory_space<vmem>>, vector<21x128xf32>,
    %cst_33 = arith.constant -1.000000e+30 : f32
    %34 = vector.shape_cast %2 : vector<288x1xi1> to vector<288x1xi1>
    %35 = vector.broadcast %34 : vector<288x1xi1> to vector<288x128xi1>
    %36 = vector.broadcast %cst_33 : f32 to vector<288x128xf32>
    %37 = arith.select %35, %29, %36 : vector<288x128xi1>, vector<288x128xf32>
    %c19_34 = arith.constant 19 : index
    %c0_35 = arith.constant 0 : index
    %38 = vector.load %arg15[%c19_34, %c0_35] : memref<328x128xf32, #tpu.memory_space<vmem>>, vector<288x128xf32>
    tpu.vector_store %arg15[%c19_34, %c0_35], %37 {strides = array<i32>} : memref<328x128xf32, #tpu.memory_space<vmem>>, vector<288x128xf32>,
    %c0_36 = arith.constant 0 : index
    %c0_37 = arith.constant 0 : index
    %39 = vector.load %arg15[%c0_36, %c0_37] : memref<328x128xf32, #tpu.memory_space<vmem>>, vector<324x128xf32>
    %c1_38 = arith.constant 1 : index
    %c0_39 = arith.constant 0 : index
    %40 = vector.load %arg15[%c1_38, %c0_39] : memref<328x128xf32, #tpu.memory_space<vmem>>, vector<324x128xf32>
    %41 = arith.maximumf %39, %40 : vector<324x128xf32>
    %c2_40 = arith.constant 2 : index
    %c0_41 = arith.constant 0 : index
    %42 = vector.load %arg15[%c2_40, %c0_41] : memref<328x128xf32, #tpu.memory_space<vmem>>, vector<324x128xf32>
    %43 = arith.maximumf %41, %42 : vector<324x128xf32>
    %c0_42 = arith.constant 0 : index
    %c0_43 = arith.constant 0 : index
    %44 = vector.load %arg16[%c0_42, %c0_43] : memref<328x128xf32, #tpu.memory_space<vmem>>, vector<324x128xf32>
    tpu.vector_store %arg16[%c0_42, %c0_43], %43 {strides = array<i32>} : memref<328x128xf32, #tpu.memory_space<vmem>>, vector<324x128xf32>,
    %c0_44 = arith.constant 0 : index
    %c0_45 = arith.constant 0 : index
    %45 = tpu.strided_load %arg16[%c0_44, %c0_45] {strides = array<i32: 2, 1>} : memref<328x128xf32, #tpu.memory_space<vmem>>, vector<144x128xf32>
    %c18_46 = arith.constant 18 : index
    %c0_47 = arith.constant 0 : index
    %46 = tpu.strided_load %arg16[%c18_46, %c0_47] {strides = array<i32: 2, 1>} : memref<328x128xf32, #tpu.memory_space<vmem>>, vector<144x128xf32>
    %47 = arith.maximumf %45, %46 : vector<144x128xf32>
    %c36_48 = arith.constant 36 : index
    %c0_49 = arith.constant 0 : index
    %48 = tpu.strided_load %arg16[%c36_48, %c0_49] {strides = array<i32: 2, 1>} : memref<328x128xf32, #tpu.memory_space<vmem>>, vector<144x128xf32>
    %49 = arith.maximumf %47, %48 : vector<144x128xf32>
    %cst_50 = arith.constant 0.000000e+00 : f32
    %50 = vector.broadcast %cst_50 : f32 to vector<19x128xf32>
    %c0_51 = arith.constant 0 : index
    %c0_52 = arith.constant 0 : index
    %51 = vector.load %arg17[%c0_51, %c0_52] : memref<184x128xf32, #tpu.memory_space<vmem>>, vector<19x128xf32>
    tpu.vector_store %arg17[%c0_51, %c0_52], %50 {strides = array<i32>} : memref<184x128xf32, #tpu.memory_space<vmem>>, vector<19x128xf32>,
    %cst_53 = arith.constant 0.000000e+00 : f32
    %52 = vector.broadcast %cst_53 : f32 to vector<21x128xf32>
    %c163 = arith.constant 163 : index
    %c0_54 = arith.constant 0 : index
    %53 = vector.load %arg17[%c163, %c0_54] : memref<184x128xf32, #tpu.memory_space<vmem>>, vector<21x128xf32>
    tpu.vector_store %arg17[%c163, %c0_54], %52 {strides = array<i32>} : memref<184x128xf32, #tpu.memory_space<vmem>>, vector<21x128xf32>,
    %cst_55 = arith.constant 0.000000e+00 : f32
    %54 = vector.broadcast %cst_55 : f32 to vector<144x128xf32>
    %55 = arith.maximumf %49, %54 : vector<144x128xf32>
    %cst_56 = arith.constant 0.000000e+00 : f32
    %56 = vector.shape_cast %5 : vector<144x1xi1> to vector<144x1xi1>
    %57 = vector.broadcast %56 : vector<144x1xi1> to vector<144x128xi1>
    %58 = vector.broadcast %cst_56 : f32 to vector<144x128xf32>
    %59 = arith.select %57, %55, %58 : vector<144x128xi1>, vector<144x128xf32>
    %c19_57 = arith.constant 19 : index
    %c0_58 = arith.constant 0 : index
    %60 = vector.load %arg17[%c19_57, %c0_58] : memref<184x128xf32, #tpu.memory_space<vmem>>, vector<144x128xf32>
    tpu.vector_store %arg17[%c19_57, %c0_58], %59 {strides = array<i32>} : memref<184x128xf32, #tpu.memory_space<vmem>>, vector<144x128xf32>,
    %c0_59 = arith.constant 0 : index
    %c0_60 = arith.constant 0 : index
    %61 = vector.load %arg17[%c0_59, %c0_60] : memref<184x128xf32, #tpu.memory_space<vmem>>, vector<144x128xf32>
    %c1_61 = arith.constant 1 : index
    %c0_62 = arith.constant 0 : index
    %62 = vector.load %arg17[%c1_61, %c0_62] : memref<184x128xf32, #tpu.memory_space<vmem>>, vector<144x128xf32>
    %c2_63 = arith.constant 2 : index
    %c0_64 = arith.constant 0 : index
    %63 = vector.load %arg17[%c2_63, %c0_64] : memref<184x128xf32, #tpu.memory_space<vmem>>, vector<144x128xf32>
    %c18_65 = arith.constant 18 : index
    %c0_66 = arith.constant 0 : index
    %64 = vector.load %arg17[%c18_65, %c0_66] : memref<184x128xf32, #tpu.memory_space<vmem>>, vector<144x128xf32>
    %c19_67 = arith.constant 19 : index
    %c0_68 = arith.constant 0 : index
    %65 = vector.load %arg17[%c19_67, %c0_68] : memref<184x128xf32, #tpu.memory_space<vmem>>, vector<144x128xf32>
    %c20_69 = arith.constant 20 : index
    %c0_70 = arith.constant 0 : index
    %66 = vector.load %arg17[%c20_69, %c0_70] : memref<184x128xf32, #tpu.memory_space<vmem>>, vector<144x128xf32>
    %c36_71 = arith.constant 36 : index
    %c0_72 = arith.constant 0 : index
    %67 = vector.load %arg17[%c36_71, %c0_72] : memref<184x128xf32, #tpu.memory_space<vmem>>, vector<144x128xf32>
    %c37_73 = arith.constant 37 : index
    %c0_74 = arith.constant 0 : index
    %68 = vector.load %arg17[%c37_73, %c0_74] : memref<184x128xf32, #tpu.memory_space<vmem>>, vector<144x128xf32>
    %c38_75 = arith.constant 38 : index
    %c0_76 = arith.constant 0 : index
    %69 = vector.load %arg17[%c38_75, %c0_76] : memref<184x128xf32, #tpu.memory_space<vmem>>, vector<144x128xf32>
    %70 = tpu.concatenate %61, %62, %63, %64, %65, %66, %67, %68, %69 in 1 : vector<144x128xf32>, vector<144x128xf32>, vector<144x128xf32>, vector<144x128xf32>, vector<144x128xf32>, vector<144x128xf32>, vector<144x128xf32>, vector<144x128xf32>, vector<144x128xf32> -> vector<144x1152xf32>
    %c0_77 = arith.constant 0 : index
    %c0_78 = arith.constant 0 : index
    %71 = vector.load %arg6[%c0_77, %c0_78] : memref<1152x128xf32, #tpu.memory_space<vmem>>, vector<1152x128xf32>
    %cst_79 = arith.constant dense<0.000000e+00> : vector<144x128xf32>
    %72 = tpu.matmul %70, %71, %cst_79 {dimension_numbers = #tpu.dot_dimension_numbers<[1], [0], [0], [1], [0, 0, 1, 1], [], []>} : vector<144x1152xf32>, vector<1152x128xf32>, vector<144x128xf32> -> vector<144x128xf32>
    %c0_80 = arith.constant 0 : index
    %c0_81 = arith.constant 0 : index
    %73 = vector.load %arg7[%c0_80, %c0_81] : memref<1x128xf32, #tpu.memory_space<vmem>>, vector<1x128xf32>
    %74 = vector.broadcast %73 : vector<1x128xf32> to vector<144x128xf32>
    %75 = arith.addf %72, %74 : vector<144x128xf32>
    %cst_82 = arith.constant 0.000000e+00 : f32
    %76 = vector.broadcast %cst_82 : f32 to vector<144x128xf32>
    %77 = arith.maximumf %75, %76 : vector<144x128xf32>
    %cst_83 = arith.constant 0.000000e+00 : f32
    %78 = vector.shape_cast %5 : vector<144x1xi1> to vector<144x1xi1>
    %79 = vector.broadcast %78 : vector<144x1xi1> to vector<144x128xi1>
    %80 = vector.broadcast %cst_83 : f32 to vector<144x128xf32>
    %81 = arith.select %79, %77, %80 : vector<144x128xi1>, vector<144x128xf32>
    %c19_84 = arith.constant 19 : index
    %c0_85 = arith.constant 0 : index
    %82 = vector.load %arg17[%c19_84, %c0_85] : memref<184x128xf32, #tpu.memory_space<vmem>>, vector<144x128xf32>
    tpu.vector_store %arg17[%c19_84, %c0_85], %81 {strides = array<i32>} : memref<184x128xf32, #tpu.memory_space<vmem>>, vector<144x128xf32>,
    %c0_86 = arith.constant 0 : index
    %c0_87 = arith.constant 0 : index
    %83 = vector.load %arg17[%c0_86, %c0_87] : memref<184x128xf32, #tpu.memory_space<vmem>>, vector<144x128xf32>
    %c1_88 = arith.constant 1 : index
    %c0_89 = arith.constant 0 : index
    %84 = vector.load %arg17[%c1_88, %c0_89] : memref<184x128xf32, #tpu.memory_space<vmem>>, vector<144x128xf32>
    %c2_90 = arith.constant 2 : index
    %c0_91 = arith.constant 0 : index
    %85 = vector.load %arg17[%c2_90, %c0_91] : memref<184x128xf32, #tpu.memory_space<vmem>>, vector<144x128xf32>
    %c18_92 = arith.constant 18 : index
    %c0_93 = arith.constant 0 : index
    %86 = vector.load %arg17[%c18_92, %c0_93] : memref<184x128xf32, #tpu.memory_space<vmem>>, vector<144x128xf32>
    %c19_94 = arith.constant 19 : index
    %c0_95 = arith.constant 0 : index
    %87 = vector.load %arg17[%c19_94, %c0_95] : memref<184x128xf32, #tpu.memory_space<vmem>>, vector<144x128xf32>
    %c20_96 = arith.constant 20 : index
    %c0_97 = arith.constant 0 : index
    %88 = vector.load %arg17[%c20_96, %c0_97] : memref<184x128xf32, #tpu.memory_space<vmem>>, vector<144x128xf32>
    %c36_98 = arith.constant 36 : index
    %c0_99 = arith.constant 0 : index
    %89 = vector.load %arg17[%c36_98, %c0_99] : memref<184x128xf32, #tpu.memory_space<vmem>>, vector<144x128xf32>
    %c37_100 = arith.constant 37 : index
    %c0_101 = arith.constant 0 : index
    %90 = vector.load %arg17[%c37_100, %c0_101] : memref<184x128xf32, #tpu.memory_space<vmem>>, vector<144x128xf32>
    %c38_102 = arith.constant 38 : index
    %c0_103 = arith.constant 0 : index
    %91 = vector.load %arg17[%c38_102, %c0_103] : memref<184x128xf32, #tpu.memory_space<vmem>>, vector<144x128xf32>
    %92 = tpu.concatenate %83, %84, %85, %86, %87, %88, %89, %90, %91 in 1 : vector<144x128xf32>, vector<144x128xf32>, vector<144x128xf32>, vector<144x128xf32>, vector<144x128xf32>, vector<144x128xf32>, vector<144x128xf32>, vector<144x128xf32>, vector<144x128xf32> -> vector<144x1152xf32>
    %c0_104 = arith.constant 0 : index
    %c0_105 = arith.constant 0 : index
    %93 = vector.load %arg8[%c0_104, %c0_105] : memref<1152x128xf32, #tpu.memory_space<vmem>>, vector<1152x128xf32>
    %cst_106 = arith.constant dense<0.000000e+00> : vector<144x128xf32>
    %94 = tpu.matmul %92, %93, %cst_106 {dimension_numbers = #tpu.dot_dimension_numbers<[1], [0], [0], [1], [0, 0, 1, 1], [], []>} : vector<144x1152xf32>, vector<1152x128xf32>, vector<144x128xf32> -> vector<144x128xf32>
    %c0_107 = arith.constant 0 : index
    %c0_108 = arith.constant 0 : index
    %95 = vector.load %arg9[%c0_107, %c0_108] : memref<1x128xf32, #tpu.memory_space<vmem>>, vector<1x128xf32>
    %96 = vector.broadcast %95 : vector<1x128xf32> to vector<144x128xf32>
    %97 = arith.addf %94, %96 : vector<144x128xf32>
    %98 = arith.addf %97, %49 : vector<144x128xf32>
    %cst_109 = arith.constant 0.000000e+00 : f32
    %99 = vector.broadcast %cst_109 : f32 to vector<144x128xf32>
    %100 = arith.maximumf %98, %99 : vector<144x128xf32>
    %cst_110 = arith.constant 0.000000e+00 : f32
    %101 = vector.shape_cast %5 : vector<144x1xi1> to vector<144x1xi1>
    %102 = vector.broadcast %101 : vector<144x1xi1> to vector<144x128xi1>
    %103 = vector.broadcast %cst_110 : f32 to vector<144x128xf32>
    %104 = arith.select %102, %100, %103 : vector<144x128xi1>, vector<144x128xf32>
    %c19_111 = arith.constant 19 : index
    %c0_112 = arith.constant 0 : index
    %105 = vector.load %arg17[%c19_111, %c0_112] : memref<184x128xf32, #tpu.memory_space<vmem>>, vector<144x128xf32>
    tpu.vector_store %arg17[%c19_111, %c0_112], %104 {strides = array<i32>} : memref<184x128xf32, #tpu.memory_space<vmem>>, vector<144x128xf32>,
    %c0_113 = arith.constant 0 : index
    %c0_114 = arith.constant 0 : index
    %106 = vector.load %arg17[%c0_113, %c0_114] : memref<184x128xf32, #tpu.memory_space<vmem>>, vector<144x128xf32>
    %c1_115 = arith.constant 1 : index
    %c0_116 = arith.constant 0 : index
    %107 = vector.load %arg17[%c1_115, %c0_116] : memref<184x128xf32, #tpu.memory_space<vmem>>, vector<144x128xf32>
    %c2_117 = arith.constant 2 : index
    %c0_118 = arith.constant 0 : index
    %108 = vector.load %arg17[%c2_117, %c0_118] : memref<184x128xf32, #tpu.memory_space<vmem>>, vector<144x128xf32>
    %c18_119 = arith.constant 18 : index
    %c0_120 = arith.constant 0 : index
    %109 = vector.load %arg17[%c18_119, %c0_120] : memref<184x128xf32, #tpu.memory_space<vmem>>, vector<144x128xf32>
    %c19_121 = arith.constant 19 : index
    %c0_122 = arith.constant 0 : index
    %110 = vector.load %arg17[%c19_121, %c0_122] : memref<184x128xf32, #tpu.memory_space<vmem>>, vector<144x128xf32>
    %c20_123 = arith.constant 20 : index
    %c0_124 = arith.constant 0 : index
    %111 = vector.load %arg17[%c20_123, %c0_124] : memref<184x128xf32, #tpu.memory_space<vmem>>, vector<144x128xf32>
    %c36_125 = arith.constant 36 : index
    %c0_126 = arith.constant 0 : index
    %112 = vector.load %arg17[%c36_125, %c0_126] : memref<184x128xf32, #tpu.memory_space<vmem>>, vector<144x128xf32>
    %c37_127 = arith.constant 37 : index
    %c0_128 = arith.constant 0 : index
    %113 = vector.load %arg17[%c37_127, %c0_128] : memref<184x128xf32, #tpu.memory_space<vmem>>, vector<144x128xf32>
    %c38_129 = arith.constant 38 : index
    %c0_130 = arith.constant 0 : index
    %114 = vector.load %arg17[%c38_129, %c0_130] : memref<184x128xf32, #tpu.memory_space<vmem>>, vector<144x128xf32>
    %115 = tpu.concatenate %106, %107, %108, %109, %110, %111, %112, %113, %114 in 1 : vector<144x128xf32>, vector<144x128xf32>, vector<144x128xf32>, vector<144x128xf32>, vector<144x128xf32>, vector<144x128xf32>, vector<144x128xf32>, vector<144x128xf32>, vector<144x128xf32> -> vector<144x1152xf32>
    %c0_131 = arith.constant 0 : index
    %c0_132 = arith.constant 0 : index
    %116 = vector.load %arg10[%c0_131, %c0_132] : memref<1152x128xf32, #tpu.memory_space<vmem>>, vector<1152x128xf32>
    %cst_133 = arith.constant dense<0.000000e+00> : vector<144x128xf32>
    %117 = tpu.matmul %115, %116, %cst_133 {dimension_numbers = #tpu.dot_dimension_numbers<[1], [0], [0], [1], [0, 0, 1, 1], [], []>} : vector<144x1152xf32>, vector<1152x128xf32>, vector<144x128xf32> -> vector<144x128xf32>
    %c0_134 = arith.constant 0 : index
    %c0_135 = arith.constant 0 : index
    %118 = vector.load %arg11[%c0_134, %c0_135] : memref<1x128xf32, #tpu.memory_space<vmem>>, vector<1x128xf32>
    %119 = vector.broadcast %118 : vector<1x128xf32> to vector<144x128xf32>
    %120 = arith.addf %117, %119 : vector<144x128xf32>
    %cst_136 = arith.constant 0.000000e+00 : f32
    %121 = vector.broadcast %cst_136 : f32 to vector<144x128xf32>
    %122 = arith.maximumf %120, %121 : vector<144x128xf32>
    %cst_137 = arith.constant 0.000000e+00 : f32
    %123 = vector.shape_cast %5 : vector<144x1xi1> to vector<144x1xi1>
    %124 = vector.broadcast %123 : vector<144x1xi1> to vector<144x128xi1>
    %125 = vector.broadcast %cst_137 : f32 to vector<144x128xf32>
    %126 = arith.select %124, %122, %125 : vector<144x128xi1>, vector<144x128xf32>
    %c19_138 = arith.constant 19 : index
    %c0_139 = arith.constant 0 : index
    %127 = vector.load %arg17[%c19_138, %c0_139] : memref<184x128xf32, #tpu.memory_space<vmem>>, vector<144x128xf32>
    tpu.vector_store %arg17[%c19_138, %c0_139], %126 {strides = array<i32>} : memref<184x128xf32, #tpu.memory_space<vmem>>, vector<144x128xf32>,
    %c0_140 = arith.constant 0 : index
    %c0_141 = arith.constant 0 : index
    %128 = vector.load %arg17[%c0_140, %c0_141] : memref<184x128xf32, #tpu.memory_space<vmem>>, vector<144x128xf32>
    %c1_142 = arith.constant 1 : index
    %c0_143 = arith.constant 0 : index
    %129 = vector.load %arg17[%c1_142, %c0_143] : memref<184x128xf32, #tpu.memory_space<vmem>>, vector<144x128xf32>
    %c2_144 = arith.constant 2 : index
    %c0_145 = arith.constant 0 : index
    %130 = vector.load %arg17[%c2_144, %c0_145] : memref<184x128xf32, #tpu.memory_space<vmem>>, vector<144x128xf32>
    %c18_146 = arith.constant 18 : index
    %c0_147 = arith.constant 0 : index
    %131 = vector.load %arg17[%c18_146, %c0_147] : memref<184x128xf32, #tpu.memory_space<vmem>>, vector<144x128xf32>
    %c19_148 = arith.constant 19 : index
    %c0_149 = arith.constant 0 : index
    %132 = vector.load %arg17[%c19_148, %c0_149] : memref<184x128xf32, #tpu.memory_space<vmem>>, vector<144x128xf32>
    %c20_150 = arith.constant 20 : index
    %c0_151 = arith.constant 0 : index
    %133 = vector.load %arg17[%c20_150, %c0_151] : memref<184x128xf32, #tpu.memory_space<vmem>>, vector<144x128xf32>
    %c36_152 = arith.constant 36 : index
    %c0_153 = arith.constant 0 : index
    %134 = vector.load %arg17[%c36_152, %c0_153] : memref<184x128xf32, #tpu.memory_space<vmem>>, vector<144x128xf32>
    %c37_154 = arith.constant 37 : index
    %c0_155 = arith.constant 0 : index
    %135 = vector.load %arg17[%c37_154, %c0_155] : memref<184x128xf32, #tpu.memory_space<vmem>>, vector<144x128xf32>
    %c38_156 = arith.constant 38 : index
    %c0_157 = arith.constant 0 : index
    %136 = vector.load %arg17[%c38_156, %c0_157] : memref<184x128xf32, #tpu.memory_space<vmem>>, vector<144x128xf32>
    %137 = tpu.concatenate %128, %129, %130, %131, %132, %133, %134, %135, %136 in 1 : vector<144x128xf32>, vector<144x128xf32>, vector<144x128xf32>, vector<144x128xf32>, vector<144x128xf32>, vector<144x128xf32>, vector<144x128xf32>, vector<144x128xf32>, vector<144x128xf32> -> vector<144x1152xf32>
    %c0_158 = arith.constant 0 : index
    %c0_159 = arith.constant 0 : index
    %138 = vector.load %arg12[%c0_158, %c0_159] : memref<1152x128xf32, #tpu.memory_space<vmem>>, vector<1152x128xf32>
    %cst_160 = arith.constant dense<0.000000e+00> : vector<144x128xf32>
    %139 = tpu.matmul %137, %138, %cst_160 {dimension_numbers = #tpu.dot_dimension_numbers<[1], [0], [0], [1], [0, 0, 1, 1], [], []>} : vector<144x1152xf32>, vector<1152x128xf32>, vector<144x128xf32> -> vector<144x128xf32>
    %c0_161 = arith.constant 0 : index
    %c0_162 = arith.constant 0 : index
    %140 = vector.load %arg13[%c0_161, %c0_162] : memref<1x128xf32, #tpu.memory_space<vmem>>, vector<1x128xf32>
    %141 = vector.broadcast %140 : vector<1x128xf32> to vector<144x128xf32>
    %142 = arith.addf %139, %141 : vector<144x128xf32>
    %143 = arith.addf %142, %98 : vector<144x128xf32>
    %c0_163 = arith.constant 0 : index
    %c0_164 = arith.constant 0 : index
    %c0_165 = arith.constant 0 : index
    %144 = vector.load %arg14[%c0_163, %c0_164, %c0_165] : memref<1x144x128xf32, #tpu.memory_space<vmem>>, vector<1x144x128xf32>
    %145 = vector.shape_cast %144 : vector<1x144x128xf32> to vector<144x128xf32>
    %146 = vector.shape_cast %143 : vector<144x128xf32> to vector<1x144x128xf32>
    tpu.vector_store %arg14[%c0_163, %c0_164, %c0_165], %146 {strides = array<i32>} : memref<1x144x128xf32, #tpu.memory_space<vmem>>, vector<1x144x128xf32>,
    return
  }
  func.func @transform_0(%arg0: i32) -> (i32, i32, i32) {
    %c0_i32 = arith.constant 0 : i32
    %c0_i32_0 = arith.constant 0 : i32
    %c0_i32_1 = arith.constant 0 : i32
    return %arg0, %c0_i32, %c0_i32_0 : i32, i32, i32
  }
  func.func @transform_1(%arg0: i32) -> (i32, i32) {
    %c0_i32 = arith.constant 0 : i32
    %c0_i32_0 = arith.constant 0 : i32
    %c0_i32_1 = arith.constant 0 : i32
    return %c0_i32, %c0_i32_0 : i32, i32
  }
  func.func @transform_2(%arg0: i32) -> (i32, i32) {
    %c0_i32 = arith.constant 0 : i32
    %c0_i32_0 = arith.constant 0 : i32
    %c0_i32_1 = arith.constant 0 : i32
    return %c0_i32, %c0_i32_0 : i32, i32
  }
  func.func @transform_3(%arg0: i32) -> (i32, i32) {
    %c0_i32 = arith.constant 0 : i32
    %c0_i32_0 = arith.constant 0 : i32
    %c0_i32_1 = arith.constant 0 : i32
    return %c0_i32, %c0_i32_0 : i32, i32
  }
  func.func @transform_4(%arg0: i32) -> (i32, i32) {
    %c0_i32 = arith.constant 0 : i32
    %c0_i32_0 = arith.constant 0 : i32
    %c0_i32_1 = arith.constant 0 : i32
    return %c0_i32, %c0_i32_0 : i32, i32
  }
  func.func @transform_5(%arg0: i32) -> (i32, i32) {
    %c0_i32 = arith.constant 0 : i32
    %c0_i32_0 = arith.constant 0 : i32
    %c0_i32_1 = arith.constant 0 : i32
    return %c0_i32, %c0_i32_0 : i32, i32
  }
  func.func @transform_6(%arg0: i32) -> (i32, i32) {
    %c0_i32 = arith.constant 0 : i32
    %c0_i32_0 = arith.constant 0 : i32
    %c0_i32_1 = arith.constant 0 : i32
    return %c0_i32, %c0_i32_0 : i32, i32
  }
  func.func @transform_7(%arg0: i32) -> (i32, i32) {
    %c0_i32 = arith.constant 0 : i32
    %c0_i32_0 = arith.constant 0 : i32
    %c0_i32_1 = arith.constant 0 : i32
    return %c0_i32, %c0_i32_0 : i32, i32
  }
  func.func @transform_8(%arg0: i32) -> (i32, i32) {
    %c0_i32 = arith.constant 0 : i32
    %c0_i32_0 = arith.constant 0 : i32
    %c0_i32_1 = arith.constant 0 : i32
    return %c0_i32, %c0_i32_0 : i32, i32
  }
  func.func @transform_9(%arg0: i32) -> (i32, i32) {
    %c0_i32 = arith.constant 0 : i32
    %c0_i32_0 = arith.constant 0 : i32
    %c0_i32_1 = arith.constant 0 : i32
    return %c0_i32, %c0_i32_0 : i32, i32
  }
  func.func @transform_10(%arg0: i32) -> (i32, i32) {
    %c0_i32 = arith.constant 0 : i32
    %c0_i32_0 = arith.constant 0 : i32
    %c0_i32_1 = arith.constant 0 : i32
    return %c0_i32, %c0_i32_0 : i32, i32
  }
  func.func @transform_11(%arg0: i32) -> (i32, i32) {
    %c0_i32 = arith.constant 0 : i32
    %c0_i32_0 = arith.constant 0 : i32
    %c0_i32_1 = arith.constant 0 : i32
    return %c0_i32, %c0_i32_0 : i32, i32
  }
  func.func @transform_12(%arg0: i32) -> (i32, i32) {
    %c0_i32 = arith.constant 0 : i32
    %c0_i32_0 = arith.constant 0 : i32
    %c0_i32_1 = arith.constant 0 : i32
    return %c0_i32, %c0_i32_0 : i32, i32
  }
  func.func @transform_13(%arg0: i32) -> (i32, i32, i32) {
    %c0_i32 = arith.constant 0 : i32
    %c0_i32_0 = arith.constant 0 : i32
    %c0_i32_1 = arith.constant 0 : i32
    return %arg0, %c0_i32, %c0_i32_0 : i32, i32, i32
  }
}

</mosaic_0001>

<bundles_post_ra>
// kernel: _conv_sequence_forward_impl.1
= control target key start
LH: loop header
LB: loop body
LE: loop exit
PB: predicated region body
PF: predicated region fallthrough
CT: control target
= control target key end

     0   :  { %v7658_v0 = vmov 0.0   ;;  %s13640_s3 = inlined_call_operand.vmem [shape: f32[1152,128], index: 3, kind: input, shape index: {}]   ;;  %s13641_s0 = inlined_call_operand.vmem [shape: f32[1,328,128], index: 0, kind: input, shape index: {}]   ;;  %s13642_s1 = inlined_call_operand.vmem [shape: f32[288,1], index: 1, kind: input, shape index: {}]   ;;  %s13643_s2 = inlined_call_operand.vmem [shape: f32[144,1], index: 2, kind: input, shape index: {}]   ;;  %s13644_s4 = inlined_call_operand.vmem [shape: f32[1,128], index: 4, kind: input, shape index: {}]   ;;  %s13645_s5 = inlined_call_operand.vmem [shape: f32[1152,128], index: 5, kind: input, shape index: {}]   ;;  %s13646_s7 = inlined_call_operand.vmem [shape: f32[1152,128], index: 7, kind: input, shape index: {}]   ;;  %s13647_s6 = inlined_call_operand.vmem [shape: f32[1,128], index: 6, kind: input, shape index: {}]   ;;  %s13648_s9 = inlined_call_operand.vmem [shape: f32[1152,128], index: 9, kind: input, shape index: {}]   ;;  %s13649_s8 = inlined_call_operand.vmem [shape: f32[1,128], index: 8, kind: input, shape index: {}]   ;;  %s13650_s11 = inlined_call_operand.vmem [shape: f32[1152,128], index: 11, kind: input, shape index: {}]   ;;  %s13651_s10 = inlined_call_operand.vmem [shape: f32[1,128], index: 10, kind: input, shape index: {}]   ;;  %s13652_s12 = inlined_call_operand.vmem [shape: f32[1,128], index: 12, kind: input, shape index: {}]   ;;  %s13653_s13 = inlined_call_operand.vmem [shape: f32[1,144,128], index: 13, kind: output, shape index: {}]  }
   0x1   :  { %559 = vmatprep.subr.mxu0 %v7658_v0  ;;  %2431 = vst [vmem:[#allocation4] sm:$0xff] %v7658_v0  ;;  %2432 = vst [vmem:[#allocation4 + $0x8] sm:$0xff] %v7658_v0  ;;  %v423_v1 = vld [vmem:[%s13640_s3 + $0x78] sm:$0xff]  ;;  %804 = vmatprep.subr.mxu1 %v7658_v0  ;;  %v422_v2 = vld [vmem:[%s13640_s3 + $0x70] sm:$0xff] }
   0x2   :  { %2433 = vst [vmem:[#allocation4 + $0x10] sm:$0x7] %v7658_v0  ;;  %2434 = vst [vmem:[#allocation4 + $0xa3] sm:$0xff] %v7658_v0  ;;  %v455_v3 = vld [vmem:[%s13640_s3 + $0x178] sm:$0xff]  ;;  %560 = vmatpush1.msra.mxu0 %v423_v1  ;;  %v454_v4 = vld [vmem:[%s13640_s3 + $0x170] sm:$0xff] }
   0x3   :  { %2435 = vst [vmem:[#allocation4 + $0xab] sm:$0xff] %v7658_v0  ;;  %2436 = vst [vmem:[#allocation4 + $0xb3] sm:$0x1f] %v7658_v0  ;;  %805 = vmatpush1.msra.mxu1 %v455_v3  ;;  %561 = vmatprep.subr.mxu0 %v7658_v0  ;;  %v421_v5 = vld [vmem:[%s13640_s3 + $0x68] sm:$0xff]  ;;  %v420_v7 = vld [vmem:[%s13640_s3 + $0x60] sm:$0xff] }
   0x4   :  { %806 = vmatprep.subr.mxu1 %v7658_v0  ;;  %v453_v6 = vld [vmem:[%s13640_s3 + $0x168] sm:$0xff]  ;;  %562 = vmatpush1.msra.mxu0 %v422_v2  ;;  %v452_v8 = vld [vmem:[%s13640_s3 + $0x160] sm:$0xff]  ;;  %v419_v9 = vld [vmem:[%s13640_s3 + $0x58] sm:$0xff] }
   0x5   :  { %807 = vmatpush1.msra.mxu1 %v454_v4  ;;  %563 = vmatprep.subr.mxu0 %v7658_v0  ;;  %v451_v10 = vld [vmem:[%s13640_s3 + $0x158] sm:$0xff]  ;;  %v418_v11 = vld [vmem:[%s13640_s3 + $0x50] sm:$0xff]  ;;  %v417_v13 = vld [vmem:[%s13640_s3 + $0x48] sm:$0xff] }
   0x6   :  { %808 = vmatprep.subr.mxu1 %v7658_v0  ;;  %564 = vmatpush1.msra.mxu0 %v421_v5  ;;  %v450_v12 = vld [vmem:[%s13640_s3 + $0x150] sm:$0xff]  ;;  %v449_v14 = vld [vmem:[%s13640_s3 + $0x148] sm:$0xff]  ;;  %v416_v15 = vld [vmem:[%s13640_s3 + $0x40] sm:$0xff] }
   0x7   :  { %809 = vmatpush1.msra.mxu1 %v453_v6  ;;  %565 = vmatprep.subr.mxu0 %v7658_v0  ;;  %v448_v16 = vld [vmem:[%s13640_s3 + $0x140] sm:$0xff]  ;;  %v415_v17 = vld [vmem:[%s13640_s3 + $0x38] sm:$0xff]  ;;  %v414_v19 = vld [vmem:[%s13640_s3 + $0x30] sm:$0xff] }
   0x8   :  { %810 = vmatprep.subr.mxu1 %v7658_v0  ;;  %566 = vmatpush1.msra.mxu0 %v420_v7  ;;  %v447_v18 = vld [vmem:[%s13640_s3 + $0x138] sm:$0xff]  ;;  %v446_v20 = vld [vmem:[%s13640_s3 + $0x130] sm:$0xff]  ;;  %v413_v21 = vld [vmem:[%s13640_s3 + $0x28] sm:$0xff] }
   0x9   :  { %811 = vmatpush1.msra.mxu1 %v452_v8  ;;  %567 = vmatprep.subr.mxu0 %v7658_v0  ;;  %v445_v22 = vld [vmem:[%s13640_s3 + $0x128] sm:$0xff]  ;;  %v412_v23 = vld [vmem:[%s13640_s3 + $0x20] sm:$0xff]  ;;  %v411_v25 = vld [vmem:[%s13640_s3 + $0x18] sm:$0xff] }
   0xa   :  { %812 = vmatprep.subr.mxu1 %v7658_v0  ;;  %568 = vmatpush1.msra.mxu0 %v419_v9  ;;  %v444_v24 = vld [vmem:[%s13640_s3 + $0x120] sm:$0xff]  ;;  %v443_v26 = vld [vmem:[%s13640_s3 + $0x118] sm:$0xff]  ;;  %v410_v27 = vld [vmem:[%s13640_s3 + $0x10] sm:$0xff] }
   0xb   :  { %813 = vmatpush1.msra.mxu1 %v451_v10  ;;  %569 = vmatprep.subr.mxu0 %v7658_v0  ;;  %v442_v28 = vld [vmem:[%s13640_s3 + $0x110] sm:$0xff]  ;;  %v409_v29 = vld [vmem:[%s13640_s3 + $0x8] sm:$0xff]  ;;  %v408_v31 = vld [vmem:[%s13640_s3] sm:$0xff] }
   0xc   :  { %814 = vmatprep.subr.mxu1 %v7658_v0  ;;  %570 = vmatpush1.msra.mxu0 %v418_v11  ;;  %v441_v30 = vld [vmem:[%s13640_s3 + $0x108] sm:$0xff]  ;;  %v440_v32 = vld [vmem:[%s13640_s3 + $0x100] sm:$0xff]  ;;  %v439_v33 = vld [vmem:[%s13640_s3 + $0xf8] sm:$0xff] }
   0xd   :  { %815 = vmatpush1.msra.mxu1 %v450_v12  ;;  %571 = vmatprep.subr.mxu0 %v7658_v0  ;;  %v471_v34 = vld [vmem:[%s13640_s3 + $0x1f8] sm:$0xff]  ;;  %v438_v35 = vld [vmem:[%s13640_s3 + $0xf0] sm:$0xff]  ;;  %v437_v37 = vld [vmem:[%s13640_s3 + $0xe8] sm:$0xff] }
   0xe   :  { %816 = vmatprep.subr.mxu1 %v7658_v0  ;;  %572 = vmatpush1.msra.mxu0 %v417_v13  ;;  %v470_v36 = vld [vmem:[%s13640_s3 + $0x1f0] sm:$0xff]  ;;  %v469_v38 = vld [vmem:[%s13640_s3 + $0x1e8] sm:$0xff]  ;;  %v436_v39 = vld [vmem:[%s13640_s3 + $0xe0] sm:$0xff] }
   0xf   :  { %817 = vmatpush1.msra.mxu1 %v449_v14  ;;  %573 = vmatprep.subr.mxu0 %v7658_v0  ;;  %v468_v40 = vld [vmem:[%s13640_s3 + $0x1e0] sm:$0xff]  ;;  %v435_v41 = vld [vmem:[%s13640_s3 + $0xd8] sm:$0xff]  ;;  %v434_v43 = vld [vmem:[%s13640_s3 + $0xd0] sm:$0xff] }
  0x10   :  { %818 = vmatprep.subr.mxu1 %v7658_v0  ;;  %574 = vmatpush1.msra.mxu0 %v416_v15  ;;  %v467_v42 = vld [vmem:[%s13640_s3 + $0x1d8] sm:$0xff]  ;;  %v466_v44 = vld [vmem:[%s13640_s3 + $0x1d0] sm:$0xff]  ;;  %v433_v45 = vld [vmem:[%s13640_s3 + $0xc8] sm:$0xff] }
  0x11   :  { %819 = vmatpush1.msra.mxu1 %v448_v16  ;;  %575 = vmatprep.subr.mxu0 %v7658_v0  ;;  %v465_v46 = vld [vmem:[%s13640_s3 + $0x1c8] sm:$0xff]  ;;  %v432_v47 = vld [vmem:[%s13640_s3 + $0xc0] sm:$0xff]  ;;  %v431_v49 = vld [vmem:[%s13640_s3 + $0xb8] sm:$0xff] }
  0x12   :  { %820 = vmatprep.subr.mxu1 %v7658_v0  ;;  %576 = vmatpush1.msra.mxu0 %v415_v17  ;;  %v464_v48 = vld [vmem:[%s13640_s3 + $0x1c0] sm:$0xff]  ;;  %v463_v50 = vld [vmem:[%s13640_s3 + $0x1b8] sm:$0xff]  ;;  %v430_v51 = vld [vmem:[%s13640_s3 + $0xb0] sm:$0xff] }
  0x13   :  { %821 = vmatpush1.msra.mxu1 %v447_v18  ;;  %577 = vmatprep.subr.mxu0 %v7658_v0  ;;  %v462_v52 = vld [vmem:[%s13640_s3 + $0x1b0] sm:$0xff]  ;;  %v429_v53 = vld [vmem:[%s13640_s3 + $0xa8] sm:$0xff]  ;;  %v428_v55 = vld [vmem:[%s13640_s3 + $0xa0] sm:$0xff] }
  0x14   :  { %822 = vmatprep.subr.mxu1 %v7658_v0  ;;  %578 = vmatpush1.msra.mxu0 %v414_v19  ;;  %v461_v54 = vld [vmem:[%s13640_s3 + $0x1a8] sm:$0xff]  ;;  %v460_v56 = vld [vmem:[%s13640_s3 + $0x1a0] sm:$0xff]  ;;  %v427_v57 = vld [vmem:[%s13640_s3 + $0x98] sm:$0xff] }
  0x15   :  { %823 = vmatpush1.msra.mxu1 %v446_v20  ;;  %579 = vmatprep.subr.mxu0 %v7658_v0  ;;  %v459_v58 = vld [vmem:[%s13640_s3 + $0x198] sm:$0xff]  ;;  %v426_v59 = vld [vmem:[%s13640_s3 + $0x90] sm:$0xff]  ;;  %v425_v61 = vld [vmem:[%s13640_s3 + $0x88] sm:$0xff] }
  0x16   :  { %824 = vmatprep.subr.mxu1 %v7658_v0  ;;  %580 = vmatpush1.msra.mxu0 %v413_v21  ;;  %v458_v60 = vld [vmem:[%s13640_s3 + $0x190] sm:$0xff]  ;;  %v188_v62 = vld [vmem:[%s13641_s0 + $0x1] sm:$0xff]  ;;  %v487_v5 = vld [vmem:[%s13640_s3 + $0x278] sm:$0xff] }
  0x17   :  { %825 = vmatpush1.msra.mxu1 %v445_v22  ;;  %581 = vmatprep.subr.mxu0 %v7658_v0  ;;  %v457_v63 = vld [vmem:[%s13640_s3 + $0x188] sm:$0xff]  ;;  %v424_v1 = vld [vmem:[%s13640_s3 + $0x80] sm:$0xff]  ;;  %v226_v4 = vld [vmem:[%s13641_s0 + $0x12] sm:$0xff] }
  0x18   :  { %826 = vmatprep.subr.mxu1 %v7658_v0  ;;  %582 = vmatpush1.msra.mxu0 %v412_v23  ;;  %v152_v2 = vld [vmem:[%s13641_s0] sm:$0xff]  ;;  %v189_v7 = vld [vmem:[%s13641_s0 + $0x9] sm:$0xff]  ;;  %v190_v11 = vld [vmem:[%s13641_s0 + $0x11] sm:$0xff] }
  0x19   :  { %827 = vmatpush1.msra.mxu1 %v444_v24  ;;  %583 = vmatprep.subr.mxu0 %v7658_v0  ;;  %v456_v3 = vld [vmem:[%s13640_s3 + $0x180] sm:$0xff]  ;;  %v153_v9 = vld [vmem:[%s13641_s0 + $0x8] sm:$0xff]  ;;  %v486_v10 = vld [vmem:[%s13640_s3 + $0x270] sm:$0xff] }
  0x1a   :  { %828 = vmatprep.subr.mxu1 %v7658_v0  ;;  %584 = vmatpush1.msra.mxu0 %v411_v25  ;;  %v224_v6 = vld [vmem:[%s13641_s0 + $0x2] sm:$0xff]  ;;  %v227_v8 = vld [vmem:[%s13641_s0 + $0x1a] sm:$0xff]  ;;  %v225_v12 = vld [vmem:[%s13641_s0 + $0xa] sm:$0xff] }
  0x1b   :  { %829 = vmatpush1.msra.mxu1 %v443_v26  ;;  %585 = vmatprep.subr.mxu0 %v7658_v0  ;;  %v228_v13 = vld [vmem:[%s13641_s0 + $0x22] sm:$0xff]  ;;  %v154_v15 = vld [vmem:[%s13641_s0 + $0x10] sm:$0xff]  ;;  %v191_v16 = vld [vmem:[%s13641_s0 + $0x19] sm:$0xff] }
  0x1c   :  { %830 = vmatprep.subr.mxu1 %v7658_v0  ;;  %586 = vmatpush1.msra.mxu0 %v410_v27  ;;  %v485_v14 = vld [vmem:[%s13640_s3 + $0x268] sm:$0xff]  ;;  %v484_v17 = vld [vmem:[%s13640_s3 + $0x260] sm:$0xff]  ;;  %v483_v19 = vld [vmem:[%s13640_s3 + $0x258] sm:$0xff] }
  0x1d   :  { %831 = vmatpush1.msra.mxu1 %v442_v28  ;;  %587 = vmatprep.subr.mxu0 %v7658_v0  ;;  %v229_v18 = vld [vmem:[%s13641_s0 + $0x2a] sm:$0xff]  ;;  %v155_v20 = vld [vmem:[%s13641_s0 + $0x18] sm:$0xff]  ;;  %v192_v21 = vld [vmem:[%s13641_s0 + $0x21] sm:$0xff] }
  0x1e   :  { %832 = vmatprep.subr.mxu1 %v7658_v0  ;;  %588 = vmatpush1.msra.mxu0 %v409_v29  ;;  %v482_v22 = vld [vmem:[%s13640_s3 + $0x250] sm:$0xff]  ;;  %v481_v24 = vld [vmem:[%s13640_s3 + $0x248] sm:$0xff]  ;;  %v156_v25 = vld [vmem:[%s13641_s0 + $0x20] sm:$0xff] }
  0x1f   :  { %833 = vmatpush1.msra.mxu1 %v441_v30  ;;  %589 = vmatprep.subr.mxu0 %v7658_v0  ;;  %v230_v23 = vld [vmem:[%s13641_s0 + $0x32] sm:$0xff]  ;;  %v193_v26 = vld [vmem:[%s13641_s0 + $0x29] sm:$0xff]  ;;  %v480_v27 = vld [vmem:[%s13640_s3 + $0x240] sm:$0xff] }
  0x20   :  { %834 = vmatprep.subr.mxu1 %v7658_v0  ;;  %590 = vmatpush1.msra.mxu0 %v408_v31  ;;  %v231_v28 = vld [vmem:[%s13641_s0 + $0x3a] sm:$0xff]  ;;  %v157_v30 = vld [vmem:[%s13641_s0 + $0x28] sm:$0xff]  ;;  %v194_v31 = vld [vmem:[%s13641_s0 + $0x31] sm:$0xff] }
  0x21   :  { %835 = vmatpush1.msra.mxu1 %v440_v32  ;;  %591 = vmatprep.subr.mxu0 %v7658_v0  ;;  %v479_v29 = vld [vmem:[%s13640_s3 + $0x238] sm:$0xff]  ;;  %v478_v32 = vld [vmem:[%s13640_s3 + $0x230] sm:$0xff] }
  0x22   :  { %836 = vmatprep.subr.mxu1 %v7658_v0  ;;  %592 = vmatpush2.msra.mxu0 %v439_v33  ;;  %v232_v33 = vld [vmem:[%s13641_s0 + $0x42] sm:$0xff] }
  0x23   :  { %837 = vmatpush2.msra.mxu1 %v471_v34  ;;  %593 = vmatprep.subr.mxu0 %v7658_v0  ;;  %v477_v34 = vld [vmem:[%s13640_s3 + $0x228] sm:$0xff] }
  0x24   :  { %838 = vmatprep.subr.mxu1 %v7658_v0  ;;  %594 = vmatpush2.msra.mxu0 %v438_v35  ;;  %v158_v35 = vld [vmem:[%s13641_s0 + $0x30] sm:$0xff] }
  0x25   :  { %839 = vmatpush2.msra.mxu1 %v470_v36  ;;  %595 = vmatprep.subr.mxu0 %v7658_v0  ;;  %v195_v36 = vld [vmem:[%s13641_s0 + $0x39] sm:$0xff] }
  0x26   :  { %840 = vmatprep.subr.mxu1 %v7658_v0  ;;  %596 = vmatpush2.msra.mxu0 %v437_v37  ;;  %v476_v37 = vld [vmem:[%s13640_s3 + $0x220] sm:$0xff] }
  0x27   :  { %841 = vmatpush2.msra.mxu1 %v469_v38  ;;  %597 = vmatprep.subr.mxu0 %v7658_v0  ;;  %v233_v38 = vld [vmem:[%s13641_s0 + $0x4a] sm:$0xff] }
  0x28   :  { %842 = vmatprep.subr.mxu1 %v7658_v0  ;;  %598 = vmatpush2.msra.mxu0 %v436_v39  ;;  %v475_v39 = vld [vmem:[%s13640_s3 + $0x218] sm:$0xff] }
  0x29   :  { %843 = vmatpush2.msra.mxu1 %v468_v40  ;;  %599 = vmatprep.subr.mxu0 %v7658_v0  ;;  %v159_v40 = vld [vmem:[%s13641_s0 + $0x38] sm:$0xff] }
  0x2a   :  { %844 = vmatprep.subr.mxu1 %v7658_v0  ;;  %600 = vmatpush2.msra.mxu0 %v435_v41  ;;  %v196_v41 = vld [vmem:[%s13641_s0 + $0x41] sm:$0xff] }
  0x2b   :  { %845 = vmatpush2.msra.mxu1 %v467_v42  ;;  %601 = vmatprep.subr.mxu0 %v7658_v0  ;;  %v474_v42 = vld [vmem:[%s13640_s3 + $0x210] sm:$0xff] }
  0x2c   :  { %846 = vmatprep.subr.mxu1 %v7658_v0  ;;  %602 = vmatpush2.msra.mxu0 %v434_v43  ;;  %v234_v43 = vld [vmem:[%s13641_s0 + $0x52] sm:$0xff] }
  0x2d   :  { %847 = vmatpush2.msra.mxu1 %v466_v44  ;;  %603 = vmatprep.subr.mxu0 %v7658_v0  ;;  %v473_v44 = vld [vmem:[%s13640_s3 + $0x208] sm:$0xff] }
  0x2e   :  { %848 = vmatprep.subr.mxu1 %v7658_v0  ;;  %604 = vmatpush2.msra.mxu0 %v433_v45  ;;  %v160_v45 = vld [vmem:[%s13641_s0 + $0x40] sm:$0xff] }
  0x2f   :  { %849 = vmatpush2.msra.mxu1 %v465_v46  ;;  %605 = vmatprep.subr.mxu0 %v7658_v0  ;;  %v197_v46 = vld [vmem:[%s13641_s0 + $0x49] sm:$0xff] }
  0x30   :  { %850 = vmatprep.subr.mxu1 %v7658_v0  ;;  %606 = vmatpush2.msra.mxu0 %v432_v47  ;;  %v472_v47 = vld [vmem:[%s13640_s3 + $0x200] sm:$0xff] }
  0x31   :  { %851 = vmatpush2.msra.mxu1 %v464_v48  ;;  %607 = vmatprep.subr.mxu0 %v7658_v0  ;;  %v235_v48 = vld [vmem:[%s13641_s0 + $0x5a] sm:$0xff] }
  0x32   :  { %852 = vmatprep.subr.mxu1 %v7658_v0  ;;  %608 = vmatpush2.msra.mxu0 %v431_v49  ;;  %v503_v49 = vld [vmem:[%s13640_s3 + $0x2f8] sm:$0xff] }
  0x33   :  { %853 = vmatpush2.msra.mxu1 %v463_v50  ;;  %609 = vmatprep.subr.mxu0 %v7658_v0  ;;  %v161_v50 = vld [vmem:[%s13641_s0 + $0x48] sm:$0xff] }
  0x34   :  { %854 = vmatprep.subr.mxu1 %v7658_v0  ;;  %610 = vmatpush2.msra.mxu0 %v430_v51  ;;  %v198_v51 = vld [vmem:[%s13641_s0 + $0x51] sm:$0xff] }
  0x35   :  { %855 = vmatpush2.msra.mxu1 %v462_v52  ;;  %611 = vmatprep.subr.mxu0 %v7658_v0  ;;  %v502_v52 = vld [vmem:[%s13640_s3 + $0x2f0] sm:$0xff] }
  0x36   :  { %856 = vmatprep.subr.mxu1 %v7658_v0  ;;  %612 = vmatpush2.msra.mxu0 %v429_v53  ;;  %v236_v53 = vld [vmem:[%s13641_s0 + $0x62] sm:$0xff] }
  0x37   :  { %857 = vmatpush2.msra.mxu1 %v461_v54  ;;  %613 = vmatprep.subr.mxu0 %v7658_v0  ;;  %v519_v54 = vld [vmem:[%s13640_s3 + $0x378] sm:$0xff] }
  0x38   :  { %858 = vmatprep.subr.mxu1 %v7658_v0  ;;  %614 = vmatpush2.msra.mxu0 %v428_v55  ;;  %v162_v55 = vld [vmem:[%s13641_s0 + $0x50] sm:$0xff] }
  0x39   :  { %859 = vmatpush2.msra.mxu1 %v460_v56  ;;  %615 = vmatprep.subr.mxu0 %v7658_v0  ;;  %v199_v56 = vld [vmem:[%s13641_s0 + $0x59] sm:$0xff] }
  0x3a   :  { %860 = vmatprep.subr.mxu1 %v7658_v0  ;;  %616 = vmatpush2.msra.mxu0 %v427_v57  ;;  %v501_v57 = vld [vmem:[%s13640_s3 + $0x2e8] sm:$0xff] }
  0x3b   :  { %861 = vmatpush2.msra.mxu1 %v459_v58  ;;  %617 = vmatprep.subr.mxu0 %v7658_v0  ;;  %v237_v58 = vld [vmem:[%s13641_s0 + $0x6a] sm:$0xff] }
  0x3c   :  { %862 = vmatprep.subr.mxu1 %v7658_v0  ;;  %618 = vmatpush2.msra.mxu0 %v426_v59  ;;  %v518_v59 = vld [vmem:[%s13640_s3 + $0x370] sm:$0xff] }
  0x3d   :  { %863 = vmatpush2.msra.mxu1 %v458_v60  ;;  %619 = vmatprep.subr.mxu0 %v7658_v0  ;;  %v163_v60 = vld [vmem:[%s13641_s0 + $0x58] sm:$0xff] }
  0x3e   :  { %864 = vmatprep.subr.mxu1 %v7658_v0  ;;  %620 = vmatpush2.msra.mxu0 %v425_v61  ;;  %v200_v61 = vld [vmem:[%s13641_s0 + $0x61] sm:$0xff] }
  0x3f   :  { %623 = vmatprep.mubr.f32.mxu0 %v188_v62  ;;  %621 = vmatprep.subr.mxu0 %v7658_v0  ;;  %v500_v62 = vld [vmem:[%s13640_s3 + $0x2e0] sm:$0xff] }
  0x40   :  { %865 = vmatpush2.msra.mxu1 %v457_v63  ;;  %622 = vmatpush2.msra.mxu0 %v424_v1  ;;  %v238_v63 = vld [vmem:[%s13641_s0 + $0x72] sm:$0xff]  ;;  %v517_v1 = vld [vmem:[%s13640_s3 + $0x368] sm:$0xff] }
  0x41   :  { %866 = vmatprep.subr.mxu1 %v7658_v0  ;;  %624 = vmatmul.mubr.f32.vlgmr.msra.gmra.mxu0 %v152_v2  ;;  %v164_v2 = vld [vmem:[%s13641_s0 + $0x60] sm:$0xff] }
  0x42   :  { %1049 = vmatprep.subr.mxu0 %v7658_v0  ;;  %867 = vmatpush2.msra.mxu1 %v456_v3  ;;  %v201_v3 = vld [vmem:[%s13641_s0 + $0x69] sm:$0xff] }
  0x43   :  { %868 = vmatprep.mubr.f32.mxu1 %v226_v4  ;;  %1050 = vmatpush1.msra.mxu0 %v487_v5  ;;  %v239_v5 = vld [vmem:[%s13641_s0 + $0x7a] sm:$0xff] }
  0x44   :  { %869 = vmatmul.mubr.f32.vlgmr.msra.gmra.mxu1 %v224_v6  ;;  %628 = vmatprep.mubr.f32.mxu0 %v189_v7  ;;  %v165_v6 = vld [vmem:[%s13641_s0 + $0x68] sm:$0xff]  ;;  %v515_v7 = vld [vmem:[%s13640_s3 + $0x358] sm:$0xff] }
  0x45   :  { %873 = vmatprep.mubr.f32.mxu1 %v227_v8  ;;  %629 = vmatmul.mubr.f32.gmra.mxu0 %v153_v9  ;;  %v499_v9 = vld [vmem:[%s13640_s3 + $0x2d8] sm:$0xff] }
  0x46   :  { %1051 = vmatprep.subr.mxu0 %v7658_v0  ;;  %633 = vmatprep.mubr.f32.mxu0 %v190_v11  ;;  %v514_v11 = vld [vmem:[%s13640_s3 + $0x350] sm:$0xff] }
  0x47   :  { %1052 = vmatpush1.msra.mxu0 %v486_v10  ;;  %1294 = vmatprep.subr.mxu1 %v7658_v0  ;;  %v240_v10 = vld [vmem:[%s13641_s0 + $0x82] sm:$0xff] }
  0x48   :  { %874 = vmatmul.mubr.f32.gmra.mxu1 %v225_v12  ;;  %1053 = vmatprep.subr.mxu0 %v7658_v0  ;;  %v166_v12 = vld [vmem:[%s13641_s0 + $0x70] sm:$0xff] }
  0x49   :  { %878 = vmatprep.mubr.f32.mxu1 %v228_v13  ;;  %1054 = vmatpush1.msra.mxu0 %v485_v14  ;;  %v498_v14 = vld [vmem:[%s13640_s3 + $0x2d0] sm:$0xff] }
  0x4a   :  { %634 = vmatmul.mubr.f32.gmra.mxu0 %v154_v15  ;;  %1055 = vmatprep.subr.mxu0 %v7658_v0  ;;  %v241_v15 = vld [vmem:[%s13641_s0 + $0x8a] sm:$0xff] }
  0x4b   :  { %638 = vmatprep.mubr.f32.mxu0 %v191_v16  ;;  %1056 = vmatpush1.msra.mxu0 %v484_v17  ;;  %v513_v16 = vld [vmem:[%s13640_s3 + $0x348] sm:$0xff]  ;;  %v167_v17 = vld [vmem:[%s13641_s0 + $0x78] sm:$0xff] }
  0x4c   :  { %879 = vmatmul.mubr.f32.gmra.mxu1 %v226_v4  ;;  %1057 = vmatprep.subr.mxu0 %v7658_v0  ;;  %v516_v4 = vld [vmem:[%s13640_s3 + $0x360] sm:$0xff] }
  0x4d   :  { %883 = vmatprep.mubr.f32.mxu1 %v229_v18  ;;  %1058 = vmatpush1.msra.mxu0 %v483_v19  ;;  %v512_v19 = vld [vmem:[%s13640_s3 + $0x340] sm:$0xff] }
  0x4e   :  { %639 = vmatmul.mubr.f32.gmra.mxu0 %v155_v20  ;;  %1059 = vmatprep.subr.mxu0 %v7658_v0  ;;  %v242_v20 = vld [vmem:[%s13641_s0 + $0x92] sm:$0xff] }
  0x4f   :  { %643 = vmatprep.mubr.f32.mxu0 %v192_v21  ;;  %1060 = vmatpush1.msra.mxu0 %v482_v22  ;;  %v168_v21 = vld [vmem:[%s13641_s0 + $0x80] sm:$0xff]  ;;  %v511_v22 = vld [vmem:[%s13640_s3 + $0x338] sm:$0xff] }
  0x50   :  { %884 = vmatmul.mubr.f32.gmra.mxu1 %v227_v8  ;;  %1061 = vmatprep.subr.mxu0 %v7658_v0  ;;  %v202_v8 = vld [vmem:[%s13641_s0 + $0x71] sm:$0xff] }
  0x51   :  { %888 = vmatprep.mubr.f32.mxu1 %v230_v23  ;;  %1062 = vmatpush1.msra.mxu0 %v481_v24  ;;  %v497_v24 = vld [vmem:[%s13640_s3 + $0x2c8] sm:$0xff] }
  0x52   :  { %644 = vmatmul.mubr.f32.gmra.mxu0 %v156_v25  ;;  %1063 = vmatprep.subr.mxu0 %v7658_v0  ;;  %v243_v25 = vld [vmem:[%s13641_s0 + $0x9a] sm:$0xff] }
  0x53   :  { %648 = vmatprep.mubr.f32.mxu0 %v193_v26  ;;  %1064 = vmatpush1.msra.mxu0 %v480_v27  ;;  %v510_v26 = vld [vmem:[%s13640_s3 + $0x330] sm:$0xff]  ;;  %v169_v27 = vld [vmem:[%s13641_s0 + $0x88] sm:$0xff] }
  0x54   :  { %889 = vmatmul.mubr.f32.gmra.mxu1 %v228_v13  ;;  %1065 = vmatprep.subr.mxu0 %v7658_v0  ;;  %v203_v13 = vld [vmem:[%s13641_s0 + $0x79] sm:$0xff] }
  0x55   :  { %893 = vmatprep.mubr.f32.mxu1 %v231_v28  ;;  %1066 = vmatpush1.msra.mxu0 %v479_v29  ;;  %v509_v29 = vld [vmem:[%s13640_s3 + $0x328] sm:$0xff] }
  0x56   :  { %649 = vmatmul.mubr.f32.gmra.mxu0 %v157_v30  ;;  %1067 = vmatprep.subr.mxu0 %v7658_v0  ;;  %v244_v30 = vld [vmem:[%s13641_s0 + $0xa2] sm:$0xff] }
  0x57   :  { %653 = vmatprep.mubr.f32.mxu0 %v194_v31  ;;  %1068 = vmatpush1.msra.mxu0 %v478_v32  ;;  %v170_v31 = vld [vmem:[%s13641_s0 + $0x90] sm:$0xff]  ;;  %v508_v32 = vld [vmem:[%s13640_s3 + $0x320] sm:$0xff] }
  0x58   :  { %894 = vmatmul.mubr.f32.gmra.mxu1 %v229_v18  ;;  %1069 = vmatprep.subr.mxu0 %v7658_v0  ;;  %v204_v18 = vld [vmem:[%s13641_s0 + $0x81] sm:$0xff] }
  0x59   :  { %898 = vmatprep.mubr.f32.mxu1 %v232_v33  ;;  %1070 = vmatpush1.msra.mxu0 %v477_v34  ;;  %v496_v34 = vld [vmem:[%s13640_s3 + $0x2c0] sm:$0xff] }
  0x5a   :  { %654 = vmatmul.mubr.f32.gmra.mxu0 %v158_v35  ;;  %1071 = vmatprep.subr.mxu0 %v7658_v0  ;;  %v245_v35 = vld [vmem:[%s13641_s0 + $0xaa] sm:$0xff] }
  0x5b   :  { %658 = vmatprep.mubr.f32.mxu0 %v195_v36  ;;  %1072 = vmatpush1.msra.mxu0 %v476_v37  ;;  %v507_v36 = vld [vmem:[%s13640_s3 + $0x318] sm:$0xff] }
  0x5c   :  { %899 = vmatmul.mubr.f32.gmra.mxu1 %v230_v23  ;;  %1073 = vmatprep.subr.mxu0 %v7658_v0  ;;  %v205_v23 = vld [vmem:[%s13641_s0 + $0x89] sm:$0xff]  ;;  %v171_v37 = vld [vmem:[%s13641_s0 + $0x98] sm:$0xff] }
  0x5d   :  { %903 = vmatprep.mubr.f32.mxu1 %v233_v38  ;;  %1074 = vmatpush1.msra.mxu0 %v475_v39  ;;  %v495_v39 = vld [vmem:[%s13640_s3 + $0x2b8] sm:$0xff] }
  0x5e   :  { %659 = vmatmul.mubr.f32.gmra.mxu0 %v159_v40  ;;  %1075 = vmatprep.subr.mxu0 %v7658_v0  ;;  %v246_v40 = vld [vmem:[%s13641_s0 + $0xb2] sm:$0xff] }
  0x5f   :  { %663 = vmatprep.mubr.f32.mxu0 %v196_v41  ;;  %1076 = vmatpush1.msra.mxu0 %v474_v42  ;;  %v506_v41 = vld [vmem:[%s13640_s3 + $0x310] sm:$0xff]  ;;  %v172_v42 = vld [vmem:[%s13641_s0 + $0xa0] sm:$0xff] }
  0x60   :  { %904 = vmatmul.mubr.f32.gmra.mxu1 %v231_v28  ;;  %1077 = vmatprep.subr.mxu0 %v7658_v0  ;;  %v206_v28 = vld [vmem:[%s13641_s0 + $0x91] sm:$0xff] }
  0x61   :  { %908 = vmatprep.mubr.f32.mxu1 %v234_v43  ;;  %1078 = vmatpush1.msra.mxu0 %v473_v44  ;;  %v505_v44 = vld [vmem:[%s13640_s3 + $0x308] sm:$0xff] }
  0x62   :  { %664 = vmatmul.mubr.f32.gmra.mxu0 %v160_v45  ;;  %1079 = vmatprep.subr.mxu0 %v7658_v0  ;;  %v247_v45 = vld [vmem:[%s13641_s0 + $0xba] sm:$0xff] }
  0x63   :  { %668 = vmatprep.mubr.f32.mxu0 %v197_v46  ;;  %1080 = vmatpush1.msra.mxu0 %v472_v47  ;;  %v173_v46 = vld [vmem:[%s13641_s0 + $0xa8] sm:$0xff]  ;;  %v504_v47 = vld [vmem:[%s13640_s3 + $0x300] sm:$0xff] }
  0x64   :  { %909 = vmatmul.mubr.f32.gmra.mxu1 %v232_v33  ;;  %1081 = vmatprep.subr.mxu0 %v7658_v0  ;;  %v207_v33 = vld [vmem:[%s13641_s0 + $0x99] sm:$0xff] }
  0x65   :  { %913 = vmatprep.mubr.f32.mxu1 %v235_v48  ;;  %1082 = vmatpush2.msra.mxu0 %v503_v49  ;;  %v494_v49 = vld [vmem:[%s13640_s3 + $0x2b0] sm:$0xff] }
  0x66   :  { %669 = vmatmul.mubr.f32.gmra.mxu0 %v161_v50  ;;  %1083 = vmatprep.subr.mxu0 %v7658_v0  ;;  %v248_v50 = vld [vmem:[%s13641_s0 + $0xc2] sm:$0xff] }
  0x67   :  { %673 = vmatprep.mubr.f32.mxu0 %v198_v51  ;;  %1084 = vmatpush2.msra.mxu0 %v502_v52  ;;  %v535_v51 = vld [vmem:[%s13640_s3 + $0x3f8] sm:$0xff]  ;;  %v174_v52 = vld [vmem:[%s13641_s0 + $0xb0] sm:$0xff] }
  0x68   :  { %914 = vmatmul.mubr.f32.gmra.mxu1 %v233_v38  ;;  %1085 = vmatprep.subr.mxu0 %v7658_v0  ;;  %v208_v38 = vld [vmem:[%s13641_s0 + $0xa1] sm:$0xff] }
  0x69   :  { %918 = vmatprep.mubr.f32.mxu1 %v236_v53  ;;  %1295 = vmatpush1.msra.mxu1 %v519_v54  ;;  %v493_v54 = vld [vmem:[%s13640_s3 + $0x2a8] sm:$0xff] }
  0x6a   :  { %674 = vmatmul.mubr.f32.gmra.mxu0 %v162_v55  ;;  %1296 = vmatprep.subr.mxu1 %v7658_v0  ;;  %v249_v55 = vld [vmem:[%s13641_s0 + $0xca] sm:$0xff] }
  0x6b   :  { %678 = vmatprep.mubr.f32.mxu0 %v199_v56  ;;  %1086 = vmatpush2.msra.mxu0 %v501_v57  ;;  %v534_v56 = vld [vmem:[%s13640_s3 + $0x3f0] sm:$0xff]  ;;  %v175_v57 = vld [vmem:[%s13641_s0 + $0xb8] sm:$0xff] }
  0x6c   :  { %919 = vmatmul.mubr.f32.gmra.mxu1 %v234_v43  ;;  %1087 = vmatprep.subr.mxu0 %v7658_v0  ;;  %v209_v43 = vld [vmem:[%s13641_s0 + $0xa9] sm:$0xff] }
  0x6d   :  { %923 = vmatprep.mubr.f32.mxu1 %v237_v58  ;;  %1297 = vmatpush1.msra.mxu1 %v518_v59  ;;  %v533_v59 = vld [vmem:[%s13640_s3 + $0x3e8] sm:$0xff] }
  0x6e   :  { %679 = vmatmul.mubr.f32.gmra.mxu0 %v163_v60  ;;  %1298 = vmatprep.subr.mxu1 %v7658_v0  ;;  %v250_v60 = vld [vmem:[%s13641_s0 + $0xd2] sm:$0xff] }
  0x6f   :  { %683 = vmatprep.mubr.f32.mxu0 %v200_v61  ;;  %1088 = vmatpush2.msra.mxu0 %v500_v62  ;;  %v532_v61 = vld [vmem:[%s13640_s3 + $0x3e0] sm:$0xff] }
  0x70   :  { %924 = vmatmul.mubr.f32.gmra.mxu1 %v235_v48  ;;  %1089 = vmatprep.subr.mxu0 %v7658_v0  ;;  %v210_v48 = vld [vmem:[%s13641_s0 + $0xb1] sm:$0xff]  ;;  %v176_v62 = vld [vmem:[%s13641_s0 + $0xc0] sm:$0xff] }
  0x71   :  { %928 = vmatprep.mubr.f32.mxu1 %v238_v63  ;;  %1299 = vmatpush1.msra.mxu1 %v517_v1  ;;  %v8414_v1 = vld [vmem:[#allocation4] sm:$0xff] }
  0x72   :  { %684 = vmatmul.mubr.f32.gmra.mxu0 %v164_v2  ;;  %1300 = vmatprep.subr.mxu1 %v7658_v0  ;;  %v251_v2 = vld [vmem:[%s13641_s0 + $0xda] sm:$0xff] }
  0x73   :  { %688 = vmatprep.mubr.f32.mxu0 %v201_v3  ;;  %1301 = vmatpush1.msra.mxu1 %v516_v4  ;;  %v531_v3 = vld [vmem:[%s13640_s3 + $0x3d8] sm:$0xff]  ;;  %v177_v4 = vld [vmem:[%s13641_s0 + $0xc8] sm:$0xff] }
  0x74   :  { %929 = vmatmul.mubr.f32.gmra.mxu1 %v236_v53  ;;  %1302 = vmatprep.subr.mxu1 %v7658_v0  ;;  %v211_v53 = vld [vmem:[%s13641_s0 + $0xb9] sm:$0xff] }
  0x75   :  { %933 = vmatprep.mubr.f32.mxu1 %v239_v5  ;;  %1303 = vmatpush1.msra.mxu1 %v515_v7  ;;  %v252_v7 = vld [vmem:[%s13641_s0 + $0xe2] sm:$0xff] }
  0x76   :  { %689 = vmatmul.mubr.f32.gmra.mxu0 %v165_v6  ;;  %1304 = vmatprep.subr.mxu1 %v7658_v0  ;;  %v530_v6 = vld [vmem:[%s13640_s3 + $0x3d0] sm:$0xff] }
  0x77   :  { %693 = vmatprep.mubr.f32.mxu0 %v202_v8  ;;  %1090 = vmatpush2.msra.mxu0 %v499_v9  ;;  %v178_v8 = vld [vmem:[%s13641_s0 + $0xd0] sm:$0xff]  ;;  %v529_v9 = vld [vmem:[%s13640_s3 + $0x3c8] sm:$0xff] }
  0x78   :  { %934 = vmatmul.mubr.f32.gmra.mxu1 %v237_v58  ;;  %1091 = vmatprep.subr.mxu0 %v7658_v0  ;;  %v212_v58 = vld [vmem:[%s13641_s0 + $0xc1] sm:$0xff] }
  0x79   :  { %938 = vmatprep.mubr.f32.mxu1 %v240_v10  ;;  %1305 = vmatpush1.msra.mxu1 %v514_v11  ;;  %v491_v11 = vld [vmem:[%s13640_s3 + $0x298] sm:$0xff] }
  0x7a   :  { %694 = vmatmul.mubr.f32.gmra.mxu0 %v166_v12  ;;  %1306 = vmatprep.subr.mxu1 %v7658_v0  ;;  %v253_v12 = vld [vmem:[%s13641_s0 + $0xea] sm:$0xff] }
  0x7b   :  { %698 = vmatprep.mubr.f32.mxu0 %v203_v13  ;;  %1092 = vmatpush2.msra.mxu0 %v498_v14  ;;  %v528_v13 = vld [vmem:[%s13640_s3 + $0x3c0] sm:$0xff]  ;;  %v179_v14 = vld [vmem:[%s13641_s0 + $0xd8] sm:$0xff] }
  0x7c   :  { %939 = vmatmul.mubr.f32.gmra.mxu1 %v238_v63  ;;  %1093 = vmatprep.subr.mxu0 %v7658_v0  ;;  %v213_v63 = vld [vmem:[%s13641_s0 + $0xc9] sm:$0xff] }
  0x7d   :  { %943 = vmatprep.mubr.f32.mxu1 %v241_v15  ;;  %1307 = vmatpush1.msra.mxu1 %v513_v16  ;;  %v490_v16 = vld [vmem:[%s13640_s3 + $0x290] sm:$0xff] }
  0x7e   :  { %699 = vmatmul.mubr.f32.gmra.mxu0 %v167_v17  ;;  %1308 = vmatprep.subr.mxu1 %v7658_v0  ;;  %v254_v17 = vld [vmem:[%s13641_s0 + $0xf2] sm:$0xff] }
  0x7f   :  { %703 = vmatprep.mubr.f32.mxu0 %v204_v18  ;;  %1309 = vmatpush1.msra.mxu1 %v512_v19  ;;  %v527_v18 = vld [vmem:[%s13640_s3 + $0x3b8] sm:$0xff]  ;;  %v180_v19 = vld [vmem:[%s13641_s0 + $0xe0] sm:$0xff] }
  0x80   :  { %944 = vmatmul.mubr.f32.gmra.mxu1 %v239_v5  ;;  %1310 = vmatprep.subr.mxu1 %v7658_v0  ;;  %v214_v5 = vld [vmem:[%s13641_s0 + $0xd1] sm:$0xff] }
  0x81   :  { %948 = vmatprep.mubr.f32.mxu1 %v242_v20  ;;  %1311 = vmatpush1.msra.mxu1 %v511_v22  ;;  %v255_v22 = vld [vmem:[%s13641_s0 + $0xfa] sm:$0xff] }
  0x82   :  { %704 = vmatmul.mubr.f32.gmra.mxu0 %v168_v21  ;;  %1312 = vmatprep.subr.mxu1 %v7658_v0  ;;  %v526_v21 = vld [vmem:[%s13640_s3 + $0x3b0] sm:$0xff] }
  0x83   :  { %708 = vmatprep.mubr.f32.mxu0 %v205_v23  ;;  %1094 = vmatpush2.msra.mxu0 %v497_v24  ;;  %v181_v23 = vld [vmem:[%s13641_s0 + $0xe8] sm:$0xff] }
  0x84   :  { %949 = vmatmul.mubr.f32.gmra.mxu1 %v240_v10  ;;  %1095 = vmatprep.subr.mxu0 %v7658_v0  ;;  %v215_v10 = vld [vmem:[%s13641_s0 + $0xd9] sm:$0xff]  ;;  %v525_v24 = vld [vmem:[%s13640_s3 + $0x3a8] sm:$0xff] }
  0x85   :  { %953 = vmatprep.mubr.f32.mxu1 %v243_v25  ;;  %1313 = vmatpush1.msra.mxu1 %v510_v26  ;;  %v489_v26 = vld [vmem:[%s13640_s3 + $0x288] sm:$0xff] }
  0x86   :  { %709 = vmatmul.mubr.f32.gmra.mxu0 %v169_v27  ;;  %1314 = vmatprep.subr.mxu1 %v7658_v0  ;;  %v256_v27 = vld [vmem:[%s13641_s0 + $0x102] sm:$0xff] }
  0x87   :  { %713 = vmatprep.mubr.f32.mxu0 %v206_v28  ;;  %1315 = vmatpush1.msra.mxu1 %v509_v29  ;;  %v524_v28 = vld [vmem:[%s13640_s3 + $0x3a0] sm:$0xff]  ;;  %v182_v29 = vld [vmem:[%s13641_s0 + $0xf0] sm:$0xff] }
  0x88   :  { %954 = vmatmul.mubr.f32.gmra.mxu1 %v241_v15  ;;  %1316 = vmatprep.subr.mxu1 %v7658_v0  ;;  %v216_v15 = vld [vmem:[%s13641_s0 + $0xe1] sm:$0xff] }
  0x89   :  { %958 = vmatprep.mubr.f32.mxu1 %v244_v30  ;;  %1317 = vmatpush1.msra.mxu1 %v508_v32  ;;  %v257_v32 = vld [vmem:[%s13641_s0 + $0x10a] sm:$0xff] }
  0x8a   :  { %714 = vmatmul.mubr.f32.gmra.mxu0 %v170_v31  ;;  %1318 = vmatprep.subr.mxu1 %v7658_v0  ;;  %v523_v31 = vld [vmem:[%s13640_s3 + $0x398] sm:$0xff] }
  0x8b   :  { %718 = vmatprep.mubr.f32.mxu0 %v207_v33  ;;  %1096 = vmatpush2.msra.mxu0 %v496_v34  ;;  %v183_v33 = vld [vmem:[%s13641_s0 + $0xf8] sm:$0xff]  ;;  %v522_v34 = vld [vmem:[%s13640_s3 + $0x390] sm:$0xff] }
  0x8c   :  { %959 = vmatmul.mubr.f32.gmra.mxu1 %v242_v20  ;;  %1097 = vmatprep.subr.mxu0 %v7658_v0  ;;  %v217_v20 = vld [vmem:[%s13641_s0 + $0xe9] sm:$0xff] }
  0x8d   :  { %963 = vmatprep.mubr.f32.mxu1 %v245_v35  ;;  %1319 = vmatpush1.msra.mxu1 %v507_v36  ;;  %v488_v36 = vld [vmem:[%s13640_s3 + $0x280] sm:$0xff] }
  0x8e   :  { %719 = vmatmul.mubr.f32.gmra.mxu0 %v171_v37  ;;  %1320 = vmatprep.subr.mxu1 %v7658_v0  ;;  %v44_v37 = vld [vmem:[%s13642_s1] sm:$0xff] }
  0x8f   :  { %723 = vmatprep.mubr.f32.mxu0 %v208_v38  ;;  %1098 = vmatpush2.msra.mxu0 %v495_v39  ;;  %v258_v38 = vld [vmem:[%s13641_s0 + $0x112] sm:$0xff]  ;;  %v521_v39 = vld [vmem:[%s13640_s3 + $0x388] sm:$0xff]  ;;  %vm80_vm0 = vcmp.gt.f32.partialorder %v44_v37, 0.5 }
  0x90   :  { %964 = vmatmul.mubr.f32.gmra.mxu1 %v243_v25  ;;  %1099 = vmatprep.subr.mxu0 %v7658_v0  ;;  %v218_v25 = vld [vmem:[%s13641_s0 + $0xf1] sm:$0xff]  ;;  %v53_v37 = vld [vmem:[%s13642_s1 + $0x48] sm:$0xff] }
  0x91   :  { %968 = vmatprep.mubr.f32.mxu1 %v246_v40  ;;  %1321 = vmatpush1.msra.mxu1 %v506_v41  ;;  %v46_v41 = vld [vmem:[%s13642_s1 + $0x10] sm:$0xff]  ;;  %vm89_vm9 = vcmp.gt.f32.partialorder %v53_v37, 0.5 }
  0x92   :  { %724 = vmatmul.mubr.f32.gmra.mxu0 %v172_v42  ;;  %1322 = vmatprep.subr.mxu1 %v7658_v0  ;;  %v221_v42 = vld [vmem:[%s13641_s0 + $0x109] sm:$0xff]  ;;  %vm82_vm1 = vcmp.gt.f32.partialorder %v46_v41, 0.5 }
  0x93   :  { %728 = vmatprep.mubr.f32.mxu0 %v209_v43  ;;  %1323 = vmatpush1.msra.mxu1 %v505_v44  ;;  %v8562_v43 = vld [vmem:[%s13640_s3 + $0x478] sm:$0xff]  ;;  %v45_v44 = vld [vmem:[%s13642_s1 + $0x8] sm:$0xff]  ;;  %v54_v41 = vld [vmem:[%s13642_s1 + $0x50] sm:$0xff] }
  0x94   :  { %969 = vmatmul.mubr.f32.gmra.mxu1 %v244_v30  ;;  %1324 = vmatprep.subr.mxu1 %v7658_v0  ;;  %v219_v30 = vld [vmem:[%s13641_s0 + $0xf9] sm:$0xff]  ;;  %vm81_vm2 = vcmp.gt.f32.partialorder %v45_v44, 0.5  ;;  %vm90_vm10 = vcmp.gt.f32.partialorder %v54_v41, 0.5  ;;  %v313_v37 = vld [vmem:[%s13641_s0 + $0x8c] sm:$0xff] }
  0x95   :  { %973 = vmatprep.mubr.f32.mxu1 %v247_v45  ;;  %1325 = vmatpush1.msra.mxu1 %v504_v47  ;;  %v185_v47 = vld [vmem:[%s13641_s0 + $0x108] sm:$0xff] }
  0x96   :  { %729 = vmatmul.mubr.f32.gmra.mxu0 %v173_v46  ;;  %1326 = vmatprep.subr.mxu1 %v7658_v0  ;;  %v520_v46 = vld [vmem:[%s13640_s3 + $0x380] sm:$0xff] }
  0x97   :  { %733 = vmatprep.mubr.f32.mxu0 %v210_v48  ;;  %1100 = vmatpush2.msra.mxu0 %v494_v49  ;;  %v7659_v48 = vmov 0  }
  0x98   :  { %974 = vmatmul.mubr.f32.gmra.mxu1 %v245_v35  ;;  %1101 = vmatprep.subr.mxu0 %v7658_v0  ;;  %v220_v35 = vld [vmem:[%s13641_s0 + $0x101] sm:$0xff]  ;;  %v1790_v49 = vsel %vm80_vm0, 1, %v7659_v48 }
  0x99   :  { %978 = vmatprep.mubr.f32.mxu1 %v248_v50  ;;  %1327 = vmatpush2.msra.mxu1 %v535_v51  ;;  %v222_v51 = vld [vmem:[%s13641_s0 + $0x111] sm:$0xff] }
  0x9a   :  { %734 = vmatmul.mubr.f32.gmra.mxu0 %v174_v52  ;;  %1328 = vmatprep.subr.mxu1 %v7658_v0  ;;  %v1792_v52 = vsel %vm82_vm1, 1, %v7659_v48 }
  0x9b   :  { %738 = vmatprep.mubr.f32.mxu0 %v211_v53  ;;  %1102 = vmatpush2.msra.mxu0 %v493_v54  ;;  %v48_v53 = vld [vmem:[%s13642_s1 + $0x20] sm:$0xff] }
  0x9c   :  { %979 = vmatmul.mubr.f32.gmra.mxu1 %v246_v40  ;;  %1103 = vmatprep.subr.mxu0 %v8414_v1  ;;  %v184_v40 = vld [vmem:[%s13641_s0 + $0x100] sm:$0xff]  ;;  %vm84_vm4 = vcmp.gt.f32.partialorder %v48_v53, 0.5  ;;  %v1800_v53 = vsel %vm90_vm10, 1, %v7659_v48 }
  0x9d   :  { %983 = vmatprep.mubr.f32.mxu1 %v249_v55  ;;  %1329 = vmatpush2.msra.mxu1 %v534_v56  ;;  %v260_v54 = vld [vmem:[%s13641_s0 + $0x122] sm:$0xff]  ;;  %v1791_v56 = vsel %vm81_vm2, 1, %v7659_v48 }
  0x9e   :  { %739 = vmatmul.mubr.f32.gmra.mxu0 %v175_v57  ;;  %1330 = vmatprep.subr.mxu1 %v7658_v0  ;;  %v492_v0 = vld [vmem:[%s13640_s3 + $0x2a0] sm:$0xff]  ;;  %v49_v57 = vld [vmem:[%s13642_s1 + $0x28] sm:$0xff] }
  0x9f   :  { %743 = vmatprep.mubr.f32.mxu0 %v212_v58  ;;  %1331 = vmatpush2.msra.mxu1 %v533_v59  ;;  %v223_v58 = vld [vmem:[%s13641_s0 + $0x119] sm:$0xff]  ;;  %vm85_vm5 = vcmp.gt.f32.partialorder %v49_v57, 0.5 }
  0xa0   :  { %984 = vmatmul.mubr.f32.gmra.mxu1 %v247_v45  ;;  %1332 = vmatprep.subr.mxu1 %v8414_v1  ;;  %v259_v45 = vld [vmem:[%s13641_s0 + $0x11a] sm:$0xff] }
  0xa1   :  { %988 = vmatprep.mubr.f32.mxu1 %v250_v60  ;;  %1333 = vmatpush2.msra.mxu1 %v532_v61  ;;  %v261_v61 = vld [vmem:[%s13641_s0 + $0x12a] sm:$0xff] }
  0xa2   :  { %744 = vmatmul.mubr.f32.gmra.mxu0 %v176_v62  ;;  %1334 = vmatprep.subr.mxu1 %v8414_v1  ;;  %v187_v62 = vld [vmem:[%s13641_s0 + $0x118] sm:$0xff] }
  0xa3   :  { %748 = vmatprep.mubr.f32.mxu0 %v213_v63  ;;  %1104 = vmatpush2.msra.mxu0 %v492_v0  ;;  %v1794_v63 = vsel %vm84_vm4, 1, %v7659_v48  ;;  %v298_v0 = vld [vmem:[%s13641_s0 + $0x14] sm:$0xff] }
  0xa4   :  { %989 = vmatmul.mubr.f32.gmra.mxu1 %v248_v50  ;;  %1105 = vmatprep.subr.mxu0 %v8414_v1  ;;  %v47_v50 = vld [vmem:[%s13642_s1 + $0x18] sm:$0xff] }
  0xa5   :  { %993 = vmatprep.mubr.f32.mxu1 %v251_v2  ;;  %1335 = vmatpush2.msra.mxu1 %v531_v3  ;;  %vm83_vm3 = vcmp.gt.f32.partialorder %v47_v50, 0.5  ;;  %v336_v3 = vld [vmem:[%s13641_s0 + $0x25] sm:$0xff] }
  0xa6   :  { %749 = vmatmul.mubr.f32.gmra.mxu0 %v177_v4  ;;  %1336 = vmatprep.subr.mxu1 %v8414_v1  ;;  %v1793_v59 = vsel %vm83_vm3, 1, %v7659_v48  ;;  %v262_v4 = vld [vmem:[%s13641_s0 + $0x13] sm:$0xff]  ;;  %v56_v50 = vld [vmem:[%s13642_s1 + $0x60] sm:$0xff] }
  0xa7   :  { %753 = vmatprep.mubr.f32.mxu0 %v214_v5  ;;  %1337 = vmatpush2.msra.mxu1 %v530_v6  ;;  %v299_v6 = vld [vmem:[%s13641_s0 + $0x1c] sm:$0xff]  ;;  %vm92_vm12 = vcmp.gt.f32.partialorder %v56_v50, 0.5 }
  0xa8   :  { %994 = vmatmul.mubr.f32.gmra.mxu1 %v249_v55  ;;  %1338 = vmatprep.subr.mxu1 %v8414_v1  ;;  %v186_v55 = vld [vmem:[%s13641_s0 + $0x110] sm:$0xff] }
  0xa9   :  { %998 = vmatprep.mubr.f32.mxu1 %v252_v7  ;;  %1339 = vmatpush2.msra.mxu1 %v529_v9  ;;  %v337_v9 = vld [vmem:[%s13641_s0 + $0x2d] sm:$0xff] }
  0xaa   :  { %754 = vmatmul.mubr.f32.gmra.mxu0 %v178_v8  ;;  %1340 = vmatprep.subr.mxu1 %v8414_v1  ;;  %v550_v8 = vld [vmem:[%s13640_s3 + $0x470] sm:$0xff] }
  0xab   :  { %758 = vmatprep.mubr.f32.mxu0 %v215_v10  ;;  %1106 = vmatpush2.msra.mxu0 %v491_v11  ;;  %v263_v10 = vld [vmem:[%s13641_s0 + $0x1b] sm:$0xff]  ;;  %v549_v11 = vld [vmem:[%s13640_s3 + $0x468] sm:$0xff] }
  0xac   :  { %999 = vmatmul.mubr.f32.gmra.mxu1 %v250_v60  ;;  %1107 = vmatprep.subr.mxu0 %v8414_v1  ;;  %v50_v60 = vld [vmem:[%s13642_s1 + $0x30] sm:$0xff] }
  0xad   :  { %1003 = vmatprep.mubr.f32.mxu1 %v253_v12  ;;  %1341 = vmatpush2.msra.mxu1 %v528_v13  ;;  %vm86_vm6 = vcmp.gt.f32.partialorder %v50_v60, 0.5  ;;  %v548_v13 = vld [vmem:[%s13640_s3 + $0x460] sm:$0xff]  ;;  %v345_v60 = vld [vmem:[%s13641_s0 + $0x6d] sm:$0xff] }
  0xae   :  { %759 = vmatmul.mubr.f32.gmra.mxu0 %v179_v14  ;;  %1342 = vmatprep.subr.mxu1 %v8414_v1  ;;  %v1796_v5 = vsel %vm86_vm6, 1, %v7659_v48  ;;  %v338_v14 = vld [vmem:[%s13641_s0 + $0x35] sm:$0xff] }
  0xaf   :  { %763 = vmatprep.mubr.f32.mxu0 %v216_v15  ;;  %1108 = vmatpush2.msra.mxu0 %v490_v16  ;;  %v264_v15 = vld [vmem:[%s13641_s0 + $0x23] sm:$0xff]  ;;  %v547_v16 = vld [vmem:[%s13640_s3 + $0x458] sm:$0xff] }
  0xb0   :  { %1004 = vmatmul.mubr.f32.gmra.mxu1 %v251_v2  ;;  %1109 = vmatprep.subr.mxu0 %v8414_v1  ;;  %v1795_v2 = vsel %vm85_vm5, 1, %v7659_v48 }
  0xb1   :  { %1008 = vmatprep.mubr.f32.mxu1 %v254_v17  ;;  %1343 = vmatpush2.msra.mxu1 %v527_v18  ;;  %v546_v18 = vld [vmem:[%s13640_s3 + $0x450] sm:$0xff] }
  0xb2   :  { %764 = vmatmul.mubr.f32.gmra.mxu0 %v180_v19  ;;  %1344 = vmatprep.subr.mxu1 %v8414_v1  ;;  %v339_v19 = vld [vmem:[%s13641_s0 + $0x3d] sm:$0xff] }
  0xb3   :  { %768 = vmatprep.mubr.f32.mxu0 %v217_v20  ;;  %1345 = vmatpush2.msra.mxu1 %v526_v21  ;;  %v265_v20 = vld [vmem:[%s13641_s0 + $0x2b] sm:$0xff] }
  0xb4   :  { %1009 = vmatmul.mubr.f32.gmra.mxu1 %v252_v7  ;;  %1346 = vmatprep.subr.mxu1 %v8414_v1  ;;  %v300_v7 = vld [vmem:[%s13641_s0 + $0x24] sm:$0xff] }
  0xb5   :  { %1013 = vmatprep.mubr.f32.mxu1 %v255_v22  ;;  %1347 = vmatpush2.msra.mxu1 %v525_v24  ;;  %v545_v21 = vld [vmem:[%s13640_s3 + $0x448] sm:$0xff] }
  0xb6   :  { %769 = vmatmul.mubr.f32.gmra.mxu0 %v181_v23  ;;  %1348 = vmatprep.subr.mxu1 %v8414_v1  ;;  %v544_v23 = vld [vmem:[%s13640_s3 + $0x440] sm:$0xff] }
  0xb7   :  { %773 = vmatprep.mubr.f32.mxu0 %v218_v25  ;;  %1110 = vmatpush2.msra.mxu0 %v489_v26  ;;  %v340_v24 = vld [vmem:[%s13641_s0 + $0x45] sm:$0xff]  ;;  %v266_v25 = vld [vmem:[%s13641_s0 + $0x33] sm:$0xff] }
  0xb8   :  { %1014 = vmatmul.mubr.f32.gmra.mxu1 %v253_v12  ;;  %1111 = vmatprep.subr.mxu0 %v8414_v1  ;;  %v301_v12 = vld [vmem:[%s13641_s0 + $0x2c] sm:$0xff]  ;;  %v543_v26 = vld [vmem:[%s13640_s3 + $0x438] sm:$0xff] }
  0xb9   :  { %1018 = vmatprep.mubr.f32.mxu1 %v256_v27  ;;  %1349 = vmatpush2.msra.mxu1 %v524_v28  ;;  %v542_v28 = vld [vmem:[%s13640_s3 + $0x430] sm:$0xff] }
  0xba   :  { %774 = vmatmul.mubr.f32.gmra.mxu0 %v182_v29  ;;  %1350 = vmatprep.subr.mxu1 %v8414_v1  ;;  %v341_v29 = vld [vmem:[%s13641_s0 + $0x4d] sm:$0xff] }
  0xbb   :  { %778 = vmatprep.mubr.f32.mxu0 %v219_v30  ;;  %1351 = vmatpush2.msra.mxu1 %v523_v31  ;;  %v51_v30 = vld [vmem:[%s13642_s1 + $0x38] sm:$0xff] }
  0xbc   :  { %1019 = vmatmul.mubr.f32.gmra.mxu1 %v254_v17  ;;  %1352 = vmatprep.subr.mxu1 %v8414_v1  ;;  %v302_v17 = vld [vmem:[%s13641_s0 + $0x34] sm:$0xff]  ;;  %vm87_vm7 = vcmp.gt.f32.partialorder %v51_v30, 0.5 }
  0xbd   :  { %1023 = vmatprep.mubr.f32.mxu1 %v257_v32  ;;  %1353 = vmatpush2.msra.mxu1 %v522_v34  ;;  %v267_v31 = vld [vmem:[%s13641_s0 + $0x3b] sm:$0xff]  ;;  %v305_v34 = vld [vmem:[%s13641_s0 + $0x4c] sm:$0xff] }
  0xbe   :  { %779 = vmatmul.mubr.f32.gmra.mxu0 %v183_v33  ;;  %1354 = vmatprep.subr.mxu1 %v8414_v1  ;;  %v52_v33 = vld [vmem:[%s13642_s1 + $0x40] sm:$0xff] }
  0xbf   :  { %783 = vmatprep.mubr.f32.mxu0 %v220_v35  ;;  %1112 = vmatpush2.msra.mxu0 %v488_v36  ;;  %v540_v35 = vld [vmem:[%s13640_s3 + $0x420] sm:$0xff]  ;;  %v342_v36 = vld [vmem:[%s13641_s0 + $0x55] sm:$0xff]  ;;  %vm88_vm8 = vcmp.gt.f32.partialorder %v52_v33, 0.5 }
  0xc0   :  { %1024 = vmatmul.mubr.f32.gmra.mxu1 %v255_v22  ;;  %7218 = vmatprep.subr.mxu0 %v8562_v43  ;;  %v303_v22 = vld [vmem:[%s13641_s0 + $0x3c] sm:$0xff]  ;;  %v1798_v44 = vsel %vm88_vm8, 1, %v7659_v48 }
  0xc1   :  { %1028 = vmatprep.mubr.f32.mxu1 %v258_v38  ;;  %1355 = vmatpush2.msra.mxu1 %v521_v39  ;;  %v539_v39 = vld [vmem:[%s13640_s3 + $0x418] sm:$0xff] }
  0xc2   :  { %784 = vmatmul.mubr.f32.gmra.mxu0 %v184_v40  ;;  %1356 = vmatprep.subr.mxu1 %v8414_v1  ;;  %v1797_v40 = vsel %vm87_vm7, 1, %v7659_v48 }
  0xc3   :  { %788 = vmatprep.mubr.f32.mxu0 %v221_v42  ;;  %7575 = vset.pattern.permute.xlu0 %v7659_v48  ;;  %v306_v42 = vld [vmem:[%s13641_s0 + $0x54] sm:$0xff] }
  0xc4   :  { %1029 = vmatmul.mubr.f32.gmra.mxu1 %v256_v27  ;;  %1827 = vperm.xlu0 %7575, %v1790_v49   ;;  %v304_v27 = vld [vmem:[%s13641_s0 + $0x44] sm:$0xff]  ;;  %v1799_v49 = vsel %vm89_vm9, 1, %v7659_v48 }
  0xc5   :  { %1033 = vmatprep.mubr.f32.mxu1 %v259_v45  ;;  %1357 = vmatpush2.msra.mxu1 %v520_v46  ;;  %v269_v46 = vld [vmem:[%s13641_s0 + $0x4b] sm:$0xff] }
  0xc6   :  { %789 = vmatmul.mubr.f32.gmra.mxu0 %v185_v47  ;;  %7576 = vset.pattern.permute.xlu1 %v7659_v48  ;;  %v538_v47 = vld [vmem:[%s13640_s3 + $0x410] sm:$0xff] }
  0xc7   :  { %793 = vmatprep.mubr.f32.mxu0 %v222_v51  ;;  %1833 = vperm.xlu1 %7576, %v1792_v52   ;;  %v307_v51 = vld [vmem:[%s13641_s0 + $0x5c] sm:$0xff]  ;;  %v344_v52 = vld [vmem:[%s13641_s0 + $0x65] sm:$0xff] }
  0xc8   :  { %1034 = vmatmul.mubr.f32.gmra.mxu1 %v257_v32  ;;  %2862 = vmatprep.subr.mxu1 %v8414_v1  ;;  %v541_v32 = vld [vmem:[%s13640_s3 + $0x428] sm:$0xff] }
  0xc9   :  { %1038 = vmatprep.mubr.f32.mxu1 %v260_v54  ;;  %1830 = vperm.xlu0 %7575, %v1791_v56   ;;  %v57_v54 = vld [vmem:[%s13642_s1 + $0x68] sm:$0xff] }
  0xca   :  { %794 = vmatmul.mubr.f32.gmra.mxu0 %v186_v55  ;;  %v270_v55 = vld [vmem:[%s13641_s0 + $0x53] sm:$0xff]  ;;  %v537_v56 = vld [vmem:[%s13640_s3 + $0x408] sm:$0xff]  ;;  %vm93_vm13 = vcmp.gt.f32.partialorder %v57_v54, 0.5  ;;  %v351_v54 = vld [vmem:[%s13641_s0 + $0x9d] sm:$0xff] }
  0xcb   :  { %798 = vmatprep.mubr.f32.mxu0 %v223_v58  ;;  %1836 = vperm.xlu1 %7576, %v1793_v59   ;;  %v58_v58 = vld [vmem:[%s13642_s1 + $0x70] sm:$0xff]  ;;  %v308_v59 = vld [vmem:[%s13641_s0 + $0x64] sm:$0xff] }
  0xcc   :  { %1039 = vmatmul.mubr.f32.gmra.mxu1 %v258_v38  ;;  %v268_v38 = vld [vmem:[%s13641_s0 + $0x43] sm:$0xff]  ;;  %vm94_vm14 = vcmp.gt.f32.partialorder %v58_v58, 0.5  ;;  %v277_v58 = vld [vmem:[%s13641_s0 + $0x8b] sm:$0xff] }
  0xcd   :  { %1043 = vmatprep.mubr.f32.mxu1 %v261_v61  ;;  %1839 = vperm.xlu0 %7575, %v1794_v63   ;;  %v1802_v61 = vsel %vm92_vm12, 1, %v7659_v48  ;;  %v271_v63 = vld [vmem:[%s13641_s0 + $0x5b] sm:$0xff] }
  0xce   :  { %799 = vmatmul.mubr.f32.gmra.mxu0 %v187_v62  ;;  %v59_v62 = vld [vmem:[%s13642_s1 + $0x78] sm:$0xff] }
  0xcf   :  { %1113 = vmatprep.mubr.f32.mxu0 %v298_v0  ;;  %1842 = vperm.xlu1 %7576, %v1795_v2   ;;  %v536_v0 = vld [vmem:[%s13640_s3 + $0x400] sm:$0xff]  ;;  %v1803_v2 = vsel %vm93_vm13, 1, %v7659_v48  ;;  %vm95_vm15 = vcmp.gt.f32.partialorder %v59_v62, 0.5 }
  0xd0   :  { %1044 = vmatmul.mubr.f32.gmra.mxu1 %v259_v45  ;;  %v55_v45 = vld [vmem:[%s13642_s1 + $0x58] sm:$0xff]  ;;  %v68_v62 = vld [vmem:[%s13642_s1 + $0xc0] sm:$0xff] }
  0xd1   :  { %1358 = vmatprep.mubr.f32.mxu1 %v336_v3  ;;  %1845 = vperm.xlu0 %7575, %v1796_v5   ;;  %vm91_vm11 = vcmp.gt.f32.partialorder %v55_v45, 0.5  ;;  %v60_v3 = vld [vmem:[%s13642_s1 + $0x80] sm:$0xff]  ;;  %v346_v5 = vld [vmem:[%s13641_s0 + $0x75] sm:$0xff]  ;;  %vm104_vm12 = vcmp.gt.f32.partialorder %v68_v62, 0.5 }
  0xd2   :  { %1114 = vmatmul.mubr.f32.vlgmr.msra.gmra.mxu0 %v262_v4  ;;  %v1801_v57 = vsel %vm91_vm11, 1, %v7659_v48  ;;  %v309_v4 = vld [vmem:[%s13641_s0 + $0x6c] sm:$0xff]  ;;  %vm96_vm0 = vcmp.gt.f32.partialorder %v60_v3, 0.5 }
  0xd3   :  { %7219 = vmatpush3.msra.mxu0 %v8562_v43  ;;  %1118 = vmatprep.mubr.f32.mxu0 %v299_v6  ;;  %v343_v43 = vld [vmem:[%s13641_s0 + $0x5d] sm:$0xff]  ;;  %v1804_v6 = vsel %vm94_vm14, 1, %v7659_v48 }
  0xd4   :  { %1359 = vmatmul.mubr.f32.vlgmr.msra.gmra.mxu1 %v300_v7  ;;  %7220 = vmatprep.subr.mxu0 %v550_v8 }
  0xd5   :  { %1363 = vmatprep.mubr.f32.mxu1 %v337_v9  ;;  %7221 = vmatpush3.msra.mxu0 %v550_v8  ;;  %v272_v8 = vld [vmem:[%s13641_s0 + $0x63] sm:$0xff]  ;;  %v1805_v9 = vsel %vm95_vm15, 1, %v7659_v48 }
  0xd6   :  { %1119 = vmatmul.mubr.f32.gmra.mxu0 %v263_v10  ;;  %7222 = vmatprep.subr.mxu0 %v549_v11  ;;  %v61_v10 = vld [vmem:[%s13642_s1 + $0x88] sm:$0xff] }
  0xd7   :  { %1123 = vmatprep.mubr.f32.mxu0 %v300_v7  ;;  %7223 = vmatpush3.msra.mxu0 %v549_v11  ;;  %v116_v7 = vld [vmem:[%s13643_s2] sm:$0xff]  ;;  %v310_v11 = vld [vmem:[%s13641_s0 + $0x74] sm:$0xff]  ;;  %vm97_vm2 = vcmp.gt.f32.partialorder %v61_v10, 0.5 }
  0xd8   :  { %1364 = vmatmul.mubr.f32.gmra.mxu1 %v301_v12  ;;  %7224 = vmatprep.subr.mxu0 %v548_v13  ;;  %vm134_vm1 = vcmp.gt.f32.partialorder %v116_v7, 0.5 }
  0xd9   :  { %1368 = vmatprep.mubr.f32.mxu1 %v338_v14  ;;  %7225 = vmatpush3.msra.mxu0 %v548_v13  ;;  %v1806_v13 = vsel %vm96_vm0, 1, %v7659_v48  ;;  %v62_v14 = vld [vmem:[%s13642_s1 + $0x90] sm:$0xff] }
  0xda   :  { %1124 = vmatmul.mubr.f32.gmra.mxu0 %v264_v15  ;;  %7226 = vmatprep.subr.mxu0 %v547_v16  ;;  %v273_v15 = vld [vmem:[%s13641_s0 + $0x6b] sm:$0xff]  ;;  %vm98_vm3 = vcmp.gt.f32.partialorder %v62_v14, 0.5 }
  0xdb   :  { %1128 = vmatprep.mubr.f32.mxu0 %v301_v12  ;;  %7227 = vmatpush3.msra.mxu0 %v547_v16  ;;  %v347_v12 = vld [vmem:[%s13641_s0 + $0x7d] sm:$0xff]  ;;  %v2455_v16 = vsel %vm134_vm1, 1, %v7659_v48 }
  0xdc   :  { %1369 = vmatmul.mubr.f32.gmra.mxu1 %v302_v17  ;;  %7228 = vmatprep.subr.mxu0 %v546_v18  ;;  %v316_v14 = vld [vmem:[%s13641_s0 + $0xa4] sm:$0xff] }
  0xdd   :  { %1373 = vmatprep.mubr.f32.mxu1 %v339_v19  ;;  %7229 = vmatpush3.msra.mxu0 %v546_v18  ;;  %v311_v18 = vld [vmem:[%s13641_s0 + $0x7c] sm:$0xff]  ;;  %v1807_v19 = vsel %vm97_vm2, 1, %v7659_v48 }
  0xde   :  { %1129 = vmatmul.mubr.f32.gmra.mxu0 %v265_v20  ;;  %7230 = vmatprep.subr.mxu0 %v545_v21  ;;  %v63_v20 = vld [vmem:[%s13642_s1 + $0x98] sm:$0xff] }
  0xdf   :  { %1133 = vmatprep.mubr.f32.mxu0 %v302_v17  ;;  %7231 = vmatpush3.msra.mxu0 %v545_v21  ;;  %v117_v17 = vld [vmem:[%s13643_s2 + $0x8] sm:$0xff]  ;;  %v274_v21 = vld [vmem:[%s13641_s0 + $0x73] sm:$0xff]  ;;  %vm99_vm5 = vcmp.gt.f32.partialorder %v63_v20, 0.5  ;;  %v279_v20 = vld [vmem:[%s13641_s0 + $0x9b] sm:$0xff] }
  0xe0   :  { %1374 = vmatmul.mubr.f32.gmra.mxu1 %v303_v22  ;;  %7232 = vmatprep.subr.mxu0 %v544_v23  ;;  %vm135_vm4 = vcmp.gt.f32.partialorder %v117_v17, 0.5  ;;  %v353_v17 = vld [vmem:[%s13641_s0 + $0xad] sm:$0xff] }
  0xe1   :  { %1378 = vmatprep.mubr.f32.mxu1 %v340_v24  ;;  %7233 = vmatpush3.msra.mxu0 %v544_v23  ;;  %v1808_v23 = vsel %vm98_vm3, 1, %v7659_v48  ;;  %v64_v24 = vld [vmem:[%s13642_s1 + $0xa0] sm:$0xff] }
  0xe2   :  { %1134 = vmatmul.mubr.f32.gmra.mxu0 %v266_v25  ;;  %7234 = vmatprep.subr.mxu0 %v543_v26  ;;  %v312_v25 = vld [vmem:[%s13641_s0 + $0x84] sm:$0xff]  ;;  %vm100_vm6 = vcmp.gt.f32.partialorder %v64_v24, 0.5 }
  0xe3   :  { %1138 = vmatprep.mubr.f32.mxu0 %v303_v22  ;;  %7235 = vmatpush3.msra.mxu0 %v543_v26  ;;  %v8845_v22 = vld [vmem:[%s13644_s4] ss:$0 sm:$0xff]  ;;  %v1810_v41 = vsel %vm100_vm6, 1, %v7659_v48 }
  0xe4   :  { %1379 = vmatmul.mubr.f32.gmra.mxu1 %v304_v27  ;;  %7236 = vmatprep.subr.mxu0 %v542_v28 }
  0xe5   :  { %1383 = vmatprep.mubr.f32.mxu1 %v341_v29  ;;  %7237 = vmatpush3.msra.mxu0 %v542_v28  ;;  %v2456_v28 = vsel %vm135_vm4, 1, %v7659_v48  ;;  %v118_v29 = vld [vmem:[%s13643_s2 + $0x10] sm:$0xff] }
  0xe6   :  { %1139 = vmatmul.mubr.f32.gmra.mxu0 %v267_v31  ;;  %7238 = vmatprep.subr.mxu0 %v541_v32  ;;  %v275_v31 = vld [vmem:[%s13641_s0 + $0x7b] sm:$0xff]  ;;  %vm136_vm7 = vcmp.gt.f32.partialorder %v118_v29, 0.5 }
  0xe7   :  { %1143 = vmatprep.mubr.f32.mxu0 %v304_v27  ;;  %7239 = vmatpush3.msra.mxu0 %v541_v32  ;;  %v349_v27 = vld [vmem:[%s13641_s0 + $0x8d] sm:$0xff] }
  0xe8   :  { %1384 = vmatmul.mubr.f32.gmra.mxu1 %v305_v34  ;;  %7240 = vmatprep.subr.mxu0 %v540_v35 }
  0xe9   :  { %1388 = vmatprep.mubr.f32.mxu1 %v342_v36  ;;  %7241 = vmatpush3.msra.mxu0 %v540_v35  ;;  %v65_v35 = vld [vmem:[%s13642_s1 + $0xa8] sm:$0xff] }
  0xea   :  { %1144 = vmatmul.mubr.f32.gmra.mxu0 %v268_v38  ;;  %7242 = vmatprep.subr.mxu0 %v539_v39  ;;  %vm101_vm8 = vcmp.gt.f32.partialorder %v65_v35, 0.5 }
  0xeb   :  { %1148 = vmatprep.mubr.f32.mxu0 %v305_v34  ;;  %1848 = vperm.xlu1 %7576, %v1797_v40   ;;  %v1809_v34 = vsel %vm99_vm5, 1, %v7659_v48  ;;  %v350_v40 = vld [vmem:[%s13641_s0 + $0x95] sm:$0xff] }
  0xec   :  { %1389 = vmatmul.mubr.f32.gmra.mxu1 %v306_v42  ;;  %7243 = vmatpush3.msra.mxu0 %v539_v39 }
  0xed   :  { %1393 = vmatprep.mubr.f32.mxu1 %v343_v43  ;;  %1851 = vperm.xlu0 %7575, %v1798_v44   ;;  %v276_v44 = vld [vmem:[%s13641_s0 + $0x83] sm:$0xff] }
  0xee   :  { %1149 = vmatmul.mubr.f32.gmra.mxu0 %v269_v46  ;;  %7244 = vmatprep.subr.mxu0 %v538_v47 }
  0xef   :  { %1153 = vmatprep.mubr.f32.mxu0 %v306_v42  ;;  %1854 = vperm.xlu1 %7576, %v1799_v49   ;;  %v66_v42 = vld [vmem:[%s13642_s1 + $0xb0] sm:$0xff]  ;;  %v119_v49 = vld [vmem:[%s13643_s2 + $0x18] sm:$0xff] }
  0xf0   :  { %1394 = vmatmul.mubr.f32.gmra.mxu1 %v307_v51  ;;  %7245 = vmatpush3.msra.mxu0 %v538_v47  ;;  %v2457_v47 = vsel %vm136_vm7, 1, %v7659_v48  ;;  %vm102_vm9 = vcmp.gt.f32.partialorder %v66_v42, 0.5  ;;  %vm137_vm10 = vcmp.gt.f32.partialorder %v119_v49, 0.5  ;;  %v281_v49 = vld [vmem:[%s13641_s0 + $0xab] sm:$0xff] }
  0xf1   :  { %1398 = vmatprep.mubr.f32.mxu1 %v344_v52  ;;  %1857 = vperm.xlu0 %7575, %v1800_v53  }
  0xf2   :  { %1154 = vmatmul.mubr.f32.gmra.mxu0 %v270_v55  ;;  %7246 = vmatprep.subr.mxu0 %v537_v56  ;;  %v1811_v55 = vsel %vm101_vm8, 1, %v7659_v48 }
  0xf3   :  { %1158 = vmatprep.mubr.f32.mxu0 %v307_v51  ;;  %1860 = vperm.xlu1 %7576, %v1801_v57   ;;  %v314_v51 = vld [vmem:[%s13641_s0 + $0x94] sm:$0xff] }
  0xf4   :  { %1399 = vmatmul.mubr.f32.gmra.mxu1 %v308_v59  ;;  %7247 = vmatpush3.msra.mxu0 %v537_v56  ;;  %v67_v56 = vld [vmem:[%s13642_s1 + $0xb8] sm:$0xff] }
  0xf5   :  { %1403 = vmatprep.mubr.f32.mxu1 %v345_v60  ;;  %1863 = vperm.xlu0 %7575, %v1802_v61   ;;  %v1812_v61 = vsel %vm102_vm9, 1, %v7659_v48  ;;  %vm103_vm11 = vcmp.gt.f32.partialorder %v67_v56, 0.5  ;;  %v319_v56 = vld [vmem:[%s13641_s0 + $0xbc] sm:$0xff] }
  0xf6   :  { %1159 = vmatmul.mubr.f32.gmra.mxu0 %v271_v63  ;;  %7248 = vmatprep.subr.mxu0 %v536_v0 }
  0xf7   :  { %1163 = vmatprep.mubr.f32.mxu0 %v308_v59  ;;  %1866 = vperm.xlu1 %7576, %v1803_v2  }
  0xf8   :  { %1404 = vmatmul.mubr.f32.gmra.mxu1 %v309_v4  ;;  %7249 = vmatpush3.msra.mxu0 %v536_v0  ;;  %v315_v0 = vld [vmem:[%s13641_s0 + $0x9c] sm:$0xff] }
  0xf9   :  { %1408 = vmatprep.mubr.f32.mxu1 %v346_v5  ;;  %1869 = vperm.xlu0 %7575, %v1804_v6   ;;  %v2458_v5 = vsel %vm137_vm10, 1, %v7659_v48  ;;  %v120_v6 = vld [vmem:[%s13643_s2 + $0x20] sm:$0xff] }
  0xfa   :  { %1164 = vmatmul.mubr.f32.gmra.mxu0 %v272_v8  ;;  %3017 = vmatprep.subr.mxu0 %v8414_v1  ;;  %v348_v1 = vld [vmem:[%s13641_s0 + $0x85] sm:$0xff]  ;;  %v278_v8 = vld [vmem:[%s13641_s0 + $0x93] sm:$0xff]  ;;  %vm138_vm13 = vcmp.gt.f32.partialorder %v120_v6, 0.5 }
  0xfb   :  { %1168 = vmatprep.mubr.f32.mxu0 %v309_v4  ;;  %1872 = vperm.xlu1 %7576, %v1805_v9   ;;  %v352_v4 = vld [vmem:[%s13641_s0 + $0xa5] sm:$0xff]  ;;  %v2459_v24 = vsel %vm138_vm13, 1, %v7659_v48 }
  0xfc   :  { %1409 = vmatmul.mubr.f32.gmra.mxu1 %v310_v11 }
  0xfd   :  { %1413 = vmatprep.mubr.f32.mxu1 %v347_v12  ;;  %1875 = vperm.xlu0 %7575, %v1806_v13   ;;  %v69_v12 = vld [vmem:[%s13642_s1 + $0xc8] sm:$0xff] }
  0xfe   :  { %1169 = vmatmul.mubr.f32.gmra.mxu0 %v273_v15  ;;  %vm105_vm14 = vcmp.gt.f32.partialorder %v69_v12, 0.5  ;;  %v75_v12 = vld [vmem:[%s13642_s1 + $0xf8] sm:$0xff] }
  0xff   :  { %1173 = vmatprep.mubr.f32.mxu0 %v310_v11  ;;  %2474 = vperm.xlu1 %7576, %v2455_v16   ;;  %v1813_v11 = vsel %vm103_vm11, 1, %v7659_v48  ;;  %vm111_vm7 = vcmp.gt.f32.partialorder %v75_v12, 0.5  ;;  %v287_v12 = vld [vmem:[%s13641_s0 + $0xdb] sm:$0xff] }
 0x100   :  { %1414 = vmatmul.mubr.f32.gmra.mxu1 %v311_v18 }
 0x101   :  { %1418 = vmatprep.mubr.f32.mxu1 %v348_v1  ;;  %1878 = vperm.xlu0 %7575, %v1807_v19   ;;  %v625_v26 = vpop.f32.mrf.mxu0  ;;  %v70_v1 = vld [vmem:[%s13642_s1 + $0xd0] sm:$0xff] }
 0x102   :  { %1174 = vmatmul.mubr.f32.gmra.mxu0 %v274_v21  ;;  %v626_v30 = vadd.f32 %v8845_v22, %v625_v26  ;;  %vm106_vm15 = vcmp.gt.f32.partialorder %v70_v1, 0.5  ;;  %v76_v1 = vld [vmem:[%s13642_s1 + $0x100] sm:$0xff] }
 0x103   :  { %1178 = vmatprep.mubr.f32.mxu0 %v311_v18  ;;  %1881 = vperm.xlu1 %7576, %v1808_v23   ;;  %v627_v32 = vpop.f32.mrf.mxu0  ;;  %v1814_v18 = vsel %vm104_vm12, 1, %v7659_v48  ;;  %vm112_vm8 = vcmp.gt.f32.partialorder %v76_v1, 0.5  ;;  %v325_v1 = vld [vmem:[%s13641_s0 + $0xec] sm:$0xff] }
 0x104   :  { %v870_v33 = vpop.f32.mrf.mxu1  ;;  %1419 = vmatmul.mubr.f32.gmra.mxu1 %v312_v25  ;;  %v71_v32 = vld [vmem:[%s13642_s1 + $0xd8] sm:$0xff] }
 0x105   :  { %v8869_v36 = vadd.f32 %v870_v33, %v626_v30  ;;  %1423 = vmatprep.mubr.f32.mxu1 %v349_v27  ;;  %2477 = vperm.xlu0 %7575, %v2456_v28   ;;  %v630_v38 = vpop.f32.mrf.mxu0  ;;  %v317_v27 = vld [vmem:[%s13641_s0 + $0xac] sm:$0xff]  ;;  %v354_v30 = vld [vmem:[%s13641_s0 + $0xb5] sm:$0xff]  ;;  %vm107_vm1 = vcmp.gt.f32.partialorder %v71_v32, 0.5  ;;  %v1821_v32 = vsel %vm111_vm7, 1, %v7659_v48 }
 0x106   :  { %v872_v39 = vpop.f32.mrf.mxu1  ;;  %1179 = vmatmul.mubr.f32.gmra.mxu0 %v275_v31  ;;  %v631_v43 = vadd.f32 %v8845_v22, %v630_v38  ;;  %v1815_v31 = vsel %vm105_vm14, 1, %v7659_v48  ;;  %v1816_v38 = vsel %vm106_vm15, 1, %v7659_v48 }
 0x107   :  { %1183 = vmatprep.mubr.f32.mxu0 %v312_v25  ;;  %1884 = vperm.xlu1 %7576, %v1809_v34   ;;  %v632_v45 = vpop.f32.mrf.mxu0  ;;  %v121_v25 = vld [vmem:[%s13643_s2 + $0x28] sm:$0xff]  ;;  %v72_v39 = vld [vmem:[%s13642_s1 + $0xe0] sm:$0xff] }
 0x108   :  { %v875_v46 = vpop.f32.mrf.mxu1  ;;  %1424 = vmatmul.mubr.f32.gmra.mxu1 %v313_v37  ;;  %v280_v34 = vld [vmem:[%s13641_s0 + $0xa3] sm:$0xff]  ;;  %vm139_vm0 = vcmp.gt.f32.partialorder %v121_v25, 0.5  ;;  %vm108_vm2 = vcmp.gt.f32.partialorder %v72_v39, 0.5 }
 0x109   :  { %v8889_v50 = vadd.f32 %v875_v46, %v631_v43  ;;  %1428 = vmatprep.mubr.f32.mxu1 %v350_v40  ;;  %1887 = vperm.xlu0 %7575, %v1810_v41   ;;  %v318_v41 = vld [vmem:[%s13641_s0 + $0xb4] sm:$0xff]  ;;  %v2460_v45 = vsel %vm139_vm0, 1, %v7659_v48  ;;  %v359_v39 = vld [vmem:[%s13641_s0 + $0xdd] sm:$0xff] }
 0x10a   :  { %v635_v52 = vpop.f32.mrf.mxu0  ;;  %v877_v53 = vpop.f32.mrf.mxu1  ;;  %1184 = vmatmul.mubr.f32.gmra.mxu0 %v276_v44  ;;  %v355_v44 = vld [vmem:[%s13641_s0 + $0xbd] sm:$0xff]  ;;  %v122_v46 = vld [vmem:[%s13643_s2 + $0x30] sm:$0xff] }
 0x10b   :  { %v636_v57 = vadd.f32 %v8845_v22, %v635_v52  ;;  %1188 = vmatprep.mubr.f32.mxu0 %v313_v37  ;;  %2480 = vperm.xlu1 %7576, %v2457_v47   ;;  %v1817_v53 = vsel %vm107_vm1, 1, %v7659_v48  ;;  %vm140_vm3 = vcmp.gt.f32.partialorder %v122_v46, 0.5 }
 0x10c   :  { %v637_v59 = vpop.f32.mrf.mxu0  ;;  %v880_v60 = vpop.f32.mrf.mxu1  ;;  %1429 = vmatmul.mubr.f32.gmra.mxu1 %v314_v51 }
 0x10d   :  { %v8909_v63 = vadd.f32 %v880_v60, %v636_v57  ;;  %1433 = vmatprep.mubr.f32.mxu1 %v351_v54  ;;  %1890 = vperm.xlu0 %7575, %v1811_v55   ;;  %v73_v54 = vld [vmem:[%s13642_s1 + $0xe8] sm:$0xff]  ;;  %v1818_v60 = vsel %vm108_vm2, 1, %v7659_v48 }
 0x10e   :  { %v640_v2 = vpop.f32.mrf.mxu0  ;;  %v882_v3 = vpop.f32.mrf.mxu1  ;;  %1189 = vmatmul.mubr.f32.gmra.mxu0 %v277_v58  ;;  %v356_v59 = vld [vmem:[%s13641_s0 + $0xc5] sm:$0xff]  ;;  %vm109_vm4 = vcmp.gt.f32.partialorder %v73_v54, 0.5 }
 0x10f   :  { %v641_v7 = vadd.f32 %v8845_v22, %v640_v2  ;;  %1193 = vmatprep.mubr.f32.mxu0 %v314_v51  ;;  %1893 = vperm.xlu1 %7576, %v1812_v61   ;;  %v74_v61 = vld [vmem:[%s13642_s1 + $0xf0] sm:$0xff] }
 0x110   :  { %v642_v9 = vpop.f32.mrf.mxu0  ;;  %v885_v10 = vpop.f32.mrf.mxu1  ;;  %1434 = vmatmul.mubr.f32.gmra.mxu1 %v315_v0  ;;  %vm110_vm5 = vcmp.gt.f32.partialorder %v74_v61, 0.5 }
 0x111   :  { %v8929_v13 = vadd.f32 %v885_v10, %v641_v7  ;;  %1438 = vmatprep.mubr.f32.mxu1 %v352_v4  ;;  %2483 = vperm.xlu0 %7575, %v2458_v5   ;;  %v2461_v4 = vsel %vm140_vm3, 1, %v7659_v48  ;;  %v123_v5 = vld [vmem:[%s13643_s2 + $0x38] sm:$0xff]  ;;  %v320_v7 = vld [vmem:[%s13641_s0 + $0xc4] sm:$0xff]  ;;  %v357_v10 = vld [vmem:[%s13641_s0 + $0xcd] sm:$0xff] }
 0x112   :  { %v645_v15 = vpop.f32.mrf.mxu0  ;;  %v887_v16 = vpop.f32.mrf.mxu1  ;;  %1194 = vmatmul.mubr.f32.gmra.mxu0 %v278_v8  ;;  %vm141_vm6 = vcmp.gt.f32.partialorder %v123_v5, 0.5 }
 0x113   :  { %v646_v19 = vadd.f32 %v8845_v22, %v645_v15  ;;  %1198 = vmatprep.mubr.f32.mxu0 %v315_v0  ;;  %1896 = vperm.xlu1 %7576, %v1813_v11   ;;  %v282_v0 = vld [vmem:[%s13641_s0 + $0xb3] sm:$0xff]  ;;  %v1819_v11 = vsel %vm109_vm4, 1, %v7659_v48  ;;  %v283_v15 = vld [vmem:[%s13641_s0 + $0xbb] sm:$0xff]  ;;  %v2462_v25 = vsel %vm141_vm6, 1, %v7659_v48 }
 0x114   :  { %v647_v21 = vpop.f32.mrf.mxu0  ;;  %v890_v23 = vpop.f32.mrf.mxu1  ;;  %1439 = vmatmul.mubr.f32.gmra.mxu1 %v316_v14 }
 0x115   :  { %v8949_v26 = vadd.f32 %v890_v23, %v646_v19  ;;  %1443 = vmatprep.mubr.f32.mxu1 %v353_v17  ;;  %1899 = vperm.xlu0 %7575, %v1814_v18   ;;  %v1820_v18 = vsel %vm110_vm5, 1, %v7659_v48 }
 0x116   :  { %v650_v28 = vpop.f32.mrf.mxu0  ;;  %v892_v29 = vpop.f32.mrf.mxu1  ;;  %1199 = vmatmul.mubr.f32.gmra.mxu0 %v279_v20  ;;  %v321_v20 = vld [vmem:[%s13641_s0 + $0xcc] sm:$0xff] }
 0x117   :  { %v651_v33 = vadd.f32 %v8845_v22, %v650_v28  ;;  %1203 = vmatprep.mubr.f32.mxu0 %v316_v14  ;;  %2486 = vperm.xlu1 %7576, %v2459_v24   ;;  %v358_v24 = vld [vmem:[%s13641_s0 + $0xd5] sm:$0xff]  ;;  %v284_v29 = vld [vmem:[%s13641_s0 + $0xc3] sm:$0xff] }
 0x118   :  { %v652_v35 = vpop.f32.mrf.mxu0  ;;  %v895_v37 = vpop.f32.mrf.mxu1  ;;  %1444 = vmatmul.mubr.f32.gmra.mxu1 %v317_v27 }
 0x119   :  { %v8969_v40 = vadd.f32 %v895_v37, %v651_v33  ;;  %1448 = vmatprep.mubr.f32.mxu1 %v354_v30  ;;  %1902 = vperm.xlu0 %7575, %v1815_v31   ;;  %v77_v33 = vld [vmem:[%s13642_s1 + $0x108] sm:$0xff]  ;;  %v322_v35 = vld [vmem:[%s13641_s0 + $0xd4] sm:$0xff] }
 0x11a   :  { %v655_v42 = vpop.f32.mrf.mxu0  ;;  %v897_v43 = vpop.f32.mrf.mxu1  ;;  %1204 = vmatmul.mubr.f32.gmra.mxu0 %v280_v34  ;;  %vm113_vm10 = vcmp.gt.f32.partialorder %v77_v33, 0.5 }
 0x11b   :  { %v656_v47 = vadd.f32 %v8845_v22, %v655_v42  ;;  %1208 = vmatprep.mubr.f32.mxu0 %v317_v27  ;;  %1905 = vperm.xlu1 %7576, %v1816_v38   ;;  %v124_v27 = vld [vmem:[%s13643_s2 + $0x40] sm:$0xff]  ;;  %v78_v42 = vld [vmem:[%s13642_s1 + $0x110] sm:$0xff] }
 0x11c   :  { %v657_v51 = vpop.f32.mrf.mxu0  ;;  %v900_v52 = vpop.f32.mrf.mxu1  ;;  %1449 = vmatmul.mubr.f32.gmra.mxu1 %v318_v41  ;;  %vm142_vm9 = vcmp.gt.f32.partialorder %v124_v27, 0.5  ;;  %vm114_vm11 = vcmp.gt.f32.partialorder %v78_v42, 0.5  ;;  %v79_v42 = vld [vmem:[%s13642_s1 + $0x118] sm:$0xff] }
 0x11d   :  { %v8989_v55 = vadd.f32 %v900_v52, %v656_v47  ;;  %1453 = vmatprep.mubr.f32.mxu1 %v355_v44  ;;  %2489 = vperm.xlu0 %7575, %v2460_v45   ;;  %v285_v44 = vld [vmem:[%s13641_s0 + $0xcb] sm:$0xff]  ;;  %v2463_v47 = vsel %vm142_vm9, 1, %v7659_v48  ;;  %v323_v52 = vld [vmem:[%s13641_s0 + $0xdc] sm:$0xff]  ;;  %vm115_vm3 = vcmp.gt.f32.partialorder %v79_v42, 0.5 }
 0x11e   :  { %v660_v57 = vpop.f32.mrf.mxu0  ;;  %v902_v58 = vpop.f32.mrf.mxu1  ;;  %1209 = vmatmul.mubr.f32.gmra.mxu0 %v281_v49  ;;  %v125_v49 = vld [vmem:[%s13643_s2 + $0x48] sm:$0xff] }
 0x11f   :  { %v661_v62 = vadd.f32 %v8845_v22, %v660_v57  ;;  %1213 = vmatprep.mubr.f32.mxu0 %v318_v41  ;;  %1908 = vperm.xlu1 %7576, %v1817_v53   ;;  %v1822_v41 = vsel %vm112_vm8, 1, %v7659_v48  ;;  %v1823_v57 = vsel %vm113_vm10, 1, %v7659_v48  ;;  %v126_v58 = vld [vmem:[%s13643_s2 + $0x50] sm:$0xff]  ;;  %vm143_vm12 = vcmp.gt.f32.partialorder %v125_v49, 0.5  ;;  %v132_v49 = vld [vmem:[%s13643_s2 + $0x80] sm:$0xff] }
 0x120   :  { %v662_v2 = vpop.f32.mrf.mxu0  ;;  %v905_v3 = vpop.f32.mrf.mxu1  ;;  %1454 = vmatmul.mubr.f32.gmra.mxu1 %v319_v56  ;;  %vm144_vm13 = vcmp.gt.f32.partialorder %v126_v58, 0.5  ;;  %v364_v58 = vld [vmem:[%s13641_s0 + $0x105] sm:$0xff]  ;;  %vm150_vm4 = vcmp.gt.f32.partialorder %v132_v49, 0.5  ;;  %v2722_v49 = vld [vmem:[%s13645_s5 + $0x58] sm:$0xff] }
 0x121   :  { %v9009_v6 = vadd.f32 %v905_v3, %v661_v62  ;;  %1458 = vmatprep.mubr.f32.mxu1 %v356_v59  ;;  %1911 = vperm.xlu0 %7575, %v1818_v60   ;;  %v286_v60 = vld [vmem:[%s13641_s0 + $0xd3] sm:$0xff] }
 0x122   :  { %v665_v8 = vpop.f32.mrf.mxu0  ;;  %v907_v9 = vpop.f32.mrf.mxu1  ;;  %1214 = vmatmul.mubr.f32.gmra.mxu0 %v282_v0  ;;  %v1824_v0 = vsel %vm114_vm11, 1, %v7659_v48  ;;  %v127_v2 = vld [vmem:[%s13643_s2 + $0x58] sm:$0xff] }
 0x123   :  { %v666_v14 = vadd.f32 %v8845_v22, %v665_v8  ;;  %1218 = vmatprep.mubr.f32.mxu0 %v319_v56  ;;  %2492 = vperm.xlu1 %7576, %v2461_v4   ;;  %v360_v56 = vld [vmem:[%s13641_s0 + $0xe5] sm:$0xff]  ;;  %v361_v8 = vld [vmem:[%s13641_s0 + $0xed] sm:$0xff]  ;;  %v2464_v9 = vsel %vm143_vm12, 1, %v7659_v48  ;;  %vm145_vm14 = vcmp.gt.f32.partialorder %v127_v2, 0.5 }
 0x124   :  { %v667_v16 = vpop.f32.mrf.mxu0  ;;  %v910_v17 = vpop.f32.mrf.mxu1  ;;  %1459 = vmatmul.mubr.f32.gmra.mxu1 %v320_v7  ;;  %v324_v4 = vld [vmem:[%s13641_s0 + $0xe4] sm:$0xff] }
 0x125   :  { %v9029_v19 = vadd.f32 %v910_v17, %v666_v14  ;;  %1463 = vmatprep.mubr.f32.mxu1 %v357_v10  ;;  %1914 = vperm.xlu0 %7575, %v1819_v11   ;;  %v128_v10 = vld [vmem:[%s13643_s2 + $0x60] sm:$0xff]  ;;  %v2465_v16 = vsel %vm144_vm13, 1, %v7659_v48  ;;  %v129_v17 = vld [vmem:[%s13643_s2 + $0x68] sm:$0xff] }
 0x126   :  { %v670_v21 = vpop.f32.mrf.mxu0  ;;  %v912_v23 = vpop.f32.mrf.mxu1  ;;  %1219 = vmatmul.mubr.f32.gmra.mxu0 %v283_v15  ;;  %vm146_vm15 = vcmp.gt.f32.partialorder %v128_v10, 0.5  ;;  %vm147_vm0 = vcmp.gt.f32.partialorder %v129_v17, 0.5 }
 0x127   :  { %v671_v28 = vadd.f32 %v8845_v22, %v670_v21  ;;  %1223 = vmatprep.mubr.f32.mxu0 %v320_v7  ;;  %1917 = vperm.xlu1 %7576, %v1820_v18   ;;  %v362_v23 = vld [vmem:[%s13641_s0 + $0xf5] sm:$0xff] }
 0x128   :  { %v672_v30 = vpop.f32.mrf.mxu0  ;;  %v915_v31 = vpop.f32.mrf.mxu1  ;;  %1464 = vmatmul.mubr.f32.gmra.mxu1 %v321_v20 }
 0x129   :  { %v9049_v34 = vadd.f32 %v915_v31, %v671_v28  ;;  %1468 = vmatprep.mubr.f32.mxu1 %v358_v24  ;;  %2495 = vperm.xlu0 %7575, %v2462_v25   ;;  %v2466_v24 = vsel %vm145_vm14, 1, %v7659_v48  ;;  %v130_v25 = vld [vmem:[%s13643_s2 + $0x70] sm:$0xff]  ;;  %v288_v28 = vld [vmem:[%s13641_s0 + $0xe3] sm:$0xff]  ;;  %v2467_v31 = vsel %vm146_vm15, 1, %v7659_v48 }
 0x12a   :  { %v675_v37 = vpop.f32.mrf.mxu0  ;;  %v917_v38 = vpop.f32.mrf.mxu1  ;;  %1224 = vmatmul.mubr.f32.gmra.mxu0 %v284_v29  ;;  %vm148_vm1 = vcmp.gt.f32.partialorder %v130_v25, 0.5 }
 0x12b   :  { %v676_v43 = vadd.f32 %v8845_v22, %v675_v37  ;;  %1228 = vmatprep.mubr.f32.mxu0 %v321_v20  ;;  %1920 = vperm.xlu1 %7576, %v1821_v32   ;;  %v131_v32 = vld [vmem:[%s13643_s2 + $0x78] sm:$0xff] }
 0x12c   :  { %v677_v45 = vpop.f32.mrf.mxu0  ;;  %v920_v46 = vpop.f32.mrf.mxu1  ;;  %1469 = vmatmul.mubr.f32.gmra.mxu1 %v322_v35  ;;  %vm149_vm2 = vcmp.gt.f32.partialorder %v131_v32, 0.5 }
 0x12d   :  { %v9069_v51 = vadd.f32 %v920_v46, %v676_v43  ;;  %1473 = vmatprep.mubr.f32.mxu1 %v359_v39  ;;  %1923 = vperm.xlu0 %7575, %v1822_v41   ;;  %v363_v39 = vld [vmem:[%s13641_s0 + $0xfd] sm:$0xff]  ;;  %v2468_v41 = vsel %vm147_vm0, 1, %v7659_v48 }
 0x12e   :  { %v680_v53 = vpop.f32.mrf.mxu0  ;;  %v922_v54 = vpop.f32.mrf.mxu1  ;;  %1229 = vmatmul.mubr.f32.gmra.mxu0 %v285_v44  ;;  %v289_v44 = vld [vmem:[%s13641_s0 + $0xeb] sm:$0xff] }
 0x12f   :  { %v681_v59 = vadd.f32 %v8845_v22, %v680_v53  ;;  %1233 = vmatprep.mubr.f32.mxu0 %v322_v35  ;;  %2498 = vperm.xlu1 %7576, %v2463_v47   ;;  %v326_v35 = vld [vmem:[%s13641_s0 + $0xf4] sm:$0xff]  ;;  %v2469_v47 = vsel %vm148_vm1, 1, %v7659_v48  ;;  %v327_v54 = vld [vmem:[%s13641_s0 + $0xfc] sm:$0xff] }
 0x130   :  { %v682_v61 = vpop.f32.mrf.mxu0  ;;  %v925_v62 = vpop.f32.mrf.mxu1  ;;  %1474 = vmatmul.mubr.f32.gmra.mxu1 %v323_v52 }
 0x131   :  { %v9089_v3 = vadd.f32 %v925_v62, %v681_v59  ;;  %1478 = vmatprep.mubr.f32.mxu1 %v360_v56  ;;  %1926 = vperm.xlu0 %7575, %v1823_v57   ;;  %v2470_v59 = vsel %vm149_vm2, 1, %v7659_v48  ;;  %v290_v62 = vld [vmem:[%s13641_s0 + $0xf3] sm:$0xff] }
 0x132   :  { %v685_v5 = vpop.f32.mrf.mxu0  ;;  %v927_v7 = vpop.f32.mrf.mxu1  ;;  %1234 = vmatmul.mubr.f32.gmra.mxu0 %v286_v60  ;;  %v133_v60 = vld [vmem:[%s13643_s2 + $0x88] sm:$0xff] }
 0x133   :  { %v686_v11 = vadd.f32 %v8845_v22, %v685_v5  ;;  %1238 = vmatprep.mubr.f32.mxu0 %v323_v52  ;;  %1929 = vperm.xlu1 %7576, %v1824_v0   ;;  %v2726_v52 = vld [vmem:[%s13645_s5 + $0x78] sm:$0xff]  ;;  %v9172_v5 = vld [vmem:[#allocation4] sm:$0xff]  ;;  %vm151_vm5 = vcmp.gt.f32.partialorder %v133_v60, 0.5 }
 0x134   :  { %v687_v14 = vpop.f32.mrf.mxu0  ;;  %v930_v15 = vpop.f32.mrf.mxu1  ;;  %1479 = vmatmul.mubr.f32.gmra.mxu1 %v324_v4 }
 0x135   :  { %v9109_v18 = vadd.f32 %v930_v15, %v686_v11  ;;  %1483 = vmatprep.mubr.f32.mxu1 %v361_v8  ;;  %2501 = vperm.xlu0 %7575, %v2464_v9   ;;  %v328_v8 = vld [vmem:[%s13641_s0 + $0x104] sm:$0xff]  ;;  %v2725_v9 = vld [vmem:[%s13645_s5 + $0x70] sm:$0xff]  ;;  %v2471_v14 = vsel %vm150_vm4, 1, %v7659_v48 }
 0x136   :  { %v690_v20 = vpop.f32.mrf.mxu0  ;;  %v932_v21 = vpop.f32.mrf.mxu1  ;;  %1239 = vmatmul.mubr.f32.gmra.mxu0 %v287_v12  ;;  %2863 = vmatpush1.msra.mxu1 %v2726_v52  ;;  %v365_v12 = vld [vmem:[%s13641_s0 + $0x10d] sm:$0xff] }
 0x137   :  { %v691_v27 = vadd.f32 %v8845_v22, %v690_v20  ;;  %1243 = vmatprep.mubr.f32.mxu0 %v324_v4  ;;  %2504 = vperm.xlu1 %7576, %v2465_v16   ;;  %v1825_v4 = vsel %vm115_vm3, 1, %v7659_v48  ;;  %v291_v16 = vld [vmem:[%s13641_s0 + $0xfb] sm:$0xff]  ;;  %v2472_v20 = vsel %vm151_vm5, 1, %v7659_v48 }
 0x138   :  { %v692_v29 = vpop.f32.mrf.mxu0  ;;  %v935_v30 = vpop.f32.mrf.mxu1  ;;  %1484 = vmatmul.mubr.f32.gmra.mxu1 %v325_v1  ;;  %2864 = vmatprep.subr.mxu1 %v9172_v5  ;;  %v366_v48 = vld [vmem:[%s13641_s0 + $0x115] sm:$0xff] }
 0x139   :  { %v9129_v33 = vadd.f32 %v935_v30, %v691_v27  ;;  %1488 = vmatprep.mubr.f32.mxu1 %v362_v23  ;;  %2507 = vperm.xlu0 %7575, %v2466_v24   ;;  %v329_v23 = vld [vmem:[%s13641_s0 + $0x10c] sm:$0xff]  ;;  %v292_v29 = vld [vmem:[%s13641_s0 + $0x103] sm:$0xff] }
 0x13a   :  { %v695_v37 = vpop.f32.mrf.mxu0  ;;  %v937_v38 = vpop.f32.mrf.mxu1  ;;  %1244 = vmatmul.mubr.f32.gmra.mxu0 %v288_v28  ;;  %2865 = vmatpush1.msra.mxu1 %v2725_v9  ;;  %v2724_v24 = vld [vmem:[%s13645_s5 + $0x68] sm:$0xff]  ;;  %v295_v9 = vld [vmem:[%s13641_s0 + $0x11b] sm:$0xff] }
 0x13b   :  { %v696_v43 = vadd.f32 %v8845_v22, %v695_v37  ;;  %1248 = vmatprep.mubr.f32.mxu0 %v325_v1  ;;  %2510 = vperm.xlu1 %7576, %v2467_v31   ;;  %v2723_v37 = vld [vmem:[%s13645_s5 + $0x60] sm:$0xff] }
 0x13c   :  { %v697_v45 = vpop.f32.mrf.mxu0  ;;  %v940_v46 = vpop.f32.mrf.mxu1  ;;  %1489 = vmatmul.mubr.f32.gmra.mxu1 %v326_v35  ;;  %2866 = vmatprep.subr.mxu1 %v9172_v5 }
 0x13d   :  { %v9153_v53 = vadd.f32 %v940_v46, %v696_v43  ;;  %1493 = vmatprep.mubr.f32.mxu1 %v363_v39  ;;  %2513 = vperm.xlu0 %7575, %v2468_v41   ;;  %v367_v41 = vld [vmem:[%s13641_s0 + $0x11d] sm:$0xff]  ;;  %v293_v43 = vld [vmem:[%s13641_s0 + $0x10b] sm:$0xff] }
 0x13e   :  { %v700_v56 = vpop.f32.mrf.mxu0  ;;  %v942_v57 = vpop.f32.mrf.mxu1  ;;  %1249 = vmatmul.mubr.f32.gmra.mxu0 %v289_v44  ;;  %2867 = vmatpush1.msra.mxu1 %v2724_v24  ;;  %v2720_v24 = vld [vmem:[%s13645_s5 + $0x48] sm:$0xff] }
 0x13f   :  { %v701_v61 = vadd.f32 %v8845_v22, %v700_v56  ;;  %1253 = vmatprep.mubr.f32.mxu0 %v326_v35  ;;  %2516 = vperm.xlu1 %7576, %v2469_v47   ;;  %v330_v35 = vld [vmem:[%s13641_s0 + $0x114] sm:$0xff]  ;;  %v331_v47 = vld [vmem:[%s13641_s0 + $0x11c] sm:$0xff]  ;;  %v368_v56 = vld [vmem:[%s13641_s0 + $0x125] sm:$0xff] }
 0x140   :  { %v702_v0 = vpop.f32.mrf.mxu0  ;;  %v945_v2 = vpop.f32.mrf.mxu1  ;;  %1494 = vmatmul.mubr.f32.gmra.mxu1 %v327_v54  ;;  %2868 = vmatprep.subr.mxu1 %v9172_v5 }
 0x141   :  { %v9175_v7 = vadd.f32 %v945_v2, %v701_v61  ;;  %1498 = vmatprep.mubr.f32.mxu1 %v364_v58  ;;  %2519 = vperm.xlu0 %7575, %v2470_v59   ;;  %v294_v58 = vld [vmem:[%s13641_s0 + $0x113] sm:$0xff] }
 0x142   :  { %v705_v10 = vpop.f32.mrf.mxu0  ;;  %v947_v11 = vpop.f32.mrf.mxu1  ;;  %1254 = vmatmul.mubr.f32.gmra.mxu0 %v290_v62  ;;  %2869 = vmatpush1.msra.mxu1 %v2723_v37  ;;  %v332_v62 = vld [vmem:[%s13641_s0 + $0x124] sm:$0xff] }
 0x143   :  { %v706_v15 = vadd.f32 %v8845_v22, %v705_v10  ;;  %1258 = vmatprep.mubr.f32.mxu0 %v327_v54  ;;  %1932 = vperm.xlu1 %7576, %v1825_v4   ;;  %v369_v4 = vld [vmem:[%s13641_s0 + $0x12d] sm:$0xff] }
 0x144   :  { %v707_v17 = vpop.f32.mrf.mxu0  ;;  %v950_v1 = vpop.f32.mrf.mxu1  ;;  %1499 = vmatmul.mubr.f32.gmra.mxu1 %v328_v8  ;;  %2870 = vmatprep.subr.mxu1 %v9172_v5  ;;  %v2721_v10 = vld [vmem:[%s13645_s5 + $0x50] sm:$0xff] }
 0x145   :  { %v9194_v21 = vadd.f32 %v950_v1, %v706_v15  ;;  %1503 = vmatprep.mubr.f32.mxu1 %v365_v12  ;;  %2522 = vperm.xlu0 %7575, %v2471_v14   ;;  %v333_v15 = vld [vmem:[%s13641_s0 + $0x12c] sm:$0xff]  ;;  %v370_v1 = vld [vmem:[%s13641_s0 + $0x135] sm:$0xff] }
 0x146   :  { %v710_v25 = vpop.f32.mrf.mxu0  ;;  %v952_v27 = vpop.f32.mrf.mxu1  ;;  %1259 = vmatmul.mubr.f32.gmra.mxu0 %v291_v16  ;;  %2871 = vmatpush1.msra.mxu1 %v2722_v49  ;;  %v297_v37 = vld [vmem:[%s13641_s0 + $0x12b] sm:$0xff] }
 0x147   :  { %v711_v28 = vadd.f32 %v8845_v22, %v710_v25  ;;  %1263 = vmatprep.mubr.f32.mxu0 %v328_v8  ;;  %2525 = vperm.xlu1 %7576, %v2472_v20  }
 0x148   :  { %v712_v30 = vpop.f32.mrf.mxu0  ;;  %v955_v31 = vpop.f32.mrf.mxu1  ;;  %1504 = vmatmul.mubr.f32.gmra.mxu1 %v329_v23  ;;  %2872 = vmatprep.subr.mxu1 %v9172_v5 }
 0x149   :  { %v9210_v32 = vadd.f32 %v955_v31, %v711_v28  ;;  %1508 = vmatprep.mubr.f32.mxu1 %v366_v48  ;;  %2873 = vmatpush1.msra.mxu1 %v2721_v10  ;;  %v334_v28 = vld [vmem:[%s13641_s0 + $0x134] sm:$0xff]  ;;  %v371_v31 = vld [vmem:[%s13641_s0 + $0x13d] sm:$0xff] }
 0x14a   :  { %v715_v38 = vpop.f32.mrf.mxu0  ;;  %v957_v39 = vpop.f32.mrf.mxu1  ;;  %1264 = vmatmul.mubr.f32.gmra.mxu0 %v292_v29  ;;  %2874 = vmatprep.subr.mxu1 %v9172_v5 }
 0x14b   :  { %v716_v42 = vadd.f32 %v8845_v22, %v715_v38  ;;  %1268 = vmatprep.mubr.f32.mxu0 %v329_v23  ;;  %v296_v23 = vld [vmem:[%s13641_s0 + $0x123] sm:$0xff]  ;;  %2875 = vmatpush1.msra.mxu1 %v2720_v24 }
 0x14c   :  { %v717_v44 = vpop.f32.mrf.mxu0  ;;  %v960_v45 = vpop.f32.mrf.mxu1  ;;  %1509 = vmatmul.mubr.f32.gmra.mxu1 %v330_v35  ;;  %2876 = vmatprep.subr.mxu1 %v9172_v5  ;;  %v2719_v38 = vld [vmem:[%s13645_s5 + $0x40] sm:$0xff] }
 0x14d   :  { %v9226_v46 = vadd.f32 %v960_v45, %v716_v42  ;;  %1513 = vmatprep.mubr.f32.mxu1 %v367_v41  ;;  %v372_v42 = vld [vmem:[%s13641_s0 + $0x26] sm:$0xff]  ;;  %v335_v44 = vld [vmem:[%s13641_s0 + $0x13c] sm:$0xff]  ;;  %2877 = vmatpush1.msra.mxu1 %v2719_v38 }
 0x14e   :  { %v720_v52 = vpop.f32.mrf.mxu0  ;;  %v962_v54 = vpop.f32.mrf.mxu1  ;;  %1269 = vmatmul.mubr.f32.gmra.mxu0 %v293_v43  ;;  %2878 = vmatprep.subr.mxu1 %v9172_v5 }
 0x14f   :  { %v721_v57 = vadd.f32 %v8845_v22, %v720_v52  ;;  %1273 = vmatprep.mubr.f32.mxu0 %v330_v35  ;;  %v373_v52 = vld [vmem:[%s13641_s0 + $0x2e] sm:$0xff]  ;;  %v2718_v54 = vld [vmem:[%s13645_s5 + $0x38] sm:$0xff] }
 0x150   :  { %v722_v59 = vpop.f32.mrf.mxu0  ;;  %v965_v60 = vpop.f32.mrf.mxu1  ;;  %1514 = vmatmul.mubr.f32.gmra.mxu1 %v331_v47 }
 0x151   :  { %v9242_v61 = vadd.f32 %v965_v60, %v721_v57  ;;  %1518 = vmatprep.mubr.f32.mxu1 %v368_v56  ;;  %2879 = vmatpush1.msra.mxu1 %v2718_v54 }
 0x152   :  { %v725_v0 = vpop.f32.mrf.mxu0  ;;  %v967_v2 = vpop.f32.mrf.mxu1  ;;  %1274 = vmatmul.mubr.f32.gmra.mxu0 %v294_v58  ;;  %v374_v58 = vld [vmem:[%s13641_s0 + $0x36] sm:$0xff]  ;;  %2880 = vmatprep.subr.mxu1 %v9172_v5 }
 0x153   :  { %v726_v8 = vadd.f32 %v8845_v22, %v725_v0  ;;  %1278 = vmatprep.mubr.f32.mxu0 %v331_v47  ;;  %v375_v2 = vld [vmem:[%s13641_s0 + $0x3e] sm:$0xff] }
 0x154   :  { %v727_v11 = vpop.f32.mrf.mxu0  ;;  %v970_v12 = vpop.f32.mrf.mxu1  ;;  %1519 = vmatmul.mubr.f32.gmra.mxu1 %v332_v62 }
 0x155   :  { %v9257_v14 = vadd.f32 %v970_v12, %v726_v8  ;;  %1523 = vmatprep.mubr.f32.mxu1 %v369_v4  ;;  %v2717_v11 = vld [vmem:[%s13645_s5 + $0x30] sm:$0xff] }
 0x156   :  { %v730_v16 = vpop.f32.mrf.mxu0  ;;  %v972_v17 = vpop.f32.mrf.mxu1  ;;  %1279 = vmatmul.mubr.f32.gmra.mxu0 %v295_v9  ;;  %v376_v9 = vld [vmem:[%s13641_s0 + $0x46] sm:$0xff]  ;;  %2881 = vmatpush1.msra.mxu1 %v2717_v11 }
 0x157   :  { %v731_v20 = vadd.f32 %v8845_v22, %v730_v16  ;;  %1283 = vmatprep.mubr.f32.mxu0 %v332_v62  ;;  %v377_v17 = vld [vmem:[%s13641_s0 + $0x4e] sm:$0xff]  ;;  %2882 = vmatprep.subr.mxu1 %v9172_v5 }
 0x158   :  { %v732_v25 = vpop.f32.mrf.mxu0  ;;  %v975_v27 = vpop.f32.mrf.mxu1  ;;  %1524 = vmatmul.mubr.f32.gmra.mxu1 %v333_v15 }
 0x159   :  { %v9273_v48 = vadd.f32 %v975_v27, %v731_v20  ;;  %1528 = vmatprep.mubr.f32.mxu1 %v370_v1  ;;  %v2716_v25 = vld [vmem:[%s13645_s5 + $0x28] sm:$0xff] }
 0x15a   :  { %v735_v29 = vpop.f32.mrf.mxu0  ;;  %v977_v30 = vpop.f32.mrf.mxu1  ;;  %1284 = vmatmul.mubr.f32.gmra.mxu0 %v296_v23  ;;  %v378_v23 = vld [vmem:[%s13641_s0 + $0x56] sm:$0xff]  ;;  %2883 = vmatpush1.msra.mxu1 %v2716_v25 }
 0x15b   :  { %v736_v35 = vadd.f32 %v8845_v22, %v735_v29  ;;  %1288 = vmatprep.mubr.f32.mxu0 %v333_v15  ;;  %v379_v30 = vld [vmem:[%s13641_s0 + $0x5e] sm:$0xff]  ;;  %2884 = vmatprep.subr.mxu1 %v9172_v5 }
 0x15c   :  { %v737_v39 = vpop.f32.mrf.mxu0  ;;  %v980_v41 = vpop.f32.mrf.mxu1  ;;  %1529 = vmatmul.mubr.f32.gmra.mxu1 %v334_v28 }
 0x15d   :  { %v9292_v43 = vadd.f32 %v980_v41, %v736_v35  ;;  %1533 = vmatprep.mubr.f32.mxu1 %v371_v31  ;;  %v2715_v39 = vld [vmem:[%s13645_s5 + $0x20] sm:$0xff] }
 0x15e   :  { %v740_v45 = vpop.f32.mrf.mxu0  ;;  %v982_v47 = vpop.f32.mrf.mxu1  ;;  %1289 = vmatmul.mubr.f32.gmra.mxu0 %v297_v37  ;;  %v380_v37 = vld [vmem:[%s13641_s0 + $0x66] sm:$0xff]  ;;  %2885 = vmatpush1.msra.mxu1 %v2715_v39 }
 0x15f   :  { %v741_v49 = vadd.f32 %v8845_v22, %v740_v45  ;;  %7250 = vmatprep.mubr.f32.mxu0 %v372_v42  ;;  %v9352_v42 = vld [vmem:[%s13644_s4] ss:$0 sm:$0xff]  ;;  %v381_v45 = vld [vmem:[%s13641_s0 + $0x6e] sm:$0xff]  ;;  %2886 = vmatprep.subr.mxu1 %v9172_v5 }
 0x160   :  { %v742_v56 = vpop.f32.mrf.mxu0  ;;  %v985_v57 = vpop.f32.mrf.mxu1  ;;  %1534 = vmatmul.mubr.f32.gmra.mxu1 %v335_v44 }
 0x161   :  { %v9308_v59 = vadd.f32 %v985_v57, %v741_v49  ;;  %v2714_v56 = vld [vmem:[%s13645_s5 + $0x18] sm:$0xff] }
 0x162   :  { %v745_v60 = vpop.f32.mrf.mxu0  ;;  %v987_v62 = vpop.f32.mrf.mxu1  ;;  %7251 = vmatmul.mubr.f32.vlgmr.msra.gmra.mxu0 %v373_v52  ;;  %v382_v52 = vld [vmem:[%s13641_s0 + $0x76] sm:$0xff]  ;;  %2887 = vmatpush1.msra.mxu1 %v2714_v56 }
 0x163   :  { %v746_v0 = vadd.f32 %v8845_v22, %v745_v60  ;;  %7253 = vmatprep.mubr.f32.mxu0 %v374_v58  ;;  %v383_v62 = vld [vmem:[%s13641_s0 + $0x7e] sm:$0xff]  ;;  %2888 = vmatprep.subr.mxu1 %v9172_v5  ;;  %v390_v56 = vld [vmem:[%s13641_s0 + $0xb6] sm:$0xff] }
 0x164   :  { %v747_v4 = vpop.f32.mrf.mxu0  ;;  %v990_v8 = vpop.f32.mrf.mxu1 }
 0x165   :  { %v9318_v10 = vadd.f32 %v990_v8, %v746_v0  ;;  %v384_v4 = vld [vmem:[%s13641_s0 + $0x86] sm:$0xff] }
 0x166   :  { %v750_v12 = vpop.f32.mrf.mxu0  ;;  %v992_v15 = vpop.f32.mrf.mxu1  ;;  %7254 = vmatmul.mubr.f32.gmra.mxu0 %v375_v2 }
 0x167   :  { %v751_v16 = vadd.f32 %v8845_v22, %v750_v12  ;;  %7256 = vmatprep.mubr.f32.mxu0 %v376_v9  ;;  %v385_v15 = vld [vmem:[%s13641_s0 + $0x8e] sm:$0xff] }
 0x168   :  { %v752_v1 = vpop.f32.mrf.mxu0  ;;  %v995_v20 = vpop.f32.mrf.mxu1 }
 0x169   :  { %v9331_v24 = vadd.f32 %v995_v20, %v751_v16  ;;  %v2713_v16 = vld [vmem:[%s13645_s5 + $0x10] sm:$0xff] }
 0x16a   :  { %v755_v27 = vpop.f32.mrf.mxu0  ;;  %v997_v28 = vpop.f32.mrf.mxu1  ;;  %7257 = vmatmul.mubr.f32.gmra.mxu0 %v377_v17  ;;  %v386_v20 = vld [vmem:[%s13641_s0 + $0x96] sm:$0xff]  ;;  %2889 = vmatpush1.msra.mxu1 %v2713_v16 }
 0x16b   :  { %v756_v29 = vadd.f32 %v8845_v22, %v755_v27  ;;  %7259 = vmatprep.mubr.f32.mxu0 %v378_v23  ;;  %2890 = vmatprep.subr.mxu1 %v9172_v5 }
 0x16c   :  { %v757_v31 = vpop.f32.mrf.mxu0  ;;  %v1000_v35 = vpop.f32.mrf.mxu1 }
 0x16d   :  { %v9344_v38 = vadd.f32 %v1000_v35, %v756_v29  ;;  %v387_v29 = vld [vmem:[%s13641_s0 + $0x9e] sm:$0xff] }
 0x16e   :  { %v760_v22 = vpop.f32.mrf.mxu0  ;;  %v1002_v41 = vpop.f32.mrf.mxu1  ;;  %7260 = vmatmul.mubr.f32.gmra.mxu0 %v379_v30  ;;  %v2712_v30 = vld [vmem:[%s13645_s5 + $0x8] sm:$0xff] }
 0x16f   :  { %v761_v44 = vadd.f32 %v9352_v42, %v760_v22  ;;  %7262 = vmatprep.mubr.f32.mxu0 %v380_v37  ;;  %v388_v37 = vld [vmem:[%s13641_s0 + $0xa6] sm:$0xff]  ;;  %2891 = vmatpush1.msra.mxu1 %v2712_v30 }
 0x170   :  { %v762_v47 = vpop.f32.mrf.mxu0  ;;  %v1005_v49 = vpop.f32.mrf.mxu1  ;;  %2892 = vmatprep.subr.mxu1 %v9172_v5 }
 0x171   :  { %v9362_v54 = vadd.f32 %v1005_v49, %v761_v44  ;;  %v2711_v47 = vld [vmem:[%s13645_s5] sm:$0xff] }
 0x172   :  { %v765_v57 = vpop.f32.mrf.mxu0  ;;  %v1007_v58 = vpop.f32.mrf.mxu1  ;;  %7263 = vmatmul.mubr.f32.gmra.mxu0 %v381_v45  ;;  %v389_v45 = vld [vmem:[%s13641_s0 + $0xae] sm:$0xff]  ;;  %2893 = vmatpush1.msra.mxu1 %v2711_v47 }
 0x173   :  { %v766_v60 = vadd.f32 %v9352_v42, %v765_v57  ;;  %7265 = vmatprep.mubr.f32.mxu0 %v382_v52  ;;  %2894 = vmatprep.subr.mxu1 %v9172_v5  ;;  %v2740_v47 = vld [vmem:[%s13645_s5 + $0xe8] sm:$0xff] }
 0x174   :  { %v767_v0 = vpop.f32.mrf.mxu0  ;;  %v1010_v2 = vpop.f32.mrf.mxu1 }
 0x175   :  { %v9375_v8 = vadd.f32 %v1010_v2, %v766_v60  ;;  %v391_v0 = vld [vmem:[%s13641_s0 + $0xbe] sm:$0xff] }
 0x176   :  { %v770_v9 = vpop.f32.mrf.mxu0  ;;  %v1012_v11 = vpop.f32.mrf.mxu1  ;;  %7266 = vmatmul.mubr.f32.gmra.mxu0 %v383_v62  ;;  %v2742_v2 = vld [vmem:[%s13645_s5 + $0xf8] sm:$0xff] }
 0x177   :  { %v771_v12 = vadd.f32 %v9352_v42, %v770_v9  ;;  %7268 = vmatprep.mubr.f32.mxu0 %v384_v4  ;;  %v392_v11 = vld [vmem:[%s13641_s0 + $0xc6] sm:$0xff]  ;;  %2895 = vmatpush2.msra.mxu1 %v2742_v2 }
 0x178   :  { %v772_v17 = vpop.f32.mrf.mxu0  ;;  %v1015_v1 = vpop.f32.mrf.mxu1  ;;  %2896 = vmatprep.subr.mxu1 %v9172_v5 }
 0x179   :  { %v9387_v23 = vadd.f32 %v1015_v1, %v771_v12  ;;  %v393_v1 = vld [vmem:[%s13641_s0 + $0xce] sm:$0xff] }
 0x17a   :  { %v775_v25 = vpop.f32.mrf.mxu0  ;;  %v1017_v27 = vpop.f32.mrf.mxu1  ;;  %7269 = vmatmul.mubr.f32.gmra.mxu0 %v385_v15 }
 0x17b   :  { %v776_v28 = vadd.f32 %v9352_v42, %v775_v25  ;;  %7271 = vmatprep.mubr.f32.mxu0 %v386_v20  ;;  %v394_v27 = vld [vmem:[%s13641_s0 + $0xd6] sm:$0xff] }
 0x17c   :  { %v777_v31 = vpop.f32.mrf.mxu0  ;;  %v1020_v35 = vpop.f32.mrf.mxu1 }
 0x17d   :  { %v9400_v39 = vadd.f32 %v1020_v35, %v776_v28 }
 0x17e   :  { %v780_v22 = vpop.f32.mrf.mxu0  ;;  %v1022_v41 = vpop.f32.mrf.mxu1  ;;  %7272 = vmatmul.mubr.f32.gmra.mxu0 %v387_v29  ;;  %v2741_v29 = vld [vmem:[%s13645_s5 + $0xf0] sm:$0xff] }
 0x17f   :  { %v781_v44 = vadd.f32 %v9352_v42, %v780_v22  ;;  %7274 = vmatprep.mubr.f32.mxu0 %v388_v37  ;;  %2897 = vmatpush2.msra.mxu1 %v2741_v29  ;;  %v395_v37 = vld [vmem:[%s13641_s0 + $0xde] sm:$0xff] }
 0x180   :  { %v782_v49 = vpop.f32.mrf.mxu0  ;;  %v1025_v52 = vpop.f32.mrf.mxu1  ;;  %2898 = vmatprep.subr.mxu1 %v9172_v5 }
 0x181   :  { %v9413_v57 = vadd.f32 %v1025_v52, %v781_v44  ;;  %v396_v44 = vld [vmem:[%s13641_s0 + $0xe6] sm:$0xff]  ;;  %2899 = vmatpush2.msra.mxu1 %v2740_v47 }
 0x182   :  { %v785_v58 = vpop.f32.mrf.mxu0  ;;  %v1027_v60 = vpop.f32.mrf.mxu1  ;;  %7275 = vmatmul.mubr.f32.gmra.mxu0 %v389_v45  ;;  %2900 = vmatprep.subr.mxu1 %v9172_v5 }
 0x183   :  { %v786_v62 = vadd.f32 %v9352_v42, %v785_v58  ;;  %7277 = vmatprep.mubr.f32.mxu0 %v390_v56  ;;  %v397_v58 = vld [vmem:[%s13641_s0 + $0xee] sm:$0xff] }
 0x184   :  { %v787_v4 = vpop.f32.mrf.mxu0  ;;  %v1030_v9 = vpop.f32.mrf.mxu1 }
 0x185   :  { %v9426_v12 = vadd.f32 %v1030_v9, %v786_v62  ;;  %v2739_v4 = vld [vmem:[%s13645_s5 + $0xe0] sm:$0xff] }
 0x186   :  { %v790_v15 = vpop.f32.mrf.mxu0  ;;  %v1032_v16 = vpop.f32.mrf.mxu1  ;;  %7278 = vmatmul.mubr.f32.gmra.mxu0 %v391_v0  ;;  %v398_v0 = vld [vmem:[%s13641_s0 + $0xf6] sm:$0xff]  ;;  %2901 = vmatpush2.msra.mxu1 %v2739_v4 }
 0x187   :  { %v791_v17 = vadd.f32 %v9352_v42, %v790_v15  ;;  %7280 = vmatprep.mubr.f32.mxu0 %v392_v11  ;;  %v2758_v11 = vld [vmem:[%s13645_s5 + $0x178] sm:$0xff]  ;;  %2902 = vmatprep.subr.mxu1 %v9172_v5 }
 0x188   :  { %v792_v20 = vpop.f32.mrf.mxu0  ;;  %v1035_v25 = vpop.f32.mrf.mxu1  ;;  %v399_v16 = vld [vmem:[%s13641_s0 + $0xfe] sm:$0xff]  ;;  %3018 = vmatpush1.msra.mxu0 %v2758_v11 }
 0x189   :  { %v9436_v28 = vadd.f32 %v1035_v25, %v791_v17  ;;  %v400_v20 = vld [vmem:[%s13641_s0 + $0x106] sm:$0xff]  ;;  %3019 = vmatprep.subr.mxu0 %v9172_v5 }
 0x18a   :  { %v795_v30 = vpop.f32.mrf.mxu0  ;;  %v1037_v31 = vpop.f32.mrf.mxu1  ;;  %7281 = vmatmul.mubr.f32.gmra.mxu0 %v393_v1 }
 0x18b   :  { %v796_v35 = vadd.f32 %v9352_v42, %v795_v30  ;;  %7283 = vmatprep.mubr.f32.mxu0 %v394_v27  ;;  %v2738_v27 = vld [vmem:[%s13645_s5 + $0xd8] sm:$0xff]  ;;  %v2756_v31 = vld [vmem:[%s13645_s5 + $0x168] sm:$0xff] }
 0x18c   :  { %v797_v22 = vpop.f32.mrf.mxu0  ;;  %v1040_v41 = vpop.f32.mrf.mxu1  ;;  %2903 = vmatpush2.msra.mxu1 %v2738_v27 }
 0x18d   :  { %v9449_v45 = vadd.f32 %v1040_v41, %v796_v35  ;;  %2904 = vmatprep.subr.mxu1 %v9172_v5 }
 0x18e   :  { %v800_v49 = vpop.f32.mrf.mxu0  ;;  %v1042_v52 = vpop.f32.mrf.mxu1  ;;  %7284 = vmatmul.mubr.f32.gmra.mxu0 %v395_v37  ;;  %v401_v37 = vld [vmem:[%s13641_s0 + $0x10e] sm:$0xff] }
 0x18f   :  { %v801_v56 = vadd.f32 %v9352_v42, %v800_v49  ;;  %7286 = vmatprep.mubr.f32.mxu0 %v396_v44  ;;  %v402_v44 = vld [vmem:[%s13641_s0 + $0x116] sm:$0xff] }
 0x190   :  { %v802_v60 = vpop.f32.mrf.mxu0  ;;  %v1045_v62 = vpop.f32.mrf.mxu1 }
 0x191   :  { %v9462_v2 = vadd.f32 %v1045_v62, %v801_v56  ;;  %v2754_v56 = vld [vmem:[%s13645_s5 + $0x158] sm:$0xff]  ;;  %v2737_v62 = vld [vmem:[%s13645_s5 + $0xd0] sm:$0xff] }
 0x192   :  { %v1047_v42 = vpop.f32.mrf.mxu1  ;;  %v1115_v9 = vpop.f32.mrf.mxu0  ;;  %7287 = vmatmul.mubr.f32.gmra.mxu0 %v397_v58  ;;  %v403_v60 = vld [vmem:[%s13641_s0 + $0x11e] sm:$0xff]  ;;  %2905 = vmatpush2.msra.mxu1 %v2737_v62  ;;  %v7660_v62 = vmov -1e+30  }
 0x193   :  { %v1116_v15 = vadd.f32 %v1115_v9, %v8869_v36  ;;  %7289 = vmatprep.mubr.f32.mxu0 %v398_v0  ;;  %v2757_v36 = vld [vmem:[%s13645_s5 + $0x170] sm:$0xff]  ;;  %v404_v42 = vld [vmem:[%s13641_s0 + $0x126] sm:$0xff]  ;;  %2906 = vmatprep.subr.mxu1 %v9172_v5  ;;  %1784 = vst [vmem:[#allocation2] sm:$0xff] %v7660_v62  ;;  %1785 = vst [vmem:[#allocation2 + $0x8] sm:$0xff] %v7660_v62 }
 0x194   :  { %v1117_v17 = vpop.f32.mrf.mxu0  ;;  %v1360_v1 = vpop.f32.mrf.mxu1  ;;  %3020 = vmatpush1.msra.mxu0 %v2757_v36  ;;  %1786 = vst [vmem:[#allocation2 + $0x10] sm:$0x7] %v7660_v62  ;;  %1788 = vst [vmem:[#allocation2 + $0x13b] sm:$0xff] %v7660_v62 }
 0x195   :  { %v9482_v25 = vadd.f32 %v1360_v1, %v1116_v15  ;;  %3021 = vmatprep.subr.mxu0 %v9172_v5  ;;  %v405_v1 = vld [vmem:[%s13641_s0 + $0x12e] sm:$0xff]  ;;  %1789 = vst [vmem:[#allocation2 + $0x143] sm:$0x1f] %v7660_v62  ;;  %1787 = vst [vmem:[#allocation2 + $0x133] sm:$0xff] %v7660_v62 }
 0x196   :  { %v1120_v29 = vpop.f32.mrf.mxu0  ;;  %v1362_v30 = vpop.f32.mrf.mxu1  ;;  %7290 = vmatmul.mubr.f32.gmra.mxu0 %v399_v16  ;;  %v2752_v16 = vld [vmem:[%s13645_s5 + $0x148] sm:$0xff] }
 0x197   :  { %v1121_v35 = vadd.f32 %v1120_v29, %v8889_v50  ;;  %7292 = vmatprep.mubr.f32.mxu0 %v400_v20  ;;  %3022 = vmatpush1.msra.mxu0 %v2756_v31  ;;  %v2755_v50 = vld [vmem:[%s13645_s5 + $0x160] sm:$0xff]  ;;  %v2736_v20 = vld [vmem:[%s13645_s5 + $0xc8] sm:$0xff]  ;;  %v406_v29 = vld [vmem:[%s13641_s0 + $0x136] sm:$0xff] }
 0x198   :  { %v1122_v22 = vpop.f32.mrf.mxu0  ;;  %v1365_v41 = vpop.f32.mrf.mxu1  ;;  %3023 = vmatprep.subr.mxu0 %v9172_v5  ;;  %2907 = vmatpush2.msra.mxu1 %v2736_v20 }
 0x199   :  { %v9502_v47 = vadd.f32 %v1365_v41, %v1121_v35  ;;  %3024 = vmatpush1.msra.mxu0 %v2755_v50  ;;  %2908 = vmatprep.subr.mxu1 %v9172_v5  ;;  %v407_v41 = vld [vmem:[%s13641_s0 + $0x13e] sm:$0xff] }
 0x19a   :  { %v1125_v49 = vpop.f32.mrf.mxu0  ;;  %v1367_v52 = vpop.f32.mrf.mxu1  ;;  %7293 = vmatmul.mubr.f32.gmra.mxu0 %v401_v37  ;;  %3025 = vmatprep.subr.mxu0 %v9172_v5  ;;  %v2750_v37 = vld [vmem:[%s13645_s5 + $0x138] sm:$0xff] }
 0x19b   :  { %v1126_v58 = vadd.f32 %v1125_v49, %v8909_v63  ;;  %7295 = vmatprep.mubr.f32.mxu0 %v402_v44  ;;  %v2753_v63 = vld [vmem:[%s13645_s5 + $0x150] sm:$0xff]  ;;  %3026 = vmatpush1.msra.mxu0 %v2754_v56 }
 0x19c   :  { %v1127_v0 = vpop.f32.mrf.mxu0  ;;  %v1370_v4 = vpop.f32.mrf.mxu1  ;;  %3027 = vmatprep.subr.mxu0 %v9172_v5  ;;  %v2749_v52 = vld [vmem:[%s13645_s5 + $0x130] sm:$0xff] }
 0x19d   :  { %v9522_v9 = vadd.f32 %v1370_v4, %v1126_v58  ;;  %3028 = vmatpush1.msra.mxu0 %v2753_v63  ;;  %v2748_v0 = vld [vmem:[%s13645_s5 + $0x128] sm:$0xff]  ;;  %v2747_v63 = vld [vmem:[%s13645_s5 + $0x120] sm:$0xff] }
 0x19e   :  { %v1130_v11 = vpop.f32.mrf.mxu0  ;;  %v1372_v15 = vpop.f32.mrf.mxu1  ;;  %7296 = vmatmul.mubr.f32.gmra.mxu0 %v403_v60  ;;  %3029 = vmatprep.subr.mxu0 %v9172_v5 }
 0x19f   :  { %v1131_v17 = vadd.f32 %v1130_v11, %v8929_v13  ;;  %7298 = vmatprep.mubr.f32.mxu0 %v404_v42  ;;  %v2751_v13 = vld [vmem:[%s13645_s5 + $0x140] sm:$0xff]  ;;  %3030 = vmatpush1.msra.mxu0 %v2752_v16 }
 0x1a0   :  { %v1132_v36 = vpop.f32.mrf.mxu0  ;;  %v1375_v27 = vpop.f32.mrf.mxu1  ;;  %3031 = vmatprep.subr.mxu0 %v9172_v5 }
 0x1a1   :  { %v9543_v30 = vadd.f32 %v1375_v27, %v1131_v17  ;;  %3032 = vmatpush1.msra.mxu0 %v2751_v13  ;;  %v2746_v17 = vld [vmem:[%s13645_s5 + $0x118] sm:$0xff]  ;;  %v2745_v27 = vld [vmem:[%s13645_s5 + $0x110] sm:$0xff] }
 0x1a2   :  { %v1135_v31 = vpop.f32.mrf.mxu0  ;;  %v1377_v35 = vpop.f32.mrf.mxu1  ;;  %7299 = vmatmul.mubr.f32.gmra.mxu0 %v405_v1  ;;  %3033 = vmatprep.subr.mxu0 %v9172_v5 }
 0x1a3   :  { %v1136_v22 = vadd.f32 %v1135_v31, %v8949_v26  ;;  %7301 = vmatprep.mubr.f32.mxu0 %v406_v29  ;;  %3034 = vmatpush1.msra.mxu0 %v2750_v37  ;;  %v2735_v26 = vld [vmem:[%s13645_s5 + $0xc0] sm:$0xff]  ;;  %v2744_v31 = vld [vmem:[%s13645_s5 + $0x108] sm:$0xff] }
 0x1a4   :  { %v1137_v44 = vpop.f32.mrf.mxu0  ;;  %v1380_v50 = vpop.f32.mrf.mxu1  ;;  %3035 = vmatprep.subr.mxu0 %v9172_v5  ;;  %2909 = vmatpush2.msra.mxu1 %v2735_v26  ;;  %v2083_v26 = vld [vmem:[#allocation2 + $0x1] sm:$0xff] }
 0x1a5   :  { %v9555_v49 = vadd.f32 %v1380_v50, %v1136_v22  ;;  %3036 = vmatpush1.msra.mxu0 %v2749_v52  ;;  %2910 = vmatprep.subr.mxu1 %v9172_v5  ;;  %v2774_v52 = vld [vmem:[%s13645_s5 + $0x1f8] sm:$0xff] }
 0x1a6   :  { %v1140_v56 = vpop.f32.mrf.mxu0  ;;  %v1382_v58 = vpop.f32.mrf.mxu1  ;;  %7302 = vmatmul.mubr.f32.gmra.mxu0 %v407_v41  ;;  %3037 = vmatprep.subr.mxu0 %v9172_v5  ;;  %v2743_v41 = vld [vmem:[%s13645_s5 + $0x100] sm:$0xff] }
 0x1a7   :  { %v1141_v60 = vadd.f32 %v1140_v56, %v8969_v40  ;;  %3038 = vmatpush1.msra.mxu0 %v2748_v0  ;;  %v2734_v0 = vld [vmem:[%s13645_s5 + $0xb8] sm:$0xff] }
 0x1a8   :  { %v1142_v4 = vpop.f32.mrf.mxu0  ;;  %v1385_v42 = vpop.f32.mrf.mxu1  ;;  %3039 = vmatprep.subr.mxu0 %v9172_v5  ;;  %2911 = vmatpush2.msra.mxu1 %v2734_v0  ;;  %v2731_v0 = vld [vmem:[%s13645_s5 + $0xa0] sm:$0xff] }
 0x1a9   :  { %v9570_v40 = vadd.f32 %v1385_v42, %v1141_v60  ;;  %3040 = vmatpush1.msra.mxu0 %v2747_v63  ;;  %v2084_v60 = vld [vmem:[#allocation2 + $0x9] sm:$0xff]  ;;  %v2124_v4 = vmax.f32 %v2083_v26, -1e+30  ;;  %2912 = vmatprep.subr.mxu1 %v9172_v5 }
 0x1aa   :  { %v1145_v11 = vpop.f32.mrf.mxu0  ;;  %v1387_v15 = vpop.f32.mrf.mxu1  ;;  %3041 = vmatprep.subr.mxu0 %v9172_v5  ;;  %v2125_v42 = vmax.f32 %v2084_v60, -1e+30 }
 0x1ab   :  { %v1146_v16 = vadd.f32 %v1145_v11, %v8989_v55  ;;  %3042 = vmatpush1.msra.mxu0 %v2746_v17  ;;  %v2165_v15 = vld [vmem:[#allocation2 + $0x2] sm:$0xff] }
 0x1ac   :  { %v1147_v1 = vpop.f32.mrf.mxu0  ;;  %v1390_v20 = vpop.f32.mrf.mxu1  ;;  %3043 = vmatprep.subr.mxu0 %v9172_v5 }
 0x1ad   :  { %v9581_v36 = vadd.f32 %v1390_v20, %v1146_v16  ;;  %3044 = vmatpush1.msra.mxu0 %v2745_v27  ;;  %v2166_v16 = vld [vmem:[#allocation2 + $0xa] sm:$0xff]  ;;  %v2206_v20 = vmax.f32 %v2124_v4, %v2165_v15 }
 0x1ae   :  { %v1150_v29 = vpop.f32.mrf.mxu0  ;;  %v1392_v13 = vpop.f32.mrf.mxu1  ;;  %3045 = vmatprep.subr.mxu0 %v9172_v5  ;;  %v2772_v1 = vld [vmem:[%s13645_s5 + $0x1e8] sm:$0xff]  ;;  %v2207_v27 = vmax.f32 %v2125_v42, %v2166_v16 }
 0x1af   :  { %v1151_v55 = vadd.f32 %v1150_v29, %v9009_v6  ;;  %3046 = vmatpush1.msra.mxu0 %v2744_v31  ;;  %2247 = vst [vmem:[#allocation3] sm:$0xff] %v2206_v20  ;;  %v2766_v20 = vld [vmem:[%s13645_s5 + $0x1b8] sm:$0xff] }
 0x1b0   :  { %v1152_v35 = vpop.f32.mrf.mxu0  ;;  %v1395_v37 = vpop.f32.mrf.mxu1  ;;  %3047 = vmatprep.subr.mxu0 %v9172_v5  ;;  %2248 = vst [vmem:[#allocation3 + $0x8] sm:$0xff] %v2207_v27 }
 0x1b1   :  { %v9592_v22 = vadd.f32 %v1395_v37, %v1151_v55  ;;  %3048 = vmatpush1.msra.mxu0 %v2743_v41  ;;  %v2733_v41 = vld [vmem:[%s13645_s5 + $0xb0] sm:$0xff] }
 0x1b2   :  { %v1155_v44 = vpop.f32.mrf.mxu0  ;;  %v1397_v50 = vpop.f32.mrf.mxu1  ;;  %3049 = vmatprep.subr.mxu0 %v9172_v5  ;;  %2913 = vmatpush2.msra.mxu1 %v2733_v41 }
 0x1b3   :  { %v1156_v6 = vadd.f32 %v1155_v44, %v9029_v19  ;;  %3050 = vmatpush2.msra.mxu0 %v2774_v52  ;;  %v2773_v19 = vld [vmem:[%s13645_s5 + $0x1f0] sm:$0xff]  ;;  %v2770_v44 = vld [vmem:[%s13645_s5 + $0x1d8] sm:$0xff]  ;;  %2914 = vmatprep.subr.mxu1 %v9172_v5 }
 0x1b4   :  { %v1157_v56 = vpop.f32.mrf.mxu0  ;;  %v1400_v58 = vpop.f32.mrf.mxu1  ;;  %3051 = vmatprep.subr.mxu0 %v9172_v5 }
 0x1b5   :  { %v9603_v62 = vadd.f32 %v1400_v58, %v1156_v6  ;;  %3052 = vmatpush2.msra.mxu0 %v2773_v19  ;;  %v2769_v56 = vld [vmem:[%s13645_s5 + $0x1d0] sm:$0xff]  ;;  %v2768_v19 = vld [vmem:[%s13645_s5 + $0x1c8] sm:$0xff] }
 0x1b6   :  { %v1160_v63 = vpop.f32.mrf.mxu0  ;;  %v1402_v11 = vpop.f32.mrf.mxu1  ;;  %3053 = vmatprep.subr.mxu0 %v9172_v5 }
 0x1b7   :  { %v1161_v17 = vadd.f32 %v1160_v63, %v9049_v34  ;;  %3054 = vmatpush2.msra.mxu0 %v2772_v1  ;;  %v2771_v34 = vld [vmem:[%s13645_s5 + $0x1e0] sm:$0xff]  ;;  %v2729_v1 = vld [vmem:[%s13645_s5 + $0x90] sm:$0xff] }
 0x1b8   :  { %v1162_v29 = vpop.f32.mrf.mxu0  ;;  %v1405_v13 = vpop.f32.mrf.mxu1  ;;  %3055 = vmatprep.subr.mxu0 %v9172_v5  ;;  %v2767_v11 = vld [vmem:[%s13645_s5 + $0x1c0] sm:$0xff] }
 0x1b9   :  { %v9618_v55 = vadd.f32 %v1405_v13, %v1161_v17  ;;  %3056 = vmatpush2.msra.mxu0 %v2771_v34  ;;  %v2765_v34 = vld [vmem:[%s13645_s5 + $0x1b0] sm:$0xff] }
 0x1ba   :  { %v1165_v31 = vpop.f32.mrf.mxu0  ;;  %v1407_v35 = vpop.f32.mrf.mxu1  ;;  %3057 = vmatprep.subr.mxu0 %v9172_v5 }
 0x1bb   :  { %v1166_v37 = vadd.f32 %v1165_v31, %v9069_v51  ;;  %v2732_v51 = vld [vmem:[%s13645_s5 + $0xa8] sm:$0xff]  ;;  %3058 = vmatpush2.msra.mxu0 %v2770_v44 }
 0x1bc   :  { %v1167_v50 = vpop.f32.mrf.mxu0  ;;  %v1410_v6 = vpop.f32.mrf.mxu1  ;;  %2915 = vmatpush2.msra.mxu1 %v2732_v51  ;;  %3059 = vmatprep.subr.mxu0 %v9172_v5  ;;  %v2764_v44 = vld [vmem:[%s13645_s5 + $0x1a8] sm:$0xff] }
 0x1bd   :  { %v9632_v52 = vadd.f32 %v1410_v6, %v1166_v37  ;;  %2916 = vmatprep.subr.mxu1 %v9172_v5  ;;  %3060 = vmatpush2.msra.mxu0 %v2769_v56  ;;  %v9679_v37 = vld [vmem:[#allocation4] sm:$0xff] }
 0x1be   :  { %v1170_v58 = vpop.f32.mrf.mxu0  ;;  %v1412_v26 = vpop.f32.mrf.mxu1  ;;  %2917 = vmatpush2.msra.mxu1 %v2731_v0  ;;  %3061 = vmatprep.subr.mxu0 %v9172_v5  ;;  %v2599_v50 = vld [vmem:[#allocation4 + $0x1] sm:$0xff] }
 0x1bf   :  { %v1171_v60 = vadd.f32 %v1170_v58, %v9089_v3  ;;  %2918 = vmatprep.subr.mxu1 %v9172_v5  ;;  %v2730_v3 = vld [vmem:[%s13645_s5 + $0x98] sm:$0xff]  ;;  %3062 = vmatpush2.msra.mxu0 %v2768_v19 }
 0x1c0   :  { %v1172_v4 = vpop.f32.mrf.mxu0  ;;  %v1415_v42 = vpop.f32.mrf.mxu1  ;;  %2919 = vmatpush2.msra.mxu1 %v2730_v3  ;;  %3063 = vmatprep.subr.mxu0 %v9172_v5  ;;  %v2762_v0 = vld [vmem:[%s13645_s5 + $0x198] sm:$0xff] }
 0x1c1   :  { %v9651_v63 = vadd.f32 %v1415_v42, %v1171_v60  ;;  %2920 = vmatprep.subr.mxu1 %v9172_v5  ;;  %3064 = vmatpush2.msra.mxu0 %v2767_v11  ;;  %v2600_v19 = vld [vmem:[#allocation4 + $0x9] sm:$0xff] }
 0x1c2   :  { %v1175_v15 = vpop.f32.mrf.mxu0  ;;  %v1417_v16 = vpop.f32.mrf.mxu1  ;;  %2921 = vmatpush2.msra.mxu1 %v2729_v1  ;;  %3065 = vmatprep.subr.mxu0 %v9172_v5 }
 0x1c3   :  { %v1176_v17 = vadd.f32 %v1175_v15, %v9109_v18  ;;  %2922 = vmatprep.subr.mxu1 %v9172_v5  ;;  %v2728_v18 = vld [vmem:[%s13645_s5 + $0x88] sm:$0xff]  ;;  %3066 = vmatpush2.msra.mxu0 %v2766_v20  ;;  %v2727_v5 = vld [vmem:[%s13645_s5 + $0x80] sm:$0xff] }
 0x1c4   :  { %v1177_v27 = vpop.f32.mrf.mxu0  ;;  %v1420_v29 = vpop.f32.mrf.mxu1  ;;  %2923 = vmatpush2.msra.mxu1 %v2728_v18  ;;  %3067 = vmatprep.subr.mxu0 %v9679_v37 }
 0x1c5   :  { %v9670_v13 = vadd.f32 %v1420_v29, %v1176_v17  ;;  %3068 = vmatpush2.msra.mxu0 %v2765_v34  ;;  %2924 = vmatprep.subr.mxu1 %v9679_v37  ;;  %v2760_v17 = vld [vmem:[%s13645_s5 + $0x188] sm:$0xff]  ;;  %v9716_v27 = vpop.permute.xlu1 %1833 }
 0x1c6   :  { %v1180_v31 = vpop.f32.mrf.mxu0  ;;  %v1422_v35 = vpop.f32.mrf.mxu1  ;;  %3069 = vmatprep.subr.mxu0 %v9679_v37  ;;  %2925 = vmatpush2.msra.mxu1 %v2727_v5  ;;  %vm1936_vm9 = vcmp.eq.s32.totalorder %v9716_v27, 1 }
 0x1c7   :  { %v1181_v41 = vadd.f32 %v1180_v31, %v9129_v33  ;;  %3070 = vmatpush2.msra.mxu0 %v2764_v44  ;;  %2926 = vmatprep.mubr.f32.mxu1 %v2599_v50  ;;  %v2763_v33 = vld [vmem:[%s13645_s5 + $0x1a0] sm:$0xff]  ;;  %v2790_v35 = vld [vmem:[%s13645_s5 + $0x278] sm:$0xff]  ;;  %v2789_v50 = vld [vmem:[%s13645_s5 + $0x270] sm:$0xff] }
 0x1c8   :  { %v1182_v6 = vpop.f32.mrf.mxu0  ;;  %v1425_v51 = vpop.f32.mrf.mxu1  ;;  %3071 = vmatprep.subr.mxu0 %v9679_v37  ;;  %2927 = vmatmul.mubr.f32.vlgmr.msra.gmra.mxu1 %v9679_v37 }
 0x1c9   :  { %v9691_v56 = vadd.f32 %v1425_v51, %v1181_v41  ;;  %3072 = vmatpush2.msra.mxu0 %v2763_v33  ;;  %3172 = vmatprep.subr.mxu1 %v9679_v37  ;;  %v9735_v51 = vpop.permute.xlu1 %1836 }
 0x1ca   :  { %v1185_v58 = vpop.f32.mrf.mxu0  ;;  %v1427_v26 = vpop.f32.mrf.mxu1  ;;  %3073 = vmatprep.subr.mxu0 %v9679_v37  ;;  %2931 = vmatprep.mubr.f32.mxu1 %v2600_v19  ;;  %vm1937_vm8 = vcmp.eq.s32.totalorder %v9735_v51, 1 }
 0x1cb   :  { %v1186_v60 = vadd.f32 %v1185_v58, %v9153_v53  ;;  %3074 = vmatpush2.msra.mxu0 %v2762_v0  ;;  %v2761_v53 = vld [vmem:[%s13645_s5 + $0x190] sm:$0xff]  ;;  %3173 = vmatpush1.msra.mxu1 %v2790_v35  ;;  %v2788_v58 = vld [vmem:[%s13645_s5 + $0x268] sm:$0xff] }
 0x1cc   :  { %v1187_v4 = vpop.f32.mrf.mxu0  ;;  %v1430_v42 = vpop.f32.mrf.mxu1  ;;  %3075 = vmatprep.subr.mxu0 %v9679_v37  ;;  %2932 = vmatmul.mubr.f32.gmra.mxu1 %v9679_v37 }
 0x1cd   :  { %v9704_v3 = vadd.f32 %v1430_v42, %v1186_v60  ;;  %3076 = vmatpush2.msra.mxu0 %v2761_v53  ;;  %3174 = vmatprep.subr.mxu1 %v9679_v37  ;;  %v2787_v42 = vld [vmem:[%s13645_s5 + $0x260] sm:$0xff] }
 0x1ce   :  { %v1190_v11 = vpop.f32.mrf.mxu0  ;;  %v1432_v15 = vpop.f32.mrf.mxu1  ;;  %3077 = vmatprep.subr.mxu0 %v9679_v37  ;;  %3175 = vmatpush1.msra.mxu1 %v2789_v50 }
 0x1cf   :  { %v1191_v16 = vadd.f32 %v1190_v11, %v9175_v7  ;;  %3078 = vmatpush2.msra.mxu0 %v2760_v17  ;;  %v2759_v7 = vld [vmem:[%s13645_s5 + $0x180] sm:$0xff]  ;;  %3176 = vmatprep.subr.mxu1 %v9679_v37  ;;  %v2786_v15 = vld [vmem:[%s13645_s5 + $0x258] sm:$0xff] }
 0x1d0   :  { %v1192_v1 = vpop.f32.mrf.mxu0  ;;  %v1435_v20 = vpop.f32.mrf.mxu1  ;;  %3079 = vmatprep.subr.mxu0 %v9679_v37  ;;  %3177 = vmatpush1.msra.mxu1 %v2788_v58 }
 0x1d1   :  { %v9718_v29 = vadd.f32 %v1435_v20, %v1191_v16  ;;  %3080 = vmatpush2.msra.mxu0 %v2759_v7  ;;  %3178 = vmatprep.subr.mxu1 %v9679_v37  ;;  %v9753_v16 = vpop.permute.xlu1 %1842  ;;  %v9776_v58 = vpop.permute.xlu0 %1827 }
 0x1d2   :  { %v1195_v18 = vpop.f32.mrf.mxu0  ;;  %v1437_v34 = vpop.f32.mrf.mxu1  ;;  %3327 = vmatprep.subr.mxu0 %v9679_v37  ;;  %3179 = vmatpush1.msra.mxu1 %v2787_v42  ;;  %vm1934_vm7 = vcmp.eq.s32.totalorder %v9776_v58, 1  ;;  %vm1939_vm10 = vcmp.eq.s32.totalorder %v9753_v16, 1 }
 0x1d3   :  { %v1196_v31 = vadd.f32 %v1195_v18, %v9194_v21  ;;  %3180 = vmatprep.subr.mxu1 %v9679_v37 }
 0x1d4   :  { %v1197_v41 = vpop.f32.mrf.mxu0  ;;  %v1440_v5 = vpop.f32.mrf.mxu1  ;;  %3181 = vmatpush1.msra.mxu1 %v2786_v15 }
 0x1d5   :  { %v9729_v44 = vadd.f32 %v1440_v5, %v1196_v31  ;;  %3182 = vmatprep.subr.mxu1 %v9679_v37  ;;  %v2784_v31 = vld [vmem:[%s13645_s5 + $0x248] sm:$0xff]  ;;  %v9772_v50 = vpop.permute.xlu1 %1848 }
 0x1d6   :  { %v1200_v6 = vpop.f32.mrf.mxu0  ;;  %v1442_v21 = vpop.f32.mrf.mxu1  ;;  %vm1941_vm12 = vcmp.eq.s32.totalorder %v9772_v50, 1 }
 0x1d7   :  { %v1201_v33 = vadd.f32 %v1200_v6, %v9210_v32 }
 0x1d8   :  { %v1202_v26 = vpop.f32.mrf.mxu0  ;;  %v1445_v60 = vpop.f32.mrf.mxu1 }
 0x1d9   :  { %v9742_v0 = vadd.f32 %v1445_v60, %v1201_v33  ;;  %v2782_v60 = vld [vmem:[%s13645_s5 + $0x238] sm:$0xff] }
 0x1da   :  { %v1205_v19 = vpop.f32.mrf.mxu0  ;;  %v1447_v4 = vpop.f32.mrf.mxu1 }
 0x1db   :  { %v1206_v32 = vadd.f32 %v1205_v19, %v9226_v46  ;;  %v2785_v46 = vld [vmem:[%s13645_s5 + $0x250] sm:$0xff] }
 0x1dc   :  { %v1207_v53 = vpop.f32.mrf.mxu0  ;;  %v1450_v11 = vpop.f32.mrf.mxu1  ;;  %3183 = vmatpush1.msra.mxu1 %v2785_v46 }
 0x1dd   :  { %v9755_v17 = vadd.f32 %v1450_v11, %v1206_v32  ;;  %3184 = vmatprep.subr.mxu1 %v9679_v37  ;;  %v9788_v11 = vpop.permute.xlu1 %1854  ;;  %v9796_v46 = vpop.permute.xlu0 %1830 }
 0x1de   :  { %v1210_v1 = vpop.f32.mrf.mxu0  ;;  %v1452_v20 = vpop.f32.mrf.mxu1  ;;  %3185 = vmatpush1.msra.mxu1 %v2784_v31  ;;  %vm1935_vm6 = vcmp.eq.s32.totalorder %v9796_v46, 1  ;;  %vm1943_vm14 = vcmp.eq.s32.totalorder %v9788_v11, 1 }
 0x1df   :  { %v1211_v18 = vadd.f32 %v1210_v1, %v9242_v61  ;;  %3186 = vmatprep.subr.mxu1 %v9679_v37  ;;  %v2783_v61 = vld [vmem:[%s13645_s5 + $0x240] sm:$0xff]  ;;  %v2780_v1 = vld [vmem:[%s13645_s5 + $0x228] sm:$0xff] }
 0x1e0   :  { %v1212_v34 = vpop.f32.mrf.mxu0  ;;  %v1455_v7 = vpop.f32.mrf.mxu1  ;;  %3187 = vmatpush1.msra.mxu1 %v2783_v61 }
 0x1e1   :  { %v9766_v35 = vadd.f32 %v1455_v7, %v1211_v18  ;;  %3188 = vmatprep.subr.mxu1 %v9679_v37  ;;  %v2779_v34 = vld [vmem:[%s13645_s5 + $0x220] sm:$0xff] }
 0x1e2   :  { %v1215_v41 = vpop.f32.mrf.mxu0  ;;  %v1457_v5 = vpop.f32.mrf.mxu1  ;;  %3189 = vmatpush1.msra.mxu1 %v2782_v60 }
 0x1e3   :  { %v1216_v6 = vadd.f32 %v1215_v41, %v9257_v14  ;;  %3190 = vmatprep.subr.mxu1 %v9679_v37  ;;  %v2781_v14 = vld [vmem:[%s13645_s5 + $0x230] sm:$0xff]  ;;  %v2778_v5 = vld [vmem:[%s13645_s5 + $0x218] sm:$0xff] }
 0x1e4   :  { %v1217_v21 = vpop.f32.mrf.mxu0  ;;  %v1460_v33 = vpop.f32.mrf.mxu1  ;;  %3191 = vmatpush1.msra.mxu1 %v2781_v14 }
 0x1e5   :  { %v9778_v26 = vadd.f32 %v1460_v33, %v1216_v6  ;;  %3192 = vmatprep.subr.mxu1 %v9679_v37 }
 0x1e6   :  { %v1220_v19 = vpop.f32.mrf.mxu0  ;;  %v1462_v4 = vpop.f32.mrf.mxu1  ;;  %3193 = vmatpush1.msra.mxu1 %v2780_v1 }
 0x1e7   :  { %v1221_v42 = vadd.f32 %v1220_v19, %v9273_v48  ;;  %3194 = vmatprep.subr.mxu1 %v9679_v37  ;;  %v9813_v19 = vpop.permute.xlu0 %1839 }
 0x1e8   :  { %v1222_v32 = vpop.f32.mrf.mxu0  ;;  %v1465_v53 = vpop.f32.mrf.mxu1  ;;  %3195 = vmatpush1.msra.mxu1 %v2779_v34  ;;  %v2777_v34 = vld [vmem:[%s13645_s5 + $0x210] sm:$0xff]  ;;  %vm1938_vm11 = vcmp.eq.s32.totalorder %v9813_v19, 1 }
 0x1e9   :  { %v9790_v15 = vadd.f32 %v1465_v53, %v1221_v42  ;;  %3196 = vmatprep.subr.mxu1 %v9679_v37 }
 0x1ea   :  { %v1225_v48 = vpop.f32.mrf.mxu0  ;;  %v1467_v20 = vpop.f32.mrf.mxu1  ;;  %3197 = vmatpush1.msra.mxu1 %v2778_v5 }
 0x1eb   :  { %v1226_v18 = vadd.f32 %v1225_v48, %v9292_v43  ;;  %v9809_v43 = vpop.permute.xlu1 %1860  ;;  %3198 = vmatprep.subr.mxu1 %v9679_v37 }
 0x1ec   :  { %v1227_v7 = vpop.f32.mrf.mxu0  ;;  %v1470_v31 = vpop.f32.mrf.mxu1  ;;  %3199 = vmatpush1.msra.mxu1 %v2777_v34  ;;  %vm1945_vm0 = vcmp.eq.s32.totalorder %v9809_v43, 1 }
 0x1ed   :  { %v9803_v41 = vadd.f32 %v1470_v31, %v1226_v18  ;;  %v9825_v7 = vpop.permute.xlu0 %1845  ;;  %3200 = vmatprep.subr.mxu1 %v9679_v37 }
 0x1ee   :  { %v1230_v61 = vpop.f32.mrf.mxu0  ;;  %v1472_v6 = vpop.f32.mrf.mxu1  ;;  %vm1940_vm13 = vcmp.eq.s32.totalorder %v9825_v7, 1 }
 0x1ef   :  { %13734 = vst [vmem:[#allocation5_spill] sm:$0xff] %v9803_v41  ;;  %v1231_v21 = vadd.f32 %v1230_v61, %v9308_v59  ;;  %v9818_v48 = vpop.permute.xlu1 %1866 }
 0x1f0   :  { %v1232_v33 = vpop.f32.mrf.mxu0  ;;  %v1475_v60 = vpop.f32.mrf.mxu1  ;;  %vm1947_vm2 = vcmp.eq.s32.totalorder %v9818_v48, 1 }
 0x1f1   :  { %v9815_v4 = vadd.f32 %v1475_v60, %v1231_v21  ;;  %v2775_v21 = vld [vmem:[%s13645_s5 + $0x200] sm:$0xff] }
 0x1f2   :  { %v1235_v42 = vpop.f32.mrf.mxu0  ;;  %v1477_v14 = vpop.f32.mrf.mxu1 }
 0x1f3   :  { %13735 = vst [vmem:[#allocation6_spill] sm:$0xff] %v9815_v4  ;;  %v1236_v32 = vadd.f32 %v1235_v42, %v9318_v10  ;;  %v2776_v10 = vld [vmem:[%s13645_s5 + $0x208] sm:$0xff]  ;;  %v9841_v42 = vpop.permute.xlu1 %1872 }
 0x1f4   :  { %v1237_v53 = vpop.f32.mrf.mxu0  ;;  %v1480_v1 = vpop.f32.mrf.mxu1  ;;  %3201 = vmatpush1.msra.mxu1 %v2776_v10  ;;  %vm1949_vm4 = vcmp.eq.s32.totalorder %v9841_v42, 1 }
 0x1f5   :  { %v9820_v20 = vadd.f32 %v1480_v1, %v1236_v32  ;;  %3202 = vmatprep.subr.mxu1 %v9679_v37  ;;  %v2805_v1 = vld [vmem:[%s13645_s5 + $0x2f0] sm:$0xff] }
 0x1f6   :  { %v1240_v18 = vpop.f32.mrf.mxu0  ;;  %v1482_v59 = vpop.f32.mrf.mxu1  ;;  %3203 = vmatpush1.msra.mxu1 %v2775_v21  ;;  %v2803_v21 = vld [vmem:[%s13645_s5 + $0x2e0] sm:$0xff] }
 0x1f7   :  { %13736 = vst [vmem:[#allocation7_spill] sm:$0xff] %v9820_v20  ;;  %v1241_v31 = vadd.f32 %v1240_v18, %v9331_v24  ;;  %v2806_v24 = vld [vmem:[%s13645_s5 + $0x2f8] sm:$0xff]  ;;  %3204 = vmatprep.subr.mxu1 %v9679_v37  ;;  %v9848_v18 = vpop.permute.xlu0 %1851  ;;  %v2205_v20 = vld [vmem:[#allocation2 + $0x142] sm:$0xf] }
 0x1f8   :  { %v1242_v5 = vpop.f32.mrf.mxu0  ;;  %v1485_v61 = vpop.f32.mrf.mxu1  ;;  %3205 = vmatpush2.msra.mxu1 %v2806_v24  ;;  %vm1942_vm15 = vcmp.eq.s32.totalorder %v9848_v18, 1 }
 0x1f9   :  { %v9832_v6 = vadd.f32 %v1485_v61, %v1241_v31  ;;  %3206 = vmatprep.subr.mxu1 %v9679_v37 }
 0x1fa   :  { %v1245_v33 = vpop.f32.mrf.mxu0  ;;  %v1487_v60 = vpop.f32.mrf.mxu1  ;;  %3207 = vmatpush2.msra.mxu1 %v2805_v1 }
 0x1fb   :  { %13737 = vst [vmem:[#allocation8_spill] sm:$0xff] %v9832_v6  ;;  %v1246_v14 = vadd.f32 %v1245_v33, %v9344_v38  ;;  %v2804_v38 = vld [vmem:[%s13645_s5 + $0x2e8] sm:$0xff]  ;;  %3208 = vmatprep.subr.mxu1 %v9679_v37  ;;  %v9861_v33 = vpop.permute.xlu1 %2474 }
 0x1fc   :  { %v1247_v32 = vpop.f32.mrf.mxu0  ;;  %v1490_v53 = vpop.f32.mrf.mxu1  ;;  %3209 = vmatpush2.msra.mxu1 %v2804_v38 }
 0x1fd   :  { %v9850_v59 = vadd.f32 %v1490_v53, %v1246_v14  ;;  %3210 = vmatprep.subr.mxu1 %v9679_v37  ;;  %v9869_v32 = vpop.permute.xlu0 %1857 }
 0x1fe   :  { %v1250_v34 = vpop.f32.mrf.mxu0  ;;  %v1492_v31 = vpop.f32.mrf.mxu1  ;;  %3211 = vmatpush2.msra.mxu1 %v2803_v21  ;;  %vm1944_vm1 = vcmp.eq.s32.totalorder %v9869_v32, 1 }
 0x1ff   :  { %13738 = vst [vmem:[#allocation9_spill] sm:$0xff] %v9850_v59  ;;  %v1251_v5 = vadd.f32 %v1250_v34, %v9362_v54  ;;  %v2802_v54 = vld [vmem:[%s13645_s5 + $0x2d8] sm:$0xff]  ;;  %3212 = vmatprep.subr.mxu1 %v9679_v37  ;;  %v2797_v59 = vld [vmem:[%s13645_s5 + $0x2b0] sm:$0xff] }
 0x200   :  { %v1252_v61 = vpop.f32.mrf.mxu0  ;;  %v1495_v10 = vpop.f32.mrf.mxu1  ;;  %3213 = vmatpush2.msra.mxu1 %v2802_v54 }
 0x201   :  { %v9863_v60 = vadd.f32 %v1495_v10, %v1251_v5  ;;  %3214 = vmatprep.subr.mxu1 %v9679_v37  ;;  %v2801_v61 = vld [vmem:[%s13645_s5 + $0x2d0] sm:$0xff]  ;;  %v9879_v10 = vpop.permute.xlu1 %1881  ;;  %v9886_v54 = vpop.permute.xlu0 %1863 }
 0x202   :  { %v1255_v24 = vpop.f32.mrf.mxu0  ;;  %v1497_v14 = vpop.f32.mrf.mxu1  ;;  %3215 = vmatpush2.msra.mxu1 %v2801_v61  ;;  %vm1946_vm3 = vcmp.eq.s32.totalorder %v9886_v54, 1 }
 0x203   :  { %13739 = vst [vmem:[#allocation10_spill] sm:$0xff] %v9863_v60  ;;  %v1256_v53 = vadd.f32 %v1255_v24, %v9375_v8  ;;  %3216 = vmatprep.subr.mxu1 %v9679_v37  ;;  %v2800_v14 = vld [vmem:[%s13645_s5 + $0x2c8] sm:$0xff]  ;;  %v2122_v60 = vld [vmem:[#allocation2 + $0x139] sm:$0xff] }
 0x204   :  { %v1257_v1 = vpop.f32.mrf.mxu0  ;;  %v1500_v34 = vpop.f32.mrf.mxu1  ;;  %3217 = vmatpush2.msra.mxu1 %v2800_v14 }
 0x205   :  { %v9873_v31 = vadd.f32 %v1500_v34, %v1256_v53  ;;  %3218 = vmatprep.subr.mxu1 %v9679_v37 }
 0x206   :  { %v1260_v38 = vpop.f32.mrf.mxu0  ;;  %v1502_v5 = vpop.f32.mrf.mxu1 }
 0x207   :  { %13740 = vst [vmem:[#allocation11_spill] sm:$0xff] %v9873_v31  ;;  %v1261_v8 = vadd.f32 %v1260_v38, %v9387_v23  ;;  %v2799_v23 = vld [vmem:[%s13645_s5 + $0x2c0] sm:$0xff]  ;;  %v9904_v31 = vpop.permute.xlu0 %1869 }
 0x208   :  { %v1262_v21 = vpop.f32.mrf.mxu0  ;;  %v1505_v24 = vpop.f32.mrf.mxu1  ;;  %3219 = vmatpush2.msra.mxu1 %v2799_v23  ;;  %v2082_v23 = vld [vmem:[#allocation2 + $0x140] sm:$0xf]  ;;  %vm1948_vm5 = vcmp.eq.s32.totalorder %v9904_v31, 1 }
 0x209   :  { %v9888_v53 = vadd.f32 %v1505_v24, %v1261_v8  ;;  %3220 = vmatprep.subr.mxu1 %v9679_v37  ;;  %v2798_v8 = vld [vmem:[%s13645_s5 + $0x2b8] sm:$0xff]  ;;  %v9899_v21 = vpop.permute.xlu1 %1884 }
 0x20a   :  { %v1265_v1 = vpop.f32.mrf.mxu0  ;;  %v1507_v34 = vpop.f32.mrf.mxu1  ;;  %3221 = vmatpush2.msra.mxu1 %v2798_v8 }
 0x20b   :  { %13741 = vst [vmem:[#allocation12_spill] sm:$0xff] %v9888_v53  ;;  %v1266_v38 = vadd.f32 %v1265_v1, %v9400_v39  ;;  %3222 = vmatprep.subr.mxu1 %v9679_v37  ;;  %v2081_v1 = vld [vmem:[#allocation2 + $0x138] sm:$0xff] }
 0x20c   :  { %v1267_v5 = vpop.f32.mrf.mxu0  ;;  %v1510_v61 = vpop.f32.mrf.mxu1  ;;  %3223 = vmatpush2.msra.mxu1 %v2797_v59  ;;  %v2163_v8 = vmax.f32 %v2081_v1, %v2122_v60  ;;  %v2795_v60 = vld [vmem:[%s13645_s5 + $0x2a0] sm:$0xff] }
 0x20d   :  { %v9901_v24 = vadd.f32 %v1510_v61, %v1266_v38  ;;  %v2123_v38 = vld [vmem:[#allocation2 + $0x141] sm:$0xf]  ;;  %3224 = vmatprep.subr.mxu1 %v9679_v37 }
 0x20e   :  { %v1270_v14 = vpop.f32.mrf.mxu0  ;;  %v1512_v34 = vpop.f32.mrf.mxu1 }
 0x20f   :  { %13742 = vst [vmem:[#allocation13_spill] sm:$0xff] %v9901_v24  ;;  %v1271_v39 = vadd.f32 %v1270_v14, %v9413_v57  ;;  %v2164_v34 = vmax.f32 %v2082_v23, %v2123_v38  ;;  %v2204_v24 = vld [vmem:[#allocation2 + $0x13a] sm:$0xff]  ;;  %v9913_v57 = vpop.permute.xlu1 %2480 }
 0x210   :  { %v1272_v5 = vpop.f32.mrf.mxu0  ;;  %v1515_v53 = vpop.f32.mrf.mxu1  ;;  %v2245_v4 = vmax.f32 %v2163_v8, %v2204_v24  ;;  %v2794_v24 = vld [vmem:[%s13645_s5 + $0x298] sm:$0xff] }
 0x211   :  { %v9910_v61 = vadd.f32 %v1515_v53, %v1271_v39  ;;  %v2796_v5 = vld [vmem:[%s13645_s5 + $0x2a8] sm:$0xff]  ;;  %v2246_v53 = vmax.f32 %v2164_v34, %v2205_v20 }
 0x212   :  { %v1275_v6 = vpop.f32.mrf.mxu0  ;;  %v1517_v41 = vpop.f32.mrf.mxu1  ;;  %3225 = vmatpush2.msra.mxu1 %v2796_v5  ;;  %2286 = vst [vmem:[#allocation3 + $0x138] sm:$0xff] %v2245_v4  ;;  %v2793_v4 = vld [vmem:[%s13645_s5 + $0x290] sm:$0xff] }
 0x213   :  { %v1276_v14 = vadd.f32 %v1275_v6, %v9426_v12  ;;  %v9922_v41 = vpop.permute.xlu0 %1875  ;;  %3226 = vmatprep.subr.mxu1 %v9679_v37  ;;  %2287 = vst [vmem:[#allocation3 + $0x140] sm:$0xf] %v2246_v53  ;;  %v9932_v8 = vpop.permute.xlu1 %1893 }
 0x214   :  { %v1277_v39 = vpop.f32.mrf.mxu0  ;;  %v1520_v59 = vpop.f32.mrf.mxu1  ;;  %3227 = vmatpush2.msra.mxu1 %v2795_v60  ;;  %v2792_v60 = vld [vmem:[%s13645_s5 + $0x288] sm:$0xff] }
 0x215   :  { %v9924_v1 = vadd.f32 %v1520_v59, %v1276_v14  ;;  %3228 = vmatprep.subr.mxu1 %v9679_v37 }
 0x216   :  { %v1280_v12 = vpop.f32.mrf.mxu0  ;;  %v1522_v6 = vpop.f32.mrf.mxu1  ;;  %3229 = vmatpush2.msra.mxu1 %v2794_v24  ;;  %v2791_v24 = vld [vmem:[%s13645_s5 + $0x280] sm:$0xff] }
 0x217   :  { %v1281_v20 = vadd.f32 %v1280_v12, %v9436_v28  ;;  %3230 = vmatprep.subr.mxu1 %v9679_v37  ;;  %v9940_v5 = vpop.permute.xlu0 %1878 }
 0x218   :  { %v1282_v23 = vpop.f32.mrf.mxu0  ;;  %v1525_v38 = vpop.f32.mrf.mxu1  ;;  %3231 = vmatpush2.msra.mxu1 %v2793_v4 }
 0x219   :  { %v9934_v34 = vadd.f32 %v1525_v38, %v1281_v20  ;;  %3232 = vmatprep.subr.mxu1 %v9679_v37 }
 0x21a   :  { %v1285_v28 = vpop.f32.mrf.mxu0  ;;  %v1527_v14 = vpop.f32.mrf.mxu1  ;;  %3233 = vmatpush2.msra.mxu1 %v2792_v60 }
 0x21b   :  { %v1286_v53 = vadd.f32 %v1285_v28, %v9449_v45  ;;  %3234 = vmatprep.subr.mxu1 %v9679_v37  ;;  %v9953_v45 = vpop.permute.xlu1 %1896  ;;  %v2854_v28 = vld [vmem:[%s13645_s5 + $0x478] sm:$0xff]  ;;  %v9959_v14 = vpop.permute.xlu0 %2477 }
 0x21c   :  { %v1287_v39 = vpop.f32.mrf.mxu0  ;;  %v1530_v59 = vpop.f32.mrf.mxu1  ;;  %3235 = vmatpush2.msra.mxu1 %v2791_v24 }
 0x21d   :  { %v9947_v12 = vadd.f32 %v1530_v59, %v1286_v53  ;;  %7304 = vmatprep.subr.mxu1 %v2854_v28 }
 0x21e   :  { %v1290_v6 = vpop.f32.mrf.mxu0  ;;  %v1532_v20 = vpop.f32.mrf.mxu1 }
 0x21f   :  { %v1291_v23 = vadd.f32 %v1290_v6, %v9462_v2  ;;  %v9965_v2 = vpop.permute.xlu1 %2486 }
 0x220   :  { %v1292_v38 = vpop.f32.mrf.mxu0  ;;  %v1535_v4 = vpop.f32.mrf.mxu1 }
 0x221   :  { %v9961_v53 = vadd.f32 %v1535_v4, %v1291_v23  ;;  %v9969_v38 = vpop.permute.xlu0 %1887 }
 0x222   :  { %v7252_v37 = vpop.f32.mrf.mxu0  ;;  %v1537_v39 = vpop.f32.mrf.mxu1 }
 0x223   :  { %v1611_v59 = vadd.f32 %v7252_v37, %v9502_v47  ;;  %v9975_v37 = vpop.permute.xlu1 %1905 }
 0x224   :  { %v1605_v60 = vpop.f32.mrf.mxu0 }
 0x225   :  { %v1971_v6 = vsel %vm1935_vm6, %v1611_v59, -1e+30  ;;  %v1606_v20 = vadd.f32 %v1605_v60, %v9482_v25  ;;  %v9979_v59 = vpop.permute.xlu0 %1890  ;;  %vm1951_vm6 = vcmp.eq.s32.totalorder %v9940_v5, 1 }
 0x226   :  { %2007 = vst [vmem:[#allocation2 + $0x1b] sm:$0xff] %v1971_v6  ;;  %v7255_v24 = vpop.f32.mrf.mxu0 }
 0x227   :  { %v1970_v23 = vsel %vm1934_vm7, %v1606_v20, -1e+30  ;;  %v1621_v4 = vadd.f32 %v7255_v24, %v9543_v30  ;;  %vm1950_vm7 = vcmp.eq.s32.totalorder %v9922_v41, 1 }
 0x228   :  { %2006 = vst [vmem:[#allocation2 + $0x13] sm:$0xff] %v1970_v23  ;;  %v1615_v47 = vpop.f32.mrf.mxu0 }
 0x229   :  { %v1973_v46 = vsel %vm1937_vm8, %v1621_v4, -1e+30  ;;  %v1616_v28 = vadd.f32 %v1615_v47, %v9522_v9  ;;  %v9985_v47 = vpop.permute.xlu1 %1908  ;;  %vm13655_vm8 = vcmp.eq.s32.totalorder %v9861_v33, 1 }
 0x22a   :  { %2009 = vst [vmem:[#allocation2 + $0x2b] sm:$0xff] %v1973_v46  ;;  %v7258_v25 = vpop.f32.mrf.mxu0 }
 0x22b   :  { %v1972_v58 = vsel %vm1936_vm9, %v1616_v28, -1e+30  ;;  %v1631_v39 = vadd.f32 %v7258_v25, %v9570_v40  ;;  %vm1953_vm9 = vcmp.eq.s32.totalorder %v9899_v21, 1 }
 0x22c   :  { %2008 = vst [vmem:[#allocation2 + $0x23] sm:$0xff] %v1972_v58  ;;  %v1625_v30 = vpop.f32.mrf.mxu0 }
 0x22d   :  { %v1975_v51 = vsel %vm1939_vm10, %v1631_v39, -1e+30  ;;  %v1626_v60 = vadd.f32 %v1625_v30, %v9555_v49  ;;  %vm1952_vm10 = vcmp.eq.s32.totalorder %v9879_v10, 1 }
 0x22e   :  { %2011 = vst [vmem:[#allocation2 + $0x3b] sm:$0xff] %v1975_v51  ;;  %v7261_v9 = vpop.f32.mrf.mxu0 }
 0x22f   :  { %v2044_v27 = vld [vmem:[#allocation2 + $0x10] sm:$0xff]  ;;  %v2045_v6 = vld [vmem:[#allocation2 + $0x18] sm:$0xff]  ;;  %v1974_v24 = vsel %vm1938_vm11, %v1626_v60, -1e+30  ;;  %v1641_v23 = vadd.f32 %v7261_v9, %v9592_v22  ;;  %v9989_v22 = vpop.permute.xlu0 %2483  ;;  %vm2528_vm11 = vcmp.eq.s32.totalorder %v9959_v14, 1  ;;  %v6200_v14 = vld [vmem:[%s13650_s11 + $0x468] sm:$0xff] }
 0x230   :  { %v2085_v20 = vld [vmem:[#allocation2 + $0x11] sm:$0xff]  ;;  %v2086_v40 = vld [vmem:[#allocation2 + $0x19] sm:$0xff]  ;;  %2010 = vst [vmem:[#allocation2 + $0x33] sm:$0xff] %v1974_v24  ;;  %v1635_v4 = vpop.f32.mrf.mxu0 }
 0x231   :  { %v2126_v16 = vmax.f32 %v2044_v27, %v2085_v20  ;;  %v2127_v46 = vmax.f32 %v2045_v6, %v2086_v40  ;;  %v2167_v49 = vld [vmem:[#allocation2 + $0x12] sm:$0xff]  ;;  %v1977_v28 = vsel %vm1941_vm12, %v1641_v23, -1e+30  ;;  %v1636_v19 = vadd.f32 %v1635_v4, %v9581_v36  ;;  %v2168_v25 = vld [vmem:[#allocation2 + $0x1a] sm:$0xff] }
 0x232   :  { %2013 = vst [vmem:[#allocation2 + $0x4b] sm:$0xff] %v1977_v28  ;;  %v7264_v39 = vpop.f32.mrf.mxu0  ;;  %vm1955_vm12 = vcmp.eq.s32.totalorder %v9979_v59, 1 }
 0x233   :  { %v2208_v58 = vmax.f32 %v2126_v16, %v2167_v49  ;;  %v2209_v50 = vmax.f32 %v2127_v46, %v2168_v25  ;;  %v2046_v30 = vld [vmem:[#allocation2 + $0x20] sm:$0xff]  ;;  %v2047_v51 = vld [vmem:[#allocation2 + $0x28] sm:$0xff]  ;;  %v1976_v9 = vsel %vm1940_vm13, %v1636_v19, -1e+30  ;;  %v1651_v27 = vadd.f32 %v7264_v39, %v9618_v55  ;;  %v9995_v55 = vpop.permute.xlu1 %2492 }
 0x234   :  { %v2087_v60 = vld [vmem:[#allocation2 + $0x21] sm:$0xff]  ;;  %v2088_v6 = vld [vmem:[#allocation2 + $0x29] sm:$0xff]  ;;  %2012 = vst [vmem:[#allocation2 + $0x43] sm:$0xff] %v1976_v9  ;;  %v1645_v7 = vpop.f32.mrf.mxu0  ;;  %vm1954_vm13 = vcmp.eq.s32.totalorder %v9969_v38, 1 }
 0x235   :  { %2249 = vst [vmem:[#allocation3 + $0x10] sm:$0xff] %v2208_v58  ;;  %v2128_v36 = vmax.f32 %v2046_v30, %v2087_v60  ;;  %2250 = vst [vmem:[#allocation3 + $0x18] sm:$0xff] %v2209_v50  ;;  %v2129_v20 = vmax.f32 %v2047_v51, %v2088_v6  ;;  %v2169_v24 = vld [vmem:[#allocation2 + $0x22] sm:$0xff]  ;;  %v1979_v23 = vsel %vm1943_vm14, %v1651_v27, -1e+30  ;;  %v1646_v40 = vadd.f32 %v1645_v7, %v9603_v62  ;;  %v2170_v16 = vld [vmem:[#allocation2 + $0x2a] sm:$0xff]  ;;  %v9999_v50 = vpop.permute.xlu0 %1899 }
 0x236   :  { %2015 = vst [vmem:[#allocation2 + $0x5b] sm:$0xff] %v1979_v23  ;;  %v7267_v46 = vpop.f32.mrf.mxu0  ;;  %vm13654_vm14 = vcmp.eq.s32.totalorder %v9913_v57, 1  ;;  %v13746_v38 = vld [vmem:[#allocation6_spill] sm:$0xff] }
 0x237   :  { %v2210_v4 = vmax.f32 %v2128_v36, %v2169_v24  ;;  %v2211_v11 = vmax.f32 %v2129_v20, %v2170_v16  ;;  %v2048_v49 = vld [vmem:[#allocation2 + $0x30] sm:$0xff]  ;;  %v2049_v28 = vld [vmem:[#allocation2 + $0x38] sm:$0xff]  ;;  %v1978_v25 = vsel %vm1942_vm15, %v1646_v40, -1e+30  ;;  %v1661_v58 = vadd.f32 %v7267_v46, %v9651_v63 }
 0x238   :  { %v2089_v19 = vld [vmem:[#allocation2 + $0x31] sm:$0xff]  ;;  %v2090_v39 = vld [vmem:[#allocation2 + $0x39] sm:$0xff]  ;;  %2014 = vst [vmem:[#allocation2 + $0x53] sm:$0xff] %v1978_v25  ;;  %v1655_v18 = vpop.f32.mrf.mxu0  ;;  %vm1957_vm15 = vcmp.eq.s32.totalorder %v9953_v45, 1  ;;  %v13747_v45 = vld [vmem:[#allocation5_spill] sm:$0xff] }
 0x239   :  { %2251 = vst [vmem:[#allocation3 + $0x20] sm:$0xff] %v2210_v4  ;;  %v2130_v62 = vmax.f32 %v2048_v49, %v2089_v19  ;;  %2252 = vst [vmem:[#allocation3 + $0x28] sm:$0xff] %v2211_v11  ;;  %v2131_v30 = vmax.f32 %v2049_v28, %v2090_v39  ;;  %v2171_v51 = vld [vmem:[#allocation2 + $0x32] sm:$0xff]  ;;  %v1981_v60 = vsel %vm1945_vm0, %v1661_v58, -1e+30  ;;  %v1656_v9 = vadd.f32 %v1655_v18, %v9632_v52  ;;  %v2172_v27 = vld [vmem:[#allocation2 + $0x3a] sm:$0xff]  ;;  %v10005_v4 = vpop.permute.xlu1 %1917  ;;  %v10009_v48 = vpop.permute.xlu0 %1902 }
 0x23a   :  { %2017 = vst [vmem:[#allocation2 + $0x6b] sm:$0xff] %v1981_v60  ;;  %v7270_v63 = vpop.f32.mrf.mxu0  ;;  %v2288_v60 = vld [vmem:[#allocation3] ss:$2 sm:$0xff]  ;;  %vm1956_vm0 = vcmp.eq.s32.totalorder %v9932_v8, 1  ;;  %v13749_v8 = vld [vmem:[#allocation8_spill] sm:$0xff] }
 0x23b   :  { %v2212_v6 = vmax.f32 %v2130_v62, %v2171_v51  ;;  %v2213_v43 = vmax.f32 %v2131_v30, %v2172_v27  ;;  %v2050_v36 = vld [vmem:[#allocation2 + $0x40] sm:$0xff]  ;;  %v2051_v7 = vld [vmem:[#allocation2 + $0x48] sm:$0xff]  ;;  %v1980_v24 = vsel %vm1944_vm1, %v1656_v9, -1e+30  ;;  %v1671_v23 = vadd.f32 %v7270_v63, %v9691_v56 }
 0x23c   :  { %v2091_v20 = vld [vmem:[#allocation2 + $0x41] sm:$0xff]  ;;  %v2092_v40 = vld [vmem:[#allocation2 + $0x49] sm:$0xff]  ;;  %2016 = vst [vmem:[#allocation2 + $0x63] sm:$0xff] %v1980_v24  ;;  %v1665_v52 = vpop.f32.mrf.mxu0  ;;  %vm2530_vm1 = vcmp.eq.s32.totalorder %v9989_v22, 1 }
 0x23d   :  { %2253 = vst [vmem:[#allocation3 + $0x30] sm:$0xff] %v2212_v6  ;;  %v2132_v16 = vmax.f32 %v2050_v36, %v2091_v20  ;;  %2254 = vst [vmem:[#allocation3 + $0x38] sm:$0xff] %v2213_v43  ;;  %v2133_v32 = vmax.f32 %v2051_v7, %v2092_v40  ;;  %v2173_v46 = vld [vmem:[#allocation2 + $0x42] sm:$0xff]  ;;  %v1983_v11 = vsel %vm1947_vm2, %v1671_v23, -1e+30  ;;  %v1666_v49 = vadd.f32 %v1665_v52, %v9670_v13  ;;  %v2174_v28 = vld [vmem:[#allocation2 + $0x4a] sm:$0xff]  ;;  %v10015_v42 = vpop.permute.xlu1 %1920 }
 0x23e   :  { %2019 = vst [vmem:[#allocation2 + $0x7b] sm:$0xff] %v1983_v11  ;;  %v7273_v56 = vpop.f32.mrf.mxu0  ;;  %vm1959_vm2 = vcmp.eq.s32.totalorder %v10009_v48, 1 }
 0x23f   :  { %v2214_v19 = vmax.f32 %v2132_v16, %v2173_v46  ;;  %v2215_v25 = vmax.f32 %v2133_v32, %v2174_v28  ;;  %v2052_v58 = vld [vmem:[#allocation2 + $0x50] sm:$0xff]  ;;  %v2053_v39 = vld [vmem:[#allocation2 + $0x58] sm:$0xff]  ;;  %v1982_v18 = vsel %vm1946_vm3, %v1666_v49, -1e+30  ;;  %v1681_v30 = vadd.f32 %v7273_v56, %v9718_v29  ;;  %v10019_v49 = vpop.permute.xlu0 %2489 }
 0x240   :  { %v2093_v62 = vld [vmem:[#allocation2 + $0x51] sm:$0xff]  ;;  %v2094_v51 = vld [vmem:[#allocation2 + $0x59] sm:$0xff]  ;;  %2018 = vst [vmem:[#allocation2 + $0x73] sm:$0xff] %v1982_v18  ;;  %v1675_v54 = vpop.f32.mrf.mxu0  ;;  %vm1958_vm3 = vcmp.eq.s32.totalorder %v9999_v50, 1  ;;  %v2820_v50 = vld [vmem:[%s13645_s5 + $0x368] sm:$0xff] }
 0x241   :  { %2255 = vst [vmem:[#allocation3 + $0x40] sm:$0xff] %v2214_v19  ;;  %v2134_v13 = vmax.f32 %v2052_v58, %v2093_v62  ;;  %2256 = vst [vmem:[#allocation3 + $0x48] sm:$0xff] %v2215_v25  ;;  %v2135_v9 = vmax.f32 %v2053_v39, %v2094_v51  ;;  %v2175_v27 = vld [vmem:[#allocation2 + $0x52] sm:$0xff]  ;;  %v1985_v6 = vsel %vm1949_vm4, %v1681_v30, -1e+30  ;;  %v1676_v63 = vadd.f32 %v1675_v54, %v9704_v3  ;;  %v2176_v36 = vld [vmem:[#allocation2 + $0x5a] sm:$0xff] }
 0x242   :  { %v2324_v43 = vld [vmem:[#allocation3 + $0x12] ss:$2 sm:$0xff]  ;;  %2021 = vst [vmem:[#allocation2 + $0x8b] sm:$0xff] %v1985_v6  ;;  %v7276_v29 = vpop.f32.mrf.mxu0  ;;  %vm2531_vm4 = vcmp.eq.s32.totalorder %v9965_v2, 1 }
 0x243   :  { %v2216_v7 = vmax.f32 %v2134_v13, %v2175_v27  ;;  %v2217_v20 = vmax.f32 %v2135_v9, %v2176_v36  ;;  %v2054_v24 = vld [vmem:[#allocation2 + $0x60] sm:$0xff]  ;;  %v2055_v23 = vld [vmem:[#allocation2 + $0x68] sm:$0xff]  ;;  %v1984_v16 = vsel %vm1948_vm5, %v1676_v63, -1e+30  ;;  %v1691_v52 = vadd.f32 %v7276_v29, %v9742_v0  ;;  %v10029_v36 = vpop.permute.xlu1 %2498 }
 0x244   :  { %v2095_v40 = vld [vmem:[#allocation2 + $0x61] sm:$0xff]  ;;  %v2096_v3 = vld [vmem:[#allocation2 + $0x69] sm:$0xff]  ;;  %2020 = vst [vmem:[#allocation2 + $0x83] sm:$0xff] %v1984_v16  ;;  %v1685_v31 = vpop.f32.mrf.mxu0  ;;  %v2359_v11 = vmax.f32 %v2288_v60, %v2324_v43  ;;  %vm1961_vm5 = vcmp.eq.s32.totalorder %v9985_v47, 1 }
 0x245   :  { %2257 = vst [vmem:[#allocation3 + $0x50] sm:$0xff] %v2216_v7  ;;  %v2136_v32 = vmax.f32 %v2054_v24, %v2095_v40  ;;  %v2177_v46 = vld [vmem:[#allocation2 + $0x62] sm:$0xff]  ;;  %2258 = vst [vmem:[#allocation3 + $0x58] sm:$0xff] %v2217_v20  ;;  %v2137_v28 = vmax.f32 %v2055_v23, %v2096_v3  ;;  %v1987_v19 = vsel %vm1951_vm6, %v1691_v52, -1e+30  ;;  %v1686_v56 = vadd.f32 %v1685_v31, %v9729_v44  ;;  %v2178_v0 = vld [vmem:[#allocation2 + $0x6a] sm:$0xff] }
 0x246   :  { %v2378_v25 = vld [vmem:[#allocation3 + $0x24] ss:$2 sm:$0xff]  ;;  %2023 = vst [vmem:[#allocation2 + $0x9b] sm:$0xff] %v1987_v19  ;;  %v7279_v39 = vpop.f32.mrf.mxu0  ;;  %vm1960_vm6 = vcmp.eq.s32.totalorder %v9975_v37, 1 }
 0x247   :  { %v2326_v58 = vld [vmem:[#allocation3 + $0x22] ss:$2 sm:$0xff]  ;;  %v2218_v5 = vmax.f32 %v2136_v32, %v2177_v46  ;;  %v10023_v62 = vmax.f32 %v2359_v11, %v2378_v25  ;;  %v2219_v30 = vmax.f32 %v2137_v28, %v2178_v0  ;;  %v1986_v60 = vsel %vm1950_vm7, %v1686_v56, -1e+30  ;;  %v2098_v41 = vld [vmem:[#allocation2 + $0x79] sm:$0xff]  ;;  %v10038_v32 = vpop.permute.xlu0 %1911 }
 0x248   :  { %v2290_v18 = vld [vmem:[#allocation3 + $0x10] ss:$2 sm:$0xff]  ;;  %v2056_v51 = vld [vmem:[#allocation2 + $0x70] sm:$0xff]  ;;  %v1701_v44 = vadd.f32 %v7279_v39, %v9766_v35  ;;  %2022 = vst [vmem:[#allocation2 + $0x93] sm:$0xff] %v1986_v60  ;;  %v1695_v6 = vpop.f32.mrf.mxu0  ;;  %v13754_v47 = vld [vmem:[#allocation9_spill] sm:$0xff]  ;;  %vm2532_vm7 = vcmp.eq.s32.totalorder %v10019_v49, 1 }
 0x249   :  { %13743 = vst [vmem:[#allocation14_spill] sm:$0xff] %v10023_v62  ;;  %v2057_v13 = vld [vmem:[#allocation2 + $0x78] sm:$0xff]  ;;  %2259 = vst [vmem:[#allocation3 + $0x60] sm:$0xff] %v2218_v5  ;;  %v2437_v63 = vmax.f32 %v10023_v62, 0.0  ;;  %v2360_v43 = vmax.f32 %v2290_v18, %v2326_v58  ;;  %v1696_v20 = vadd.f32 %v1695_v6, %v9755_v17  ;;  %v2292_v3 = vld [vmem:[#allocation3 + $0x20] ss:$2 sm:$0xff] }
 0x24a   :  { %v2097_v54 = vld [vmem:[#allocation2 + $0x71] sm:$0xff]  ;;  %2260 = vst [vmem:[#allocation3 + $0x68] sm:$0xff] %v2219_v30  ;;  %v2139_v7 = vmax.f32 %v2057_v13, %v2098_v41  ;;  %v1989_v29 = vsel %vm1953_vm9, %v1701_v44, -1e+30  ;;  %v2380_v24 = vld [vmem:[#allocation3 + $0x34] ss:$2 sm:$0xff]  ;;  %v7282_v40 = vpop.f32.mrf.mxu0 }
 0x24b   :  { %v2138_v9 = vmax.f32 %v2056_v51, %v2097_v54  ;;  %v2179_v27 = vld [vmem:[#allocation2 + $0x72] sm:$0xff]  ;;  %v2328_v35 = vld [vmem:[#allocation3 + $0x32] ss:$2 sm:$0xff]  ;;  %2025 = vst [vmem:[#allocation2 + $0xab] sm:$0xff] %v1989_v29  ;;  %v2545_v16 = vsel %vm13655_vm8, %v2437_v63, 0.0  ;;  %v10035_v52 = vmax.f32 %v2360_v43, %v2380_v24  ;;  %v1711_v10 = vadd.f32 %v7282_v40, %v9790_v15  ;;  %v2100_v19 = vld [vmem:[#allocation2 + $0x89] sm:$0xff] }
 0x24c   :  { %v2180_v21 = vld [vmem:[#allocation2 + $0x7a] sm:$0xff]  ;;  %v2059_v31 = vld [vmem:[#allocation2 + $0x88] sm:$0xff]  ;;  %v1988_v28 = vsel %vm1952_vm10, %v1696_v20, -1e+30  ;;  %2563 = vst [vmem:[#allocation4 + $0x13] sm:$0xff] %v2545_v16  ;;  %v1705_v58 = vpop.f32.mrf.mxu0  ;;  %v2361_v5 = vmax.f32 %v2292_v3, %v2328_v35  ;;  %v2617_v29 = vld [vmem:[#allocation4 + $0x2] sm:$0xff] }
 0x24d   :  { %v2220_v23 = vmax.f32 %v2138_v9, %v2179_v27  ;;  %13744 = vst [vmem:[#allocation15_spill] sm:$0xff] %v10035_v52  ;;  %v2221_v46 = vmax.f32 %v2139_v7, %v2180_v21  ;;  %v2058_v17 = vld [vmem:[#allocation2 + $0x80] sm:$0xff]  ;;  %2024 = vst [vmem:[#allocation2 + $0xa3] sm:$0xff] %v1988_v28  ;;  %v2438_v0 = vmax.f32 %v10035_v52, 0.0  ;;  %v2141_v39 = vmax.f32 %v2059_v31, %v2100_v19  ;;  %v2382_v51 = vld [vmem:[#allocation3 + $0x44] ss:$2 sm:$0xff]  ;;  %v10050_v9 = vpop.permute.xlu1 %1929 }
 0x24e   :  { %v2099_v11 = vld [vmem:[#allocation2 + $0x81] sm:$0xff]  ;;  %v1991_v18 = vsel %vm1955_vm12, %v1711_v10, -1e+30  ;;  %v1706_v30 = vadd.f32 %v1705_v58, %v9778_v26  ;;  %v2330_v13 = vld [vmem:[#allocation3 + $0x42] ss:$2 sm:$0xff]  ;;  %v7285_v54 = vpop.f32.mrf.mxu0  ;;  %v10047_v44 = vmax.f32 %v2361_v5, %v2382_v51  ;;  %vm1962_vm10 = vcmp.eq.s32.totalorder %v10038_v32, 1 }
 0x24f   :  { %2261 = vst [vmem:[#allocation3 + $0x70] sm:$0xff] %v2220_v23  ;;  %v2140_v56 = vmax.f32 %v2058_v17, %v2099_v11  ;;  %v2181_v25 = vld [vmem:[#allocation2 + $0x82] sm:$0xff]  ;;  %2262 = vst [vmem:[#allocation3 + $0x78] sm:$0xff] %v2221_v46  ;;  %v2182_v15 = vld [vmem:[#allocation2 + $0x8a] sm:$0xff]  ;;  %v2546_v60 = vsel %vm2528_vm11, %v2438_v0, 0.0  ;;  %v1721_v7 = vadd.f32 %v7285_v54, %v13746_v38  ;;  %v10058_v46 = vpop.permute.xlu0 %1914  ;;  %vm1965_vm12 = vcmp.eq.s32.totalorder %v10015_v42, 1 }
 0x250   :  { %2027 = vst [vmem:[#allocation2 + $0xbb] sm:$0xff] %v1991_v18  ;;  %13745 = vst [vmem:[#allocation16_spill] sm:$0xff] %v10047_v44  ;;  %v2294_v41 = vld [vmem:[#allocation3 + $0x30] ss:$2 sm:$0xff]  ;;  %v2223_v27 = vmax.f32 %v2141_v39, %v2182_v15  ;;  %v2060_v26 = vld [vmem:[#allocation2 + $0x90] sm:$0xff]  ;;  %v1715_v23 = vpop.f32.mrf.mxu0  ;;  %v2439_v40 = vmax.f32 %v10047_v44, 0.0 }
 0x251   :  { %v2222_v59 = vmax.f32 %v2140_v56, %v2181_v25  ;;  %v2061_v6 = vld [vmem:[#allocation2 + $0x98] sm:$0xff]  ;;  %v1990_v43 = vsel %vm1954_vm13, %v1706_v30, -1e+30  ;;  %2564 = vst [vmem:[#allocation4 + $0x1b] sm:$0xff] %v2546_v60  ;;  %v2362_v3 = vmax.f32 %v2294_v41, %v2330_v13  ;;  %v1993_v31 = vsel %vm1957_vm15, %v1721_v7, -1e+30 }
 0x252   :  { %v2101_v63 = vld [vmem:[#allocation2 + $0x91] sm:$0xff]  ;;  %v2102_v20 = vld [vmem:[#allocation2 + $0x99] sm:$0xff]  ;;  %2026 = vst [vmem:[#allocation2 + $0xb3] sm:$0xff] %v1990_v43  ;;  %2264 = vst [vmem:[#allocation3 + $0x88] sm:$0xff] %v2223_v27  ;;  %v1716_v11 = vadd.f32 %v1715_v23, %v13747_v45  ;;  %v7288_v0 = vpop.f32.mrf.mxu0  ;;  %v2547_v39 = vsel %vm13654_vm14, %v2439_v40, 0.0  ;;  %vm1963_vm9 = vcmp.eq.s32.totalorder %v10058_v46, 1 }
 0x253   :  { %2263 = vst [vmem:[#allocation3 + $0x80] sm:$0xff] %v2222_v59  ;;  %v2142_v24 = vmax.f32 %v2060_v26, %v2101_v63  ;;  %v2183_v35 = vld [vmem:[#allocation2 + $0x92] sm:$0xff]  ;;  %v2184_v21 = vld [vmem:[#allocation2 + $0x9a] sm:$0xff]  ;;  %v2143_v17 = vmax.f32 %v2061_v6, %v2102_v20  ;;  %2029 = vst [vmem:[#allocation2 + $0xcb] sm:$0xff] %v1993_v31  ;;  %v1731_v54 = vadd.f32 %v7288_v0, %v13749_v8  ;;  %v10076_v20 = vpop.permute.xlu1 %2504  ;;  %vm1964_vm13 = vcmp.eq.s32.totalorder %v10005_v4, 1 }
 0x254   :  { %v2822_v16 = vld [vmem:[%s13645_s5 + $0x378] sm:$0xff]  ;;  %v2296_v10 = vld [vmem:[#allocation3 + $0x40] ss:$2 sm:$0xff]  ;;  %v2583_v5 = vld [vmem:[#allocation4 + $0x10] sm:$0xff]  ;;  %v1992_v59 = vsel %vm1956_vm0, %v1716_v11, -1e+30  ;;  %v1725_v63 = vpop.f32.mrf.mxu0 }
 0x255   :  { %v2384_v28 = vld [vmem:[#allocation3 + $0x54] ss:$2 sm:$0xff]  ;;  %v2224_v56 = vmax.f32 %v2142_v24, %v2183_v35  ;;  %v2225_v30 = vmax.f32 %v2143_v17, %v2184_v21  ;;  %2565 = vst [vmem:[#allocation4 + $0x23] sm:$0xff] %v2547_v39  ;;  %2028 = vst [vmem:[#allocation2 + $0xc3] sm:$0xff] %v1992_v59  ;;  %v2821_v38 = vld [vmem:[%s13645_s5 + $0x370] sm:$0xff]  ;;  %vm2533_vm15 = vcmp.eq.s32.totalorder %v9995_v55, 1 }
 0x256   :  { %v2332_v19 = vld [vmem:[#allocation3 + $0x52] ss:$2 sm:$0xff]  ;;  %v10066_v18 = vmax.f32 %v2362_v3, %v2384_v28  ;;  %v2104_v41 = vld [vmem:[#allocation2 + $0xa9] sm:$0xff]  ;;  %13750 = vst [vmem:[#allocation5_spill] sm:$0xff] %v10076_v20  ;;  %v1995_v35 = vsel %vm1959_vm2, %v1731_v54, -1e+30  ;;  %v7291_v11 = vpop.f32.mrf.mxu0 }
 0x257   :  { %v2601_v25 = vld [vmem:[#allocation4 + $0x11] sm:$0xff]  ;;  %2265 = vst [vmem:[#allocation3 + $0x90] sm:$0xff] %v2224_v56  ;;  %v2186_v6 = vld [vmem:[#allocation2 + $0xaa] sm:$0xff]  ;;  %v2363_v7 = vmax.f32 %v2296_v10, %v2332_v19  ;;  %2266 = vst [vmem:[#allocation3 + $0x98] sm:$0xff] %v2225_v30  ;;  %v10094_v19 = vpop.permute.xlu0 %2495 }
 0x258   :  { %v10062_v58 = vld [vmem:[#allocation4 + $0x12] sm:$0xff]  ;;  %13748 = vst [vmem:[#allocation6_spill] sm:$0xff] %v10066_v18  ;;  %2936 = vmatprep.mubr.f32.mxu1 %v2601_v25  ;;  %v2618_v60 = vld [vmem:[#allocation4 + $0xa] sm:$0xff]  ;;  %v2440_v43 = vmax.f32 %v10066_v18, 0.0  ;;  %v2334_v3 = vld [vmem:[#allocation3 + $0x62] ss:$2 sm:$0xff]  ;;  %v1735_v59 = vpop.f32.mrf.mxu0 }
 0x259   :  { %v2062_v51 = vld [vmem:[#allocation2 + $0xa0] sm:$0xff]  ;;  %v2063_v13 = vld [vmem:[#allocation2 + $0xa8] sm:$0xff]  ;;  %3081 = vmatprep.mubr.f32.mxu0 %v10062_v58  ;;  %2937 = vmatmul.mubr.f32.gmra.mxu1 %v2583_v5  ;;  %v13751_v21 = vld [vmem:[#allocation7_spill] sm:$0xff]  ;;  %2031 = vst [vmem:[#allocation2 + $0xdb] sm:$0xff] %v1995_v35 }
 0x25a   :  { %v2103_v15 = vld [vmem:[#allocation2 + $0xa1] sm:$0xff]  ;;  %3082 = vmatmul.mubr.f32.vlgmr.msra.gmra.mxu0 %v2617_v29  ;;  %v2145_v24 = vmax.f32 %v2063_v13, %v2104_v41  ;;  %v1726_v23 = vadd.f32 %v1725_v63, %v13751_v21  ;;  %v2386_v40 = vld [vmem:[#allocation3 + $0x64] ss:$2 sm:$0xff]  ;;  %v2548_v48 = vsel %vm2530_vm1, %v2440_v43, 0.0  ;;  %v1736_v63 = vadd.f32 %v1735_v59, %v13754_v47  ;;  %v7294_v21 = vpop.f32.mrf.mxu0 }
 0x25b   :  { %v2144_v27 = vmax.f32 %v2062_v51, %v2103_v15  ;;  %v2185_v26 = vld [vmem:[#allocation2 + $0xa2] sm:$0xff]  ;;  %3328 = vmatpush1.msra.mxu0 %v2822_v16  ;;  %v10082_v45 = vld [vmem:[#allocation4 + $0x1a] sm:$0xff]  ;;  %v10091_v16 = vmax.f32 %v2363_v7, %v2386_v40  ;;  %v2065_v0 = vld [vmem:[#allocation2 + $0xb8] sm:$0xff]  ;;  %2566 = vst [vmem:[#allocation4 + $0x2b] sm:$0xff] %v2548_v48 }
 0x25c   :  { %v2298_v29 = vld [vmem:[#allocation3 + $0x50] ss:$2 sm:$0xff]  ;;  %v2602_v31 = vld [vmem:[#allocation4 + $0x19] sm:$0xff]  ;;  %v2227_v56 = vmax.f32 %v2145_v24, %v2186_v6  ;;  %v1994_v39 = vsel %vm1958_vm3, %v1726_v23, -1e+30  ;;  %3086 = vmatprep.mubr.f32.mxu0 %v10082_v45  ;;  %vm2534_vm3 = vcmp.eq.s32.totalorder %v10094_v19, 1 }
 0x25d   :  { %v2226_v17 = vmax.f32 %v2144_v27, %v2185_v26  ;;  %v2584_v28 = vld [vmem:[#allocation4 + $0x18] sm:$0xff]  ;;  %v10084_v10 = vld [vmem:[#allocation4] sm:$0xff]  ;;  %13752 = vst [vmem:[#allocation8_spill] sm:$0xff] %v10091_v16  ;;  %2941 = vmatprep.mubr.f32.mxu1 %v2602_v31  ;;  %v2106_v13 = vld [vmem:[#allocation2 + $0xb9] sm:$0xff]  ;;  %v2441_v8 = vmax.f32 %v10091_v16, 0.0  ;;  %v2364_v54 = vmax.f32 %v2298_v29, %v2334_v3 }
 0x25e   :  { %3329 = vmatprep.subr.mxu0 %v10084_v10  ;;  %v2064_v25 = vld [vmem:[#allocation2 + $0xb0] sm:$0xff]  ;;  %2030 = vst [vmem:[#allocation2 + $0xd3] sm:$0xff] %v1994_v39  ;;  %2942 = vmatmul.mubr.f32.gmra.mxu1 %v2584_v28  ;;  %2268 = vst [vmem:[#allocation3 + $0xa8] sm:$0xff] %v2227_v56  ;;  %v2147_v41 = vmax.f32 %v2065_v0, %v2106_v13  ;;  %v2188_v26 = vld [vmem:[#allocation2 + $0xba] sm:$0xff] }
 0x25f   :  { %v2105_v5 = vld [vmem:[#allocation2 + $0xb1] sm:$0xff]  ;;  %2267 = vst [vmem:[#allocation3 + $0xa0] sm:$0xff] %v2226_v17  ;;  %3087 = vmatmul.mubr.f32.gmra.mxu0 %v2618_v60  ;;  %v2388_v7 = vld [vmem:[#allocation3 + $0x74] ss:$2 sm:$0xff]  ;;  %v2549_v40 = vsel %vm2531_vm4, %v2441_v8, 0.0 }
 0x260   :  { %v13753_v30 = vld [vmem:[#allocation10_spill] sm:$0xff]  ;;  %v2146_v15 = vmax.f32 %v2064_v25, %v2105_v5  ;;  %3330 = vmatpush1.msra.mxu0 %v2821_v38  ;;  %v10114_v29 = vmax.f32 %v2364_v54, %v2388_v7  ;;  %v10116_v38 = vpop.permute.xlu1 %2510  ;;  %v2229_v3 = vmax.f32 %v2147_v41, %v2188_v26  ;;  %v2066_v37 = vld [vmem:[#allocation2 + $0xc0] sm:$0xff]  ;;  %v2067_v17 = vld [vmem:[#allocation2 + $0xc8] sm:$0xff]  ;;  %2567 = vst [vmem:[#allocation4 + $0x33] sm:$0xff] %v2549_v40 }
 0x261   :  { %v1741_v51 = vadd.f32 %v7291_v11, %v13753_v30  ;;  %v2187_v27 = vld [vmem:[#allocation2 + $0xb2] sm:$0xff]  ;;  %3331 = vmatprep.subr.mxu0 %v10084_v10  ;;  %13756 = vst [vmem:[#allocation10_spill] sm:$0xff] %v10116_v38  ;;  %v2107_v31 = vld [vmem:[#allocation2 + $0xc1] sm:$0xff]  ;;  %v1996_v11 = vsel %vm1960_vm6, %v1736_v63, -1e+30  ;;  %v2108_v25 = vld [vmem:[#allocation2 + $0xc9] sm:$0xff]  ;;  %v1745_v30 = vpop.f32.mrf.mxu0 }
 0x262   :  { %v2228_v60 = vmax.f32 %v2146_v15, %v2187_v27  ;;  %v2603_v24 = vld [vmem:[#allocation4 + $0x21] sm:$0xff]  ;;  %13755 = vst [vmem:[#allocation7_spill] sm:$0xff] %v10114_v29  ;;  %v13757_v28 = vld [vmem:[#allocation12_spill] sm:$0xff]  ;;  %v2148_v0 = vmax.f32 %v2066_v37, %v2107_v31  ;;  %2032 = vst [vmem:[#allocation2 + $0xe3] sm:$0xff] %v1996_v11  ;;  %v2442_v13 = vmax.f32 %v10114_v29, 0.0  ;;  %v10127_v15 = vpop.permute.xlu0 %1923  ;;  %v2149_v46 = vmax.f32 %v2067_v17, %v2108_v25 }
 0x263   :  { %v1997_v6 = vsel %vm1961_vm5, %v1741_v51, -1e+30  ;;  %v10107_v35 = vld [vmem:[#allocation4 + $0x22] sm:$0xff]  ;;  %2946 = vmatprep.mubr.f32.mxu1 %v2603_v24  ;;  %v1751_v48 = vadd.f32 %v7294_v21, %v13757_v28  ;;  %v2189_v5 = vld [vmem:[#allocation2 + $0xc2] sm:$0xff]  ;;  %v2190_v39 = vld [vmem:[#allocation2 + $0xca] sm:$0xff]  ;;  %2270 = vst [vmem:[#allocation3 + $0xb8] sm:$0xff] %v2229_v3  ;;  %3332 = vmatpush1.msra.mxu0 %v2820_v50  ;;  %v7297_v63 = vpop.f32.mrf.mxu0 }
 0x264   :  { %2033 = vst [vmem:[#allocation2 + $0xeb] sm:$0xff] %v1997_v6  ;;  %v2585_v23 = vld [vmem:[#allocation4 + $0x20] sm:$0xff]  ;;  %3091 = vmatprep.mubr.f32.mxu0 %v10107_v35  ;;  %2269 = vst [vmem:[#allocation3 + $0xb0] sm:$0xff] %v2228_v60  ;;  %v2819_v51 = vld [vmem:[%s13645_s5 + $0x360] sm:$0xff]  ;;  %3333 = vmatprep.subr.mxu0 %v10084_v10  ;;  %v2550_v60 = vsel %vm2532_vm7, %v2442_v13, 0.0  ;;  %v2231_v50 = vmax.f32 %v2149_v46, %v2190_v39  ;;  %v1761_v3 = vadd.f32 %v7297_v63, %v9910_v61  ;;  %v10147_v61 = vpop.permute.xlu1 %2516 }
 0x265   :  { %v2300_v56 = vld [vmem:[#allocation3 + $0x60] ss:$2 sm:$0xff]  ;;  %2947 = vmatmul.mubr.f32.gmra.mxu1 %v2585_v23  ;;  %3092 = vmatmul.mubr.f32.gmra.mxu0 %v10062_v58  ;;  %v1999_v59 = vsel %vm1963_vm9, %v1751_v48, -1e+30  ;;  %v13758_v54 = vld [vmem:[#allocation11_spill] sm:$0xff]  ;;  %v2230_v58 = vmax.f32 %v2148_v0, %v2189_v5  ;;  %2568 = vst [vmem:[#allocation4 + $0x3b] sm:$0xff] %v2550_v60  ;;  %v1755_v28 = vpop.f32.mrf.mxu0 }
 0x266   :  { %v1746_v41 = vadd.f32 %v1745_v30, %v13758_v54  ;;  %v2336_v27 = vld [vmem:[#allocation3 + $0x72] ss:$2 sm:$0xff]  ;;  %2035 = vst [vmem:[#allocation2 + $0xfb] sm:$0xff] %v1999_v59  ;;  %v2068_v21 = vld [vmem:[#allocation2 + $0xd0] sm:$0xff]  ;;  %13760 = vst [vmem:[#allocation12_spill] sm:$0xff] %v10147_v61  ;;  %3334 = vmatpush1.msra.mxu0 %v2819_v51  ;;  %vm1966_vm2 = vcmp.eq.s32.totalorder %v10127_v15, 1 }
 0x267   :  { %v2390_v26 = vld [vmem:[#allocation3 + $0x84] ss:$2 sm:$0xff]  ;;  %v2365_v24 = vmax.f32 %v2300_v56, %v2336_v27  ;;  %2271 = vst [vmem:[#allocation3 + $0xc0] sm:$0xff] %v2230_v58  ;;  %2272 = vst [vmem:[#allocation3 + $0xc8] sm:$0xff] %v2231_v50  ;;  %v2001_v25 = vsel %vm1965_vm12, %v1761_v3, -1e+30  ;;  %v7300_v54 = vpop.f32.mrf.mxu0  ;;  %3335 = vmatprep.subr.mxu0 %v10084_v10 }
 0x268   :  { %v2604_v6 = vld [vmem:[#allocation4 + $0x29] sm:$0xff]  ;;  %v2109_v40 = vld [vmem:[#allocation2 + $0xd1] sm:$0xff]  ;;  %v1998_v32 = vsel %vm1962_vm10, %v1746_v41, -1e+30  ;;  %v13761_v0 = vld [vmem:[#allocation13_spill] sm:$0xff]  ;;  %2037 = vst [vmem:[#allocation2 + $0x10b] sm:$0xff] %v2001_v25  ;;  %v1771_v4 = vadd.f32 %v7300_v54, %v9934_v34 }
 0x269   :  { %v10131_v47 = vld [vmem:[#allocation4 + $0x2a] sm:$0xff]  ;;  %2951 = vmatprep.mubr.f32.mxu1 %v2604_v6  ;;  %v2150_v17 = vmax.f32 %v2068_v21, %v2109_v40  ;;  %v2191_v31 = vld [vmem:[#allocation2 + $0xd2] sm:$0xff]  ;;  %2034 = vst [vmem:[#allocation2 + $0xf3] sm:$0xff] %v1998_v32  ;;  %v10145_v56 = vmax.f32 %v2365_v24, %v2390_v26  ;;  %v1756_v5 = vadd.f32 %v1755_v28, %v13761_v0  ;;  %v10151_v59 = vld [vmem:[#allocation4 + $0x32] sm:$0xff]  ;;  %v1927_v26 = vpop.permute.xlu0 %1926  ;;  %v1765_v50 = vpop.f32.mrf.mxu0  ;;  %vm1968_vm6 = vcmp.eq.s32.totalorder %v10050_v9, 1 }
 0x26a   :  { %v2586_v7 = vld [vmem:[#allocation4 + $0x28] sm:$0xff]  ;;  %3096 = vmatprep.mubr.f32.mxu0 %v10131_v47  ;;  %v2605_v46 = vld [vmem:[#allocation4 + $0x31] sm:$0xff]  ;;  %vm1967_vm0 = vcmp.eq.s32.totalorder %v1927_v26, 1  ;;  %v2817_v21 = vld [vmem:[%s13645_s5 + $0x350] sm:$0xff]  ;;  %vm2535_vm9 = vcmp.eq.s32.totalorder %v10029_v36, 1  ;;  %vm2537_vm12 = vcmp.eq.s32.totalorder %v10076_v20, 1 }
 0x26b   :  { %v2069_v23 = vld [vmem:[#allocation2 + $0xd8] sm:$0xff]  ;;  %2952 = vmatmul.mubr.f32.gmra.mxu1 %v2586_v7  ;;  %3097 = vmatmul.mubr.f32.gmra.mxu0 %v10082_v45  ;;  %13759 = vst [vmem:[#allocation9_spill] sm:$0xff] %v10145_v56  ;;  %v2232_v45 = vmax.f32 %v2150_v17, %v2191_v31  ;;  %v2587_v41 = vld [vmem:[#allocation4 + $0x30] sm:$0xff]  ;;  %v2443_v27 = vmax.f32 %v10145_v56, 0.0  ;;  %v2071_v6 = vld [vmem:[#allocation2 + $0xe8] sm:$0xff]  ;;  %v1766_v17 = vadd.f32 %v1765_v50, %v9924_v1  ;;  %v7303_v25 = vpop.f32.mrf.mxu0  ;;  %v1933_v1 = vpop.permute.xlu1 %1932 }
 0x26c   :  { %v2110_v37 = vld [vmem:[#allocation2 + $0xd9] sm:$0xff]  ;;  %v2338_v30 = vld [vmem:[#allocation3 + $0x82] ss:$2 sm:$0xff]  ;;  %v2111_v63 = vld [vmem:[#allocation2 + $0xe1] sm:$0xff]  ;;  %v2000_v7 = vsel %vm1964_vm13, %v1756_v5, -1e+30  ;;  %2956 = vmatprep.mubr.f32.mxu1 %v2605_v46  ;;  %3101 = vmatprep.mubr.f32.mxu0 %v10151_v59  ;;  %v1781_v15 = vadd.f32 %v7303_v25, %v9961_v53 }
 0x26d   :  { %v2192_v11 = vld [vmem:[#allocation2 + $0xda] sm:$0xff]  ;;  %v2151_v42 = vmax.f32 %v2069_v23, %v2110_v37  ;;  %2273 = vst [vmem:[#allocation3 + $0xd0] sm:$0xff] %v2232_v45  ;;  %v2112_v60 = vld [vmem:[#allocation2 + $0xe9] sm:$0xff]  ;;  %2036 = vst [vmem:[#allocation2 + $0x103] sm:$0xff] %v2000_v7  ;;  %v2551_v23 = vsel %vm2533_vm15, %v2443_v27, 0.0  ;;  %vm1969_vm5 = vcmp.eq.s32.totalorder %v1933_v1, 1  ;;  %v10187_v50 = vpop.permute.xlu0 %2501 }
 0x26e   :  { %v2818_v48 = vld [vmem:[%s13645_s5 + $0x358] sm:$0xff]  ;;  %v2070_v51 = vld [vmem:[#allocation2 + $0xe0] sm:$0xff]  ;;  %v2153_v34 = vmax.f32 %v2071_v6, %v2112_v60  ;;  %v2194_v3 = vld [vmem:[#allocation2 + $0xea] sm:$0xff]  ;;  %v2003_v37 = vsel %vm1967_vm0, %v1771_v4, -1e+30  ;;  %2569 = vst [vmem:[#allocation4 + $0x43] sm:$0xff] %v2551_v23 }
 0x26f   :  { %v2302_v39 = vld [vmem:[#allocation3 + $0x70] ss:$2 sm:$0xff]  ;;  %v2233_v58 = vmax.f32 %v2151_v42, %v2192_v11  ;;  %v2152_v24 = vmax.f32 %v2070_v51, %v2111_v63  ;;  %2957 = vmatmul.mubr.f32.gmra.mxu1 %v2587_v41  ;;  %3102 = vmatmul.mubr.f32.gmra.mxu0 %v10107_v35  ;;  %v2816_v35 = vld [vmem:[%s13645_s5 + $0x348] sm:$0xff]  ;;  %2039 = vst [vmem:[#allocation2 + $0x11b] sm:$0xff] %v2003_v37  ;;  %v2002_v46 = vsel %vm1966_vm2, %v1766_v17, -1e+30  ;;  %v1775_v51 = vpop.f32.mrf.mxu0 }
 0x270   :  { %v2366_v40 = vmax.f32 %v2302_v39, %v2338_v30  ;;  %v2193_v32 = vld [vmem:[#allocation2 + $0xe2] sm:$0xff]  ;;  %3336 = vmatpush1.msra.mxu0 %v2818_v48  ;;  %v10172_v42 = vld [vmem:[#allocation4 + $0x3a] sm:$0xff]  ;;  %v2235_v5 = vmax.f32 %v2153_v34, %v2194_v3  ;;  %v2073_v30 = vld [vmem:[#allocation2 + $0xf8] sm:$0xff]  ;;  %2038 = vst [vmem:[#allocation2 + $0x113] sm:$0xff] %v2002_v46  ;;  %v2005_v4 = vsel %vm1969_vm5, %v1781_v15, -1e+30  ;;  %v1776_v53 = vadd.f32 %v1775_v51, %v9947_v12 }
 0x271   :  { %2274 = vst [vmem:[#allocation3 + $0xd8] sm:$0xff] %v2233_v58  ;;  %v2392_v31 = vld [vmem:[#allocation3 + $0x94] ss:$2 sm:$0xff]  ;;  %v2234_v11 = vmax.f32 %v2152_v24, %v2193_v32  ;;  %3337 = vmatprep.subr.mxu0 %v10084_v10  ;;  %v2072_v39 = vld [vmem:[#allocation2 + $0xf0] sm:$0xff]  ;;  %3106 = vmatprep.mubr.f32.mxu0 %v10172_v42  ;;  %2041 = vst [vmem:[#allocation2 + $0x12b] sm:$0xff] %v2005_v4  ;;  %v10211_v4 = vpop.permute.xlu0 %2507  ;;  %vm2536_vm10 = vcmp.eq.s32.totalorder %v10187_v50, 1 }
 0x272   :  { %v2606_v28 = vld [vmem:[#allocation4 + $0x39] sm:$0xff]  ;;  %v10174_v48 = vmax.f32 %v2366_v40, %v2392_v31  ;;  %v2113_v45 = vld [vmem:[#allocation2 + $0xf1] sm:$0xff]  ;;  %v2815_v54 = vld [vmem:[%s13645_s5 + $0x340] sm:$0xff]  ;;  %3338 = vmatpush1.msra.mxu0 %v2817_v21  ;;  %2276 = vst [vmem:[#allocation3 + $0xe8] sm:$0xff] %v2235_v5  ;;  %v2004_v17 = vsel %vm1968_vm6, %v1776_v53, -1e+30 }
 0x273   :  { %v2588_v0 = vld [vmem:[#allocation4 + $0x38] sm:$0xff]  ;;  %2961 = vmatprep.mubr.f32.mxu1 %v2606_v28  ;;  %2275 = vst [vmem:[#allocation3 + $0xe0] sm:$0xff] %v2234_v11  ;;  %v2114_v41 = vld [vmem:[#allocation2 + $0xf9] sm:$0xff]  ;;  %v2154_v26 = vmax.f32 %v2072_v39, %v2113_v45  ;;  %3107 = vmatmul.mubr.f32.gmra.mxu0 %v10131_v47  ;;  %2040 = vst [vmem:[#allocation2 + $0x123] sm:$0xff] %v2004_v17  ;;  %vm2538_vm13 = vcmp.eq.s32.totalorder %v10211_v4, 1  ;;  %vm2539_vm0 = vcmp.eq.s32.totalorder %v10116_v38, 1 }
 0x274   :  { %13762 = vst [vmem:[#allocation11_spill] sm:$0xff] %v10174_v48  ;;  %v2195_v58 = vld [vmem:[#allocation2 + $0xf2] sm:$0xff]  ;;  %2962 = vmatmul.mubr.f32.gmra.mxu1 %v2588_v0  ;;  %v2444_v6 = vmax.f32 %v10174_v48, 0.0  ;;  %v2155_v7 = vmax.f32 %v2073_v30, %v2114_v41  ;;  %3339 = vmatprep.subr.mxu0 %v10084_v10  ;;  %v2340_v60 = vld [vmem:[#allocation3 + $0x92] ss:$2 sm:$0xff]  ;;  %v2198_v45 = vld [vmem:[#allocation2 + $0x10a] sm:$0xff] }
 0x275   :  { %v2304_v63 = vld [vmem:[#allocation3 + $0x80] ss:$2 sm:$0xff]  ;;  %v2196_v21 = vld [vmem:[#allocation2 + $0xfa] sm:$0xff]  ;;  %v2236_v23 = vmax.f32 %v2154_v26, %v2195_v58  ;;  %3340 = vmatpush1.msra.mxu0 %v2816_v35  ;;  %13765 = vst [vmem:[#allocation18_spill] sm:$0xff] %v10211_v4  ;;  %vm2541_vm5 = vcmp.eq.s32.totalorder %v10147_v61, 1 }
 0x276   :  { %v2394_v24 = vld [vmem:[#allocation3 + $0xa4] ss:$2 sm:$0xff]  ;;  %v2552_v40 = vsel %vm2534_vm3, %v2444_v6, 0.0  ;;  %v2367_v47 = vmax.f32 %v2304_v63, %v2340_v60  ;;  %v2237_v32 = vmax.f32 %v2155_v7, %v2196_v21  ;;  %v2074_v3 = vld [vmem:[#allocation2 + $0x100] sm:$0xff]  ;;  %3341 = vmatprep.subr.mxu0 %v10084_v10 }
 0x277   :  { %v2342_v34 = vld [vmem:[#allocation3 + $0xa2] ss:$2 sm:$0xff]  ;;  %v2115_v37 = vld [vmem:[#allocation2 + $0x101] sm:$0xff]  ;;  %2570 = vst [vmem:[#allocation4 + $0x4b] sm:$0xff] %v2552_v40  ;;  %2277 = vst [vmem:[#allocation3 + $0xf0] sm:$0xff] %v2236_v23  ;;  %3342 = vmatpush1.msra.mxu0 %v2815_v54 }
 0x278   :  { %v2075_v12 = vld [vmem:[#allocation2 + $0x108] sm:$0xff]  ;;  %v2814_v9 = vld [vmem:[%s13645_s5 + $0x338] sm:$0xff]  ;;  %v2156_v31 = vmax.f32 %v2074_v3, %v2115_v37  ;;  %v10197_v28 = vmax.f32 %v2367_v47, %v2394_v24  ;;  %2278 = vst [vmem:[#allocation3 + $0xf8] sm:$0xff] %v2237_v32  ;;  %v2589_v39 = vld [vmem:[#allocation4 + $0x40] sm:$0xff]  ;;  %3343 = vmatprep.subr.mxu0 %v10084_v10 }
 0x279   :  { %v2116_v35 = vld [vmem:[#allocation2 + $0x109] sm:$0xff]  ;;  %v2306_v25 = vld [vmem:[#allocation3 + $0x90] ss:$2 sm:$0xff]  ;;  %3344 = vmatpush1.msra.mxu0 %v2814_v9 }
 0x27a   :  { %v2197_v11 = vld [vmem:[#allocation2 + $0x102] sm:$0xff]  ;;  %13763 = vst [vmem:[#allocation13_spill] sm:$0xff] %v10197_v28  ;;  %v2157_v0 = vmax.f32 %v2075_v12, %v2116_v35  ;;  %v2607_v1 = vld [vmem:[#allocation4 + $0x41] sm:$0xff]  ;;  %v2368_v30 = vmax.f32 %v2306_v25, %v2342_v34  ;;  %v2445_v54 = vmax.f32 %v10197_v28, 0.0  ;;  %v2118_v53 = vld [vmem:[#allocation2 + $0x119] sm:$0xff]  ;;  %3345 = vmatprep.subr.mxu0 %v10084_v10 }
 0x27b   :  { %v10199_v5 = vld [vmem:[#allocation4 + $0x42] sm:$0xff]  ;;  %v2238_v46 = vmax.f32 %v2156_v31, %v2197_v11  ;;  %2966 = vmatprep.mubr.f32.mxu1 %v2607_v1  ;;  %v2396_v41 = vld [vmem:[#allocation3 + $0xb4] ss:$2 sm:$0xff] }
 0x27c   :  { %3111 = vmatprep.mubr.f32.mxu0 %v10199_v5  ;;  %v2813_v15 = vld [vmem:[%s13645_s5 + $0x330] sm:$0xff]  ;;  %v2239_v26 = vmax.f32 %v2157_v0, %v2198_v45  ;;  %v2077_v51 = vld [vmem:[#allocation2 + $0x118] sm:$0xff]  ;;  %2967 = vmatmul.mubr.f32.gmra.mxu1 %v2589_v39  ;;  %v10209_v7 = vmax.f32 %v2368_v30, %v2396_v41  ;;  %v2553_v23 = vsel %vm2535_vm9, %v2445_v54, 0.0  ;;  %v2812_v32 = vld [vmem:[%s13645_s5 + $0x328] sm:$0xff] }
 0x27d   :  { %v2076_v58 = vld [vmem:[#allocation2 + $0x110] sm:$0xff]  ;;  %3112 = vmatmul.mubr.f32.gmra.mxu0 %v10151_v59  ;;  %2279 = vst [vmem:[#allocation3 + $0x100] sm:$0xff] %v2238_v46  ;;  %v2200_v21 = vld [vmem:[#allocation2 + $0x11a] sm:$0xff]  ;;  %v2159_v40 = vmax.f32 %v2077_v51, %v2118_v53  ;;  %2571 = vst [vmem:[#allocation4 + $0x53] sm:$0xff] %v2553_v23  ;;  %v10235_v53 = vpop.permute.xlu0 %2513 }
 0x27e   :  { %v2117_v63 = vld [vmem:[#allocation2 + $0x111] sm:$0xff]  ;;  %13764 = vst [vmem:[#allocation17_spill] sm:$0xff] %v10209_v7  ;;  %2280 = vst [vmem:[#allocation3 + $0x108] sm:$0xff] %v2239_v26  ;;  %v2446_v3 = vmax.f32 %v10209_v7, 0.0  ;;  %v2608_v17 = vld [vmem:[#allocation4 + $0x49] sm:$0xff]  ;;  %3346 = vmatpush1.msra.mxu0 %v2813_v15  ;;  %vm2540_vm2 = vcmp.eq.s32.totalorder %v10235_v53, 1 }
 0x27f   :  { %v2158_v60 = vmax.f32 %v2076_v58, %v2117_v63  ;;  %v2199_v24 = vld [vmem:[#allocation2 + $0x112] sm:$0xff]  ;;  %v10223_v9 = vld [vmem:[#allocation4 + $0x4a] sm:$0xff]  ;;  %v2241_v31 = vmax.f32 %v2159_v40, %v2200_v21  ;;  %v2079_v25 = vld [vmem:[#allocation2 + $0x128] sm:$0xff]  ;;  %2971 = vmatprep.mubr.f32.mxu1 %v2608_v17  ;;  %3347 = vmatprep.subr.mxu0 %v10084_v10  ;;  %13766 = vst [vmem:[#allocation19_spill] sm:$0xff] %v10235_v53 }
 0x280   :  { %v2080_v47 = vld [vmem:[#allocation2 + $0x130] sm:$0xff]  ;;  %v2590_v35 = vld [vmem:[#allocation4 + $0x48] sm:$0xff]  ;;  %v2078_v11 = vld [vmem:[#allocation2 + $0x120] sm:$0xff]  ;;  %3116 = vmatprep.mubr.f32.mxu0 %v10223_v9  ;;  %v2554_v39 = vsel %vm2536_vm10, %v2446_v3, 0.0  ;;  %3348 = vmatpush1.msra.mxu0 %v2812_v32 }
 0x281   :  { %v2121_v34 = vld [vmem:[#allocation2 + $0x131] sm:$0xff]  ;;  %v2240_v12 = vmax.f32 %v2158_v60, %v2199_v24  ;;  %v2119_v0 = vld [vmem:[#allocation2 + $0x121] sm:$0xff]  ;;  %v2120_v45 = vld [vmem:[#allocation2 + $0x129] sm:$0xff]  ;;  %2972 = vmatmul.mubr.f32.gmra.mxu1 %v2590_v35  ;;  %3117 = vmatmul.mubr.f32.gmra.mxu0 %v10172_v42  ;;  %2572 = vst [vmem:[#allocation4 + $0x5b] sm:$0xff] %v2554_v39 }
 0x282   :  { %v2203_v59 = vld [vmem:[#allocation2 + $0x132] sm:$0xff]  ;;  %v2162_v37 = vmax.f32 %v2080_v47, %v2121_v34  ;;  %v2811_v1 = vld [vmem:[%s13645_s5 + $0x320] sm:$0xff]  ;;  %v2160_v46 = vmax.f32 %v2078_v11, %v2119_v0  ;;  %2282 = vst [vmem:[#allocation3 + $0x118] sm:$0xff] %v2241_v31  ;;  %v2161_v26 = vmax.f32 %v2079_v25, %v2120_v45  ;;  %v2202_v58 = vld [vmem:[#allocation2 + $0x12a] sm:$0xff]  ;;  %3349 = vmatprep.subr.mxu0 %v10084_v10 }
 0x283   :  { %2281 = vst [vmem:[#allocation3 + $0x110] sm:$0xff] %v2240_v12  ;;  %v2201_v15 = vld [vmem:[#allocation2 + $0x122] sm:$0xff]  ;;  %v2398_v63 = vld [vmem:[#allocation3 + $0xc4] ss:$2 sm:$0xff]  ;;  %3350 = vmatpush1.msra.mxu0 %v2811_v1 }
 0x284   :  { %v2244_v30 = vmax.f32 %v2162_v37, %v2203_v59  ;;  %v2308_v41 = vld [vmem:[#allocation3 + $0xa0] ss:$2 sm:$0xff]  ;;  %v2242_v60 = vmax.f32 %v2160_v46, %v2201_v15  ;;  %v2310_v21 = vld [vmem:[#allocation3 + $0xb0] ss:$2 sm:$0xff]  ;;  %v2243_v47 = vmax.f32 %v2161_v26, %v2202_v58  ;;  %3351 = vmatprep.subr.mxu0 %v10084_v10 }
 0x285   :  { %v2344_v51 = vld [vmem:[#allocation3 + $0xb2] ss:$2 sm:$0xff]  ;;  %v2346_v23 = vld [vmem:[#allocation3 + $0xc2] ss:$2 sm:$0xff] }
 0x286   :  { %2285 = vst [vmem:[#allocation3 + $0x130] sm:$0xff] %v2244_v30  ;;  %v2369_v24 = vmax.f32 %v2308_v41, %v2344_v51  ;;  %v2400_v40 = vld [vmem:[#allocation3 + $0xd4] ss:$2 sm:$0xff]  ;;  %v2370_v34 = vmax.f32 %v2310_v21, %v2346_v23  ;;  %v2402_v37 = vld [vmem:[#allocation3 + $0xe4] ss:$2 sm:$0xff]  ;;  %2283 = vst [vmem:[#allocation3 + $0x120] sm:$0xff] %v2242_v60 }
 0x287   :  { %v2810_v42 = vld [vmem:[%s13645_s5 + $0x318] sm:$0xff]  ;;  %v2312_v59 = vld [vmem:[#allocation3 + $0xc0] ss:$2 sm:$0xff]  ;;  %v2591_v32 = vld [vmem:[#allocation4 + $0x50] sm:$0xff]  ;;  %2284 = vst [vmem:[#allocation3 + $0x128] sm:$0xff] %v2243_v47 }
 0x288   :  { %v2348_v12 = vld [vmem:[#allocation3 + $0xd2] ss:$2 sm:$0xff]  ;;  %v10243_v31 = vmax.f32 %v2369_v24, %v2398_v63  ;;  %v10246_v25 = vmax.f32 %v2370_v34, %v2400_v40  ;;  %v2350_v39 = vld [vmem:[#allocation3 + $0xe2] ss:$2 sm:$0xff]  ;;  %v10261_v24 = vpop.permute.xlu0 %2519  ;;  %3352 = vmatpush1.msra.mxu0 %v2810_v42 }
 0x289   :  { %v2609_v17 = vld [vmem:[#allocation4 + $0x51] sm:$0xff]  ;;  %v2371_v11 = vmax.f32 %v2312_v59, %v2348_v12  ;;  %v2809_v1 = vld [vmem:[%s13645_s5 + $0x310] sm:$0xff]  ;;  %13770 = vst [vmem:[#allocation23_spill] sm:$0xff] %v10261_v24  ;;  %3353 = vmatprep.subr.mxu0 %v10084_v10  ;;  %vm2542_vm6 = vcmp.eq.s32.totalorder %v10261_v24, 1 }
 0x28a   :  { %v10241_v35 = vld [vmem:[#allocation4 + $0x52] sm:$0xff]  ;;  %13767 = vst [vmem:[#allocation20_spill] sm:$0xff] %v10243_v31  ;;  %2976 = vmatprep.mubr.f32.mxu1 %v2609_v17  ;;  %13768 = vst [vmem:[#allocation21_spill] sm:$0xff] %v10246_v25  ;;  %v2447_v45 = vmax.f32 %v10243_v31, 0.0  ;;  %v10258_v51 = vld [vmem:[#allocation4 + $0x5a] sm:$0xff]  ;;  %v2448_v63 = vmax.f32 %v10246_v25, 0.0  ;;  %3354 = vmatpush1.msra.mxu0 %v2809_v1 }
 0x28b   :  { %3121 = vmatprep.mubr.f32.mxu0 %v10241_v35  ;;  %v2314_v0 = vld [vmem:[#allocation3 + $0xd0] ss:$2 sm:$0xff]  ;;  %2977 = vmatmul.mubr.f32.gmra.mxu1 %v2591_v32  ;;  %v10253_v46 = vmax.f32 %v2371_v11, %v2402_v37  ;;  %v2316_v41 = vld [vmem:[#allocation3 + $0xe0] ss:$2 sm:$0xff] }
 0x28c   :  { %v2404_v30 = vld [vmem:[#allocation3 + $0xf4] ss:$2 sm:$0xff]  ;;  %3122 = vmatmul.mubr.f32.gmra.mxu0 %v10199_v5  ;;  %v2372_v15 = vmax.f32 %v2314_v0, %v2350_v39  ;;  %v2555_v21 = vsel %vm2537_vm12, %v2447_v45, 0.0  ;;  %v2406_v47 = vld [vmem:[#allocation3 + $0x104] ss:$2 sm:$0xff]  ;;  %v2556_v59 = vsel %vm2538_vm13, %v2448_v63, 0.0  ;;  %3355 = vmatprep.subr.mxu0 %v10084_v10 }
 0x28d   :  { %13769 = vst [vmem:[#allocation22_spill] sm:$0xff] %v10253_v46  ;;  %v2352_v26 = vld [vmem:[#allocation3 + $0xf2] ss:$2 sm:$0xff]  ;;  %v2610_v58 = vld [vmem:[#allocation4 + $0x59] sm:$0xff]  ;;  %v2449_v23 = vmax.f32 %v10253_v46, 0.0  ;;  %3126 = vmatprep.mubr.f32.mxu0 %v10258_v51  ;;  %2573 = vst [vmem:[#allocation4 + $0x63] sm:$0xff] %v2555_v21 }
 0x28e   :  { %v2592_v5 = vld [vmem:[#allocation4 + $0x58] sm:$0xff]  ;;  %v2373_v60 = vmax.f32 %v2316_v41, %v2352_v26  ;;  %2981 = vmatprep.mubr.f32.mxu1 %v2610_v58  ;;  %v10268_v40 = vmax.f32 %v2372_v15, %v2404_v30  ;;  %v2318_v37 = vld [vmem:[#allocation3 + $0xf0] ss:$2 sm:$0xff]  ;;  %2574 = vst [vmem:[#allocation4 + $0x6b] sm:$0xff] %v2556_v59 }
 0x28f   :  { %v2354_v34 = vld [vmem:[#allocation3 + $0x102] ss:$2 sm:$0xff]  ;;  %2982 = vmatmul.mubr.f32.gmra.mxu1 %v2592_v5  ;;  %v2557_v17 = vsel %vm2539_vm0, %v2449_v23, 0.0  ;;  %v2807_v39 = vld [vmem:[%s13645_s5 + $0x300] sm:$0xff] }
 0x290   :  { %13771 = vst [vmem:[#allocation24_spill] sm:$0xff] %v10268_v40  ;;  %v2808_v42 = vld [vmem:[%s13645_s5 + $0x308] sm:$0xff]  ;;  %v10280_v12 = vmax.f32 %v2373_v60, %v2406_v47  ;;  %v2450_v32 = vmax.f32 %v10268_v40, 0.0  ;;  %v2374_v11 = vmax.f32 %v2318_v37, %v2354_v34  ;;  %3127 = vmatmul.mubr.f32.gmra.mxu0 %v10223_v9  ;;  %2575 = vst [vmem:[#allocation4 + $0x73] sm:$0xff] %v2557_v17  ;;  %v2322_v58 = vld [vmem:[#allocation3 + $0x110] ss:$2 sm:$0xff] }
 0x291   :  { %v2320_v0 = vld [vmem:[#allocation3 + $0x100] ss:$2 sm:$0xff]  ;;  %3356 = vmatpush1.msra.mxu0 %v2808_v42  ;;  %v2838_v60 = vld [vmem:[%s13645_s5 + $0x3f8] sm:$0xff]  ;;  %v10309_v42 = vpop.permute.xlu0 %2522  ;;  %v3901_v46 = vld [vmem:[%s13646_s7 + $0x280] sm:$0xff] }
 0x292   :  { %13772 = vst [vmem:[#allocation25_spill] sm:$0xff] %v10280_v12  ;;  %v2451_v30 = vmax.f32 %v10280_v12, 0.0  ;;  %v2408_v1 = vld [vmem:[#allocation3 + $0x114] ss:$2 sm:$0xff]  ;;  %v2558_v41 = vsel %vm2540_vm2, %v2450_v32, 0.0  ;;  %3357 = vmatprep.subr.mxu0 %v10084_v10  ;;  %13774 = vst [vmem:[#allocation27_spill] sm:$0xff] %v10309_v42 }
 0x293   :  { %v2356_v15 = vld [vmem:[#allocation3 + $0x112] ss:$2 sm:$0xff]  ;;  %v10299_v9 = vmax.f32 %v2374_v11, %v2408_v1  ;;  %v2358_v5 = vld [vmem:[#allocation3 + $0x122] ss:$2 sm:$0xff]  ;;  %2576 = vst [vmem:[#allocation4 + $0x7b] sm:$0xff] %v2558_v41  ;;  %3358 = vmatpush1.msra.mxu0 %v2807_v39  ;;  %v10315_v11 = vpop.permute.xlu1 %2525  ;;  %vm13692_vm14 = vcmp.eq.s32.totalorder %v10309_v42, 1 }
 0x294   :  { %v2375_v26 = vmax.f32 %v2320_v0, %v2356_v15  ;;  %v2559_v21 = vsel %vm2541_vm5, %v2451_v30, 0.0  ;;  %v2410_v47 = vld [vmem:[#allocation3 + $0x124] ss:$2 sm:$0xff]  ;;  %v2376_v34 = vmax.f32 %v2322_v58, %v2358_v5  ;;  %v2412_v17 = vld [vmem:[#allocation3 + $0x134] ss:$2 sm:$0xff]  ;;  %13776 = vst [vmem:[#allocation29_spill] sm:$0xff] %v10315_v11  ;;  %3359 = vmatprep.subr.mxu0 %v10084_v10 }
 0x295   :  { %13773 = vst [vmem:[#allocation26_spill] sm:$0xff] %v10299_v9  ;;  %2577 = vst [vmem:[#allocation4 + $0x83] sm:$0xff] %v2559_v21  ;;  %v2452_v59 = vmax.f32 %v10299_v9, 0.0  ;;  %v2611_v1 = vld [vmem:[#allocation4 + $0x61] sm:$0xff]  ;;  %3360 = vmatpush2.msra.mxu0 %v2838_v60  ;;  %v2612_v58 = vld [vmem:[#allocation4 + $0x69] sm:$0xff]  ;;  %vm2544_vm8 = vcmp.eq.s32.totalorder %v10315_v11, 1 }
 0x296   :  { %v10312_v37 = vmax.f32 %v2375_v26, %v2410_v47  ;;  %v10318_v0 = vmax.f32 %v2376_v34, %v2412_v17  ;;  %v2629_v15 = vld [vmem:[#allocation4 + $0x62] sm:$0xff]  ;;  %2986 = vmatprep.mubr.f32.mxu1 %v2611_v1  ;;  %v2630_v5 = vld [vmem:[#allocation4 + $0x6a] sm:$0xff]  ;;  %3361 = vmatprep.subr.mxu0 %v10084_v10  ;;  %v3902_v9 = vld [vmem:[%s13646_s7 + $0x288] sm:$0xff] }
 0x297   :  { %v2593_v41 = vld [vmem:[#allocation4 + $0x60] sm:$0xff]  ;;  %v2560_v39 = vsel %vm2542_vm6, %v2452_v59, 0.0  ;;  %3131 = vmatprep.mubr.f32.mxu0 %v2629_v15  ;;  %v2594_v34 = vld [vmem:[#allocation4 + $0x68] sm:$0xff]  ;;  %v2613_v1 = vld [vmem:[#allocation4 + $0x71] sm:$0xff] }
 0x298   :  { %13775 = vst [vmem:[#allocation28_spill] sm:$0xff] %v10312_v37  ;;  %13777 = vst [vmem:[#allocation30_spill] sm:$0xff] %v10318_v0  ;;  %v2453_v26 = vmax.f32 %v10312_v37, 0.0  ;;  %v2837_v21 = vld [vmem:[%s13645_s5 + $0x3f0] sm:$0xff]  ;;  %v13656_v60 = vmax.f32 %v10318_v0, 0.0  ;;  %2987 = vmatmul.mubr.f32.gmra.mxu1 %v2593_v41  ;;  %3132 = vmatmul.mubr.f32.gmra.mxu0 %v10241_v35  ;;  %v2836_v35 = vld [vmem:[%s13645_s5 + $0x3e8] sm:$0xff] }
 0x299   :  { %2578 = vst [vmem:[#allocation4 + $0x8b] sm:$0xff] %v2560_v39  ;;  %2991 = vmatprep.mubr.f32.mxu1 %v2612_v58  ;;  %3136 = vmatprep.mubr.f32.mxu0 %v2630_v5  ;;  %v2631_v41 = vld [vmem:[#allocation4 + $0x72] sm:$0xff]  ;;  %v10349_v58 = vpop.f32.mrf.mxu1  ;;  %v3903_v12 = vld [vmem:[%s13646_s7 + $0x290] sm:$0xff] }
 0x29a   :  { %v2561_v47 = vsel %vm13692_vm14, %v2453_v26, 0.0  ;;  %v2562_v17 = vsel %vm2544_vm8, %v13656_v60, 0.0  ;;  %3362 = vmatpush2.msra.mxu0 %v2837_v21  ;;  %v2835_v39 = vld [vmem:[%s13645_s5 + $0x3e0] sm:$0xff] }
 0x29b   :  { %2579 = vst [vmem:[#allocation4 + $0x93] sm:$0xff] %v2561_v47  ;;  %2580 = vst [vmem:[#allocation4 + $0x9b] sm:$0xff] %v2562_v17  ;;  %3363 = vmatprep.subr.mxu0 %v10084_v10  ;;  %v2595_v21 = vld [vmem:[#allocation4 + $0x70] sm:$0xff]  ;;  %v2614_v47 = vld [vmem:[#allocation4 + $0x79] sm:$0xff]  ;;  %v2930_v17 = vpop.f32.mrf.mxu1 }
 0x29c   :  { %2992 = vmatmul.mubr.f32.gmra.mxu1 %v2594_v34  ;;  %3137 = vmatmul.mubr.f32.gmra.mxu0 %v10258_v51  ;;  %v2834_v34 = vld [vmem:[%s13645_s5 + $0x3d8] sm:$0xff]  ;;  %v2632_v51 = vld [vmem:[#allocation4 + $0x7a] sm:$0xff] }
 0x29d   :  { %3364 = vmatpush2.msra.mxu0 %v2836_v35  ;;  %2996 = vmatprep.mubr.f32.mxu1 %v2613_v1  ;;  %v10355_v60 = vpop.f32.mrf.mxu1  ;;  %v2833_v35 = vld [vmem:[%s13645_s5 + $0x3d0] sm:$0xff]  ;;  %v2596_v1 = vld [vmem:[#allocation4 + $0x78] sm:$0xff] }
 0x29e   :  { %3365 = vmatprep.subr.mxu0 %v10084_v10  ;;  %3141 = vmatprep.mubr.f32.mxu0 %v2631_v41  ;;  %v2633_v17 = vld [vmem:[#allocation4 + $0x82] sm:$0xff] }
 0x29f   :  { %3366 = vmatpush2.msra.mxu0 %v2835_v39  ;;  %v2935_v39 = vpop.f32.mrf.mxu1 }
 0x2a0   :  { %2997 = vmatmul.mubr.f32.gmra.mxu1 %v2595_v21  ;;  %3142 = vmatmul.mubr.f32.gmra.mxu0 %v2629_v15  ;;  %v2832_v21 = vld [vmem:[%s13645_s5 + $0x3c8] sm:$0xff]  ;;  %v2615_v15 = vld [vmem:[#allocation4 + $0x81] sm:$0xff] }
 0x2a1   :  { %3367 = vmatprep.subr.mxu0 %v10084_v10  ;;  %3001 = vmatprep.mubr.f32.mxu1 %v2614_v47  ;;  %v2831_v47 = vld [vmem:[%s13645_s5 + $0x3c0] sm:$0xff]  ;;  %v2830_v39 = vld [vmem:[%s13645_s5 + $0x3b8] sm:$0xff] }
 0x2a2   :  { %3368 = vmatpush2.msra.mxu0 %v2834_v34  ;;  %3146 = vmatprep.mubr.f32.mxu0 %v2632_v51  ;;  %v2597_v34 = vld [vmem:[#allocation4 + $0x80] sm:$0xff] }
 0x2a3   :  { %3369 = vmatprep.subr.mxu0 %v10084_v10 }
 0x2a4   :  { %3370 = vmatpush2.msra.mxu0 %v2833_v35  ;;  %3002 = vmatmul.mubr.f32.gmra.mxu1 %v2596_v1  ;;  %v2616_v35 = vld [vmem:[#allocation4 + $0x89] sm:$0xff]  ;;  %v2829_v1 = vld [vmem:[%s13645_s5 + $0x3b0] sm:$0xff] }
 0x2a5   :  { %3147 = vmatmul.mubr.f32.gmra.mxu0 %v2630_v5  ;;  %3371 = vmatprep.subr.mxu0 %v10084_v10  ;;  %v2634_v5 = vld [vmem:[#allocation4 + $0x8a] sm:$0xff] }
 0x2a6   :  { %3372 = vmatpush2.msra.mxu0 %v2832_v21  ;;  %3006 = vmatprep.mubr.f32.mxu1 %v2615_v15  ;;  %v2598_v21 = vld [vmem:[#allocation4 + $0x88] sm:$0xff]  ;;  %v2635_v15 = vld [vmem:[#allocation4 + $0x92] sm:$0xff] }
 0x2a7   :  { %3373 = vmatprep.subr.mxu0 %v10084_v10  ;;  %3151 = vmatprep.mubr.f32.mxu0 %v2633_v17 }
 0x2a8   :  { %3374 = vmatpush2.msra.mxu0 %v2831_v47  ;;  %3007 = vmatmul.mubr.f32.gmra.mxu1 %v2597_v34  ;;  %v2828_v47 = vld [vmem:[%s13645_s5 + $0x3a8] sm:$0xff]  ;;  %v2827_v34 = vld [vmem:[%s13645_s5 + $0x3a0] sm:$0xff] }
 0x2a9   :  { %3152 = vmatmul.mubr.f32.gmra.mxu0 %v2631_v41  ;;  %3375 = vmatprep.subr.mxu0 %v10084_v10  ;;  %v2655_v41 = vld [vmem:[#allocation4 + $0x14] sm:$0xff] }
 0x2aa   :  { %3376 = vmatpush2.msra.mxu0 %v2830_v39  ;;  %3011 = vmatprep.mubr.f32.mxu1 %v2616_v35  ;;  %v2637_v39 = vld [vmem:[#allocation4 + $0x13] sm:$0xff]  ;;  %v2656_v35 = vld [vmem:[#allocation4 + $0x1c] sm:$0xff] }
 0x2ab   :  { %3377 = vmatprep.subr.mxu0 %v10084_v10  ;;  %3156 = vmatprep.mubr.f32.mxu0 %v2634_v5 }
 0x2ac   :  { %3378 = vmatpush2.msra.mxu0 %v2829_v1  ;;  %3012 = vmatmul.mubr.f32.gmra.mxu1 %v2598_v21  ;;  %v2826_v1 = vld [vmem:[%s13645_s5 + $0x398] sm:$0xff]  ;;  %v2825_v21 = vld [vmem:[%s13645_s5 + $0x390] sm:$0xff] }
 0x2ad   :  { %3157 = vmatmul.mubr.f32.gmra.mxu0 %v2632_v51  ;;  %3379 = vmatprep.subr.mxu0 %v10084_v10  ;;  %v2636_v51 = vld [vmem:[#allocation4 + $0x9a] sm:$0xff] }
 0x2ae   :  { %3161 = vmatprep.mubr.f32.mxu0 %v2635_v15  ;;  %3236 = vmatprep.mubr.f32.mxu1 %v2655_v41  ;;  %v7582_v15 = vld [vmem:[%s13645_s5 + $0x478] sm:$0xff]  ;;  %v2853_v41 = vld [vmem:[%s13645_s5 + $0x470] sm:$0xff] }
 0x2af   :  { %3380 = vmatpush2.msra.mxu0 %v2828_v47  ;;  %v2638_v47 = vld [vmem:[#allocation4 + $0x1b] sm:$0xff] }
 0x2b0   :  { %3381 = vmatprep.subr.mxu0 %v10084_v10  ;;  %3237 = vmatmul.mubr.f32.vlgmr.msra.gmra.mxu1 %v2637_v39  ;;  %v2675_v39 = vld [vmem:[#allocation4 + $0x25] sm:$0xff] }
 0x2b1   :  { %3382 = vmatpush2.msra.mxu0 %v2827_v34  ;;  %3241 = vmatprep.mubr.f32.mxu1 %v2656_v35  ;;  %v2657_v34 = vld [vmem:[#allocation4 + $0x24] sm:$0xff]  ;;  %v2823_v35 = vld [vmem:[%s13645_s5 + $0x380] sm:$0xff] }
 0x2b2   :  { %3162 = vmatmul.mubr.f32.gmra.mxu0 %v2633_v17  ;;  %3383 = vmatprep.subr.mxu0 %v10084_v10  ;;  %v2824_v17 = vld [vmem:[%s13645_s5 + $0x388] sm:$0xff] }
 0x2b3   :  { %3166 = vmatprep.mubr.f32.mxu0 %v2636_v51  ;;  %3384 = vmatpush2.msra.mxu0 %v2826_v1  ;;  %v2639_v1 = vld [vmem:[#allocation4 + $0x23] sm:$0xff]  ;;  %v2658_v51 = vld [vmem:[#allocation4 + $0x2c] sm:$0xff] }
 0x2b4   :  { %7305 = vmatpush3.msra.mxu1 %v7582_v15  ;;  %3385 = vmatprep.subr.mxu0 %v10084_v10  ;;  %v2851_v15 = vld [vmem:[%s13645_s5 + $0x460] sm:$0xff] }
 0x2b5   :  { %3386 = vmatpush2.msra.mxu0 %v2825_v21  ;;  %3242 = vmatmul.mubr.f32.gmra.mxu1 %v2638_v47  ;;  %v2676_v21 = vld [vmem:[#allocation4 + $0x2d] sm:$0xff] }
 0x2b6   :  { %3167 = vmatmul.mubr.f32.gmra.mxu0 %v2634_v5  ;;  %3387 = vmatprep.subr.mxu0 %v10084_v10  ;;  %v2852_v5 = vld [vmem:[%s13645_s5 + $0x468] sm:$0xff] }
 0x2b7   :  { %3246 = vmatprep.mubr.f32.mxu1 %v2657_v34  ;;  %3388 = vmatpush2.msra.mxu0 %v2824_v17  ;;  %v2659_v47 = vld [vmem:[#allocation4 + $0x34] sm:$0xff]  ;;  %v2850_v17 = vld [vmem:[%s13645_s5 + $0x458] sm:$0xff] }
 0x2b8   :  { %3391 = vmatprep.mubr.f32.mxu0 %v2675_v39  ;;  %7306 = vmatprep.subr.mxu1 %v2853_v41  ;;  %v2678_v39 = vld [vmem:[#allocation4 + $0x3d] sm:$0xff] }
 0x2b9   :  { %3389 = vmatprep.subr.mxu0 %v10084_v10  ;;  %7307 = vmatpush3.msra.mxu1 %v2853_v41  ;;  %v10414_v10 = vld [vmem:[#allocation4] sm:$0xff]  ;;  %v2677_v41 = vld [vmem:[#allocation4 + $0x35] sm:$0xff] }
 0x2ba   :  { %3390 = vmatpush2.msra.mxu0 %v2823_v35  ;;  %3247 = vmatmul.mubr.f32.gmra.mxu1 %v2639_v1  ;;  %v2661_v35 = vld [vmem:[#allocation4 + $0x44] sm:$0xff] }
 0x2bb   :  { %3392 = vmatmul.mubr.f32.vlgmr.msra.gmra.mxu0 %v2657_v34  ;;  %3251 = vmatprep.mubr.f32.mxu1 %v2658_v51  ;;  %v2660_v34 = vld [vmem:[#allocation4 + $0x3c] sm:$0xff]  ;;  %v2679_v1 = vld [vmem:[#allocation4 + $0x45] sm:$0xff] }
 0x2bc   :  { %3396 = vmatprep.mubr.f32.mxu0 %v2676_v21  ;;  %7308 = vmatprep.subr.mxu1 %v2852_v5  ;;  %v2663_v21 = vld [vmem:[#allocation4 + $0x54] sm:$0xff] }
 0x2bd   :  { %7309 = vmatpush3.msra.mxu1 %v2852_v5  ;;  %4127 = vmatprep.subr.mxu0 %v10414_v10  ;;  %v2662_v5 = vld [vmem:[#allocation4 + $0x4c] sm:$0xff] }
 0x2be   :  { %7589 = vmatmul.mubr.msk.f32.gmra.mxu1 %vm2530_vm1, %v2440_v43  ;;  %7310 = vmatprep.subr.mxu1 %v2851_v15  ;;  %v2849_v43 = vld [vmem:[%s13645_s5 + $0x450] sm:$0xff] }
 0x2bf   :  { %3397 = vmatmul.mubr.f32.gmra.mxu0 %v2658_v51  ;;  %3256 = vmatprep.mubr.f32.mxu1 %v2659_v47  ;;  %v2680_v51 = vld [vmem:[#allocation4 + $0x4d] sm:$0xff] }
 0x2c0   :  { %3401 = vmatprep.mubr.f32.mxu0 %v2677_v41  ;;  %7311 = vmatpush3.msra.mxu1 %v2851_v15  ;;  %v2681_v15 = vld [vmem:[#allocation4 + $0x55] sm:$0xff]  ;;  %v2665_v41 = vld [vmem:[#allocation4 + $0x64] sm:$0xff] }
 0x2c1   :  { %7312 = vmatprep.subr.mxu1 %v2850_v17 }
 0x2c2   :  { %7590 = vmatmul.mubr.msk.f32.gmra.mxu1 %vm2531_vm4, %v2441_v8  ;;  %v2848_v8 = vld [vmem:[%s13645_s5 + $0x448] sm:$0xff] }
 0x2c3   :  { %3402 = vmatmul.mubr.f32.gmra.mxu0 %v2659_v47  ;;  %3261 = vmatprep.mubr.f32.mxu1 %v2660_v34  ;;  %v2664_v47 = vld [vmem:[#allocation4 + $0x5c] sm:$0xff] }
 0x2c4   :  { %3406 = vmatprep.mubr.f32.mxu0 %v2678_v39  ;;  %7313 = vmatpush3.msra.mxu1 %v2850_v17  ;;  %v2682_v17 = vld [vmem:[#allocation4 + $0x5d] sm:$0xff]  ;;  %v2684_v39 = vld [vmem:[#allocation4 + $0x6d] sm:$0xff] }
 0x2c5   :  { %7314 = vmatprep.subr.mxu1 %v2849_v43 }
 0x2c6   :  { %7591 = vmatmul.mubr.msk.f32.gmra.mxu1 %vm2532_vm7, %v2442_v13  ;;  %v2847_v13 = vld [vmem:[%s13645_s5 + $0x440] sm:$0xff] }
 0x2c7   :  { %3407 = vmatmul.mubr.f32.gmra.mxu0 %v2660_v34  ;;  %3266 = vmatprep.mubr.f32.mxu1 %v2661_v35  ;;  %v2683_v34 = vld [vmem:[#allocation4 + $0x65] sm:$0xff] }
 0x2c8   :  { %3411 = vmatprep.mubr.f32.mxu0 %v2679_v1  ;;  %7315 = vmatpush3.msra.mxu1 %v2849_v43  ;;  %v2666_v43 = vld [vmem:[#allocation4 + $0x6c] sm:$0xff]  ;;  %v2668_v1 = vld [vmem:[#allocation4 + $0x7c] sm:$0xff] }
 0x2c9   :  { %7316 = vmatprep.subr.mxu1 %v2848_v8 }
 0x2ca   :  { %7592 = vmatmul.mubr.msk.f32.gmra.mxu1 %vm2533_vm15, %v2443_v27  ;;  %v2846_v27 = vld [vmem:[%s13645_s5 + $0x438] sm:$0xff] }
 0x2cb   :  { %3412 = vmatmul.mubr.f32.gmra.mxu0 %v2661_v35  ;;  %3271 = vmatprep.mubr.f32.mxu1 %v2662_v5  ;;  %v2667_v35 = vld [vmem:[#allocation4 + $0x74] sm:$0xff] }
 0x2cc   :  { %3416 = vmatprep.mubr.f32.mxu0 %v2680_v51  ;;  %7317 = vmatpush3.msra.mxu1 %v2848_v8  ;;  %v2685_v8 = vld [vmem:[#allocation4 + $0x75] sm:$0xff]  ;;  %v2687_v51 = vld [vmem:[#allocation4 + $0x85] sm:$0xff] }
 0x2cd   :  { %7318 = vmatprep.subr.mxu1 %v2847_v13 }
 0x2ce   :  { %7593 = vmatmul.mubr.msk.f32.gmra.mxu1 %vm2534_vm3, %v2444_v6  ;;  %v2845_v6 = vld [vmem:[%s13645_s5 + $0x430] sm:$0xff] }
 0x2cf   :  { %3417 = vmatmul.mubr.f32.gmra.mxu0 %v2662_v5  ;;  %3276 = vmatprep.mubr.f32.mxu1 %v2663_v21  ;;  %v2686_v5 = vld [vmem:[#allocation4 + $0x7d] sm:$0xff] }
 0x2d0   :  { %3421 = vmatprep.mubr.f32.mxu0 %v2681_v15  ;;  %7319 = vmatpush3.msra.mxu1 %v2847_v13  ;;  %v2669_v13 = vld [vmem:[#allocation4 + $0x84] sm:$0xff]  ;;  %v2671_v15 = vld [vmem:[#allocation4 + $0x94] sm:$0xff] }
 0x2d1   :  { %7320 = vmatprep.subr.mxu1 %v2846_v27 }
 0x2d2   :  { %7594 = vmatmul.mubr.msk.f32.gmra.mxu1 %vm2535_vm9, %v2445_v54  ;;  %v2844_v54 = vld [vmem:[%s13645_s5 + $0x428] sm:$0xff] }
 0x2d3   :  { %3422 = vmatmul.mubr.f32.gmra.mxu0 %v2663_v21  ;;  %3281 = vmatprep.mubr.f32.mxu1 %v2664_v47  ;;  %v2670_v21 = vld [vmem:[#allocation4 + $0x8c] sm:$0xff] }
 0x2d4   :  { %3426 = vmatprep.mubr.f32.mxu0 %v2682_v17  ;;  %7321 = vmatpush3.msra.mxu1 %v2846_v27  ;;  %v2688_v27 = vld [vmem:[#allocation4 + $0x8d] sm:$0xff]  ;;  %v2691_v17 = vld [vmem:[#allocation4 + $0xa5] sm:$0xff] }
 0x2d5   :  { %7322 = vmatprep.subr.mxu1 %v2845_v6 }
 0x2d6   :  { %7595 = vmatmul.mubr.msk.f32.gmra.mxu1 %vm2536_vm10, %v2446_v3  ;;  %v2843_v3 = vld [vmem:[%s13645_s5 + $0x420] sm:$0xff] }
 0x2d7   :  { %3427 = vmatmul.mubr.f32.gmra.mxu0 %v2664_v47  ;;  %3286 = vmatprep.mubr.f32.mxu1 %v2665_v41  ;;  %v2672_v47 = vld [vmem:[#allocation4 + $0x9c] sm:$0xff] }
 0x2d8   :  { %3431 = vmatprep.mubr.f32.mxu0 %v2683_v34  ;;  %7323 = vmatpush3.msra.mxu1 %v2845_v6  ;;  %v2690_v6 = vld [vmem:[#allocation4 + $0x9d] sm:$0xff]  ;;  %v2694_v34 = vld [vmem:[#allocation4 + $0x2e] sm:$0xff] }
 0x2d9   :  { %7324 = vmatprep.subr.mxu1 %v2844_v54 }
 0x2da   :  { %7596 = vmatmul.mubr.msk.f32.gmra.mxu1 %vm2537_vm12, %v2447_v45  ;;  %v2842_v45 = vld [vmem:[%s13645_s5 + $0x418] sm:$0xff] }
 0x2db   :  { %3432 = vmatmul.mubr.f32.gmra.mxu0 %v2665_v41  ;;  %3291 = vmatprep.mubr.f32.mxu1 %v2666_v43  ;;  %v2693_v41 = vld [vmem:[#allocation4 + $0x26] sm:$0xff] }
 0x2dc   :  { %3436 = vmatprep.mubr.f32.mxu0 %v2684_v39  ;;  %7325 = vmatpush3.msra.mxu1 %v2844_v54  ;;  %v2673_v54 = vld [vmem:[#allocation4 + $0xa4] sm:$0xff] }
 0x2dd   :  { %7326 = vmatprep.subr.mxu1 %v2843_v3  ;;  %v2696_v39 = vld [vmem:[#allocation4 + $0x3e] sm:$0xff] }
 0x2de   :  { %7597 = vmatmul.mubr.msk.f32.gmra.mxu1 %vm2538_vm13, %v2448_v63  ;;  %v2841_v63 = vld [vmem:[%s13645_s5 + $0x410] sm:$0xff] }
 0x2df   :  { %3437 = vmatmul.mubr.f32.gmra.mxu0 %v2666_v43  ;;  %3296 = vmatprep.mubr.f32.mxu1 %v2667_v35  ;;  %v2692_v43 = vld [vmem:[#allocation4 + $0xad] sm:$0xff] }
 0x2e0   :  { %3441 = vmatprep.mubr.f32.mxu0 %v2685_v8  ;;  %7327 = vmatpush3.msra.mxu1 %v2843_v3  ;;  %v2674_v3 = vld [vmem:[#allocation4 + $0xac] sm:$0xff]  ;;  %v2699_v8 = vld [vmem:[#allocation4 + $0x56] sm:$0xff] }
 0x2e1   :  { %7328 = vmatprep.subr.mxu1 %v2842_v45 }
 0x2e2   :  { %7598 = vmatmul.mubr.msk.f32.gmra.mxu1 %vm2539_vm0, %v2449_v23  ;;  %v2840_v23 = vld [vmem:[%s13645_s5 + $0x408] sm:$0xff] }
 0x2e3   :  { %3442 = vmatmul.mubr.f32.gmra.mxu0 %v2667_v35  ;;  %3301 = vmatprep.mubr.f32.mxu1 %v2668_v1  ;;  %v2697_v35 = vld [vmem:[#allocation4 + $0x46] sm:$0xff] }
 0x2e4   :  { %3446 = vmatprep.mubr.f32.mxu0 %v2686_v5  ;;  %7329 = vmatpush3.msra.mxu1 %v2842_v45  ;;  %v2698_v45 = vld [vmem:[#allocation4 + $0x4e] sm:$0xff]  ;;  %v2701_v5 = vld [vmem:[#allocation4 + $0x66] sm:$0xff] }
 0x2e5   :  { %7330 = vmatprep.subr.mxu1 %v2841_v63 }
 0x2e6   :  { %7599 = vmatmul.mubr.msk.f32.gmra.mxu1 %vm2540_vm2, %v2450_v32  ;;  %v2839_v32 = vld [vmem:[%s13645_s5 + $0x400] sm:$0xff] }
 0x2e7   :  { %3447 = vmatmul.mubr.f32.gmra.mxu0 %v2668_v1  ;;  %3306 = vmatprep.mubr.f32.mxu1 %v2669_v13  ;;  %v2700_v1 = vld [vmem:[#allocation4 + $0x5e] sm:$0xff] }
 0x2e8   :  { %3451 = vmatprep.mubr.f32.mxu0 %v2687_v51  ;;  %7331 = vmatpush3.msra.mxu1 %v2841_v63  ;;  %v3836_v63 = vld [vmem:[%s13646_s7 + $0x78] sm:$0xff] }
 0x2e9   :  { %7332 = vmatprep.subr.mxu1 %v2840_v23  ;;  %v2702_v51 = vld [vmem:[#allocation4 + $0x6e] sm:$0xff] }
 0x2ea   :  { %7600 = vmatmul.mubr.msk.f32.gmra.mxu1 %vm2541_vm5, %v2451_v30  ;;  %v2689_v30 = vld [vmem:[#allocation4 + $0x95] sm:$0xff] }
 0x2eb   :  { %3452 = vmatmul.mubr.f32.gmra.mxu0 %v2669_v13  ;;  %3311 = vmatprep.mubr.f32.mxu1 %v2670_v21  ;;  %v3835_v13 = vld [vmem:[%s13646_s7 + $0x70] sm:$0xff] }
 0x2ec   :  { %3456 = vmatprep.mubr.f32.mxu0 %v2688_v27  ;;  %7333 = vmatpush3.msra.mxu1 %v2840_v23  ;;  %v3834_v23 = vld [vmem:[%s13646_s7 + $0x68] sm:$0xff]  ;;  %v3832_v27 = vld [vmem:[%s13646_s7 + $0x58] sm:$0xff] }
 0x2ed   :  { %7334 = vmatprep.subr.mxu1 %v2839_v32 }
 0x2ee   :  { %7601 = vmatmul.mubr.msk.f32.gmra.mxu1 %vm2542_vm6, %v2452_v59  ;;  %v13778_v59 = vmax.f32 %v10318_v0, 0.0 }
 0x2ef   :  { %3457 = vmatmul.mubr.f32.gmra.mxu0 %v2670_v21  ;;  %3316 = vmatprep.mubr.f32.mxu1 %v2671_v15  ;;  %v2703_v21 = vld [vmem:[#allocation4 + $0x76] sm:$0xff] }
 0x2f0   :  { %3461 = vmatprep.mubr.f32.mxu0 %v2689_v30  ;;  %7335 = vmatpush3.msra.mxu1 %v2839_v32  ;;  %v3833_v32 = vld [vmem:[%s13646_s7 + $0x60] sm:$0xff]  ;;  %v3868_v30 = vld [vmem:[%s13646_s7 + $0x178] sm:$0xff] }
 0x2f1   :  { %3972 = vmatprep.subr.mxu1 %v10414_v10  ;;  %4128 = vmatpush1.msra.mxu0 %v3868_v30  ;;  %v3859_v30 = vld [vmem:[%s13646_s7 + $0x130] sm:$0xff] }
 0x2f2   :  { %7602 = vmatmul.mubr.msk.f32.gmra.mxu1 %vm13692_vm14, %v2453_v26  ;;  %v2695_v26 = vld [vmem:[#allocation4 + $0x36] sm:$0xff]  ;;  %4129 = vmatprep.subr.mxu0 %v10414_v10  ;;  %vm13788_vm14 = vcmp.eq.s32.totalorder %v9861_v33, 1 }
 0x2f3   :  { %3462 = vmatmul.mubr.f32.gmra.mxu0 %v2671_v15  ;;  %3321 = vmatprep.mubr.f32.mxu1 %v2672_v47  ;;  %v2704_v15 = vld [vmem:[#allocation4 + $0x7e] sm:$0xff] }
 0x2f4   :  { %3466 = vmatprep.mubr.f32.mxu0 %v2690_v6  ;;  %v3831_v6 = vld [vmem:[%s13646_s7 + $0x50] sm:$0xff] }
 0x2f6   :  { %7603 = vmatmul.mubr.msk.f32.gmra.mxu1 %vm2544_vm8, %v13778_v59  ;;  %v2706_v59 = vld [vmem:[#allocation4 + $0x8e] sm:$0xff] }
 0x2f7   :  { %3467 = vmatmul.mubr.f32.gmra.mxu0 %v2672_v47  ;;  %7336 = vmatprep.mubr.f32.mxu1 %v2693_v41  ;;  %v2705_v47 = vld [vmem:[#allocation4 + $0x86] sm:$0xff]  ;;  %v3830_v41 = vld [vmem:[%s13646_s7 + $0x48] sm:$0xff] }
 0x2f8   :  { %3471 = vmatprep.mubr.f32.mxu0 %v2691_v17  ;;  %v3867_v17 = vld [vmem:[%s13646_s7 + $0x170] sm:$0xff] }
 0x2f9   :  { %4130 = vmatpush1.msra.mxu0 %v3867_v17  ;;  %v3821_v17 = vld [vmem:[%s13646_s7] sm:$0xff] }
 0x2fa   :  { %7337 = vmatmul.mubr.f32.vlgmr.msra.gmra.mxu1 %v2694_v34  ;;  %v3866_v34 = vld [vmem:[%s13646_s7 + $0x168] sm:$0xff]  ;;  %4131 = vmatprep.subr.mxu0 %v10414_v10 }
 0x2fb   :  { %3472 = vmatmul.mubr.f32.gmra.mxu0 %v2673_v54  ;;  %7339 = vmatprep.mubr.f32.mxu1 %v2695_v26  ;;  %v2707_v54 = vld [vmem:[#allocation4 + $0x96] sm:$0xff] }
 0x2fc   :  { %3476 = vmatprep.mubr.f32.mxu0 %v2692_v43  ;;  %3973 = vmatpush1.msra.mxu1 %v3836_v63  ;;  %v2709_v43 = vld [vmem:[#allocation4 + $0xa6] sm:$0xff]  ;;  %v3829_v26 = vld [vmem:[%s13646_s7 + $0x40] sm:$0xff] }
 0x2fd   :  { %3974 = vmatprep.subr.mxu1 %v10414_v10  ;;  %4132 = vmatpush1.msra.mxu0 %v3866_v34  ;;  %v3863_v63 = vld [vmem:[%s13646_s7 + $0x150] sm:$0xff]  ;;  %v3857_v34 = vld [vmem:[%s13646_s7 + $0x120] sm:$0xff] }
 0x2fe   :  { %7340 = vmatmul.mubr.f32.gmra.mxu1 %v2696_v39  ;;  %v3865_v39 = vld [vmem:[%s13646_s7 + $0x160] sm:$0xff]  ;;  %4133 = vmatprep.subr.mxu0 %v10414_v10 }
 0x2ff   :  { %3477 = vmatmul.mubr.f32.gmra.mxu0 %v2674_v3  ;;  %7342 = vmatprep.mubr.f32.mxu1 %v2697_v35  ;;  %v2708_v3 = vld [vmem:[#allocation4 + $0x9e] sm:$0xff]  ;;  %v3828_v35 = vld [vmem:[%s13646_s7 + $0x38] sm:$0xff] }
 0x300   :  { %3975 = vmatpush1.msra.mxu1 %v3835_v13  ;;  %4134 = vmatpush1.msra.mxu0 %v3865_v39  ;;  %v3862_v13 = vld [vmem:[%s13646_s7 + $0x148] sm:$0xff]  ;;  %v3856_v39 = vld [vmem:[%s13646_s7 + $0x118] sm:$0xff] }
 0x301   :  { %3976 = vmatprep.subr.mxu1 %v10414_v10  ;;  %4135 = vmatprep.subr.mxu0 %v10414_v10 }
 0x302   :  { %7343 = vmatmul.mubr.f32.gmra.mxu1 %v2698_v45  ;;  %v2710_v45 = vld [vmem:[#allocation4 + $0xae] sm:$0xff] }
 0x303   :  { %7345 = vmatprep.mubr.f32.mxu1 %v2699_v8  ;;  %3977 = vmatpush1.msra.mxu1 %v3834_v23  ;;  %v3864_v8 = vld [vmem:[%s13646_s7 + $0x158] sm:$0xff]  ;;  %v3825_v23 = vld [vmem:[%s13646_s7 + $0x20] sm:$0xff] }
 0x304   :  { %3978 = vmatprep.subr.mxu1 %v10414_v10  ;;  %4136 = vmatpush1.msra.mxu0 %v3864_v8 }
 0x305   :  { %3979 = vmatpush1.msra.mxu1 %v3833_v32  ;;  %4137 = vmatprep.subr.mxu0 %v10414_v10  ;;  %v3860_v32 = vld [vmem:[%s13646_s7 + $0x138] sm:$0xff] }
 0x306   :  { %7346 = vmatmul.mubr.f32.gmra.mxu1 %v2700_v1  ;;  %3980 = vmatprep.subr.mxu1 %v10414_v10  ;;  %v3827_v1 = vld [vmem:[%s13646_s7 + $0x30] sm:$0xff] }
 0x307   :  { %7348 = vmatprep.mubr.f32.mxu1 %v2701_v5  ;;  %3981 = vmatpush1.msra.mxu1 %v3832_v27  ;;  %v3826_v5 = vld [vmem:[%s13646_s7 + $0x28] sm:$0xff]  ;;  %v3823_v27 = vld [vmem:[%s13646_s7 + $0x10] sm:$0xff] }
 0x308   :  { %3982 = vmatprep.subr.mxu1 %v10414_v10  ;;  %4138 = vmatpush1.msra.mxu0 %v3863_v63  ;;  %v3855_v63 = vld [vmem:[%s13646_s7 + $0x110] sm:$0xff] }
 0x309   :  { %3983 = vmatpush1.msra.mxu1 %v3831_v6  ;;  %4139 = vmatprep.subr.mxu0 %v10414_v10  ;;  %v3858_v6 = vld [vmem:[%s13646_s7 + $0x128] sm:$0xff] }
 0x30a   :  { %7349 = vmatmul.mubr.f32.gmra.mxu1 %v2702_v51  ;;  %3984 = vmatprep.subr.mxu1 %v10414_v10  ;;  %v3861_v51 = vld [vmem:[%s13646_s7 + $0x140] sm:$0xff] }
 0x30b   :  { %7351 = vmatprep.mubr.f32.mxu1 %v2703_v21  ;;  %3985 = vmatpush1.msra.mxu1 %v3830_v41  ;;  %v3824_v21 = vld [vmem:[%s13646_s7 + $0x18] sm:$0xff] }
 0x30c   :  { %3986 = vmatprep.subr.mxu1 %v10414_v10  ;;  %4140 = vmatpush1.msra.mxu0 %v3862_v13 }
 0x30d   :  { %3987 = vmatpush1.msra.mxu1 %v3829_v26  ;;  %4141 = vmatprep.subr.mxu0 %v10414_v10 }
 0x30e   :  { %7352 = vmatmul.mubr.f32.gmra.mxu1 %v2704_v15  ;;  %3988 = vmatprep.subr.mxu1 %v10414_v10  ;;  %v10605_v15 = vld [vmem:[%s13647_s6] ss:$0 sm:$0xff] }
 0x30f   :  { %7354 = vmatprep.mubr.f32.mxu1 %v2705_v47  ;;  %3989 = vmatpush1.msra.mxu1 %v3828_v35  ;;  %v3822_v47 = vld [vmem:[%s13646_s7 + $0x8] sm:$0xff]  ;;  %v3851_v35 = vld [vmem:[%s13646_s7 + $0xf0] sm:$0xff] }
 0x310   :  { %3990 = vmatprep.subr.mxu1 %v10414_v10  ;;  %4142 = vmatpush1.msra.mxu0 %v3861_v51  ;;  %v3854_v51 = vld [vmem:[%s13646_s7 + $0x108] sm:$0xff] }
 0x311   :  { %3991 = vmatpush1.msra.mxu1 %v3827_v1  ;;  %4143 = vmatprep.subr.mxu0 %v10414_v10 }
 0x312   :  { %7355 = vmatmul.mubr.f32.gmra.mxu1 %v2706_v59  ;;  %3992 = vmatprep.subr.mxu1 %v10414_v10  ;;  %v2929_v59 = vadd.f32 %v10605_v15, %v10349_v58 }
 0x313   :  { %7357 = vmatprep.mubr.f32.mxu1 %v2707_v54  ;;  %3993 = vmatpush1.msra.mxu1 %v3826_v5  ;;  %v3850_v5 = vld [vmem:[%s13646_s7 + $0xe8] sm:$0xff] }
 0x314   :  { %3994 = vmatprep.subr.mxu1 %v10414_v10  ;;  %4144 = vmatpush1.msra.mxu0 %v3860_v32 }
 0x315   :  { %3995 = vmatpush1.msra.mxu1 %v3825_v23  ;;  %4145 = vmatprep.subr.mxu0 %v10414_v10 }
 0x316   :  { %7358 = vmatmul.mubr.f32.gmra.mxu1 %v2708_v3  ;;  %3996 = vmatprep.subr.mxu1 %v10414_v10 }
 0x317   :  { %7360 = vmatprep.mubr.f32.mxu1 %v2709_v43  ;;  %3997 = vmatpush1.msra.mxu1 %v3824_v21  ;;  %v3852_v43 = vld [vmem:[%s13646_s7 + $0xf8] sm:$0xff]  ;;  %v3849_v21 = vld [vmem:[%s13646_s7 + $0xe0] sm:$0xff] }
 0x318   :  { %3998 = vmatprep.subr.mxu1 %v10414_v10  ;;  %4146 = vmatpush1.msra.mxu0 %v3859_v30 }
 0x319   :  { %3999 = vmatpush1.msra.mxu1 %v3823_v27  ;;  %v2938_v41 = vpop.f32.mrf.mxu1  ;;  %4147 = vmatprep.subr.mxu0 %v10414_v10 }
 0x31a   :  { %7361 = vmatmul.mubr.f32.gmra.mxu1 %v2710_v45  ;;  %4000 = vmatprep.subr.mxu1 %v10414_v10  ;;  %v3083_v54 = vpop.f32.mrf.mxu0  ;;  %v2934_v45 = vadd.f32 %v10605_v15, %v10355_v60  ;;  %v2939_v32 = vadd.f32 %v10605_v15, %v2938_v41 }
 0x31b   :  { %4001 = vmatpush1.msra.mxu1 %v3822_v47  ;;  %v10633_v26 = vadd.f32 %v3083_v54, %v2929_v59  ;;  %4148 = vmatpush1.msra.mxu0 %v3858_v6  ;;  %v2940_v58 = vpop.f32.mrf.mxu1  ;;  %v3853_v47 = vld [vmem:[%s13646_s7 + $0x100] sm:$0xff]  ;;  %v3848_v6 = vld [vmem:[%s13646_s7 + $0xd8] sm:$0xff] }
 0x31c   :  { %4002 = vmatprep.subr.mxu1 %v10414_v10  ;;  %v3085_v3 = vpop.f32.mrf.mxu0  ;;  %4149 = vmatprep.subr.mxu0 %v10414_v10  ;;  %v3884_v54 = vld [vmem:[%s13646_s7 + $0x1f8] sm:$0xff] }
 0x31d   :  { %4003 = vmatpush1.msra.mxu1 %v3821_v17  ;;  %4150 = vmatpush1.msra.mxu0 %v3857_v34  ;;  %v3847_v34 = vld [vmem:[%s13646_s7 + $0xd0] sm:$0xff] }
 0x31e   :  { %4004 = vmatprep.subr.mxu1 %v10414_v10  ;;  %v2943_v8 = vpop.f32.mrf.mxu1  ;;  %4151 = vmatprep.subr.mxu0 %v10414_v10 }
 0x31f   :  { %4005 = vmatpush2.msra.mxu1 %v3852_v43  ;;  %v3088_v1 = vpop.f32.mrf.mxu0  ;;  %4152 = vmatpush1.msra.mxu0 %v3856_v39  ;;  %v2944_v43 = vadd.f32 %v10605_v15, %v2943_v8  ;;  %v3883_v39 = vld [vmem:[%s13646_s7 + $0x1f0] sm:$0xff] }
 0x320   :  { %4006 = vmatprep.subr.mxu1 %v10414_v10  ;;  %v10653_v13 = vadd.f32 %v3088_v1, %v2934_v45  ;;  %v2945_v60 = vpop.f32.mrf.mxu1  ;;  %4153 = vmatprep.subr.mxu0 %v10414_v10 }
 0x321   :  { %4007 = vmatpush2.msra.mxu1 %v3851_v35  ;;  %v3090_v23 = vpop.f32.mrf.mxu0  ;;  %4154 = vmatpush1.msra.mxu0 %v3855_v63  ;;  %v3846_v35 = vld [vmem:[%s13646_s7 + $0xc8] sm:$0xff] }
 0x322   :  { %4008 = vmatprep.subr.mxu1 %v10414_v10  ;;  %4155 = vmatprep.subr.mxu0 %v10414_v10  ;;  %v3882_v63 = vld [vmem:[%s13646_s7 + $0x1e8] sm:$0xff] }
 0x323   :  { %4009 = vmatpush2.msra.mxu1 %v3850_v5  ;;  %4156 = vmatpush1.msra.mxu0 %v3854_v51  ;;  %v3845_v5 = vld [vmem:[%s13646_s7 + $0xc0] sm:$0xff] }
 0x324   :  { %4010 = vmatprep.subr.mxu1 %v10414_v10  ;;  %4157 = vmatprep.subr.mxu0 %v10414_v10 }
 0x325   :  { %v2948_v27 = vpop.f32.mrf.mxu1  ;;  %v3093_v30 = vpop.f32.mrf.mxu0  ;;  %4011 = vmatpush2.msra.mxu1 %v3849_v21  ;;  %4158 = vmatpush1.msra.mxu0 %v3853_v47  ;;  %v3881_v21 = vld [vmem:[%s13646_s7 + $0x1e0] sm:$0xff] }
 0x326   :  { %v10672_v17 = vadd.f32 %v3093_v30, %v2939_v32  ;;  %4012 = vmatprep.subr.mxu1 %v10414_v10  ;;  %4159 = vmatprep.subr.mxu0 %v10414_v10  ;;  %v2949_v60 = vadd.f32 %v10605_v15, %v2948_v27  ;;  %v3844_v32 = vld [vmem:[%s13646_s7 + $0xb8] sm:$0xff] }
 0x327   :  { %v2950_v59 = vpop.f32.mrf.mxu1  ;;  %v3095_v41 = vpop.f32.mrf.mxu0  ;;  %4013 = vmatpush2.msra.mxu1 %v3848_v6  ;;  %4160 = vmatpush2.msra.mxu0 %v3884_v54  ;;  %v3880_v6 = vld [vmem:[%s13646_s7 + $0x1d8] sm:$0xff] }
 0x328   :  { %4014 = vmatprep.subr.mxu1 %v10414_v10  ;;  %4161 = vmatprep.subr.mxu0 %v10414_v10  ;;  %v3843_v59 = vld [vmem:[%s13646_s7 + $0xb0] sm:$0xff] }
 0x329   :  { %4015 = vmatpush2.msra.mxu1 %v3847_v34  ;;  %4162 = vmatpush2.msra.mxu0 %v3883_v39  ;;  %v3879_v34 = vld [vmem:[%s13646_s7 + $0x1d0] sm:$0xff] }
 0x32a   :  { %4016 = vmatprep.subr.mxu1 %v10414_v10  ;;  %4163 = vmatprep.subr.mxu0 %v10414_v10 }
 0x32b   :  { %v2953_v58 = vpop.f32.mrf.mxu1  ;;  %v3098_v3 = vpop.f32.mrf.mxu0  ;;  %4017 = vmatpush2.msra.mxu1 %v3846_v35  ;;  %4164 = vmatpush2.msra.mxu0 %v3882_v63 }
 0x32c   :  { %v10691_v45 = vadd.f32 %v3098_v3, %v2944_v43  ;;  %4018 = vmatprep.subr.mxu1 %v10414_v10  ;;  %4165 = vmatprep.subr.mxu0 %v10414_v10  ;;  %v2954_v41 = vadd.f32 %v10605_v15, %v2953_v58  ;;  %v3842_v43 = vld [vmem:[%s13646_s7 + $0xa8] sm:$0xff] }
 0x32d   :  { %v2955_v8 = vpop.f32.mrf.mxu1  ;;  %v3100_v1 = vpop.f32.mrf.mxu0  ;;  %4019 = vmatpush2.msra.mxu1 %v3845_v5  ;;  %4166 = vmatpush2.msra.mxu0 %v3881_v21  ;;  %v3878_v58 = vld [vmem:[%s13646_s7 + $0x1c8] sm:$0xff]  ;;  %v3877_v5 = vld [vmem:[%s13646_s7 + $0x1c0] sm:$0xff] }
 0x32e   :  { %4020 = vmatprep.subr.mxu1 %v10414_v10  ;;  %4167 = vmatprep.subr.mxu0 %v10414_v10  ;;  %v3841_v8 = vld [vmem:[%s13646_s7 + $0xa0] sm:$0xff] }
 0x32f   :  { %v2958_v23 = vpop.f32.mrf.mxu1  ;;  %v3103_v51 = vpop.f32.mrf.mxu0  ;;  %4021 = vmatpush2.msra.mxu1 %v3844_v32  ;;  %4168 = vmatpush2.msra.mxu0 %v3880_v6 }
 0x330   :  { %v10710_v30 = vadd.f32 %v3103_v51, %v2949_v60  ;;  %4022 = vmatprep.subr.mxu1 %v10414_v10  ;;  %4169 = vmatprep.subr.mxu0 %v10414_v10  ;;  %v2959_v63 = vadd.f32 %v10605_v15, %v2958_v23  ;;  %v3840_v60 = vld [vmem:[%s13646_s7 + $0x98] sm:$0xff] }
 0x331   :  { %v2960_v27 = vpop.f32.mrf.mxu1  ;;  %v3105_v47 = vpop.f32.mrf.mxu0  ;;  %4023 = vmatpush2.msra.mxu1 %v3843_v59  ;;  %4170 = vmatpush2.msra.mxu0 %v3879_v34  ;;  %v3876_v23 = vld [vmem:[%s13646_s7 + $0x1b8] sm:$0xff]  ;;  %v3875_v59 = vld [vmem:[%s13646_s7 + $0x1b0] sm:$0xff] }
 0x332   :  { %4024 = vmatprep.subr.mxu1 %v10414_v10  ;;  %4171 = vmatprep.subr.mxu0 %v10414_v10  ;;  %v3839_v27 = vld [vmem:[%s13646_s7 + $0x90] sm:$0xff] }
 0x333   :  { %v3108_v3 = vpop.f32.mrf.mxu0  ;;  %4025 = vmatpush2.msra.mxu1 %v3842_v43  ;;  %4172 = vmatpush2.msra.mxu0 %v3878_v58  ;;  %v3837_v58 = vld [vmem:[%s13646_s7 + $0x80] sm:$0xff] }
 0x334   :  { %v2963_v54 = vpop.f32.mrf.mxu1  ;;  %v10729_v39 = vadd.f32 %v3108_v3, %v2954_v41  ;;  %4026 = vmatprep.subr.mxu1 %v10414_v10  ;;  %4173 = vmatprep.subr.mxu0 %v10414_v10  ;;  %v3838_v41 = vld [vmem:[%s13646_s7 + $0x88] sm:$0xff] }
 0x335   :  { %v3110_v1 = vpop.f32.mrf.mxu0  ;;  %4027 = vmatpush2.msra.mxu1 %v3841_v8  ;;  %4174 = vmatpush2.msra.mxu0 %v3877_v5  ;;  %v2964_v34 = vadd.f32 %v10605_v15, %v2963_v54  ;;  %v3709_v8 = vld [vmem:[#allocation4 + $0x1] sm:$0xff]  ;;  %v3873_v5 = vld [vmem:[%s13646_s7 + $0x1a0] sm:$0xff] }
 0x336   :  { %v2965_v35 = vpop.f32.mrf.mxu1  ;;  %4028 = vmatprep.subr.mxu1 %v10414_v10  ;;  %4175 = vmatprep.subr.mxu0 %v10414_v10 }
 0x337   :  { %4029 = vmatpush2.msra.mxu1 %v3840_v60  ;;  %4176 = vmatpush2.msra.mxu0 %v3876_v23  ;;  %v3874_v35 = vld [vmem:[%s13646_s7 + $0x1a8] sm:$0xff]  ;;  %v3872_v60 = vld [vmem:[%s13646_s7 + $0x198] sm:$0xff] }
 0x338   :  { %4030 = vmatprep.subr.mxu1 %v10414_v10  ;;  %4177 = vmatprep.subr.mxu0 %v10414_v10  ;;  %v3710_v23 = vld [vmem:[#allocation4 + $0x9] sm:$0xff] }
 0x339   :  { %4031 = vmatpush2.msra.mxu1 %v3839_v27  ;;  %4178 = vmatpush2.msra.mxu0 %v3875_v59  ;;  %v3871_v59 = vld [vmem:[%s13646_s7 + $0x190] sm:$0xff] }
 0x33a   :  { %4032 = vmatprep.subr.mxu1 %v10414_v10  ;;  %4179 = vmatprep.subr.mxu0 %v10414_v10 }
 0x33b   :  { %4033 = vmatpush2.msra.mxu1 %v3838_v41  ;;  %4180 = vmatpush2.msra.mxu0 %v3874_v35  ;;  %v3899_v41 = vld [vmem:[%s13646_s7 + $0x270] sm:$0xff]  ;;  %v3870_v35 = vld [vmem:[%s13646_s7 + $0x188] sm:$0xff] }
 0x33c   :  { %v2968_v51 = vpop.f32.mrf.mxu1  ;;  %4034 = vmatprep.subr.mxu1 %v10414_v10  ;;  %4036 = vmatprep.mubr.f32.mxu1 %v3709_v8 }
 0x33d   :  { %v3113_v21 = vpop.f32.mrf.mxu0  ;;  %4035 = vmatpush2.msra.mxu1 %v3837_v58  ;;  %4181 = vmatprep.subr.mxu0 %v10414_v10  ;;  %v2969_v27 = vadd.f32 %v10605_v15, %v2968_v51  ;;  %v3898_v58 = vld [vmem:[%s13646_s7 + $0x268] sm:$0xff] }
 0x33e   :  { %v10750_v32 = vadd.f32 %v3113_v21, %v2959_v63  ;;  %v2970_v47 = vpop.f32.mrf.mxu1  ;;  %4037 = vmatmul.mubr.f32.vlgmr.msra.gmra.mxu1 %v10414_v10  ;;  %4182 = vmatpush2.msra.mxu0 %v3873_v5  ;;  %v3900_v21 = vld [vmem:[%s13646_s7 + $0x278] sm:$0xff]  ;;  %v3897_v5 = vld [vmem:[%s13646_s7 + $0x260] sm:$0xff] }
 0x33f   :  { %v3115_v6 = vpop.f32.mrf.mxu0  ;;  %4183 = vmatprep.subr.mxu0 %v10414_v10  ;;  %4282 = vmatprep.subr.mxu1 %v10414_v10 }
 0x340   :  { %4184 = vmatpush2.msra.mxu0 %v3872_v60  ;;  %4283 = vmatpush1.msra.mxu1 %v3900_v21 }
 0x341   :  { %v2973_v43 = vpop.f32.mrf.mxu1  ;;  %v3118_v3 = vpop.f32.mrf.mxu0  ;;  %4041 = vmatprep.mubr.f32.mxu1 %v3710_v23  ;;  %4185 = vmatprep.subr.mxu0 %v10414_v10 }
 0x342   :  { %v10777_v1 = vadd.f32 %v3118_v3, %v2964_v34  ;;  %4042 = vmatmul.mubr.f32.gmra.mxu1 %v10414_v10  ;;  %4186 = vmatpush2.msra.mxu0 %v3871_v59  ;;  %v2974_v8 = vadd.f32 %v10605_v15, %v2973_v43  ;;  %v3896_v43 = vld [vmem:[%s13646_s7 + $0x258] sm:$0xff] }
 0x343   :  { %v2975_v54 = vpop.f32.mrf.mxu1  ;;  %v3120_v63 = vpop.f32.mrf.mxu0  ;;  %4284 = vmatprep.subr.mxu1 %v10414_v10  ;;  %4187 = vmatprep.subr.mxu0 %v10414_v10 }
 0x344   :  { %4285 = vmatpush1.msra.mxu1 %v3899_v41  ;;  %4188 = vmatpush2.msra.mxu0 %v3870_v35  ;;  %v3869_v63 = vld [vmem:[%s13646_s7 + $0x180] sm:$0xff] }
 0x345   :  { %4286 = vmatprep.subr.mxu1 %v10414_v10  ;;  %4189 = vmatprep.subr.mxu0 %v10414_v10 }
 0x346   :  { %4287 = vmatpush1.msra.mxu1 %v3898_v58  ;;  %4190 = vmatpush2.msra.mxu0 %v3869_v63 }
 0x347   :  { %4288 = vmatprep.subr.mxu1 %v10414_v10  ;;  %4437 = vmatprep.subr.mxu0 %v10414_v10 }
 0x348   :  { %4289 = vmatpush1.msra.mxu1 %v3897_v5 }
 0x349   :  { %4290 = vmatprep.subr.mxu1 %v10414_v10 }
 0x34a   :  { %4291 = vmatpush1.msra.mxu1 %v3896_v43 }
 0x34b   :  { %v2978_v47 = vpop.f32.mrf.mxu1  ;;  %4292 = vmatprep.subr.mxu1 %v10414_v10 }
 0x34c   :  { %v3123_v6 = vpop.f32.mrf.mxu0  ;;  %v2979_v59 = vadd.f32 %v10605_v15, %v2978_v47  ;;  %v3893_v47 = vld [vmem:[%s13646_s7 + $0x240] sm:$0xff] }
 0x34d   :  { %v10800_v34 = vadd.f32 %v3123_v6, %v2969_v27  ;;  %v2980_v51 = vpop.f32.mrf.mxu1  ;;  %v3895_v6 = vld [vmem:[%s13646_s7 + $0x250] sm:$0xff] }
 0x34e   :  { %v3125_v3 = vpop.f32.mrf.mxu0  ;;  %4293 = vmatpush1.msra.mxu1 %v3895_v6 }
 0x34f   :  { %v2983_v54 = vpop.f32.mrf.mxu1  ;;  %4294 = vmatprep.subr.mxu1 %v10414_v10  ;;  %v3894_v3 = vld [vmem:[%s13646_s7 + $0x248] sm:$0xff] }
 0x350   :  { %v3128_v60 = vpop.f32.mrf.mxu0  ;;  %4295 = vmatpush1.msra.mxu1 %v3894_v3  ;;  %v2984_v63 = vadd.f32 %v10605_v15, %v2983_v54  ;;  %v3891_v54 = vld [vmem:[%s13646_s7 + $0x230] sm:$0xff] }
 0x351   :  { %v10820_v21 = vadd.f32 %v3128_v60, %v2974_v8  ;;  %v2985_v23 = vpop.f32.mrf.mxu1  ;;  %4296 = vmatprep.subr.mxu1 %v10414_v10 }
 0x352   :  { %v3130_v27 = vpop.f32.mrf.mxu0  ;;  %4297 = vmatpush1.msra.mxu1 %v3893_v47  ;;  %v3892_v23 = vld [vmem:[%s13646_s7 + $0x238] sm:$0xff] }
 0x353   :  { %4298 = vmatprep.subr.mxu1 %v10414_v10 }
 0x354   :  { %4299 = vmatpush1.msra.mxu1 %v3892_v23 }
 0x355   :  { %4300 = vmatprep.subr.mxu1 %v10414_v10 }
 0x356   :  { %4301 = vmatpush1.msra.mxu1 %v3891_v54 }
 0x357   :  { %4302 = vmatprep.subr.mxu1 %v10414_v10 }
 0x358   :  { %v2988_v41 = vpop.f32.mrf.mxu1  ;;  %v3133_v51 = vpop.f32.mrf.mxu0 }
 0x359   :  { %v10837_v35 = vadd.f32 %v3133_v51, %v2979_v59  ;;  %v2989_v59 = vadd.f32 %v10605_v15, %v2988_v41  ;;  %v3889_v41 = vld [vmem:[%s13646_s7 + $0x220] sm:$0xff] }
 0x35a   :  { %v2990_v58 = vpop.f32.mrf.mxu1  ;;  %v3135_v8 = vpop.f32.mrf.mxu0 }
 0x35b   :  { %v3890_v58 = vld [vmem:[%s13646_s7 + $0x228] sm:$0xff] }
 0x35c   :  { %v2993_v5 = vpop.f32.mrf.mxu1  ;;  %v3138_v60 = vpop.f32.mrf.mxu0  ;;  %4303 = vmatpush1.msra.mxu1 %v3890_v58  ;;  %v3886_v58 = vld [vmem:[%s13646_s7 + $0x208] sm:$0xff] }
 0x35d   :  { %v10848_v43 = vadd.f32 %v3138_v60, %v2984_v63  ;;  %4304 = vmatprep.subr.mxu1 %v10414_v10  ;;  %v3888_v60 = vld [vmem:[%s13646_s7 + $0x218] sm:$0xff]  ;;  %v2994_v23 = vadd.f32 %v10605_v15, %v2993_v5 }
 0x35e   :  { %v2995_v27 = vpop.f32.mrf.mxu1  ;;  %v3140_v6 = vpop.f32.mrf.mxu0  ;;  %4305 = vmatpush1.msra.mxu1 %v3889_v41  ;;  %v3885_v41 = vld [vmem:[%s13646_s7 + $0x200] sm:$0xff] }
 0x35f   :  { %4306 = vmatprep.subr.mxu1 %v10414_v10  ;;  %v3887_v6 = vld [vmem:[%s13646_s7 + $0x210] sm:$0xff] }
 0x360   :  { %v2998_v51 = vpop.f32.mrf.mxu1  ;;  %v3143_v3 = vpop.f32.mrf.mxu0  ;;  %4307 = vmatpush1.msra.mxu1 %v3888_v60 }
 0x361   :  { %v10859_v8 = vadd.f32 %v3143_v3, %v2989_v59  ;;  %4308 = vmatprep.subr.mxu1 %v10414_v10  ;;  %v2999_v5 = vadd.f32 %v10605_v15, %v2998_v51 }
 0x362   :  { %v3000_v47 = vpop.f32.mrf.mxu1  ;;  %v3145_v63 = vpop.f32.mrf.mxu0  ;;  %4309 = vmatpush1.msra.mxu1 %v3887_v6  ;;  %v3916_v6 = vld [vmem:[%s13646_s7 + $0x2f8] sm:$0xff] }
 0x363   :  { %4310 = vmatprep.subr.mxu1 %v10414_v10 }
 0x364   :  { %v3003_v27 = vpop.f32.mrf.mxu1  ;;  %4311 = vmatpush1.msra.mxu1 %v3886_v58  ;;  %v3915_v58 = vld [vmem:[%s13646_s7 + $0x2f0] sm:$0xff] }
 0x365   :  { %v3148_v54 = vpop.f32.mrf.mxu0  ;;  %4312 = vmatprep.subr.mxu1 %v10414_v10  ;;  %v3004_v51 = vadd.f32 %v10605_v15, %v3003_v27  ;;  %v3914_v27 = vld [vmem:[%s13646_s7 + $0x2e8] sm:$0xff] }
 0x366   :  { %v10873_v59 = vadd.f32 %v3148_v54, %v2994_v23  ;;  %v3005_v3 = vpop.f32.mrf.mxu1  ;;  %4313 = vmatpush1.msra.mxu1 %v3885_v41 }
 0x367   :  { %v3150_v47 = vpop.f32.mrf.mxu0  ;;  %4314 = vmatprep.subr.mxu1 %v10414_v10 }
 0x368   :  { %v3008_v63 = vpop.f32.mrf.mxu1  ;;  %4315 = vmatpush2.msra.mxu1 %v3916_v6 }
 0x369   :  { %v3153_v60 = vpop.f32.mrf.mxu0  ;;  %v3009_v6 = vadd.f32 %v10605_v15, %v3008_v63 }
 0x36a   :  { %v10884_v23 = vadd.f32 %v3153_v60, %v2999_v5  ;;  %v3010_v54 = vpop.f32.mrf.mxu1 }
 0x36b   :  { %v3155_v3 = vpop.f32.mrf.mxu0  ;;  %v10897_v54 = vld [vmem:[#allocation4] sm:$0xff] }
 0x36c   :  { %13779 = vst [vmem:[#allocation31_spill] sm:$0xff] %v10884_v23  ;;  %v3013_v47 = vpop.f32.mrf.mxu1  ;;  %4316 = vmatprep.subr.mxu1 %v10897_v54 }
 0x36d   :  { %v3158_v37 = vpop.f32.mrf.mxu0  ;;  %4317 = vmatpush2.msra.mxu1 %v3915_v58  ;;  %v3912_v58 = vld [vmem:[%s13646_s7 + $0x2d8] sm:$0xff] }
 0x36e   :  { %v10895_v5 = vadd.f32 %v3158_v37, %v3004_v51  ;;  %v3015_v60 = vpop.f32.mrf.mxu1  ;;  %4318 = vmatprep.subr.mxu1 %v10897_v54  ;;  %v3913_v37 = vld [vmem:[%s13646_s7 + $0x2e0] sm:$0xff] }
 0x36f   :  { %v3160_v41 = vpop.f32.mrf.mxu0  ;;  %4319 = vmatpush2.msra.mxu1 %v3914_v27 }
 0x370   :  { %v3238_v10 = vpop.f32.mrf.mxu1  ;;  %4320 = vmatprep.subr.mxu1 %v10897_v54 }
 0x371   :  { %v10906_v3 = vadd.f32 %v3238_v10, %v10633_v26  ;;  %4321 = vmatpush2.msra.mxu1 %v3913_v37  ;;  %v3014_v26 = vadd.f32 %v10605_v15, %v3013_v47  ;;  %v3910_v15 = vld [vmem:[%s13646_s7 + $0x2c8] sm:$0xff] }
 0x372   :  { %v3163_v51 = vpop.f32.mrf.mxu0  ;;  %v3240_v60 = vpop.f32.mrf.mxu1  ;;  %4322 = vmatprep.subr.mxu1 %v10897_v54 }
 0x373   :  { %v10915_v41 = vadd.f32 %v3163_v51, %v3009_v6  ;;  %4323 = vmatpush2.msra.mxu1 %v3912_v58  ;;  %v3911_v60 = vld [vmem:[%s13646_s7 + $0x2d0] sm:$0xff]  ;;  %v3909_v51 = vld [vmem:[%s13646_s7 + $0x2c0] sm:$0xff] }
 0x374   :  { %v3165_v63 = vpop.f32.mrf.mxu0  ;;  %4324 = vmatprep.subr.mxu1 %v10897_v54 }
 0x375   :  { %13780 = vst [vmem:[#allocation32_spill] sm:$0xff] %v10915_v41  ;;  %v3243_v27 = vpop.f32.mrf.mxu1  ;;  %4325 = vmatpush2.msra.mxu1 %v3911_v60 }
 0x376   :  { %v3168_v10 = vpop.f32.mrf.mxu0  ;;  %v10920_v0 = vadd.f32 %v3243_v27, %v10653_v13  ;;  %4326 = vmatprep.subr.mxu1 %v10897_v54 }
 0x377   :  { %v10926_v6 = vadd.f32 %v3168_v10, %v3014_v26  ;;  %v3245_v37 = vpop.f32.mrf.mxu1  ;;  %4327 = vmatpush2.msra.mxu1 %v3910_v15  ;;  %v3908_v26 = vld [vmem:[%s13646_s7 + $0x2b8] sm:$0xff] }
 0x378   :  { %v3170_v47 = vpop.f32.mrf.mxu0  ;;  %4328 = vmatprep.subr.mxu1 %v10897_v54 }
 0x379   :  { %13781 = vst [vmem:[#allocation33_spill] sm:$0xff] %v10926_v6  ;;  %4329 = vmatpush2.msra.mxu1 %v3909_v51 }
 0x37a   :  { %v3248_v13 = vpop.f32.mrf.mxu1  ;;  %4330 = vmatprep.subr.mxu1 %v10897_v54 }
 0x37b   :  { %v10937_v58 = vadd.f32 %v3248_v13, %v10672_v17  ;;  %v10939_v63 = vpop.f32.mrf.mxu0  ;;  %4331 = vmatpush2.msra.mxu1 %v3908_v26  ;;  %v3907_v17 = vld [vmem:[%s13646_s7 + $0x2b0] sm:$0xff]  ;;  %v3906_v13 = vld [vmem:[%s13646_s7 + $0x2a8] sm:$0xff]  ;;  %v3905_v26 = vld [vmem:[%s13646_s7 + $0x2a0] sm:$0xff] }
 0x37c   :  { %v3250_v27 = vpop.f32.mrf.mxu1  ;;  %4332 = vmatprep.subr.mxu1 %v10897_v54 }
 0x37d   :  { %v3395_v10 = vpop.f32.mrf.mxu0  ;;  %4333 = vmatpush2.msra.mxu1 %v3907_v17 }
 0x37e   :  { %v10945_v60 = vpop.f32.mrf.mxu1  ;;  %4334 = vmatprep.subr.mxu1 %v10897_v54 }
 0x37f   :  { %v10951_v37 = vpop.f32.mrf.mxu0  ;;  %4335 = vmatpush2.msra.mxu1 %v3906_v13 }
 0x380   :  { %v3255_v15 = vpop.f32.mrf.mxu1  ;;  %4336 = vmatprep.subr.mxu1 %v10897_v54 }
 0x381   :  { %v3400_v47 = vpop.f32.mrf.mxu0  ;;  %4337 = vmatpush2.msra.mxu1 %v3905_v26  ;;  %v3904_v15 = vld [vmem:[%s13646_s7 + $0x298] sm:$0xff] }
 0x382   :  { %v10957_v51 = vpop.f32.mrf.mxu1  ;;  %4338 = vmatprep.subr.mxu1 %v10897_v54 }
 0x383   :  { %v10962_v27 = vpop.f32.mrf.mxu0  ;;  %4339 = vmatpush2.msra.mxu1 %v3904_v15 }
 0x384   :  { %v3260_v10 = vpop.f32.mrf.mxu1  ;;  %4340 = vmatprep.subr.mxu1 %v10897_v54 }
 0x385   :  { %v3405_v17 = vpop.f32.mrf.mxu0  ;;  %4341 = vmatpush2.msra.mxu1 %v3903_v12 }
 0x386   :  { %v10969_v47 = vpop.f32.mrf.mxu1  ;;  %4342 = vmatprep.subr.mxu1 %v10897_v54 }
 0x387   :  { %v10971_v13 = vpop.f32.mrf.mxu0  ;;  %4343 = vmatpush2.msra.mxu1 %v3902_v9 }
 0x388   :  { %v3265_v10 = vpop.f32.mrf.mxu1  ;;  %4344 = vmatprep.subr.mxu1 %v10897_v54 }
 0x389   :  { %v3410_v26 = vpop.f32.mrf.mxu0  ;;  %4345 = vmatpush2.msra.mxu1 %v3901_v46  ;;  %v10992_v10 = vld [vmem:[%s13646_s7 + $0x478] sm:$0xff] }
 0x38a   :  { %v10978_v17 = vpop.f32.mrf.mxu1  ;;  %13782 = vst [vmem:[#allocation34_spill] sm:$0xff] %v10992_v10  ;;  %7363 = vmatprep.subr.mxu1 %v10992_v10 }
 0x38b   :  { %v10983_v15 = vpop.f32.mrf.mxu0 }
 0x38c   :  { %v3270_v40 = vpop.f32.mrf.mxu1 }
 0x38d   :  { %v3415_v12 = vpop.f32.mrf.mxu0 }
 0x38e   :  { %v10994_v26 = vpop.f32.mrf.mxu1 }
 0x38f   :  { %v10997_v31 = vpop.f32.mrf.mxu0 }
 0x390   :  { %v3275_v9 = vpop.f32.mrf.mxu1 }
 0x391   :  { %v3420_v25 = vpop.f32.mrf.mxu0 }
 0x392   :  { %v10999_v28 = vpop.f32.mrf.mxu1 }
 0x393   :  { %v11001_v40 = vpop.f32.mrf.mxu0 }
 0x394   :  { %v3280_v7 = vpop.f32.mrf.mxu1 }
 0x395   :  { %v3425_v12 = vpop.f32.mrf.mxu0 }
 0x396   :  { %v11003_v46 = vpop.f32.mrf.mxu1 }
 0x397   :  { %v11005_v56 = vpop.f32.mrf.mxu0 }
 0x398   :  { %v3285_v48 = vpop.f32.mrf.mxu1 }
 0x399   :  { %v3430_v16 = vpop.f32.mrf.mxu0 }
 0x39a   :  { %v11007_v29 = vpop.f32.mrf.mxu1 }
 0x39b   :  { %v11009_v44 = vpop.f32.mrf.mxu0 }
 0x39c   :  { %v3290_v18 = vpop.f32.mrf.mxu1 }
 0x39d   :  { %v3435_v62 = vpop.f32.mrf.mxu0 }
 0x39e   :  { %v11011_v9 = vpop.f32.mrf.mxu1 }
 0x39f   :  { %v11013_v25 = vpop.f32.mrf.mxu0 }
 0x3a0   :  { %v3295_v52 = vpop.f32.mrf.mxu1 }
 0x3a1   :  { %v3440_v10 = vpop.f32.mrf.mxu0 }
 0x3a2   :  { %v11015_v7 = vpop.f32.mrf.mxu1 }
 0x3a3   :  { %v11017_v12 = vpop.f32.mrf.mxu0 }
 0x3a4   :  { %v3300_v42 = vpop.f32.mrf.mxu1 }
 0x3a5   :  { %v3445_v11 = vpop.f32.mrf.mxu0 }
 0x3a6   :  { %v11019_v48 = vpop.f32.mrf.mxu1 }
 0x3a7   :  { %v11021_v16 = vpop.f32.mrf.mxu0 }
 0x3a8   :  { %v3305_v61 = vpop.f32.mrf.mxu1 }
 0x3a9   :  { %v3450_v24 = vpop.f32.mrf.mxu0 }
 0x3aa   :  { %v11023_v18 = vpop.f32.mrf.mxu1 }
 0x3ab   :  { %13783 = vst [vmem:[#allocation35_spill] sm:$0xff] %v11023_v18  ;;  %v11025_v62 = vpop.f32.mrf.mxu0 }
 0x3ac   :  { %v3310_v38 = vpop.f32.mrf.mxu1 }
 0x3ad   :  { %v3455_v41 = vpop.f32.mrf.mxu0  ;;  %v3399_v38 = vadd.f32 %v10951_v37, %v10920_v0  ;;  %v3404_v0 = vadd.f32 %v10962_v27, %v10937_v58 }
 0x3ae   :  { %v11027_v52 = vpop.f32.mrf.mxu1 }
 0x3af   :  { %v11029_v10 = vpop.f32.mrf.mxu0 }
 0x3b0   :  { %v3315_v53 = vpop.f32.mrf.mxu1 }
 0x3b1   :  { %v3460_v6 = vpop.f32.mrf.mxu0  ;;  %v3394_v53 = vadd.f32 %v10939_v63, %v10906_v3  ;;  %v3264_v3 = vadd.f32 %v10969_v47, %v10729_v39 }
 0x3b2   :  { %v11031_v42 = vpop.f32.mrf.mxu1  ;;  %v3254_v6 = vadd.f32 %v10945_v60, %v10691_v45 }
 0x3b3   :  { %13784 = vst [vmem:[#allocation36_spill] sm:$0xff] %v11031_v42  ;;  %v11033_v11 = vpop.f32.mrf.mxu0  ;;  %v3419_v27 = vadd.f32 %v10997_v31, %v3264_v3 }
 0x3b4   :  { %13785 = vst [vmem:[#allocation37_spill] sm:$0xff] %v11033_v11  ;;  %v3320_v20 = vpop.f32.mrf.mxu1 }
 0x3b5   :  { %v3465_v23 = vpop.f32.mrf.mxu0 }
 0x3b6   :  { %v11035_v61 = vpop.f32.mrf.mxu1 }
 0x3b7   :  { %13786 = vst [vmem:[#allocation38_spill] sm:$0xff] %v11035_v61  ;;  %v11037_v24 = vpop.f32.mrf.mxu0  ;;  %v3409_v61 = vadd.f32 %v10971_v13, %v3254_v6  ;;  %v3259_v13 = vadd.f32 %v10957_v51, %v10710_v30  ;;  %v3274_v30 = vadd.f32 %v10994_v26, %v10777_v1  ;;  %v3269_v6 = vadd.f32 %v10978_v17, %v10750_v32 }
 0x3b8   :  { %13787 = vst [vmem:[#allocation39_spill] sm:$0xff] %v11037_v24  ;;  %v3325_v18 = vpop.f32.mrf.mxu1  ;;  %v3284_v32 = vadd.f32 %v11003_v46, %v10820_v21 }
 0x3b9   :  { %v3470_v41 = vpop.f32.mrf.mxu0 }
 0x3ba   :  { %v7338_v4 = vpop.f32.mrf.mxu1 }
 0x3bb   :  { %v11045_v42 = vpop.f32.mrf.mxu0  ;;  %v11047_v20 = vadd.f32 %v7338_v4, %v3399_v38 }
 0x3bc   :  { %v3548_v23 = vpop.f32.mrf.mxu1 }
 0x3bd   :  { %v3638_v18 = vmax.f32 %v11047_v20, 0.0  ;;  %v3475_v11 = vpop.f32.mrf.mxu0  ;;  %v11051_v24 = vadd.f32 %v3548_v23, %v3394_v53  ;;  %v3962_v20 = vld [vmem:[%s13646_s7 + $0x468] sm:$0xff] }
 0x3be   :  { %v7341_v37 = vpop.f32.mrf.mxu1 }
 0x3bf   :  { %v3656_v4 = vsel %vm2528_vm11, %v3638_v18, 0.0  ;;  %v3637_v45 = vmax.f32 %v11051_v24, 0.0  ;;  %v11062_v63 = vpop.f32.mrf.mxu0  ;;  %v11064_v60 = vadd.f32 %v7341_v37, %v3409_v61  ;;  %v3414_v61 = vadd.f32 %v10983_v15, %v3259_v13 }
 0x3c0   :  { %3674 = vst [vmem:[#allocation4 + $0x1b] sm:$0xff] %v3656_v4  ;;  %v3558_v58 = vpop.f32.mrf.mxu1  ;;  %v3429_v15 = vadd.f32 %v11005_v56, %v3274_v30  ;;  %v3424_v37 = vadd.f32 %v11001_v40, %v3269_v6  ;;  %v3279_v13 = vadd.f32 %v10999_v28, %v10800_v34  ;;  %v3727_v40 = vld [vmem:[#allocation4 + $0x2] sm:$0xff] }
 0x3c1   :  { %v3655_v39 = vsel %vm13788_vm14, %v3637_v45, 0.0  ;;  %v3640_v47 = vmax.f32 %v11064_v60, 0.0  ;;  %v11074_v11 = vadd.f32 %v3558_v58, %v3404_v0  ;;  %v3480_v38 = vpop.f32.mrf.mxu0  ;;  %vm13789_vm14 = vcmp.eq.s32.totalorder %v9913_v57, 1  ;;  %v3932_v34 = vld [vmem:[%s13646_s7 + $0x378] sm:$0xff]  ;;  %v3959_v60 = vld [vmem:[%s13646_s7 + $0x450] sm:$0xff] }
 0x3c2   :  { %3673 = vst [vmem:[#allocation4 + $0x13] sm:$0xff] %v3655_v39  ;;  %v7344_v41 = vpop.f32.mrf.mxu1  ;;  %v3434_v30 = vadd.f32 %v11009_v44, %v3279_v13 }
 0x3c3   :  { %v3658_v31 = vsel %vm2530_vm1, %v3640_v47, 0.0  ;;  %v3639_v51 = vmax.f32 %v11074_v11, 0.0  ;;  %v11084_v53 = vadd.f32 %v7344_v41, %v3419_v27  ;;  %v3439_v27 = vadd.f32 %v11013_v25, %v3284_v32 }
 0x3c4   :  { %3676 = vst [vmem:[#allocation4 + $0x2b] sm:$0xff] %v3658_v31  ;;  %v3568_v23 = vpop.f32.mrf.mxu1  ;;  %v3294_v25 = vadd.f32 %v11011_v9, %v10848_v43  ;;  %v3728_v43 = vld [vmem:[#allocation4 + $0xa] sm:$0xff] }
 0x3c5   :  { %v3657_v1 = vsel %vm13789_vm14, %v3639_v51, 0.0  ;;  %v3642_v26 = vmax.f32 %v11084_v53, 0.0  ;;  %v11094_v0 = vadd.f32 %v3568_v23, %v3414_v61 }
 0x3c6   :  { %3675 = vst [vmem:[#allocation4 + $0x23] sm:$0xff] %v3657_v1  ;;  %v7347_v3 = vpop.f32.mrf.mxu1  ;;  %v3289_v1 = vadd.f32 %v11007_v29, %v10837_v35  ;;  %v3449_v9 = vadd.f32 %v11021_v16, %v3294_v25  ;;  %v3931_v16 = vld [vmem:[%s13646_s7 + $0x370] sm:$0xff] }
 0x3c7   :  { %v3660_v56 = vsel %vm2532_vm7, %v3642_v26, 0.0  ;;  %v3641_v17 = vmax.f32 %v11094_v0, 0.0  ;;  %v11104_v4 = vadd.f32 %v7347_v3, %v3429_v15 }
 0x3c8   :  { %3678 = vst [vmem:[#allocation4 + $0x3b] sm:$0xff] %v3660_v56  ;;  %v3578_v58 = vpop.f32.mrf.mxu1  ;;  %v3444_v29 = vadd.f32 %v11017_v12, %v3289_v1 }
 0x3c9   :  { %v3659_v21 = vsel %vm2531_vm4, %v3641_v17, 0.0  ;;  %v3644_v46 = vmax.f32 %v11104_v4, 0.0  ;;  %v11114_v39 = vadd.f32 %v3578_v58, %v3424_v37  ;;  %v3711_v38 = vld [vmem:[#allocation4 + $0x11] sm:$0xff]  ;;  %v3712_v44 = vld [vmem:[#allocation4 + $0x19] sm:$0xff]  ;;  %v3304_v58 = vadd.f32 %v11019_v48, %v10873_v59 }
 0x3ca   :  { %v3729_v61 = vld [vmem:[#allocation4 + $0x12] sm:$0xff]  ;;  %3677 = vst [vmem:[#allocation4 + $0x33] sm:$0xff] %v3659_v21  ;;  %v7350_v28 = vpop.f32.mrf.mxu1  ;;  %4046 = vmatprep.mubr.f32.mxu1 %v3711_v38  ;;  %v11129_v15 = vld [vmem:[#allocation4 + $0x1a] sm:$0xff] }
 0x3cb   :  { %v3693_v41 = vld [vmem:[#allocation4 + $0x10] sm:$0xff]  ;;  %4191 = vmatprep.mubr.f32.mxu0 %v3729_v61  ;;  %v3662_v31 = vsel %vm2534_vm3, %v3644_v46, 0.0  ;;  %v3643_v6 = vmax.f32 %v11114_v39, 0.0  ;;  %v11127_v23 = vadd.f32 %v7350_v28, %v3439_v27  ;;  %v3694_v13 = vld [vmem:[#allocation4 + $0x18] sm:$0xff]  ;;  %v3459_v59 = vadd.f32 %v11029_v10, %v3304_v58 }
 0x3cc   :  { %4047 = vmatmul.mubr.f32.gmra.mxu1 %v3693_v41  ;;  %4192 = vmatmul.mubr.f32.vlgmr.msra.gmra.mxu0 %v3727_v40  ;;  %3680 = vst [vmem:[#allocation4 + $0x4b] sm:$0xff] %v3662_v31  ;;  %v3588_v37 = vpop.f32.mrf.mxu1  ;;  %v3299_v41 = vadd.f32 %v11015_v7, %v10859_v8  ;;  %v3930_v10 = vld [vmem:[%s13646_s7 + $0x368] sm:$0xff]  ;;  %v3314_v31 = vadd.f32 %v11027_v52, %v10895_v5  ;;  %v13793_v5 = vld [vmem:[#allocation39_spill] sm:$0xff] }
 0x3cd   :  { %4051 = vmatprep.mubr.f32.mxu1 %v3712_v44  ;;  %4196 = vmatprep.mubr.f32.mxu0 %v11129_v15  ;;  %v3661_v3 = vsel %vm2533_vm15, %v3643_v6, 0.0  ;;  %v3646_v32 = vmax.f32 %v11127_v23, 0.0  ;;  %v11140_v56 = vadd.f32 %v3588_v37, %v3434_v30  ;;  %v3713_v21 = vld [vmem:[#allocation4 + $0x21] sm:$0xff] }
 0x3ce   :  { %4438 = vmatpush1.msra.mxu0 %v3932_v34  ;;  %3679 = vst [vmem:[#allocation4 + $0x43] sm:$0xff] %v3661_v3  ;;  %v7353_v35 = vpop.f32.mrf.mxu1  ;;  %v11156_v38 = vld [vmem:[#allocation4 + $0x22] sm:$0xff]  ;;  %v3454_v25 = vadd.f32 %v11025_v62, %v3299_v41  ;;  %v3469_v52 = vadd.f32 %v13793_v5, %v3314_v31 }
 0x3cf   :  { %4439 = vmatprep.subr.mxu0 %v10897_v54  ;;  %v3664_v40 = vsel %vm2536_vm10, %v3646_v32, 0.0  ;;  %v3645_v27 = vmax.f32 %v11140_v56, 0.0  ;;  %v11154_v12 = vadd.f32 %v7353_v35, %v3449_v9  ;;  %v3695_v7 = vld [vmem:[#allocation4 + $0x20] sm:$0xff]  ;;  %v11183_v9 = vld [vmem:[#allocation4 + $0x2a] sm:$0xff] }
 0x3d0   :  { %4052 = vmatmul.mubr.f32.gmra.mxu1 %v3694_v13  ;;  %4197 = vmatmul.mubr.f32.gmra.mxu0 %v3728_v43  ;;  %3682 = vst [vmem:[#allocation4 + $0x5b] sm:$0xff] %v3664_v40  ;;  %v3598_v30 = vpop.f32.mrf.mxu1  ;;  %v3714_v43 = vld [vmem:[#allocation4 + $0x29] sm:$0xff] }
 0x3d1   :  { %4056 = vmatprep.mubr.f32.mxu1 %v3713_v21  ;;  %4201 = vmatprep.mubr.f32.mxu0 %v11156_v38  ;;  %v3663_v48 = vsel %vm2535_vm9, %v3645_v27, 0.0  ;;  %v3648_v28 = vmax.f32 %v11154_v12, 0.0  ;;  %v11167_v34 = vadd.f32 %v3598_v30, %v3444_v29  ;;  %v13791_v3 = vld [vmem:[#allocation31_spill] sm:$0xff]  ;;  %v13795_v21 = vld [vmem:[#allocation37_spill] sm:$0xff] }
 0x3d2   :  { %4440 = vmatpush1.msra.mxu0 %v3931_v16  ;;  %3681 = vst [vmem:[#allocation4 + $0x53] sm:$0xff] %v3663_v48  ;;  %v7356_v8 = vpop.f32.mrf.mxu1  ;;  %v13792_v29 = vld [vmem:[#allocation35_spill] sm:$0xff]  ;;  %v3929_v48 = vld [vmem:[%s13646_s7 + $0x360] sm:$0xff] }
 0x3d3   :  { %4441 = vmatprep.subr.mxu0 %v10897_v54  ;;  %v3666_v1 = vsel %vm2538_vm13, %v3648_v28, 0.0  ;;  %v3647_v37 = vmax.f32 %v11167_v34, 0.0  ;;  %v11181_v62 = vadd.f32 %v7356_v8, %v3459_v59  ;;  %v3309_v35 = vadd.f32 %v13792_v29, %v13791_v3  ;;  %v3696_v59 = vld [vmem:[#allocation4 + $0x28] sm:$0xff]  ;;  %v13796_v8 = vld [vmem:[#allocation33_spill] sm:$0xff] }
 0x3d4   :  { %4057 = vmatmul.mubr.f32.gmra.mxu1 %v3695_v7  ;;  %4202 = vmatmul.mubr.f32.gmra.mxu0 %v3729_v61  ;;  %3684 = vst [vmem:[#allocation4 + $0x6b] sm:$0xff] %v3666_v1  ;;  %v3608_v13 = vpop.f32.mrf.mxu1  ;;  %v13797_v7 = vld [vmem:[#allocation38_spill] sm:$0xff]  ;;  %v3715_v3 = vld [vmem:[#allocation4 + $0x31] sm:$0xff] }
 0x3d5   :  { %4061 = vmatprep.mubr.f32.mxu1 %v3714_v43  ;;  %4206 = vmatprep.mubr.f32.mxu0 %v11183_v9  ;;  %v3665_v58 = vsel %vm2537_vm12, %v3647_v37, 0.0  ;;  %v3650_v61 = vmax.f32 %v11181_v62, 0.0  ;;  %v11194_v40 = vadd.f32 %v3608_v13, %v3454_v25  ;;  %v3464_v41 = vadd.f32 %v13795_v21, %v3309_v35  ;;  %v3733_v29 = vld [vmem:[#allocation4 + $0x32] sm:$0xff]  ;;  %v3771_v0 = vld [vmem:[#allocation4 + $0x44] sm:$0xff] }
 0x3d6   :  { %4442 = vmatpush1.msra.mxu0 %v3930_v10  ;;  %3683 = vst [vmem:[#allocation4 + $0x63] sm:$0xff] %v3665_v58  ;;  %v7359_v30 = vpop.f32.mrf.mxu1  ;;  %v3324_v31 = vadd.f32 %v13797_v7, %v13796_v8  ;;  %v13799_v35 = vld [vmem:[#allocation32_spill] sm:$0xff] }
 0x3d7   :  { %4443 = vmatprep.subr.mxu0 %v10897_v54  ;;  %v3668_v25 = vsel %vm2540_vm2, %v3650_v61, 0.0  ;;  %v3649_v10 = vmax.f32 %v11194_v40, 0.0  ;;  %v11208_v43 = vadd.f32 %v7359_v30, %v3469_v52  ;;  %v13800_v13 = vld [vmem:[#allocation36_spill] sm:$0xff] }
 0x3d8   :  { %4062 = vmatmul.mubr.f32.gmra.mxu1 %v3696_v59  ;;  %4207 = vmatmul.mubr.f32.gmra.mxu0 %v11129_v15  ;;  %v3319_v5 = vadd.f32 %v13800_v13, %v13799_v35  ;;  %3686 = vst [vmem:[#allocation4 + $0x7b] sm:$0xff] %v3668_v25  ;;  %v3618_v58 = vpop.f32.mrf.mxu1  ;;  %v3479_v21 = vadd.f32 %v11062_v63, %v3324_v31  ;;  %v3697_v7 = vld [vmem:[#allocation4 + $0x30] sm:$0xff]  ;;  %v3928_v25 = vld [vmem:[%s13646_s7 + $0x358] sm:$0xff]  ;;  %v3734_v13 = vld [vmem:[#allocation4 + $0x3a] sm:$0xff] }
 0x3d9   :  { %4066 = vmatprep.mubr.f32.mxu1 %v3715_v3  ;;  %4211 = vmatprep.mubr.f32.mxu0 %v3733_v29  ;;  %v3667_v52 = vsel %vm2539_vm0, %v3649_v10, 0.0  ;;  %v13693_v30 = vmax.f32 %v11208_v43, 0.0  ;;  %v11219_v59 = vadd.f32 %v3618_v58, %v3464_v41  ;;  %v3769_v11 = vld [vmem:[#allocation4 + $0x34] sm:$0xff]  ;;  %v3772_v53 = vld [vmem:[#allocation4 + $0x4c] sm:$0xff] }
 0x3da   :  { %4444 = vmatpush1.msra.mxu0 %v3929_v48  ;;  %3685 = vst [vmem:[#allocation4 + $0x73] sm:$0xff] %v3667_v52  ;;  %v7362_v15 = vpop.f32.mrf.mxu1  ;;  %v3474_v63 = vadd.f32 %v11045_v42, %v3319_v5  ;;  %v3716_v48 = vld [vmem:[#allocation4 + $0x39] sm:$0xff] }
 0x3db   :  { %4445 = vmatprep.subr.mxu0 %v10897_v54  ;;  %v3670_v3 = vsel %vm2542_vm6, %v13693_v30, 0.0  ;;  %v3651_v41 = vmax.f32 %v11219_v59, 0.0  ;;  %v11231_v35 = vadd.f32 %v7362_v15, %v3479_v21  ;;  %v3927_v42 = vld [vmem:[%s13646_s7 + $0x350] sm:$0xff]  ;;  %v3926_v30 = vld [vmem:[%s13646_s7 + $0x348] sm:$0xff] }
 0x3dc   :  { %4067 = vmatmul.mubr.f32.gmra.mxu1 %v3697_v7  ;;  %4212 = vmatmul.mubr.f32.gmra.mxu0 %v11156_v38  ;;  %3688 = vst [vmem:[#allocation4 + $0x8b] sm:$0xff] %v3670_v3  ;;  %v3628_v58 = vpop.f32.mrf.mxu1  ;;  %v3698_v38 = vld [vmem:[#allocation4 + $0x38] sm:$0xff] }
 0x3dd   :  { %4071 = vmatprep.mubr.f32.mxu1 %v3716_v48  ;;  %4216 = vmatprep.mubr.f32.mxu0 %v3734_v13  ;;  %v3669_v52 = vsel %vm2541_vm5, %v3651_v41, 0.0  ;;  %v3654_v21 = vmax.f32 %v11231_v35, 0.0  ;;  %v11242_v15 = vadd.f32 %v3628_v58, %v3474_v63  ;;  %v3735_v63 = vld [vmem:[#allocation4 + $0x42] sm:$0xff]  ;;  %v3773_v39 = vld [vmem:[#allocation4 + $0x54] sm:$0xff] }
 0x3de   :  { %4446 = vmatpush1.msra.mxu0 %v3928_v25  ;;  %3687 = vst [vmem:[#allocation4 + $0x83] sm:$0xff] %v3669_v52  ;;  %v3717_v25 = vld [vmem:[#allocation4 + $0x41] sm:$0xff]  ;;  %v3808_v35 = vld [vmem:[#allocation4 + $0x4e] sm:$0xff] }
 0x3df   :  { %4447 = vmatprep.subr.mxu0 %v10897_v54  ;;  %v3672_v3 = vsel %vm2544_vm8, %v3654_v21, 0.0  ;;  %v3653_v48 = vmax.f32 %v11242_v15, 0.0  ;;  %v13805_v58 = vld [vmem:[#allocation27_spill] sm:$0xff]  ;;  %v3774_v4 = vld [vmem:[#allocation4 + $0x5c] sm:$0xff] }
 0x3e0   :  { %4448 = vmatpush1.msra.mxu0 %v3927_v42  ;;  %4072 = vmatmul.mubr.f32.gmra.mxu1 %v3698_v38  ;;  %3690 = vst [vmem:[#allocation4 + $0x9b] sm:$0xff] %v3672_v3  ;;  %vm13806_vm14 = vcmp.eq.s32.totalorder %v13805_v58, 1  ;;  %v3925_v42 = vld [vmem:[%s13646_s7 + $0x340] sm:$0xff]  ;;  %v3699_v38 = vld [vmem:[#allocation4 + $0x40] sm:$0xff]  ;;  %v3924_v3 = vld [vmem:[%s13646_s7 + $0x338] sm:$0xff] }
 0x3e1   :  { %4217 = vmatmul.mubr.f32.gmra.mxu0 %v11183_v9  ;;  %4449 = vmatprep.subr.mxu0 %v10897_v54  ;;  %v3671_v52 = vsel %vm13806_vm14, %v3653_v48, 0.0  ;;  %v3718_v9 = vld [vmem:[#allocation4 + $0x49] sm:$0xff]  ;;  %vm13807_vm14 = vcmp.eq.s32.totalorder %v9861_v33, 1  ;;  %v3777_v34 = vld [vmem:[#allocation4 + $0x74] sm:$0xff] }
 0x3e2   :  { %4076 = vmatprep.mubr.f32.mxu1 %v3717_v25  ;;  %4221 = vmatprep.mubr.f32.mxu0 %v3735_v63  ;;  %3689 = vst [vmem:[#allocation4 + $0x93] sm:$0xff] %v3671_v52  ;;  %v3736_v25 = vld [vmem:[#allocation4 + $0x4a] sm:$0xff]  ;;  %v3923_v52 = vld [vmem:[%s13646_s7 + $0x330] sm:$0xff] }
 0x3e3   :  { %4450 = vmatpush1.msra.mxu0 %v3926_v30  ;;  %v3700_v30 = vld [vmem:[#allocation4 + $0x48] sm:$0xff] }
 0x3e4   :  { %4451 = vmatprep.subr.mxu0 %v10897_v54  ;;  %4077 = vmatmul.mubr.f32.gmra.mxu1 %v3699_v38  ;;  %v3719_v38 = vld [vmem:[#allocation4 + $0x51] sm:$0xff]  ;;  %v3775_v56 = vld [vmem:[#allocation4 + $0x64] sm:$0xff] }
 0x3e5   :  { %4452 = vmatpush1.msra.mxu0 %v3925_v42  ;;  %4081 = vmatprep.mubr.f32.mxu1 %v3718_v9  ;;  %v3922_v42 = vld [vmem:[%s13646_s7 + $0x328] sm:$0xff]  ;;  %v3921_v9 = vld [vmem:[%s13646_s7 + $0x320] sm:$0xff]  ;;  %v3779_v40 = vld [vmem:[#allocation4 + $0x84] sm:$0xff] }
 0x3e6   :  { %4222 = vmatmul.mubr.f32.gmra.mxu0 %v3733_v29  ;;  %4453 = vmatprep.subr.mxu0 %v10897_v54  ;;  %v3737_v29 = vld [vmem:[#allocation4 + $0x52] sm:$0xff]  ;;  %v3778_v12 = vld [vmem:[#allocation4 + $0x7c] sm:$0xff] }
 0x3e7   :  { %4226 = vmatprep.mubr.f32.mxu0 %v3736_v25  ;;  %4454 = vmatpush1.msra.mxu0 %v3924_v3  ;;  %v3701_v3 = vld [vmem:[#allocation4 + $0x50] sm:$0xff] }
 0x3e8   :  { %4455 = vmatprep.subr.mxu0 %v10897_v54  ;;  %4082 = vmatmul.mubr.f32.gmra.mxu1 %v3700_v30  ;;  %v3720_v30 = vld [vmem:[#allocation4 + $0x59] sm:$0xff]  ;;  %v3776_v23 = vld [vmem:[#allocation4 + $0x6c] sm:$0xff] }
 0x3e9   :  { %4456 = vmatpush1.msra.mxu0 %v3923_v52  ;;  %4086 = vmatprep.mubr.f32.mxu1 %v3719_v38  ;;  %v3920_v52 = vld [vmem:[%s13646_s7 + $0x318] sm:$0xff]  ;;  %v3919_v38 = vld [vmem:[%s13646_s7 + $0x310] sm:$0xff]  ;;  %v3781_v59 = vld [vmem:[#allocation4 + $0x94] sm:$0xff] }
 0x3ea   :  { %4227 = vmatmul.mubr.f32.gmra.mxu0 %v3734_v13  ;;  %4457 = vmatprep.subr.mxu0 %v10897_v54  ;;  %v3738_v13 = vld [vmem:[#allocation4 + $0x5a] sm:$0xff]  ;;  %v3780_v62 = vld [vmem:[#allocation4 + $0x8c] sm:$0xff] }
 0x3eb   :  { %4231 = vmatprep.mubr.f32.mxu0 %v3737_v29  ;;  %4458 = vmatpush1.msra.mxu0 %v3922_v42  ;;  %v3702_v42 = vld [vmem:[#allocation4 + $0x58] sm:$0xff]  ;;  %v3804_v15 = vld [vmem:[#allocation4 + $0x2e] sm:$0xff] }
 0x3ec   :  { %4459 = vmatprep.subr.mxu0 %v10897_v54  ;;  %4087 = vmatmul.mubr.f32.gmra.mxu1 %v3701_v3  ;;  %v3721_v3 = vld [vmem:[#allocation4 + $0x61] sm:$0xff] }
 0x3ed   :  { %4460 = vmatpush1.msra.mxu0 %v3921_v9  ;;  %4091 = vmatprep.mubr.f32.mxu1 %v3720_v30  ;;  %v3918_v9 = vld [vmem:[%s13646_s7 + $0x308] sm:$0xff]  ;;  %v3917_v30 = vld [vmem:[%s13646_s7 + $0x300] sm:$0xff] }
 0x3ee   :  { %4232 = vmatmul.mubr.f32.gmra.mxu0 %v3735_v63  ;;  %4461 = vmatprep.subr.mxu0 %v10897_v54  ;;  %v3739_v63 = vld [vmem:[#allocation4 + $0x62] sm:$0xff] }
 0x3ef   :  { %4236 = vmatprep.mubr.f32.mxu0 %v3738_v13  ;;  %4462 = vmatpush1.msra.mxu0 %v3920_v52  ;;  %v3703_v52 = vld [vmem:[#allocation4 + $0x60] sm:$0xff] }
 0x3f0   :  { %4463 = vmatprep.subr.mxu0 %v10897_v54  ;;  %4092 = vmatmul.mubr.f32.gmra.mxu1 %v3702_v42  ;;  %v3722_v42 = vld [vmem:[#allocation4 + $0x69] sm:$0xff] }
 0x3f1   :  { %4464 = vmatpush1.msra.mxu0 %v3919_v38  ;;  %4096 = vmatprep.mubr.f32.mxu1 %v3721_v3  ;;  %v3948_v38 = vld [vmem:[%s13646_s7 + $0x3f8] sm:$0xff]  ;;  %v3947_v3 = vld [vmem:[%s13646_s7 + $0x3f0] sm:$0xff] }
 0x3f2   :  { %4237 = vmatmul.mubr.f32.gmra.mxu0 %v3736_v25  ;;  %4465 = vmatprep.subr.mxu0 %v10897_v54  ;;  %v3740_v25 = vld [vmem:[#allocation4 + $0x6a] sm:$0xff] }
 0x3f3   :  { %4241 = vmatprep.mubr.f32.mxu0 %v3739_v63  ;;  %4466 = vmatpush1.msra.mxu0 %v3918_v9  ;;  %v3704_v9 = vld [vmem:[#allocation4 + $0x68] sm:$0xff] }
 0x3f4   :  { %4467 = vmatprep.subr.mxu0 %v10897_v54  ;;  %4097 = vmatmul.mubr.f32.gmra.mxu1 %v3703_v52  ;;  %v3723_v52 = vld [vmem:[#allocation4 + $0x71] sm:$0xff] }
 0x3f5   :  { %4468 = vmatpush1.msra.mxu0 %v3917_v30  ;;  %4101 = vmatprep.mubr.f32.mxu1 %v3722_v42  ;;  %v3946_v30 = vld [vmem:[%s13646_s7 + $0x3e8] sm:$0xff]  ;;  %v3945_v42 = vld [vmem:[%s13646_s7 + $0x3e0] sm:$0xff] }
 0x3f6   :  { %4242 = vmatmul.mubr.f32.gmra.mxu0 %v3737_v29  ;;  %4469 = vmatprep.subr.mxu0 %v10897_v54  ;;  %v3741_v29 = vld [vmem:[#allocation4 + $0x72] sm:$0xff] }
 0x3f7   :  { %4246 = vmatprep.mubr.f32.mxu0 %v3740_v25  ;;  %4470 = vmatpush2.msra.mxu0 %v3948_v38  ;;  %v3705_v38 = vld [vmem:[#allocation4 + $0x70] sm:$0xff] }
 0x3f8   :  { %4471 = vmatprep.subr.mxu0 %v10897_v54  ;;  %4102 = vmatmul.mubr.f32.gmra.mxu1 %v3704_v9  ;;  %v3724_v9 = vld [vmem:[#allocation4 + $0x79] sm:$0xff] }
 0x3f9   :  { %4472 = vmatpush2.msra.mxu0 %v3947_v3  ;;  %4106 = vmatprep.mubr.f32.mxu1 %v3723_v52  ;;  %v3944_v3 = vld [vmem:[%s13646_s7 + $0x3d8] sm:$0xff]  ;;  %v3943_v52 = vld [vmem:[%s13646_s7 + $0x3d0] sm:$0xff] }
 0x3fa   :  { %4247 = vmatmul.mubr.f32.gmra.mxu0 %v3738_v13  ;;  %4473 = vmatprep.subr.mxu0 %v10897_v54  ;;  %v3742_v13 = vld [vmem:[#allocation4 + $0x7a] sm:$0xff] }
 0x3fb   :  { %4251 = vmatprep.mubr.f32.mxu0 %v3741_v29  ;;  %4474 = vmatpush2.msra.mxu0 %v3946_v30  ;;  %v3706_v30 = vld [vmem:[#allocation4 + $0x78] sm:$0xff] }
 0x3fc   :  { %4475 = vmatprep.subr.mxu0 %v10897_v54  ;;  %4107 = vmatmul.mubr.f32.gmra.mxu1 %v3705_v38  ;;  %v3725_v38 = vld [vmem:[#allocation4 + $0x81] sm:$0xff] }
 0x3fd   :  { %4476 = vmatpush2.msra.mxu0 %v3945_v42  ;;  %4111 = vmatprep.mubr.f32.mxu1 %v3724_v9  ;;  %v3942_v42 = vld [vmem:[%s13646_s7 + $0x3c8] sm:$0xff]  ;;  %v3941_v9 = vld [vmem:[%s13646_s7 + $0x3c0] sm:$0xff] }
 0x3fe   :  { %4252 = vmatmul.mubr.f32.gmra.mxu0 %v3739_v63  ;;  %4477 = vmatprep.subr.mxu0 %v10897_v54  ;;  %v3743_v63 = vld [vmem:[#allocation4 + $0x82] sm:$0xff] }
 0x3ff   :  { %4256 = vmatprep.mubr.f32.mxu0 %v3742_v13  ;;  %4478 = vmatpush2.msra.mxu0 %v3944_v3  ;;  %v3707_v3 = vld [vmem:[#allocation4 + $0x80] sm:$0xff] }
 0x400   :  { %4479 = vmatprep.subr.mxu0 %v10897_v54  ;;  %4112 = vmatmul.mubr.f32.gmra.mxu1 %v3706_v30  ;;  %v3726_v30 = vld [vmem:[#allocation4 + $0x89] sm:$0xff] }
 0x401   :  { %4480 = vmatpush2.msra.mxu0 %v3943_v52  ;;  %4116 = vmatprep.mubr.f32.mxu1 %v3725_v38  ;;  %v3940_v52 = vld [vmem:[%s13646_s7 + $0x3b8] sm:$0xff]  ;;  %v3939_v38 = vld [vmem:[%s13646_s7 + $0x3b0] sm:$0xff] }
 0x402   :  { %4257 = vmatmul.mubr.f32.gmra.mxu0 %v3740_v25  ;;  %4481 = vmatprep.subr.mxu0 %v10897_v54  ;;  %v3744_v25 = vld [vmem:[#allocation4 + $0x8a] sm:$0xff] }
 0x403   :  { %4261 = vmatprep.mubr.f32.mxu0 %v3743_v63  ;;  %4482 = vmatpush2.msra.mxu0 %v3942_v42  ;;  %v3708_v42 = vld [vmem:[#allocation4 + $0x88] sm:$0xff] }
 0x404   :  { %4483 = vmatprep.subr.mxu0 %v10897_v54  ;;  %4117 = vmatmul.mubr.f32.gmra.mxu1 %v3707_v3  ;;  %v3765_v3 = vld [vmem:[#allocation4 + $0x14] sm:$0xff] }
 0x405   :  { %4484 = vmatpush2.msra.mxu0 %v3941_v9  ;;  %4121 = vmatprep.mubr.f32.mxu1 %v3726_v30  ;;  %v3938_v9 = vld [vmem:[%s13646_s7 + $0x3a8] sm:$0xff]  ;;  %v3937_v30 = vld [vmem:[%s13646_s7 + $0x3a0] sm:$0xff] }
 0x406   :  { %4262 = vmatmul.mubr.f32.gmra.mxu0 %v3741_v29  ;;  %4485 = vmatprep.subr.mxu0 %v10897_v54  ;;  %v3745_v29 = vld [vmem:[#allocation4 + $0x92] sm:$0xff] }
 0x407   :  { %4266 = vmatprep.mubr.f32.mxu0 %v3744_v25  ;;  %4486 = vmatpush2.msra.mxu0 %v3940_v52  ;;  %v11342_v52 = vpop.f32.mrf.mxu1 }
 0x408   :  { %4487 = vmatprep.subr.mxu0 %v10897_v54  ;;  %4122 = vmatmul.mubr.f32.gmra.mxu1 %v3708_v42 }
 0x409   :  { %4488 = vmatpush2.msra.mxu0 %v3939_v38  ;;  %4346 = vmatprep.mubr.f32.mxu1 %v3765_v3  ;;  %v3766_v38 = vld [vmem:[#allocation4 + $0x1c] sm:$0xff]  ;;  %v4040_v42 = vpop.f32.mrf.mxu1 }
 0x40a   :  { %4267 = vmatmul.mubr.f32.gmra.mxu0 %v3742_v13  ;;  %4489 = vmatprep.subr.mxu0 %v10897_v54  ;;  %v3936_v13 = vld [vmem:[%s13646_s7 + $0x398] sm:$0xff]  ;;  %v3746_v3 = vld [vmem:[#allocation4 + $0x9a] sm:$0xff]  ;;  %v3933_v42 = vld [vmem:[%s13646_s7 + $0x380] sm:$0xff] }
 0x40b   :  { %4271 = vmatprep.mubr.f32.mxu0 %v3745_v29  ;;  %4490 = vmatpush2.msra.mxu0 %v3938_v9  ;;  %v3935_v9 = vld [vmem:[%s13646_s7 + $0x390] sm:$0xff]  ;;  %v11356_v24 = vpop.f32.mrf.mxu1  ;;  %v3934_v29 = vld [vmem:[%s13646_s7 + $0x388] sm:$0xff] }
 0x40c   :  { %4491 = vmatprep.subr.mxu0 %v10897_v54  ;;  %7604 = vmatmul.mubr.msk.f32.vlgmr.msra.gmra.mxu1 %vm13807_vm14, %v3637_v45  ;;  %v13808_v45 = vld [vmem:[#allocation34_spill] sm:$0xff]  ;;  %vm13809_vm14 = vcmp.eq.s32.totalorder %v9913_v57, 1 }
 0x40d   :  { %4492 = vmatpush2.msra.mxu0 %v3937_v30  ;;  %4351 = vmatprep.mubr.f32.mxu1 %v3766_v38  ;;  %v3963_v30 = vld [vmem:[%s13646_s7 + $0x470] sm:$0xff] }
 0x40e   :  { %4272 = vmatmul.mubr.f32.gmra.mxu0 %v3743_v63  ;;  %4493 = vmatprep.subr.mxu0 %v10897_v54  ;;  %v4045_v63 = vpop.f32.mrf.mxu1  ;;  %v3767_v38 = vld [vmem:[#allocation4 + $0x24] sm:$0xff] }
 0x40f   :  { %4276 = vmatprep.mubr.f32.mxu0 %v3746_v3  ;;  %4494 = vmatpush2.msra.mxu0 %v3936_v13  ;;  %v3785_v13 = vld [vmem:[#allocation4 + $0x25] sm:$0xff]  ;;  %v3961_v3 = vld [vmem:[%s13646_s7 + $0x460] sm:$0xff] }
 0x410   :  { %7364 = vmatpush3.msra.mxu1 %v13808_v45  ;;  %4495 = vmatprep.subr.mxu0 %v10897_v54  ;;  %v3789_v45 = vld [vmem:[#allocation4 + $0x45] sm:$0xff]  ;;  %v3791_v63 = vld [vmem:[#allocation4 + $0x55] sm:$0xff] }
 0x411   :  { %4496 = vmatpush2.msra.mxu0 %v3935_v9  ;;  %7605 = vmatmul.mubr.msk.f32.gmra.mxu1 %vm2528_vm11, %v3638_v18  ;;  %v3768_v18 = vld [vmem:[#allocation4 + $0x2c] sm:$0xff]  ;;  %v3787_v9 = vld [vmem:[#allocation4 + $0x35] sm:$0xff] }
 0x412   :  { %4277 = vmatmul.mubr.f32.gmra.mxu0 %v3744_v25  ;;  %4497 = vmatprep.subr.mxu0 %v10897_v54  ;;  %v3786_v25 = vld [vmem:[#allocation4 + $0x2d] sm:$0xff] }
 0x413   :  { %4356 = vmatprep.mubr.f32.mxu1 %v3767_v38  ;;  %4498 = vmatpush2.msra.mxu0 %v3934_v29  ;;  %v3790_v29 = vld [vmem:[#allocation4 + $0x4d] sm:$0xff] }
 0x414   :  { %4501 = vmatprep.mubr.f32.mxu0 %v3785_v13  ;;  %7365 = vmatprep.subr.mxu1 %v3963_v30  ;;  %v3794_v13 = vld [vmem:[#allocation4 + $0x6d] sm:$0xff] }
 0x415   :  { %4499 = vmatprep.subr.mxu0 %v10897_v54  ;;  %7366 = vmatpush3.msra.mxu1 %v3963_v30  ;;  %v3792_v30 = vld [vmem:[#allocation4 + $0x5d] sm:$0xff] }
 0x416   :  { %4500 = vmatpush2.msra.mxu0 %v3933_v42  ;;  %7606 = vmatmul.mubr.msk.f32.gmra.mxu1 %vm13809_vm14, %v3639_v51  ;;  %v3960_v51 = vld [vmem:[%s13646_s7 + $0x458] sm:$0xff]  ;;  %v3795_v42 = vld [vmem:[#allocation4 + $0x75] sm:$0xff]  ;;  %vm13811_vm14 = vcmp.eq.s32.totalorder %v13805_v58, 1 }
 0x417   :  { %4502 = vmatmul.mubr.f32.vlgmr.msra.gmra.mxu0 %v3767_v38  ;;  %4361 = vmatprep.mubr.f32.mxu1 %v3768_v18  ;;  %v3793_v38 = vld [vmem:[#allocation4 + $0x65] sm:$0xff] }
 0x418   :  { %4506 = vmatprep.mubr.f32.mxu0 %v3786_v25  ;;  %7367 = vmatprep.subr.mxu1 %v3962_v20  ;;  %v3798_v25 = vld [vmem:[#allocation4 + $0x8d] sm:$0xff] }
 0x419   :  { %7368 = vmatpush3.msra.mxu1 %v3962_v20  ;;  %5100 = vmatprep.subr.mxu0 %v10897_v54  ;;  %v3770_v54 = vld [vmem:[#allocation4 + $0x3c] sm:$0xff] }
 0x41a   :  { %7607 = vmatmul.mubr.msk.f32.gmra.mxu1 %vm2530_vm1, %v3640_v47  ;;  %7369 = vmatprep.subr.mxu1 %v3961_v3  ;;  %v3788_v47 = vld [vmem:[#allocation4 + $0x3d] sm:$0xff] }
 0x41b   :  { %4507 = vmatmul.mubr.f32.gmra.mxu0 %v3768_v18  ;;  %4366 = vmatprep.mubr.f32.mxu1 %v3769_v11  ;;  %v3796_v20 = vld [vmem:[#allocation4 + $0x7d] sm:$0xff]  ;;  %v3797_v18 = vld [vmem:[#allocation4 + $0x85] sm:$0xff] }
 0x41c   :  { %4511 = vmatprep.mubr.f32.mxu0 %v3787_v9  ;;  %7370 = vmatpush3.msra.mxu1 %v3961_v3  ;;  %v13810_v3 = vmax.f32 %v11208_v43, 0.0  ;;  %v3800_v43 = vld [vmem:[#allocation4 + $0x9d] sm:$0xff]  ;;  %v3801_v9 = vld [vmem:[#allocation4 + $0xa5] sm:$0xff] }
 0x41d   :  { %7371 = vmatprep.subr.mxu1 %v3960_v51 }
 0x41e   :  { %7608 = vmatmul.mubr.msk.f32.gmra.mxu1 %vm2531_vm4, %v3641_v17  ;;  %v3958_v17 = vld [vmem:[%s13646_s7 + $0x448] sm:$0xff] }
 0x41f   :  { %4512 = vmatmul.mubr.f32.gmra.mxu0 %v3769_v11  ;;  %4371 = vmatprep.mubr.f32.mxu1 %v3770_v54  ;;  %v11474_v11 = vld [vmem:[#allocation4] sm:$0xff] }
 0x420   :  { %4516 = vmatprep.mubr.f32.mxu0 %v3788_v47  ;;  %7372 = vmatpush3.msra.mxu1 %v3960_v51  ;;  %v3782_v51 = vld [vmem:[#allocation4 + $0x9c] sm:$0xff]  ;;  %v3802_v47 = vld [vmem:[#allocation4 + $0xad] sm:$0xff] }
 0x421   :  { %7373 = vmatprep.subr.mxu1 %v3959_v60 }
 0x422   :  { %7609 = vmatmul.mubr.msk.f32.gmra.mxu1 %vm2532_vm7, %v3642_v26  ;;  %v3957_v26 = vld [vmem:[%s13646_s7 + $0x440] sm:$0xff] }
 0x423   :  { %4517 = vmatmul.mubr.f32.gmra.mxu0 %v3770_v54  ;;  %4376 = vmatprep.mubr.f32.mxu1 %v3771_v0  ;;  %v3803_v54 = vld [vmem:[#allocation4 + $0x26] sm:$0xff] }
 0x424   :  { %4521 = vmatprep.mubr.f32.mxu0 %v3789_v45  ;;  %7374 = vmatpush3.msra.mxu1 %v3959_v60  ;;  %v3783_v60 = vld [vmem:[#allocation4 + $0xa4] sm:$0xff] }
 0x425   :  { %7375 = vmatprep.subr.mxu1 %v3958_v17  ;;  %v3807_v45 = vld [vmem:[#allocation4 + $0x46] sm:$0xff] }
 0x426   :  { %7610 = vmatmul.mubr.msk.f32.gmra.mxu1 %vm2533_vm15, %v3643_v6  ;;  %v3956_v6 = vld [vmem:[%s13646_s7 + $0x438] sm:$0xff] }
 0x427   :  { %4522 = vmatmul.mubr.f32.gmra.mxu0 %v3771_v0  ;;  %4381 = vmatprep.mubr.f32.mxu1 %v3772_v53  ;;  %v3784_v0 = vld [vmem:[#allocation4 + $0xac] sm:$0xff] }
 0x428   :  { %4526 = vmatprep.mubr.f32.mxu0 %v3790_v29  ;;  %7376 = vmatpush3.msra.mxu1 %v3958_v17  ;;  %v3806_v17 = vld [vmem:[#allocation4 + $0x3e] sm:$0xff] }
 0x429   :  { %7377 = vmatprep.subr.mxu1 %v3957_v26  ;;  %v4962_v29 = vld [vmem:[%s13648_s9 + $0x68] sm:$0xff] }
 0x42a   :  { %7611 = vmatmul.mubr.msk.f32.gmra.mxu1 %vm2534_vm3, %v3644_v46  ;;  %v3955_v46 = vld [vmem:[%s13646_s7 + $0x430] sm:$0xff] }
 0x42b   :  { %4527 = vmatmul.mubr.f32.gmra.mxu0 %v3772_v53  ;;  %4386 = vmatprep.mubr.f32.mxu1 %v3773_v39  ;;  %v4963_v53 = vld [vmem:[%s13648_s9 + $0x70] sm:$0xff] }
 0x42c   :  { %4531 = vmatprep.mubr.f32.mxu0 %v3791_v63  ;;  %7378 = vmatpush3.msra.mxu1 %v3957_v26  ;;  %v3809_v26 = vld [vmem:[#allocation4 + $0x56] sm:$0xff]  ;;  %v3811_v63 = vld [vmem:[#allocation4 + $0x66] sm:$0xff] }
 0x42d   :  { %7379 = vmatprep.subr.mxu1 %v3956_v6 }
 0x42e   :  { %7612 = vmatmul.mubr.msk.f32.gmra.mxu1 %vm2535_vm9, %v3645_v27  ;;  %v3954_v27 = vld [vmem:[%s13646_s7 + $0x428] sm:$0xff] }
 0x42f   :  { %4532 = vmatmul.mubr.f32.gmra.mxu0 %v3773_v39  ;;  %4391 = vmatprep.mubr.f32.mxu1 %v3774_v4  ;;  %v3810_v39 = vld [vmem:[#allocation4 + $0x5e] sm:$0xff] }
 0x430   :  { %4536 = vmatprep.mubr.f32.mxu0 %v3792_v30  ;;  %7380 = vmatpush3.msra.mxu1 %v3956_v6  ;;  %v4961_v6 = vld [vmem:[%s13648_s9 + $0x60] sm:$0xff] }
 0x431   :  { %7381 = vmatprep.subr.mxu1 %v3955_v46  ;;  %v3813_v30 = vld [vmem:[#allocation4 + $0x76] sm:$0xff] }
 0x432   :  { %7613 = vmatmul.mubr.msk.f32.gmra.mxu1 %vm2536_vm10, %v3646_v32  ;;  %v3953_v32 = vld [vmem:[%s13646_s7 + $0x420] sm:$0xff] }
 0x433   :  { %4537 = vmatmul.mubr.f32.gmra.mxu0 %v3774_v4  ;;  %4396 = vmatprep.mubr.f32.mxu1 %v3775_v56  ;;  %v4960_v4 = vld [vmem:[%s13648_s9 + $0x58] sm:$0xff] }
 0x434   :  { %4541 = vmatprep.mubr.f32.mxu0 %v3793_v38  ;;  %7382 = vmatpush3.msra.mxu1 %v3955_v46  ;;  %v3812_v46 = vld [vmem:[#allocation4 + $0x6e] sm:$0xff]  ;;  %v4958_v38 = vld [vmem:[%s13648_s9 + $0x48] sm:$0xff] }
 0x435   :  { %7383 = vmatprep.subr.mxu1 %v3954_v27 }
 0x436   :  { %7614 = vmatmul.mubr.msk.f32.gmra.mxu1 %vm2537_vm12, %v3647_v37  ;;  %v3952_v37 = vld [vmem:[%s13646_s7 + $0x418] sm:$0xff] }
 0x437   :  { %4542 = vmatmul.mubr.f32.gmra.mxu0 %v3775_v56  ;;  %4401 = vmatprep.mubr.f32.mxu1 %v3776_v23  ;;  %v4959_v56 = vld [vmem:[%s13648_s9 + $0x50] sm:$0xff] }
 0x438   :  { %4546 = vmatprep.mubr.f32.mxu0 %v3794_v13  ;;  %7384 = vmatpush3.msra.mxu1 %v3954_v27  ;;  %v3814_v27 = vld [vmem:[#allocation4 + $0x7e] sm:$0xff]  ;;  %v4996_v13 = vld [vmem:[%s13648_s9 + $0x178] sm:$0xff] }
 0x439   :  { %7385 = vmatprep.subr.mxu1 %v3953_v32 }
 0x43a   :  { %7615 = vmatmul.mubr.msk.f32.gmra.mxu1 %vm2538_vm13, %v3648_v28  ;;  %v3951_v28 = vld [vmem:[%s13646_s7 + $0x410] sm:$0xff] }
 0x43b   :  { %4547 = vmatmul.mubr.f32.gmra.mxu0 %v3776_v23  ;;  %4406 = vmatprep.mubr.f32.mxu1 %v3777_v34  ;;  %v3815_v23 = vld [vmem:[#allocation4 + $0x86] sm:$0xff] }
 0x43c   :  { %4551 = vmatprep.mubr.f32.mxu0 %v3795_v42  ;;  %7386 = vmatpush3.msra.mxu1 %v3953_v32  ;;  %v4957_v32 = vld [vmem:[%s13648_s9 + $0x40] sm:$0xff]  ;;  %v4995_v42 = vld [vmem:[%s13648_s9 + $0x170] sm:$0xff] }
 0x43d   :  { %7387 = vmatprep.subr.mxu1 %v3952_v37 }
 0x43e   :  { %7616 = vmatmul.mubr.msk.f32.gmra.mxu1 %vm2539_vm0, %v3649_v10  ;;  %v3950_v10 = vld [vmem:[%s13646_s7 + $0x408] sm:$0xff] }
 0x43f   :  { %4552 = vmatmul.mubr.f32.gmra.mxu0 %v3777_v34  ;;  %4411 = vmatprep.mubr.f32.mxu1 %v3778_v12  ;;  %v3816_v34 = vld [vmem:[#allocation4 + $0x8e] sm:$0xff] }
 0x440   :  { %4556 = vmatprep.mubr.f32.mxu0 %v3796_v20  ;;  %7388 = vmatpush3.msra.mxu1 %v3952_v37  ;;  %v4956_v37 = vld [vmem:[%s13648_s9 + $0x38] sm:$0xff]  ;;  %v4994_v20 = vld [vmem:[%s13648_s9 + $0x168] sm:$0xff] }
 0x441   :  { %7389 = vmatprep.subr.mxu1 %v3951_v28 }
 0x442   :  { %7617 = vmatmul.mubr.msk.f32.gmra.mxu1 %vm2540_vm2, %v3650_v61  ;;  %v3949_v61 = vld [vmem:[%s13646_s7 + $0x400] sm:$0xff] }
 0x443   :  { %4557 = vmatmul.mubr.f32.gmra.mxu0 %v3778_v12  ;;  %4416 = vmatprep.mubr.f32.mxu1 %v3779_v40  ;;  %v3817_v12 = vld [vmem:[#allocation4 + $0x96] sm:$0xff] }
 0x444   :  { %4561 = vmatprep.mubr.f32.mxu0 %v3797_v18  ;;  %7390 = vmatpush3.msra.mxu1 %v3951_v28  ;;  %v3819_v28 = vld [vmem:[#allocation4 + $0xa6] sm:$0xff]  ;;  %v4993_v18 = vld [vmem:[%s13648_s9 + $0x160] sm:$0xff] }
 0x445   :  { %7391 = vmatprep.subr.mxu1 %v3950_v10 }
 0x446   :  { %7618 = vmatmul.mubr.msk.f32.gmra.mxu1 %vm2541_vm5, %v3651_v41  ;;  %v3799_v41 = vld [vmem:[#allocation4 + $0x95] sm:$0xff] }
 0x447   :  { %4562 = vmatmul.mubr.f32.gmra.mxu0 %v3779_v40  ;;  %4421 = vmatprep.mubr.f32.mxu1 %v3780_v62  ;;  %v4955_v40 = vld [vmem:[%s13648_s9 + $0x30] sm:$0xff] }
 0x448   :  { %4566 = vmatprep.mubr.f32.mxu0 %v3798_v25  ;;  %7392 = vmatpush3.msra.mxu1 %v3950_v10  ;;  %v3818_v10 = vld [vmem:[#allocation4 + $0x9e] sm:$0xff]  ;;  %v4992_v25 = vld [vmem:[%s13648_s9 + $0x158] sm:$0xff] }
 0x449   :  { %7393 = vmatprep.subr.mxu1 %v3949_v61 }
 0x44a   :  { %7619 = vmatmul.mubr.msk.f32.gmra.mxu1 %vm2542_vm6, %v13810_v3  ;;  %v4953_v3 = vld [vmem:[%s13648_s9 + $0x20] sm:$0xff] }
 0x44b   :  { %4567 = vmatmul.mubr.f32.gmra.mxu0 %v3780_v62  ;;  %4426 = vmatprep.mubr.f32.mxu1 %v3781_v59  ;;  %v4954_v62 = vld [vmem:[%s13648_s9 + $0x28] sm:$0xff] }
 0x44c   :  { %4571 = vmatprep.mubr.f32.mxu0 %v3799_v41  ;;  %7394 = vmatpush3.msra.mxu1 %v3949_v61  ;;  %v3820_v61 = vld [vmem:[#allocation4 + $0xae] sm:$0xff] }
 0x44d   :  { %5255 = vmatprep.subr.mxu1 %v11474_v11  ;;  %v4952_v41 = vld [vmem:[%s13648_s9 + $0x18] sm:$0xff] }
 0x44e   :  { %7620 = vmatmul.mubr.msk.f32.gmra.mxu1 %vm13811_vm14, %v3653_v48  ;;  %v3805_v48 = vld [vmem:[#allocation4 + $0x36] sm:$0xff]  ;;  %vm13827_vm14 = vcmp.eq.s32.totalorder %v9861_v33, 1 }
 0x44f   :  { %4572 = vmatmul.mubr.f32.gmra.mxu0 %v3781_v59  ;;  %4431 = vmatprep.mubr.f32.mxu1 %v3782_v51  ;;  %v4991_v59 = vld [vmem:[%s13648_s9 + $0x150] sm:$0xff] }
 0x450   :  { %4576 = vmatprep.mubr.f32.mxu0 %v3800_v43  ;;  %v4951_v43 = vld [vmem:[%s13648_s9 + $0x10] sm:$0xff] }
 0x452   :  { %7621 = vmatmul.mubr.msk.f32.gmra.mxu1 %vm2544_vm8, %v3654_v21  ;;  %v4964_v21 = vld [vmem:[%s13648_s9 + $0x78] sm:$0xff] }
 0x453   :  { %4577 = vmatmul.mubr.f32.gmra.mxu0 %v3782_v51  ;;  %7395 = vmatprep.mubr.f32.mxu1 %v3803_v54  ;;  %v4990_v51 = vld [vmem:[%s13648_s9 + $0x148] sm:$0xff] }
 0x454   :  { %4581 = vmatprep.mubr.f32.mxu0 %v3801_v9  ;;  %5101 = vmatpush1.msra.mxu0 %v4964_v21  ;;  %v4989_v9 = vld [vmem:[%s13648_s9 + $0x140] sm:$0xff]  ;;  %v4950_v54 = vld [vmem:[%s13648_s9 + $0x8] sm:$0xff] }
 0x455   :  { %5102 = vmatprep.subr.mxu0 %v11474_v11  ;;  %v4978_v21 = vld [vmem:[%s13648_s9 + $0xe8] sm:$0xff] }
 0x456   :  { %7396 = vmatmul.mubr.f32.vlgmr.msra.gmra.mxu1 %v3804_v15  ;;  %5103 = vmatpush1.msra.mxu0 %v4963_v53  ;;  %v4949_v15 = vld [vmem:[%s13648_s9] sm:$0xff] }
 0x457   :  { %4582 = vmatmul.mubr.f32.gmra.mxu0 %v3783_v60  ;;  %7398 = vmatprep.mubr.f32.mxu1 %v3805_v48  ;;  %v4988_v60 = vld [vmem:[%s13648_s9 + $0x138] sm:$0xff]  ;;  %v4977_v53 = vld [vmem:[%s13648_s9 + $0xe0] sm:$0xff] }
 0x458   :  { %4586 = vmatprep.mubr.f32.mxu0 %v3802_v47  ;;  %5104 = vmatprep.subr.mxu0 %v11474_v11  ;;  %v4987_v47 = vld [vmem:[%s13648_s9 + $0x130] sm:$0xff]  ;;  %v4980_v48 = vld [vmem:[%s13648_s9 + $0xf8] sm:$0xff] }
 0x459   :  { %5105 = vmatpush1.msra.mxu0 %v4962_v29  ;;  %5256 = vmatpush1.msra.mxu1 %v4996_v13  ;;  %v11621_v29 = vld [vmem:[%s13649_s8] ss:$0 sm:$0xff]  ;;  %v5011_v13 = vld [vmem:[%s13648_s9 + $0x1f0] sm:$0xff] }
 0x45a   :  { %7399 = vmatmul.mubr.f32.gmra.mxu1 %v3806_v17  ;;  %5106 = vmatprep.subr.mxu0 %v11474_v11  ;;  %v4979_v17 = vld [vmem:[%s13648_s9 + $0xf0] sm:$0xff] }
 0x45b   :  { %4587 = vmatmul.mubr.f32.gmra.mxu0 %v3784_v0  ;;  %7401 = vmatprep.mubr.f32.mxu1 %v3807_v45  ;;  %v4986_v0 = vld [vmem:[%s13648_s9 + $0x128] sm:$0xff]  ;;  %v4985_v45 = vld [vmem:[%s13648_s9 + $0x120] sm:$0xff] }
 0x45c   :  { %5107 = vmatpush1.msra.mxu0 %v4961_v6  ;;  %5257 = vmatprep.subr.mxu1 %v11474_v11  ;;  %v4976_v6 = vld [vmem:[%s13648_s9 + $0xd8] sm:$0xff] }
 0x45d   :  { %5108 = vmatprep.subr.mxu0 %v11474_v11  ;;  %5258 = vmatpush1.msra.mxu1 %v4995_v42 }
 0x45e   :  { %7402 = vmatmul.mubr.f32.gmra.mxu1 %v3808_v35  ;;  %5109 = vmatpush1.msra.mxu0 %v4960_v4  ;;  %v4984_v35 = vld [vmem:[%s13648_s9 + $0x118] sm:$0xff]  ;;  %v4039_v4 = vadd.f32 %v11621_v29, %v11342_v52  ;;  %v4974_v52 = vld [vmem:[%s13648_s9 + $0xc8] sm:$0xff] }
 0x45f   :  { %7404 = vmatprep.mubr.f32.mxu1 %v3809_v26  ;;  %5110 = vmatprep.subr.mxu0 %v11474_v11  ;;  %v4983_v26 = vld [vmem:[%s13648_s9 + $0x110] sm:$0xff] }
 0x460   :  { %5111 = vmatpush1.msra.mxu0 %v4959_v56  ;;  %5259 = vmatprep.subr.mxu1 %v11474_v11  ;;  %v4975_v56 = vld [vmem:[%s13648_s9 + $0xd0] sm:$0xff] }
 0x461   :  { %5112 = vmatprep.subr.mxu0 %v11474_v11  ;;  %5260 = vmatpush1.msra.mxu1 %v4994_v20 }
 0x462   :  { %7405 = vmatmul.mubr.f32.gmra.mxu1 %v3810_v39  ;;  %5113 = vmatpush1.msra.mxu0 %v4958_v38  ;;  %v4982_v39 = vld [vmem:[%s13648_s9 + $0x108] sm:$0xff] }
 0x463   :  { %7407 = vmatprep.mubr.f32.mxu1 %v3811_v63  ;;  %5114 = vmatprep.subr.mxu0 %v11474_v11  ;;  %v4981_v63 = vld [vmem:[%s13648_s9 + $0x100] sm:$0xff] }
 0x464   :  { %5115 = vmatpush1.msra.mxu0 %v4957_v32  ;;  %5261 = vmatprep.subr.mxu1 %v11474_v11 }
 0x465   :  { %5116 = vmatprep.subr.mxu0 %v11474_v11  ;;  %5262 = vmatpush1.msra.mxu1 %v4993_v18  ;;  %v5009_v18 = vld [vmem:[%s13648_s9 + $0x1e0] sm:$0xff] }
 0x466   :  { %7408 = vmatmul.mubr.f32.gmra.mxu1 %v3812_v46  ;;  %5117 = vmatpush1.msra.mxu0 %v4956_v37 }
 0x467   :  { %7410 = vmatprep.mubr.f32.mxu1 %v3813_v30  ;;  %5118 = vmatprep.subr.mxu0 %v11474_v11 }
 0x468   :  { %5119 = vmatpush1.msra.mxu0 %v4955_v40  ;;  %5263 = vmatprep.subr.mxu1 %v11474_v11 }
 0x469   :  { %5120 = vmatprep.subr.mxu0 %v11474_v11  ;;  %5264 = vmatpush1.msra.mxu1 %v4992_v25 }
 0x46a   :  { %7411 = vmatmul.mubr.f32.gmra.mxu1 %v3814_v27  ;;  %5121 = vmatpush1.msra.mxu0 %v4954_v62  ;;  %v5012_v27 = vld [vmem:[%s13648_s9 + $0x1f8] sm:$0xff] }
 0x46b   :  { %7413 = vmatprep.mubr.f32.mxu1 %v3815_v23  ;;  %5122 = vmatprep.subr.mxu0 %v11474_v11 }
 0x46c   :  { %5123 = vmatpush1.msra.mxu0 %v4953_v3  ;;  %5265 = vmatprep.subr.mxu1 %v11474_v11  ;;  %v5008_v3 = vld [vmem:[%s13648_s9 + $0x1d8] sm:$0xff] }
 0x46d   :  { %5124 = vmatprep.subr.mxu0 %v11474_v11  ;;  %5266 = vmatpush1.msra.mxu1 %v4991_v59  ;;  %v4971_v59 = vld [vmem:[%s13648_s9 + $0xb0] sm:$0xff] }
 0x46e   :  { %7414 = vmatmul.mubr.f32.gmra.mxu1 %v3816_v34  ;;  %5125 = vmatpush1.msra.mxu0 %v4952_v41  ;;  %v4044_v34 = vadd.f32 %v11621_v29, %v11356_v24  ;;  %v4972_v24 = vld [vmem:[%s13648_s9 + $0xb8] sm:$0xff] }
 0x46f   :  { %7416 = vmatprep.mubr.f32.mxu1 %v3817_v12  ;;  %5267 = vmatprep.subr.mxu1 %v11474_v11  ;;  %v4973_v12 = vld [vmem:[%s13648_s9 + $0xc0] sm:$0xff] }
 0x470   :  { %5268 = vmatpush1.msra.mxu1 %v4990_v51  ;;  %5126 = vmatprep.subr.mxu0 %v11474_v11  ;;  %v4970_v51 = vld [vmem:[%s13648_s9 + $0xa8] sm:$0xff] }
 0x471   :  { %5269 = vmatprep.subr.mxu1 %v11474_v11  ;;  %5127 = vmatpush1.msra.mxu0 %v4951_v43 }
 0x472   :  { %7417 = vmatmul.mubr.f32.gmra.mxu1 %v3818_v10  ;;  %5128 = vmatprep.subr.mxu0 %v11474_v11 }
 0x473   :  { %7419 = vmatprep.mubr.f32.mxu1 %v3819_v28  ;;  %5270 = vmatpush1.msra.mxu1 %v4989_v9  ;;  %v5010_v28 = vld [vmem:[%s13648_s9 + $0x1e8] sm:$0xff] }
 0x474   :  { %5271 = vmatprep.subr.mxu1 %v11474_v11  ;;  %5129 = vmatpush1.msra.mxu0 %v4950_v54  ;;  %v5007_v54 = vld [vmem:[%s13648_s9 + $0x1d0] sm:$0xff] }
 0x475   :  { %5272 = vmatpush1.msra.mxu1 %v4988_v60  ;;  %5130 = vmatprep.subr.mxu0 %v11474_v11 }
 0x476   :  { %7420 = vmatmul.mubr.f32.gmra.mxu1 %v3820_v61  ;;  %5273 = vmatprep.subr.mxu1 %v11474_v11 }
 0x477   :  { %5131 = vmatpush1.msra.mxu0 %v4949_v15  ;;  %5274 = vmatpush1.msra.mxu1 %v4987_v47 }
 0x478   :  { %5132 = vmatprep.subr.mxu0 %v11474_v11  ;;  %5275 = vmatprep.subr.mxu1 %v11474_v11 }
 0x479   :  { %5133 = vmatpush2.msra.mxu0 %v4980_v48  ;;  %5276 = vmatpush1.msra.mxu1 %v4986_v0 }
 0x47a   :  { %5134 = vmatprep.subr.mxu0 %v11474_v11  ;;  %5277 = vmatprep.subr.mxu1 %v11474_v11 }
 0x47b   :  { %5135 = vmatpush2.msra.mxu0 %v4979_v17  ;;  %5278 = vmatpush1.msra.mxu1 %v4985_v45 }
 0x47c   :  { %5136 = vmatprep.subr.mxu0 %v11474_v11  ;;  %5279 = vmatprep.subr.mxu1 %v11474_v11 }
 0x47d   :  { %5137 = vmatpush2.msra.mxu0 %v4978_v21  ;;  %5280 = vmatpush1.msra.mxu1 %v4984_v35 }
 0x47e   :  { %5138 = vmatprep.subr.mxu0 %v11474_v11  ;;  %5281 = vmatprep.subr.mxu1 %v11474_v11 }
 0x47f   :  { %5139 = vmatpush2.msra.mxu0 %v4977_v53  ;;  %5282 = vmatpush1.msra.mxu1 %v4983_v26 }
 0x480   :  { %5140 = vmatprep.subr.mxu0 %v11474_v11  ;;  %5283 = vmatprep.subr.mxu1 %v11474_v11 }
 0x481   :  { %5141 = vmatpush2.msra.mxu0 %v4976_v6  ;;  %5284 = vmatpush1.msra.mxu1 %v4982_v39  ;;  %v5006_v6 = vld [vmem:[%s13648_s9 + $0x1c8] sm:$0xff] }
 0x482   :  { %5142 = vmatprep.subr.mxu0 %v11474_v11  ;;  %5285 = vmatprep.subr.mxu1 %v11474_v11 }
 0x483   :  { %5286 = vmatpush1.msra.mxu1 %v4981_v63  ;;  %5143 = vmatpush2.msra.mxu0 %v4975_v56  ;;  %v4969_v63 = vld [vmem:[%s13648_s9 + $0xa0] sm:$0xff]  ;;  %v4968_v56 = vld [vmem:[%s13648_s9 + $0x98] sm:$0xff] }
 0x484   :  { %5287 = vmatprep.subr.mxu1 %v11474_v11  ;;  %5144 = vmatprep.subr.mxu0 %v11474_v11 }
 0x485   :  { %5288 = vmatpush2.msra.mxu1 %v5012_v27  ;;  %5145 = vmatpush2.msra.mxu0 %v4974_v52 }
 0x486   :  { %5289 = vmatprep.subr.mxu1 %v11474_v11  ;;  %5146 = vmatprep.subr.mxu0 %v11474_v11 }
 0x487   :  { %5290 = vmatpush2.msra.mxu1 %v5011_v13  ;;  %5147 = vmatpush2.msra.mxu0 %v4973_v12  ;;  %v4967_v13 = vld [vmem:[%s13648_s9 + $0x90] sm:$0xff]  ;;  %v4966_v12 = vld [vmem:[%s13648_s9 + $0x88] sm:$0xff] }
 0x488   :  { %5291 = vmatprep.subr.mxu1 %v11474_v11  ;;  %5148 = vmatprep.subr.mxu0 %v11474_v11 }
 0x489   :  { %5292 = vmatpush2.msra.mxu1 %v5010_v28  ;;  %5149 = vmatpush2.msra.mxu0 %v4972_v24 }
 0x48a   :  { %5293 = vmatprep.subr.mxu1 %v11474_v11  ;;  %5150 = vmatprep.subr.mxu0 %v11474_v11 }
 0x48b   :  { %5294 = vmatpush2.msra.mxu1 %v5009_v18  ;;  %5151 = vmatpush2.msra.mxu0 %v4971_v59  ;;  %v4965_v18 = vld [vmem:[%s13648_s9 + $0x80] sm:$0xff] }
 0x48c   :  { %v4048_v46 = vpop.f32.mrf.mxu1  ;;  %v4193_v30 = vpop.f32.mrf.mxu0  ;;  %5295 = vmatprep.subr.mxu1 %v11474_v11  ;;  %5152 = vmatprep.subr.mxu0 %v11474_v11  ;;  %v5001_v59 = vld [vmem:[%s13648_s9 + $0x1a0] sm:$0xff] }
 0x48d   :  { %v11645_v38 = vadd.f32 %v4193_v30, %v4039_v4  ;;  %v4049_v62 = vadd.f32 %v11621_v29, %v4048_v46  ;;  %5296 = vmatpush2.msra.mxu1 %v5008_v3  ;;  %5153 = vmatpush2.msra.mxu0 %v4970_v51  ;;  %v5005_v30 = vld [vmem:[%s13648_s9 + $0x1c0] sm:$0xff] }
 0x48e   :  { %v4050_v23 = vpop.f32.mrf.mxu1  ;;  %v4195_v32 = vpop.f32.mrf.mxu0  ;;  %5297 = vmatprep.subr.mxu1 %v11474_v11  ;;  %5154 = vmatprep.subr.mxu0 %v11474_v11 }
 0x48f   :  { %5298 = vmatpush2.msra.mxu1 %v5007_v54  ;;  %5155 = vmatpush2.msra.mxu0 %v4969_v63  ;;  %v5004_v32 = vld [vmem:[%s13648_s9 + $0x1b8] sm:$0xff]  ;;  %v5026_v63 = vld [vmem:[%s13648_s9 + $0x268] sm:$0xff] }
 0x490   :  { %v4053_v37 = vpop.f32.mrf.mxu1  ;;  %v4198_v42 = vpop.f32.mrf.mxu0  ;;  %5299 = vmatprep.subr.mxu1 %v11474_v11  ;;  %5156 = vmatprep.subr.mxu0 %v11474_v11  ;;  %v5000_v54 = vld [vmem:[%s13648_s9 + $0x198] sm:$0xff] }
 0x491   :  { %v11665_v20 = vadd.f32 %v4198_v42, %v4044_v34  ;;  %v4054_v60 = vadd.f32 %v11621_v29, %v4053_v37  ;;  %5300 = vmatpush2.msra.mxu1 %v5006_v6  ;;  %5157 = vmatpush2.msra.mxu0 %v4968_v56  ;;  %v5003_v42 = vld [vmem:[%s13648_s9 + $0x1b0] sm:$0xff]  ;;  %v4998_v6 = vld [vmem:[%s13648_s9 + $0x188] sm:$0xff]  ;;  %v4997_v56 = vld [vmem:[%s13648_s9 + $0x180] sm:$0xff] }
 0x492   :  { %v4055_v40 = vpop.f32.mrf.mxu1  ;;  %v4200_v10 = vpop.f32.mrf.mxu0  ;;  %5301 = vmatprep.subr.mxu1 %v11474_v11  ;;  %5158 = vmatprep.subr.mxu0 %v11474_v11 }
 0x493   :  { %5302 = vmatpush2.msra.mxu1 %v5005_v30  ;;  %5159 = vmatpush2.msra.mxu0 %v4967_v13  ;;  %v5002_v10 = vld [vmem:[%s13648_s9 + $0x1a8] sm:$0xff] }
 0x494   :  { %v4058_v61 = vpop.f32.mrf.mxu1  ;;  %v4203_v25 = vpop.f32.mrf.mxu0  ;;  %5303 = vmatprep.subr.mxu1 %v11474_v11  ;;  %5160 = vmatprep.subr.mxu0 %v11474_v11 }
 0x495   :  { %v11684_v41 = vadd.f32 %v4203_v25, %v4049_v62  ;;  %v4059_v45 = vadd.f32 %v11621_v29, %v4058_v61  ;;  %5304 = vmatpush2.msra.mxu1 %v5004_v32  ;;  %5161 = vmatpush2.msra.mxu0 %v4966_v12  ;;  %v4837_v62 = vld [vmem:[#allocation4 + $0x1] sm:$0xff] }
 0x496   :  { %v4060_v43 = vpop.f32.mrf.mxu1  ;;  %v4205_v9 = vpop.f32.mrf.mxu0  ;;  %5305 = vmatprep.subr.mxu1 %v11474_v11  ;;  %5162 = vmatprep.subr.mxu0 %v11474_v11 }
 0x497   :  { %5306 = vmatpush2.msra.mxu1 %v5003_v42  ;;  %5163 = vmatpush2.msra.mxu0 %v4965_v18 }
 0x498   :  { %v4063_v15 = vpop.f32.mrf.mxu1  ;;  %v4208_v47 = vpop.f32.mrf.mxu0  ;;  %5307 = vmatprep.subr.mxu1 %v11474_v11  ;;  %5164 = vmatprep.mubr.f32.mxu0 %v4837_v62 }
 0x499   :  { %v11697_v48 = vadd.f32 %v4208_v47, %v4054_v60  ;;  %v4064_v4 = vadd.f32 %v11621_v29, %v4063_v15  ;;  %5308 = vmatpush2.msra.mxu1 %v5002_v10  ;;  %5165 = vmatmul.mubr.f32.vlgmr.msra.gmra.mxu0 %v11474_v11  ;;  %v5028_v60 = vld [vmem:[%s13648_s9 + $0x278] sm:$0xff]  ;;  %v5023_v10 = vld [vmem:[%s13648_s9 + $0x250] sm:$0xff] }
 0x49a   :  { %v4065_v0 = vpop.f32.mrf.mxu1  ;;  %v4210_v17 = vpop.f32.mrf.mxu0  ;;  %5309 = vmatprep.subr.mxu1 %v11474_v11  ;;  %5410 = vmatprep.subr.mxu0 %v11474_v11  ;;  %v4838_v15 = vld [vmem:[#allocation4 + $0x9] sm:$0xff] }
 0x49b   :  { %5310 = vmatpush2.msra.mxu1 %v5001_v59  ;;  %5411 = vmatpush1.msra.mxu0 %v5028_v60 }
 0x49c   :  { %v4068_v35 = vpop.f32.mrf.mxu1  ;;  %v4213_v21 = vpop.f32.mrf.mxu0  ;;  %5311 = vmatprep.subr.mxu1 %v11474_v11  ;;  %5169 = vmatprep.mubr.f32.mxu0 %v4838_v15 }
 0x49d   :  { %v11701_v53 = vadd.f32 %v4213_v21, %v4059_v45  ;;  %v4069_v28 = vadd.f32 %v11621_v29, %v4068_v35  ;;  %5312 = vmatpush2.msra.mxu1 %v5000_v54  ;;  %v4999_v45 = vld [vmem:[%s13648_s9 + $0x190] sm:$0xff]  ;;  %5170 = vmatmul.mubr.f32.gmra.mxu0 %v11474_v11 }
 0x49e   :  { %v4070_v26 = vpop.f32.mrf.mxu1  ;;  %v4215_v39 = vpop.f32.mrf.mxu0  ;;  %5313 = vmatprep.subr.mxu1 %v11474_v11  ;;  %v5027_v35 = vld [vmem:[%s13648_s9 + $0x270] sm:$0xff]  ;;  %5412 = vmatprep.subr.mxu0 %v11474_v11 }
 0x49f   :  { %5314 = vmatpush2.msra.mxu1 %v4999_v45  ;;  %5413 = vmatpush1.msra.mxu0 %v5027_v35 }
 0x4a0   :  { %v4073_v46 = vpop.f32.mrf.mxu1  ;;  %5315 = vmatprep.subr.mxu1 %v11474_v11  ;;  %5414 = vmatprep.subr.mxu0 %v11474_v11 }
 0x4a1   :  { %v4218_v27 = vpop.f32.mrf.mxu0  ;;  %v4074_v51 = vadd.f32 %v11621_v29, %v4073_v46  ;;  %5316 = vmatpush2.msra.mxu1 %v4998_v6  ;;  %5415 = vmatpush1.msra.mxu0 %v5026_v63  ;;  %v5018_v63 = vld [vmem:[%s13648_s9 + $0x228] sm:$0xff] }
 0x4a2   :  { %v11718_v52 = vadd.f32 %v4218_v27, %v4064_v4  ;;  %v4075_v23 = vpop.f32.mrf.mxu1  ;;  %5317 = vmatprep.subr.mxu1 %v11474_v11  ;;  %v5025_v27 = vld [vmem:[%s13648_s9 + $0x260] sm:$0xff]  ;;  %5416 = vmatprep.subr.mxu0 %v11474_v11 }
 0x4a3   :  { %v4220_v34 = vpop.f32.mrf.mxu0  ;;  %5318 = vmatpush2.msra.mxu1 %v4997_v56  ;;  %5417 = vmatpush1.msra.mxu0 %v5025_v27 }
 0x4a4   :  { %v4078_v37 = vpop.f32.mrf.mxu1  ;;  %v5024_v34 = vld [vmem:[%s13648_s9 + $0x258] sm:$0xff]  ;;  %5565 = vmatprep.subr.mxu1 %v11474_v11  ;;  %5418 = vmatprep.subr.mxu0 %v11474_v11 }
 0x4a5   :  { %v4079_v21 = vadd.f32 %v11621_v29, %v4078_v37  ;;  %5419 = vmatpush1.msra.mxu0 %v5024_v34 }
 0x4a6   :  { %v4223_v24 = vpop.f32.mrf.mxu0  ;;  %v4080_v40 = vpop.f32.mrf.mxu1  ;;  %5420 = vmatprep.subr.mxu0 %v11474_v11 }
 0x4a7   :  { %v11745_v61 = vadd.f32 %v4223_v24, %v4069_v28  ;;  %5421 = vmatpush1.msra.mxu0 %v5023_v10 }
 0x4a8   :  { %v4225_v25 = vpop.f32.mrf.mxu0  ;;  %v4083_v3 = vpop.f32.mrf.mxu1  ;;  %5422 = vmatprep.subr.mxu0 %v11474_v11 }
 0x4a9   :  { %v4084_v23 = vadd.f32 %v11621_v29, %v4083_v3  ;;  %v5022_v3 = vld [vmem:[%s13648_s9 + $0x248] sm:$0xff] }
 0x4aa   :  { %v4228_v43 = vpop.f32.mrf.mxu0  ;;  %v4085_v9 = vpop.f32.mrf.mxu1  ;;  %5423 = vmatpush1.msra.mxu0 %v5022_v3  ;;  %v5013_v3 = vld [vmem:[%s13648_s9 + $0x200] sm:$0xff] }
 0x4ab   :  { %v11761_v47 = vadd.f32 %v4228_v43, %v4074_v51  ;;  %5424 = vmatprep.subr.mxu0 %v11474_v11  ;;  %v5021_v9 = vld [vmem:[%s13648_s9 + $0x240] sm:$0xff] }
 0x4ac   :  { %v4230_v0 = vpop.f32.mrf.mxu0  ;;  %v4088_v17 = vpop.f32.mrf.mxu1  ;;  %5425 = vmatpush1.msra.mxu0 %v5021_v9  ;;  %v5044_v9 = vld [vmem:[%s13648_s9 + $0x2f8] sm:$0xff] }
 0x4ad   :  { %v4089_v28 = vadd.f32 %v11621_v29, %v4088_v17  ;;  %5426 = vmatprep.subr.mxu0 %v11474_v11  ;;  %v5020_v0 = vld [vmem:[%s13648_s9 + $0x238] sm:$0xff] }
 0x4ae   :  { %v4233_v26 = vpop.f32.mrf.mxu0  ;;  %v4090_v39 = vpop.f32.mrf.mxu1  ;;  %5427 = vmatpush1.msra.mxu0 %v5020_v0 }
 0x4af   :  { %v11780_v4 = vadd.f32 %v4233_v26, %v4079_v21  ;;  %5428 = vmatprep.subr.mxu0 %v11474_v11  ;;  %v5019_v21 = vld [vmem:[%s13648_s9 + $0x230] sm:$0xff] }
 0x4b0   :  { %v4235_v46 = vpop.f32.mrf.mxu0  ;;  %v4093_v30 = vpop.f32.mrf.mxu1  ;;  %5429 = vmatpush1.msra.mxu0 %v5019_v21 }
 0x4b1   :  { %v4094_v59 = vadd.f32 %v11621_v29, %v4093_v30  ;;  %5430 = vmatprep.subr.mxu0 %v11474_v11  ;;  %v5017_v30 = vld [vmem:[%s13648_s9 + $0x220] sm:$0xff] }
 0x4b2   :  { %v4238_v32 = vpop.f32.mrf.mxu0  ;;  %v4095_v13 = vpop.f32.mrf.mxu1  ;;  %5431 = vmatpush1.msra.mxu0 %v5018_v63 }
 0x4b3   :  { %v11796_v37 = vadd.f32 %v4238_v32, %v4084_v23  ;;  %5432 = vmatprep.subr.mxu0 %v11474_v11  ;;  %v5016_v23 = vld [vmem:[%s13648_s9 + $0x218] sm:$0xff] }
 0x4b4   :  { %v4240_v42 = vpop.f32.mrf.mxu0  ;;  %v4098_v12 = vpop.f32.mrf.mxu1  ;;  %5433 = vmatpush1.msra.mxu0 %v5017_v30 }
 0x4b5   :  { %v4099_v17 = vadd.f32 %v11621_v29, %v4098_v12  ;;  %5434 = vmatprep.subr.mxu0 %v11474_v11  ;;  %v5015_v42 = vld [vmem:[%s13648_s9 + $0x210] sm:$0xff] }
 0x4b6   :  { %v4243_v24 = vpop.f32.mrf.mxu0  ;;  %v4100_v40 = vpop.f32.mrf.mxu1  ;;  %5435 = vmatpush1.msra.mxu0 %v5016_v23 }
 0x4b7   :  { %v11804_v18 = vadd.f32 %v4243_v24, %v4089_v28  ;;  %5436 = vmatprep.subr.mxu0 %v11474_v11  ;;  %v5014_v40 = vld [vmem:[%s13648_s9 + $0x208] sm:$0xff] }
 0x4b8   :  { %v4245_v62 = vpop.f32.mrf.mxu0  ;;  %v4103_v25 = vpop.f32.mrf.mxu1  ;;  %5437 = vmatpush1.msra.mxu0 %v5015_v42 }
 0x4b9   :  { %v4104_v46 = vadd.f32 %v11621_v29, %v4103_v25  ;;  %5438 = vmatprep.subr.mxu0 %v11474_v11 }
 0x4ba   :  { %v4248_v51 = vpop.f32.mrf.mxu0  ;;  %v4105_v43 = vpop.f32.mrf.mxu1  ;;  %5439 = vmatpush1.msra.mxu0 %v5014_v40 }
 0x4bb   :  { %v11815_v54 = vadd.f32 %v4248_v51, %v4094_v59  ;;  %5440 = vmatprep.subr.mxu0 %v11474_v11 }
 0x4bc   :  { %v4250_v60 = vpop.f32.mrf.mxu0  ;;  %v4108_v15 = vpop.f32.mrf.mxu1  ;;  %5441 = vmatpush1.msra.mxu0 %v5013_v3 }
 0x4bd   :  { %v4109_v12 = vadd.f32 %v11621_v29, %v4108_v15  ;;  %5442 = vmatprep.subr.mxu0 %v11474_v11 }
 0x4be   :  { %v4253_v45 = vpop.f32.mrf.mxu0  ;;  %v4110_v35 = vpop.f32.mrf.mxu1  ;;  %5443 = vmatpush2.msra.mxu0 %v5044_v9  ;;  %v5035_v9 = vld [vmem:[%s13648_s9 + $0x2b0] sm:$0xff] }
 0x4bf   :  { %v11826_v26 = vadd.f32 %v4253_v45, %v4099_v17  ;;  %v5043_v17 = vld [vmem:[%s13648_s9 + $0x2f0] sm:$0xff]  ;;  %5444 = vmatprep.subr.mxu0 %v11474_v11 }
 0x4c0   :  { %v4255_v39 = vpop.f32.mrf.mxu0  ;;  %v4113_v6 = vpop.f32.mrf.mxu1  ;;  %5445 = vmatpush2.msra.mxu0 %v5043_v17 }
 0x4c1   :  { %v4114_v59 = vadd.f32 %v11621_v29, %v4113_v6  ;;  %v5042_v6 = vld [vmem:[%s13648_s9 + $0x2e8] sm:$0xff]  ;;  %5446 = vmatprep.subr.mxu0 %v11474_v11 }
 0x4c2   :  { %v4258_v56 = vpop.f32.mrf.mxu0  ;;  %v4115_v27 = vpop.f32.mrf.mxu1  ;;  %5447 = vmatpush2.msra.mxu0 %v5042_v6 }
 0x4c3   :  { %v11840_v32 = vadd.f32 %v4258_v56, %v4104_v46  ;;  %5448 = vmatprep.subr.mxu0 %v11474_v11 }
 0x4c4   :  { %v4260_v13 = vpop.f32.mrf.mxu0  ;;  %v4118_v34 = vpop.f32.mrf.mxu1 }
 0x4c5   :  { %v4119_v45 = vadd.f32 %v11621_v29, %v4118_v34  ;;  %v5040_v13 = vld [vmem:[%s13648_s9 + $0x2d8] sm:$0xff] }
 0x4c6   :  { %v4263_v28 = vpop.f32.mrf.mxu0  ;;  %v4120_v24 = vpop.f32.mrf.mxu1 }
 0x4c7   :  { %v11851_v10 = vadd.f32 %v4263_v28, %v4109_v12  ;;  %v5038_v28 = vld [vmem:[%s13648_s9 + $0x2c8] sm:$0xff] }
 0x4c8   :  { %v4265_v62 = vpop.f32.mrf.mxu0  ;;  %v4123_v25 = vpop.f32.mrf.mxu1 }
 0x4c9   :  { %13812 = vst [vmem:[#allocation31_spill] sm:$0xff] %v11851_v10  ;;  %v4124_v30 = vadd.f32 %v11621_v29, %v4123_v25  ;;  %v5039_v29 = vld [vmem:[%s13648_s9 + $0x2d0] sm:$0xff]  ;;  %v5037_v25 = vld [vmem:[%s13648_s9 + $0x2c0] sm:$0xff] }
 0x4ca   :  { %v4268_v51 = vpop.f32.mrf.mxu0  ;;  %v4125_v43 = vpop.f32.mrf.mxu1 }
 0x4cb   :  { %v11862_v60 = vadd.f32 %v4268_v51, %v4114_v59 }
 0x4cc   :  { %v4270_v15 = vpop.f32.mrf.mxu0  ;;  %v4348_v0 = vpop.f32.mrf.mxu1 }
 0x4cd   :  { %v11870_v35 = vadd.f32 %v4348_v0, %v11645_v38  ;;  %v5041_v38 = vld [vmem:[%s13648_s9 + $0x2e0] sm:$0xff] }
 0x4ce   :  { %v4273_v21 = vpop.f32.mrf.mxu0  ;;  %v4350_v39 = vpop.f32.mrf.mxu1  ;;  %5449 = vmatpush2.msra.mxu0 %v5041_v38 }
 0x4cf   :  { %v11876_v63 = vadd.f32 %v4273_v21, %v4119_v45  ;;  %5450 = vmatprep.subr.mxu0 %v11474_v11  ;;  %v5034_v45 = vld [vmem:[%s13648_s9 + $0x2a8] sm:$0xff]  ;;  %v5033_v39 = vld [vmem:[%s13648_s9 + $0x2a0] sm:$0xff] }
 0x4d0   :  { %v4275_v46 = vpop.f32.mrf.mxu0  ;;  %5451 = vmatpush2.msra.mxu0 %v5040_v13  ;;  %v5031_v13 = vld [vmem:[%s13648_s9 + $0x290] sm:$0xff] }
 0x4d1   :  { %13813 = vst [vmem:[#allocation35_spill] sm:$0xff] %v11876_v63  ;;  %v4353_v56 = vpop.f32.mrf.mxu1  ;;  %5452 = vmatprep.subr.mxu0 %v11474_v11 }
 0x4d2   :  { %v4278_v27 = vpop.f32.mrf.mxu0  ;;  %v11884_v23 = vadd.f32 %v4353_v56, %v11665_v20  ;;  %5453 = vmatpush2.msra.mxu0 %v5039_v29 }
 0x4d3   :  { %v11890_v34 = vadd.f32 %v4278_v27, %v4124_v30  ;;  %v4355_v42 = vpop.f32.mrf.mxu1  ;;  %5454 = vmatprep.subr.mxu0 %v11474_v11  ;;  %v5032_v30 = vld [vmem:[%s13648_s9 + $0x298] sm:$0xff] }
 0x4d4   :  { %v4280_v12 = vpop.f32.mrf.mxu0  ;;  %5455 = vmatpush2.msra.mxu0 %v5038_v28 }
 0x4d5   :  { %13814 = vst [vmem:[#allocation39_spill] sm:$0xff] %v11890_v34  ;;  %5456 = vmatprep.subr.mxu0 %v11474_v11 }
 0x4d6   :  { %v4358_v20 = vpop.f32.mrf.mxu1  ;;  %5457 = vmatpush2.msra.mxu0 %v5037_v25 }
 0x4d7   :  { %v11901_v24 = vadd.f32 %v4358_v20, %v11684_v41  ;;  %v11903_v40 = vpop.f32.mrf.mxu0  ;;  %v5036_v41 = vld [vmem:[%s13648_s9 + $0x2b8] sm:$0xff]  ;;  %5458 = vmatprep.subr.mxu0 %v11474_v11  ;;  %v5030_v20 = vld [vmem:[%s13648_s9 + $0x288] sm:$0xff] }
 0x4d8   :  { %v4360_v62 = vpop.f32.mrf.mxu1  ;;  %5459 = vmatpush2.msra.mxu0 %v5036_v41  ;;  %v11965_v41 = vld [vmem:[%s13648_s9 + $0x478] sm:$0xff] }
 0x4d9   :  { %v4505_v3 = vpop.f32.mrf.mxu0  ;;  %5460 = vmatprep.subr.mxu0 %v11474_v11  ;;  %v5029_v62 = vld [vmem:[%s13648_s9 + $0x280] sm:$0xff]  ;;  %13815 = vst [vmem:[#allocation37_spill] sm:$0xff] %v11965_v41 }
 0x4da   :  { %v11909_v59 = vpop.f32.mrf.mxu1  ;;  %5461 = vmatpush2.msra.mxu0 %v5035_v9 }
 0x4db   :  { %v11915_v51 = vpop.f32.mrf.mxu0  ;;  %5462 = vmatprep.subr.mxu0 %v11474_v11 }
 0x4dc   :  { %v4365_v43 = vpop.f32.mrf.mxu1  ;;  %5463 = vmatpush2.msra.mxu0 %v5034_v45 }
 0x4dd   :  { %v4510_v15 = vpop.f32.mrf.mxu0  ;;  %5464 = vmatprep.subr.mxu0 %v11474_v11 }
 0x4de   :  { %v11921_v0 = vpop.f32.mrf.mxu1  ;;  %5465 = vmatpush2.msra.mxu0 %v5033_v39 }
 0x4df   :  { %v11924_v17 = vpop.f32.mrf.mxu0  ;;  %5466 = vmatprep.subr.mxu0 %v11474_v11 }
 0x4e0   :  { %v4370_v21 = vpop.f32.mrf.mxu1  ;;  %5467 = vmatpush2.msra.mxu0 %v5032_v30 }
 0x4e1   :  { %v4515_v6 = vpop.f32.mrf.mxu0  ;;  %5468 = vmatprep.subr.mxu0 %v11474_v11 }
 0x4e2   :  { %v11933_v46 = vpop.f32.mrf.mxu1  ;;  %5469 = vmatpush2.msra.mxu0 %v5031_v13 }
 0x4e3   :  { %v11936_v38 = vpop.f32.mrf.mxu0  ;;  %5470 = vmatprep.subr.mxu0 %v11474_v11 }
 0x4e4   :  { %v4375_v56 = vpop.f32.mrf.mxu1  ;;  %5471 = vmatpush2.msra.mxu0 %v5030_v20 }
 0x4e5   :  { %v4520_v27 = vpop.f32.mrf.mxu0  ;;  %5472 = vmatprep.subr.mxu0 %v11474_v11 }
 0x4e6   :  { %v11945_v42 = vpop.f32.mrf.mxu1  ;;  %5473 = vmatpush2.msra.mxu0 %v5029_v62 }
 0x4e7   :  { %v11948_v12 = vpop.f32.mrf.mxu0  ;;  %7422 = vmatprep.subr.mxu0 %v11965_v41 }
 0x4e8   :  { %v4380_v29 = vpop.f32.mrf.mxu1 }
 0x4e9   :  { %v4525_v28 = vpop.f32.mrf.mxu0 }
 0x4ea   :  { %v11957_v25 = vpop.f32.mrf.mxu1 }
 0x4eb   :  { %v11960_v3 = vpop.f32.mrf.mxu0 }
 0x4ec   :  { %v4385_v43 = vpop.f32.mrf.mxu1 }
 0x4ed   :  { %v4530_v9 = vpop.f32.mrf.mxu0 }
 0x4ee   :  { %v11968_v15 = vpop.f32.mrf.mxu1 }
 0x4ef   :  { %v11970_v45 = vpop.f32.mrf.mxu0 }
 0x4f0   :  { %v4390_v21 = vpop.f32.mrf.mxu1 }
 0x4f1   :  { %v4535_v39 = vpop.f32.mrf.mxu0 }
 0x4f2   :  { %v11972_v6 = vpop.f32.mrf.mxu1 }
 0x4f3   :  { %v11974_v11 = vpop.f32.mrf.mxu0 }
 0x4f4   :  { %v4395_v30 = vpop.f32.mrf.mxu1 }
 0x4f5   :  { %v4540_v56 = vpop.f32.mrf.mxu0 }
 0x4f6   :  { %v11976_v27 = vpop.f32.mrf.mxu1 }
 0x4f7   :  { %v11978_v13 = vpop.f32.mrf.mxu0 }
 0x4f8   :  { %v4400_v29 = vpop.f32.mrf.mxu1 }
 0x4f9   :  { %v4545_v20 = vpop.f32.mrf.mxu0 }
 0x4fa   :  { %v11980_v28 = vpop.f32.mrf.mxu1 }
 0x4fb   :  { %v11982_v62 = vpop.f32.mrf.mxu0 }
 0x4fc   :  { %v4405_v43 = vpop.f32.mrf.mxu1 }
 0x4fd   :  { %v4550_v9 = vpop.f32.mrf.mxu0 }
 0x4fe   :  { %v11984_v21 = vpop.f32.mrf.mxu1 }
 0x4ff   :  { %v11986_v39 = vpop.f32.mrf.mxu0 }
 0x500   :  { %v4410_v41 = vpop.f32.mrf.mxu1 }
 0x501   :  { %v4555_v58 = vpop.f32.mrf.mxu0 }
 0x502   :  { %v11988_v30 = vpop.f32.mrf.mxu1 }
 0x503   :  { %v11990_v56 = vpop.f32.mrf.mxu0 }
 0x504   :  { %v4415_v7 = vpop.f32.mrf.mxu1 }
 0x505   :  { %v4560_v5 = vpop.f32.mrf.mxu0 }
 0x506   :  { %v11992_v29 = vpop.f32.mrf.mxu1 }
 0x507   :  { %13816 = vst [vmem:[#allocation33_spill] sm:$0xff] %v11992_v29  ;;  %v11994_v20 = vpop.f32.mrf.mxu0 }
 0x508   :  { %v4420_v31 = vpop.f32.mrf.mxu1 }
 0x509   :  { %v4565_v8 = vpop.f32.mrf.mxu0 }
 0x50a   :  { %v11996_v43 = vpop.f32.mrf.mxu1  ;;  %v4509_v8 = vadd.f32 %v11915_v51, %v11884_v23  ;;  %v4374_v23 = vadd.f32 %v11933_v46, %v11718_v52 }
 0x50b   :  { %v11998_v9 = vpop.f32.mrf.mxu0 }
 0x50c   :  { %v4425_v1 = vpop.f32.mrf.mxu1 }
 0x50d   :  { %v4570_v63 = vpop.f32.mrf.mxu0  ;;  %v4504_v1 = vadd.f32 %v11903_v40, %v11870_v35  ;;  %v4514_v35 = vadd.f32 %v11924_v17, %v11901_v24  ;;  %v13823_v40 = vld [vmem:[#allocation14_spill] sm:$0xff] }
 0x50e   :  { %v12000_v41 = vpop.f32.mrf.mxu1  ;;  %v4364_v63 = vadd.f32 %v11909_v59, %v11697_v48  ;;  %v13825_v17 = vld [vmem:[#allocation6_spill] sm:$0xff] }
 0x50f   :  { %13817 = vst [vmem:[#allocation38_spill] sm:$0xff] %v12000_v41  ;;  %v12002_v58 = vpop.f32.mrf.mxu0 }
 0x510   :  { %13818 = vst [vmem:[#allocation32_spill] sm:$0xff] %v12002_v58  ;;  %v4430_v16 = vpop.f32.mrf.mxu1  ;;  %v13821_v58 = vld [vmem:[#allocation15_spill] sm:$0xff] }
 0x511   :  { %v4575_v34 = vpop.f32.mrf.mxu0 }
 0x512   :  { %v12004_v7 = vpop.f32.mrf.mxu1 }
 0x513   :  { %13819 = vst [vmem:[#allocation36_spill] sm:$0xff] %v12004_v7  ;;  %v12006_v5 = vpop.f32.mrf.mxu0  ;;  %v4519_v7 = vadd.f32 %v11936_v38, %v4364_v63 }
 0x514   :  { %13820 = vst [vmem:[#allocation34_spill] sm:$0xff] %v12006_v5  ;;  %v4435_v44 = vpop.f32.mrf.mxu1 }
 0x515   :  { %v4580_v31 = vpop.f32.mrf.mxu0 }
 0x516   :  { %v7397_v29 = vpop.f32.mrf.mxu1 }
 0x517   :  { %v12014_v41 = vpop.f32.mrf.mxu0  ;;  %v4664_v16 = vadd.f32 %v7397_v29, %v4509_v8  ;;  %v4529_v8 = vadd.f32 %v11960_v3, %v4374_v23  ;;  %v4379_v23 = vadd.f32 %v11945_v42, %v11745_v61  ;;  %v4394_v61 = vadd.f32 %v11972_v6, %v11796_v37 }
 0x518   :  { %v4658_v34 = vpop.f32.mrf.mxu1 }
 0x519   :  { %v12018_v5 = vadd.f32 %v4664_v16, %v13821_v58  ;;  %v4585_v44 = vpop.f32.mrf.mxu0  ;;  %v4659_v10 = vadd.f32 %v4658_v34, %v4504_v1  ;;  %v4369_v58 = vadd.f32 %v11921_v0, %v11701_v53  ;;  %v4384_v53 = vadd.f32 %v11957_v25, %v11761_v47  ;;  %v13828_v16 = vld [vmem:[#allocation16_spill] sm:$0xff] }
 0x51a   :  { %v7400_v51 = vpop.f32.mrf.mxu1 }
 0x51b   :  { %13822 = vst [vmem:[#allocation15_spill] sm:$0xff] %v12018_v5  ;;  %v4766_v48 = vmax.f32 %v12018_v5, 0.0  ;;  %v12026_v59 = vadd.f32 %v4659_v10, %v13823_v40  ;;  %v12028_v29 = vpop.f32.mrf.mxu0  ;;  %v4674_v38 = vadd.f32 %v7400_v51, %v4519_v7  ;;  %v4524_v7 = vadd.f32 %v11948_v12, %v4369_v58 }
 0x51c   :  { %v4668_v31 = vpop.f32.mrf.mxu1  ;;  %v4539_v12 = vadd.f32 %v11974_v11, %v4384_v53  ;;  %v4534_v58 = vadd.f32 %v11970_v45, %v4379_v23  ;;  %v4549_v45 = vadd.f32 %v11982_v62, %v4394_v61  ;;  %v4855_v62 = vld [vmem:[#allocation4 + $0x2] sm:$0xff]  ;;  %v13837_v23 = vld [vmem:[#allocation9_spill] sm:$0xff] }
 0x51d   :  { %13824 = vst [vmem:[#allocation14_spill] sm:$0xff] %v12026_v59  ;;  %v4784_v52 = vsel %vm2528_vm11, %v4766_v48, 0.0  ;;  %v4765_v24 = vmax.f32 %v12026_v59, 0.0  ;;  %v12039_v46 = vadd.f32 %v4674_v38, %v13825_v17  ;;  %v4669_v10 = vadd.f32 %v4668_v31, %v4514_v35  ;;  %v4590_v1 = vpop.f32.mrf.mxu0  ;;  %v13830_v35 = vld [vmem:[#allocation7_spill] sm:$0xff]  ;;  %v13833_v31 = vld [vmem:[#allocation8_spill] sm:$0xff] }
 0x51e   :  { %4802 = vst [vmem:[#allocation4 + $0x1b] sm:$0xff] %v4784_v52  ;;  %v7403_v0 = vpop.f32.mrf.mxu1 }
 0x51f   :  { %13826 = vst [vmem:[#allocation6_spill] sm:$0xff] %v12039_v46  ;;  %v4783_v3 = vsel %vm13827_vm14, %v4765_v24, 0.0  ;;  %v4768_v63 = vmax.f32 %v12039_v46, 0.0  ;;  %v12050_v34 = vadd.f32 %v4669_v10, %v13828_v16  ;;  %v4684_v44 = vadd.f32 %v7403_v0, %v4529_v8 }
 0x520   :  { %4801 = vst [vmem:[#allocation4 + $0x13] sm:$0xff] %v4783_v3  ;;  %v4678_v47 = vpop.f32.mrf.mxu1  ;;  %vm13832_vm14 = vcmp.eq.s32.totalorder %v9913_v57, 1  ;;  %v4389_v10 = vadd.f32 %v11968_v15, %v11780_v4  ;;  %v4404_v4 = vadd.f32 %v11980_v28, %v11815_v54  ;;  %v4399_v54 = vadd.f32 %v11976_v27, %v11804_v18 }
 0x521   :  { %13829 = vst [vmem:[#allocation16_spill] sm:$0xff] %v12050_v34  ;;  %v4786_v25 = vsel %vm2530_vm1, %v4768_v63, 0.0  ;;  %v4767_v51 = vmax.f32 %v12050_v34, 0.0  ;;  %v12061_v40 = vadd.f32 %v4684_v44, %v13830_v35  ;;  %v4679_v38 = vadd.f32 %v4678_v47, %v4524_v7  ;;  %v13835_v7 = vld [vmem:[#allocation11_spill] sm:$0xff] }
 0x522   :  { %4804 = vst [vmem:[#allocation4 + $0x2b] sm:$0xff] %v4786_v25  ;;  %v7406_v42 = vpop.f32.mrf.mxu1  ;;  %v4544_v3 = vadd.f32 %v11978_v13, %v4389_v10  ;;  %v4559_v28 = vadd.f32 %v11990_v56, %v4404_v4  ;;  %v4414_v10 = vadd.f32 %v11988_v30, %v11840_v32  ;;  %v4409_v32 = vadd.f32 %v11984_v21, %v11826_v26  ;;  %v13843_v21 = vld [vmem:[#allocation21_spill] sm:$0xff] }
 0x523   :  { %13831 = vst [vmem:[#allocation7_spill] sm:$0xff] %v12061_v40  ;;  %v4785_v11 = vsel %vm13832_vm14, %v4767_v51, 0.0  ;;  %v4770_v8 = vmax.f32 %v12061_v40, 0.0  ;;  %v12072_v52 = vadd.f32 %v4679_v38, %v13833_v31  ;;  %v4694_v17 = vadd.f32 %v7406_v42, %v4539_v12 }
 0x524   :  { %4803 = vst [vmem:[#allocation4 + $0x23] sm:$0xff] %v4785_v11  ;;  %v4688_v37 = vpop.f32.mrf.mxu1  ;;  %v13839_v11 = vld [vmem:[#allocation17_spill] sm:$0xff]  ;;  %v4569_v30 = vadd.f32 %v11998_v9, %v4414_v10 }
 0x525   :  { %13834 = vst [vmem:[#allocation8_spill] sm:$0xff] %v12072_v52  ;;  %v4788_v6 = vsel %vm2532_vm7, %v4770_v8, 0.0  ;;  %v4769_v1 = vmax.f32 %v12072_v52, 0.0  ;;  %v12083_v53 = vadd.f32 %v4694_v17, %v13835_v7  ;;  %v4689_v0 = vadd.f32 %v4688_v37, %v4534_v58  ;;  %v5060_v58 = vld [vmem:[%s13648_s9 + $0x378] sm:$0xff] }
 0x526   :  { %4806 = vst [vmem:[#allocation4 + $0x3b] sm:$0xff] %v4788_v6  ;;  %v7409_v15 = vpop.f32.mrf.mxu1  ;;  %v4554_v17 = vadd.f32 %v11986_v39, %v4399_v54  ;;  %v4856_v37 = vld [vmem:[#allocation4 + $0xa] sm:$0xff]  ;;  %v4564_v54 = vadd.f32 %v11994_v20, %v4409_v32 }
 0x527   :  { %13836 = vst [vmem:[#allocation11_spill] sm:$0xff] %v12083_v53  ;;  %v4787_v16 = vsel %vm2531_vm4, %v4769_v1, 0.0  ;;  %v4772_v44 = vmax.f32 %v12083_v53, 0.0  ;;  %v12094_v12 = vadd.f32 %v4689_v0, %v13837_v23  ;;  %v4704_v47 = vadd.f32 %v7409_v15, %v4549_v45  ;;  %v4839_v25 = vld [vmem:[#allocation4 + $0x11] sm:$0xff]  ;;  %v4840_v56 = vld [vmem:[#allocation4 + $0x19] sm:$0xff]  ;;  %v13847_v20 = vld [vmem:[#allocation31_spill] sm:$0xff] }
 0x528   :  { %v12096_v35 = vld [vmem:[#allocation4 + $0x12] sm:$0xff]  ;;  %4805 = vst [vmem:[#allocation4 + $0x33] sm:$0xff] %v4787_v16  ;;  %v4698_v38 = vpop.f32.mrf.mxu1  ;;  %5174 = vmatprep.mubr.f32.mxu0 %v4839_v25  ;;  %v12113_v31 = vld [vmem:[#allocation4 + $0x1a] sm:$0xff] }
 0x529   :  { %13838 = vst [vmem:[#allocation9_spill] sm:$0xff] %v12094_v12  ;;  %v4821_v13 = vld [vmem:[#allocation4 + $0x10] sm:$0xff]  ;;  %5319 = vmatprep.mubr.f32.mxu1 %v12096_v35  ;;  %v4790_v61 = vsel %vm2534_vm3, %v4772_v44, 0.0  ;;  %v4771_v42 = vmax.f32 %v12094_v12, 0.0  ;;  %v12111_v18 = vadd.f32 %v4704_v47, %v13839_v11  ;;  %v4699_v27 = vadd.f32 %v4698_v38, %v4544_v3  ;;  %v13841_v0 = vld [vmem:[#allocation13_spill] sm:$0xff]  ;;  %v5059_v16 = vld [vmem:[%s13648_s9 + $0x370] sm:$0xff] }
 0x52a   :  { %5175 = vmatmul.mubr.f32.gmra.mxu0 %v4821_v13  ;;  %5320 = vmatmul.mubr.f32.vlgmr.msra.gmra.mxu1 %v4855_v62  ;;  %4808 = vst [vmem:[#allocation4 + $0x4b] sm:$0xff] %v4790_v61  ;;  %v7412_v45 = vpop.f32.mrf.mxu1  ;;  %v4822_v15 = vld [vmem:[#allocation4 + $0x18] sm:$0xff]  ;;  %v12130_v62 = vld [vmem:[#allocation4] sm:$0xff]  ;;  %v13845_v11 = vld [vmem:[#allocation20_spill] sm:$0xff] }
 0x52b   :  { %13840 = vst [vmem:[#allocation17_spill] sm:$0xff] %v12111_v18  ;;  %5179 = vmatprep.mubr.f32.mxu0 %v4840_v56  ;;  %5324 = vmatprep.mubr.f32.mxu1 %v12113_v31  ;;  %v4789_v6 = vsel %vm2533_vm15, %v4771_v42, 0.0  ;;  %v4774_v7 = vmax.f32 %v12111_v18, 0.0  ;;  %v12125_v3 = vadd.f32 %v4699_v27, %v13841_v0  ;;  %v4714_v39 = vadd.f32 %v7412_v45, %v4559_v28  ;;  %v4841_v25 = vld [vmem:[#allocation4 + $0x21] sm:$0xff] }
 0x52c   :  { %5566 = vmatpush1.msra.mxu1 %v5060_v58  ;;  %4807 = vst [vmem:[#allocation4 + $0x43] sm:$0xff] %v4789_v6  ;;  %v4708_v4 = vpop.f32.mrf.mxu1  ;;  %v12144_v13 = vld [vmem:[#allocation4 + $0x22] sm:$0xff]  ;;  %v4424_v28 = vadd.f32 %v11996_v43, %v11862_v60  ;;  %v5058_v6 = vld [vmem:[%s13648_s9 + $0x368] sm:$0xff] }
 0x52d   :  { %13842 = vst [vmem:[#allocation13_spill] sm:$0xff] %v12125_v3  ;;  %5567 = vmatprep.subr.mxu1 %v12130_v62  ;;  %v4792_v23 = vsel %vm2536_vm10, %v4774_v7, 0.0  ;;  %v4773_v26 = vmax.f32 %v12125_v3, 0.0  ;;  %v12142_v9 = vadd.f32 %v4714_v39, %v13843_v21  ;;  %v4709_v47 = vadd.f32 %v4708_v4, %v4554_v17  ;;  %v13848_v17 = vld [vmem:[#allocation33_spill] sm:$0xff]  ;;  %v13849_v43 = vld [vmem:[#allocation34_spill] sm:$0xff]  ;;  %v13853_v21 = vld [vmem:[#allocation32_spill] sm:$0xff] }
 0x52e   :  { %5180 = vmatmul.mubr.f32.gmra.mxu0 %v4822_v15  ;;  %5325 = vmatmul.mubr.f32.gmra.mxu1 %v4856_v37  ;;  %4810 = vst [vmem:[#allocation4 + $0x5b] sm:$0xff] %v4792_v23  ;;  %v7415_v38 = vpop.f32.mrf.mxu1  ;;  %v4419_v60 = vadd.f32 %v13848_v17, %v13847_v20  ;;  %v4579_v10 = vadd.f32 %v13849_v43, %v4424_v28  ;;  %v4823_v37 = vld [vmem:[#allocation4 + $0x20] sm:$0xff]  ;;  %v12174_v23 = vld [vmem:[#allocation4 + $0x2a] sm:$0xff] }
 0x52f   :  { %13844 = vst [vmem:[#allocation21_spill] sm:$0xff] %v12142_v9  ;;  %5184 = vmatprep.mubr.f32.mxu0 %v4841_v25  ;;  %5329 = vmatprep.mubr.f32.mxu1 %v12144_v13  ;;  %v4791_v58 = vsel %vm2535_vm9, %v4773_v26, 0.0  ;;  %v4776_v61 = vmax.f32 %v12142_v9, 0.0  ;;  %v12156_v27 = vadd.f32 %v4709_v47, %v13845_v11  ;;  %v4724_v56 = vadd.f32 %v7415_v38, %v4569_v30  ;;  %v13851_v30 = vld [vmem:[#allocation24_spill] sm:$0xff]  ;;  %v13854_v25 = vld [vmem:[#allocation39_spill] sm:$0xff]  ;;  %v13860_v43 = vld [vmem:[#allocation38_spill] sm:$0xff] }
 0x530   :  { %5568 = vmatpush1.msra.mxu1 %v5059_v16  ;;  %4809 = vst [vmem:[#allocation4 + $0x53] sm:$0xff] %v4791_v58  ;;  %v4718_v45 = vpop.f32.mrf.mxu1  ;;  %v4842_v16 = vld [vmem:[#allocation4 + $0x29] sm:$0xff]  ;;  %v4574_v47 = vadd.f32 %v13853_v21, %v4419_v60  ;;  %v13862_v21 = vld [vmem:[#allocation26_spill] sm:$0xff] }
 0x531   :  { %13846 = vst [vmem:[#allocation20_spill] sm:$0xff] %v12156_v27  ;;  %5569 = vmatprep.subr.mxu1 %v12130_v62  ;;  %v4794_v39 = vsel %vm2538_vm13, %v4776_v61, 0.0  ;;  %v4775_v32 = vmax.f32 %v12156_v27, 0.0  ;;  %v12171_v4 = vadd.f32 %v4724_v56, %v13851_v30  ;;  %v4719_v15 = vadd.f32 %v4718_v45, %v4564_v54  ;;  %v13855_v28 = vld [vmem:[#allocation36_spill] sm:$0xff]  ;;  %v13857_v56 = vld [vmem:[#allocation22_spill] sm:$0xff]  ;;  %v13859_v60 = vld [vmem:[#allocation35_spill] sm:$0xff] }
 0x532   :  { %5185 = vmatmul.mubr.f32.gmra.mxu0 %v4823_v37  ;;  %5330 = vmatmul.mubr.f32.gmra.mxu1 %v12096_v35  ;;  %v4434_v38 = vadd.f32 %v13855_v28, %v13854_v25  ;;  %4812 = vst [vmem:[#allocation4 + $0x6b] sm:$0xff] %v4794_v39  ;;  %v7418_v58 = vpop.f32.mrf.mxu1  ;;  %v4429_v45 = vadd.f32 %v13860_v43, %v13859_v60  ;;  %v4824_v30 = vld [vmem:[#allocation4 + $0x28] sm:$0xff]  ;;  %v4843_v28 = vld [vmem:[#allocation4 + $0x31] sm:$0xff] }
 0x533   :  { %13852 = vst [vmem:[#allocation31_spill] sm:$0xff] %v12171_v4  ;;  %5189 = vmatprep.mubr.f32.mxu0 %v4842_v16  ;;  %5334 = vmatprep.mubr.f32.mxu1 %v12174_v23  ;;  %v4793_v54 = vsel %vm2537_vm12, %v4775_v32, 0.0  ;;  %v4778_v35 = vmax.f32 %v12171_v4, 0.0  ;;  %v12186_v20 = vadd.f32 %v4719_v15, %v13857_v56  ;;  %v4734_v17 = vadd.f32 %v7418_v58, %v4579_v10  ;;  %v5057_v16 = vld [vmem:[%s13648_s9 + $0x360] sm:$0xff]  ;;  %v13865_v43 = vld [vmem:[#allocation25_spill] sm:$0xff] }
 0x534   :  { %5570 = vmatpush1.msra.mxu1 %v5058_v6  ;;  %v4589_v37 = vadd.f32 %v12028_v29, %v4434_v38  ;;  %4811 = vst [vmem:[#allocation4 + $0x63] sm:$0xff] %v4793_v54  ;;  %v4728_v39 = vpop.f32.mrf.mxu1  ;;  %v4861_v38 = vld [vmem:[#allocation4 + $0x32] sm:$0xff]  ;;  %v4584_v58 = vadd.f32 %v12014_v41, %v4429_v45  ;;  %v5056_v41 = vld [vmem:[%s13648_s9 + $0x358] sm:$0xff] }
 0x535   :  { %13858 = vst [vmem:[#allocation33_spill] sm:$0xff] %v12186_v20  ;;  %5571 = vmatprep.subr.mxu1 %v12130_v62  ;;  %v4796_v10 = vsel %vm2540_vm2, %v4778_v35, 0.0  ;;  %v4777_v6 = vmax.f32 %v12186_v20, 0.0  ;;  %v12201_v25 = vadd.f32 %v4734_v17, %v13862_v21  ;;  %v4729_v29 = vadd.f32 %v4728_v39, %v4574_v47 }
 0x536   :  { %5190 = vmatmul.mubr.f32.gmra.mxu0 %v4824_v30  ;;  %5335 = vmatmul.mubr.f32.gmra.mxu1 %v12113_v31  ;;  %4814 = vst [vmem:[#allocation4 + $0x7b] sm:$0xff] %v4796_v10  ;;  %v7421_v54 = vpop.f32.mrf.mxu1  ;;  %v4825_v30 = vld [vmem:[#allocation4 + $0x30] sm:$0xff] }
 0x537   :  { %13863 = vst [vmem:[#allocation34_spill] sm:$0xff] %v12201_v25  ;;  %5194 = vmatprep.mubr.f32.mxu0 %v4843_v28  ;;  %5339 = vmatprep.mubr.f32.mxu1 %v4861_v38  ;;  %v4795_v60 = vsel %vm2539_vm0, %v4777_v6, 0.0  ;;  %v13703_v17 = vmax.f32 %v12201_v25, 0.0  ;;  %v12211_v47 = vadd.f32 %v4729_v29, %v13865_v43  ;;  %v4744_v39 = vadd.f32 %v7421_v54, %v4589_v37  ;;  %v13868_v29 = vld [vmem:[#allocation30_spill] sm:$0xff] }
 0x538   :  { %5572 = vmatpush1.msra.mxu1 %v5057_v16  ;;  %4813 = vst [vmem:[#allocation4 + $0x73] sm:$0xff] %v4795_v60  ;;  %v4738_v31 = vpop.f32.mrf.mxu1  ;;  %v4844_v16 = vld [vmem:[#allocation4 + $0x39] sm:$0xff] }
 0x539   :  { %13866 = vst [vmem:[#allocation24_spill] sm:$0xff] %v12211_v47  ;;  %5573 = vmatprep.subr.mxu1 %v12130_v62  ;;  %v4798_v10 = vsel %vm2542_vm6, %v13703_v17, 0.0  ;;  %v4779_v21 = vmax.f32 %v12211_v47, 0.0  ;;  %v12223_v28 = vadd.f32 %v4744_v39, %v13868_v29  ;;  %v4739_v37 = vadd.f32 %v4738_v31, %v4584_v58  ;;  %v4862_v54 = vld [vmem:[#allocation4 + $0x3a] sm:$0xff]  ;;  %v13871_v58 = vld [vmem:[#allocation28_spill] sm:$0xff] }
 0x53a   :  { %5195 = vmatmul.mubr.f32.gmra.mxu0 %v4825_v30  ;;  %5340 = vmatmul.mubr.f32.gmra.mxu1 %v12144_v13  ;;  %4816 = vst [vmem:[#allocation4 + $0x8b] sm:$0xff] %v4798_v10  ;;  %v5055_v60 = vld [vmem:[%s13648_s9 + $0x350] sm:$0xff]  ;;  %v4826_v13 = vld [vmem:[#allocation4 + $0x38] sm:$0xff] }
 0x53b   :  { %13869 = vst [vmem:[#allocation32_spill] sm:$0xff] %v12223_v28  ;;  %5199 = vmatprep.mubr.f32.mxu0 %v4844_v16  ;;  %5344 = vmatprep.mubr.f32.mxu1 %v4862_v54  ;;  %v4797_v17 = vsel %vm2541_vm5, %v4779_v21, 0.0  ;;  %v4782_v39 = vmax.f32 %v12223_v28, 0.0  ;;  %v12235_v31 = vadd.f32 %v4739_v37, %v13871_v58  ;;  %v5054_v16 = vld [vmem:[%s13648_s9 + $0x348] sm:$0xff]  ;;  %v13874_v37 = vld [vmem:[#allocation27_spill] sm:$0xff] }
 0x53c   :  { %5574 = vmatpush1.msra.mxu1 %v5056_v41  ;;  %4815 = vst [vmem:[#allocation4 + $0x83] sm:$0xff] %v4797_v17  ;;  %v4845_v17 = vld [vmem:[#allocation4 + $0x41] sm:$0xff]  ;;  %vm13875_vm14 = vcmp.eq.s32.totalorder %v13874_v37, 1  ;;  %v6140_v47 = vld [vmem:[%s13650_s11 + $0x288] sm:$0xff] }
 0x53d   :  { %13872 = vst [vmem:[#allocation39_spill] sm:$0xff] %v12235_v31  ;;  %5575 = vmatprep.subr.mxu1 %v12130_v62  ;;  %v4800_v10 = vsel %vm2544_vm8, %v4782_v39, 0.0  ;;  %v4781_v29 = vmax.f32 %v12235_v31, 0.0  ;;  %v4863_v41 = vld [vmem:[#allocation4 + $0x42] sm:$0xff] }
 0x53e   :  { %5576 = vmatpush1.msra.mxu1 %v5055_v60  ;;  %5200 = vmatmul.mubr.f32.gmra.mxu0 %v4826_v13  ;;  %4818 = vst [vmem:[#allocation4 + $0x9b] sm:$0xff] %v4800_v10  ;;  %v5053_v60 = vld [vmem:[%s13648_s9 + $0x340] sm:$0xff]  ;;  %v4827_v13 = vld [vmem:[#allocation4 + $0x40] sm:$0xff]  ;;  %v5052_v10 = vld [vmem:[%s13648_s9 + $0x338] sm:$0xff] }
 0x53f   :  { %5345 = vmatmul.mubr.f32.gmra.mxu1 %v12174_v23  ;;  %5577 = vmatprep.subr.mxu1 %v12130_v62  ;;  %v4799_v58 = vsel %vm13875_vm14, %v4781_v29, 0.0  ;;  %v4846_v23 = vld [vmem:[#allocation4 + $0x49] sm:$0xff]  ;;  %vm13876_vm14 = vcmp.eq.s32.totalorder %v9861_v33, 1 }
 0x540   :  { %5204 = vmatprep.mubr.f32.mxu0 %v4845_v17  ;;  %5349 = vmatprep.mubr.f32.mxu1 %v4863_v41  ;;  %4817 = vst [vmem:[#allocation4 + $0x93] sm:$0xff] %v4799_v58  ;;  %v4864_v17 = vld [vmem:[#allocation4 + $0x4a] sm:$0xff]  ;;  %v5051_v58 = vld [vmem:[%s13648_s9 + $0x330] sm:$0xff] }
 0x541   :  { %5578 = vmatpush1.msra.mxu1 %v5054_v16  ;;  %v4828_v16 = vld [vmem:[#allocation4 + $0x48] sm:$0xff] }
 0x542   :  { %5579 = vmatprep.subr.mxu1 %v12130_v62  ;;  %5205 = vmatmul.mubr.f32.gmra.mxu0 %v4827_v13  ;;  %v4847_v13 = vld [vmem:[#allocation4 + $0x51] sm:$0xff] }
 0x543   :  { %5580 = vmatpush1.msra.mxu1 %v5053_v60  ;;  %5209 = vmatprep.mubr.f32.mxu0 %v4846_v23  ;;  %v5050_v60 = vld [vmem:[%s13648_s9 + $0x328] sm:$0xff]  ;;  %v5049_v23 = vld [vmem:[%s13648_s9 + $0x320] sm:$0xff] }
 0x544   :  { %5350 = vmatmul.mubr.f32.gmra.mxu1 %v4861_v38  ;;  %5581 = vmatprep.subr.mxu1 %v12130_v62  ;;  %v4865_v38 = vld [vmem:[#allocation4 + $0x52] sm:$0xff] }
 0x545   :  { %5354 = vmatprep.mubr.f32.mxu1 %v4864_v17  ;;  %5582 = vmatpush1.msra.mxu1 %v5052_v10  ;;  %v4829_v10 = vld [vmem:[#allocation4 + $0x50] sm:$0xff] }
 0x546   :  { %5583 = vmatprep.subr.mxu1 %v12130_v62  ;;  %5210 = vmatmul.mubr.f32.gmra.mxu0 %v4828_v16  ;;  %v4848_v16 = vld [vmem:[#allocation4 + $0x59] sm:$0xff] }
 0x547   :  { %5584 = vmatpush1.msra.mxu1 %v5051_v58  ;;  %5214 = vmatprep.mubr.f32.mxu0 %v4847_v13  ;;  %v5048_v58 = vld [vmem:[%s13648_s9 + $0x318] sm:$0xff]  ;;  %v5047_v13 = vld [vmem:[%s13648_s9 + $0x310] sm:$0xff] }
 0x548   :  { %5355 = vmatmul.mubr.f32.gmra.mxu1 %v4862_v54  ;;  %5585 = vmatprep.subr.mxu1 %v12130_v62  ;;  %v4866_v54 = vld [vmem:[#allocation4 + $0x5a] sm:$0xff] }
 0x549   :  { %5359 = vmatprep.mubr.f32.mxu1 %v4865_v38  ;;  %5586 = vmatpush1.msra.mxu1 %v5050_v60  ;;  %v4830_v60 = vld [vmem:[#allocation4 + $0x58] sm:$0xff] }
 0x54a   :  { %5587 = vmatprep.subr.mxu1 %v12130_v62  ;;  %5215 = vmatmul.mubr.f32.gmra.mxu0 %v4829_v10  ;;  %v4849_v10 = vld [vmem:[#allocation4 + $0x61] sm:$0xff] }
 0x54b   :  { %5588 = vmatpush1.msra.mxu1 %v5049_v23  ;;  %5219 = vmatprep.mubr.f32.mxu0 %v4848_v16  ;;  %v5046_v23 = vld [vmem:[%s13648_s9 + $0x308] sm:$0xff]  ;;  %v5045_v16 = vld [vmem:[%s13648_s9 + $0x300] sm:$0xff] }
 0x54c   :  { %5360 = vmatmul.mubr.f32.gmra.mxu1 %v4863_v41  ;;  %5589 = vmatprep.subr.mxu1 %v12130_v62  ;;  %v4867_v41 = vld [vmem:[#allocation4 + $0x62] sm:$0xff] }
 0x54d   :  { %5364 = vmatprep.mubr.f32.mxu1 %v4866_v54  ;;  %5590 = vmatpush1.msra.mxu1 %v5048_v58  ;;  %v4831_v58 = vld [vmem:[#allocation4 + $0x60] sm:$0xff] }
 0x54e   :  { %5591 = vmatprep.subr.mxu1 %v12130_v62  ;;  %5220 = vmatmul.mubr.f32.gmra.mxu0 %v4830_v60  ;;  %v4850_v60 = vld [vmem:[#allocation4 + $0x69] sm:$0xff] }
 0x54f   :  { %5592 = vmatpush1.msra.mxu1 %v5047_v13  ;;  %5224 = vmatprep.mubr.f32.mxu0 %v4849_v10  ;;  %v5076_v13 = vld [vmem:[%s13648_s9 + $0x3f8] sm:$0xff]  ;;  %v5075_v10 = vld [vmem:[%s13648_s9 + $0x3f0] sm:$0xff] }
 0x550   :  { %5365 = vmatmul.mubr.f32.gmra.mxu1 %v4864_v17  ;;  %5593 = vmatprep.subr.mxu1 %v12130_v62  ;;  %v4868_v17 = vld [vmem:[#allocation4 + $0x6a] sm:$0xff] }
 0x551   :  { %5369 = vmatprep.mubr.f32.mxu1 %v4867_v41  ;;  %5594 = vmatpush1.msra.mxu1 %v5046_v23  ;;  %v4832_v23 = vld [vmem:[#allocation4 + $0x68] sm:$0xff] }
 0x552   :  { %5595 = vmatprep.subr.mxu1 %v12130_v62  ;;  %5225 = vmatmul.mubr.f32.gmra.mxu0 %v4831_v58  ;;  %v4851_v58 = vld [vmem:[#allocation4 + $0x71] sm:$0xff] }
 0x553   :  { %5596 = vmatpush1.msra.mxu1 %v5045_v16  ;;  %5229 = vmatprep.mubr.f32.mxu0 %v4850_v60  ;;  %v5074_v16 = vld [vmem:[%s13648_s9 + $0x3e8] sm:$0xff]  ;;  %v5073_v60 = vld [vmem:[%s13648_s9 + $0x3e0] sm:$0xff] }
 0x554   :  { %5370 = vmatmul.mubr.f32.gmra.mxu1 %v4865_v38  ;;  %5597 = vmatprep.subr.mxu1 %v12130_v62  ;;  %v4869_v38 = vld [vmem:[#allocation4 + $0x72] sm:$0xff] }
 0x555   :  { %5374 = vmatprep.mubr.f32.mxu1 %v4868_v17  ;;  %5598 = vmatpush2.msra.mxu1 %v5076_v13  ;;  %v4833_v13 = vld [vmem:[#allocation4 + $0x70] sm:$0xff] }
 0x556   :  { %5599 = vmatprep.subr.mxu1 %v12130_v62  ;;  %5230 = vmatmul.mubr.f32.gmra.mxu0 %v4832_v23  ;;  %v4852_v23 = vld [vmem:[#allocation4 + $0x79] sm:$0xff] }
 0x557   :  { %5600 = vmatpush2.msra.mxu1 %v5075_v10  ;;  %5234 = vmatprep.mubr.f32.mxu0 %v4851_v58  ;;  %v5072_v10 = vld [vmem:[%s13648_s9 + $0x3d8] sm:$0xff]  ;;  %v5071_v58 = vld [vmem:[%s13648_s9 + $0x3d0] sm:$0xff] }
 0x558   :  { %5375 = vmatmul.mubr.f32.gmra.mxu1 %v4866_v54  ;;  %5601 = vmatprep.subr.mxu1 %v12130_v62  ;;  %v4870_v54 = vld [vmem:[#allocation4 + $0x7a] sm:$0xff] }
 0x559   :  { %5379 = vmatprep.mubr.f32.mxu1 %v4869_v38  ;;  %5602 = vmatpush2.msra.mxu1 %v5074_v16  ;;  %v4834_v16 = vld [vmem:[#allocation4 + $0x78] sm:$0xff] }
 0x55a   :  { %5603 = vmatprep.subr.mxu1 %v12130_v62  ;;  %5235 = vmatmul.mubr.f32.gmra.mxu0 %v4833_v13  ;;  %v4853_v13 = vld [vmem:[#allocation4 + $0x81] sm:$0xff] }
 0x55b   :  { %5604 = vmatpush2.msra.mxu1 %v5073_v60  ;;  %5239 = vmatprep.mubr.f32.mxu0 %v4852_v23  ;;  %v5070_v60 = vld [vmem:[%s13648_s9 + $0x3c8] sm:$0xff]  ;;  %v5069_v23 = vld [vmem:[%s13648_s9 + $0x3c0] sm:$0xff] }
 0x55c   :  { %5380 = vmatmul.mubr.f32.gmra.mxu1 %v4867_v41  ;;  %5605 = vmatprep.subr.mxu1 %v12130_v62  ;;  %v4871_v41 = vld [vmem:[#allocation4 + $0x82] sm:$0xff] }
 0x55d   :  { %5384 = vmatprep.mubr.f32.mxu1 %v4870_v54  ;;  %5606 = vmatpush2.msra.mxu1 %v5072_v10  ;;  %v4835_v10 = vld [vmem:[#allocation4 + $0x80] sm:$0xff] }
 0x55e   :  { %5607 = vmatprep.subr.mxu1 %v12130_v62  ;;  %5240 = vmatmul.mubr.f32.gmra.mxu0 %v4834_v16  ;;  %v4854_v16 = vld [vmem:[#allocation4 + $0x89] sm:$0xff] }
 0x55f   :  { %5608 = vmatpush2.msra.mxu1 %v5071_v58  ;;  %5244 = vmatprep.mubr.f32.mxu0 %v4853_v13  ;;  %v5068_v58 = vld [vmem:[%s13648_s9 + $0x3b8] sm:$0xff]  ;;  %v5067_v13 = vld [vmem:[%s13648_s9 + $0x3b0] sm:$0xff] }
 0x560   :  { %5385 = vmatmul.mubr.f32.gmra.mxu1 %v4868_v17  ;;  %5609 = vmatprep.subr.mxu1 %v12130_v62  ;;  %v4872_v17 = vld [vmem:[#allocation4 + $0x8a] sm:$0xff] }
 0x561   :  { %5389 = vmatprep.mubr.f32.mxu1 %v4871_v41  ;;  %5610 = vmatpush2.msra.mxu1 %v5070_v60  ;;  %v4836_v60 = vld [vmem:[#allocation4 + $0x88] sm:$0xff] }
 0x562   :  { %5611 = vmatprep.subr.mxu1 %v12130_v62  ;;  %5245 = vmatmul.mubr.f32.gmra.mxu0 %v4835_v10  ;;  %v4893_v10 = vld [vmem:[#allocation4 + $0x14] sm:$0xff] }
 0x563   :  { %5612 = vmatpush2.msra.mxu1 %v5069_v23  ;;  %5249 = vmatprep.mubr.f32.mxu0 %v4854_v16  ;;  %v5066_v23 = vld [vmem:[%s13648_s9 + $0x3a8] sm:$0xff]  ;;  %v5065_v16 = vld [vmem:[%s13648_s9 + $0x3a0] sm:$0xff] }
 0x564   :  { %5390 = vmatmul.mubr.f32.gmra.mxu1 %v4869_v38  ;;  %5613 = vmatprep.subr.mxu1 %v12130_v62  ;;  %v4873_v38 = vld [vmem:[#allocation4 + $0x92] sm:$0xff] }
 0x565   :  { %5394 = vmatprep.mubr.f32.mxu1 %v4872_v17  ;;  %5614 = vmatpush2.msra.mxu1 %v5068_v58  ;;  %v4894_v58 = vld [vmem:[#allocation4 + $0x1c] sm:$0xff] }
 0x566   :  { %5615 = vmatprep.subr.mxu1 %v12130_v62  ;;  %5250 = vmatmul.mubr.f32.gmra.mxu0 %v4836_v60  ;;  %v4874_v60 = vld [vmem:[#allocation4 + $0x9a] sm:$0xff] }
 0x567   :  { %5616 = vmatpush2.msra.mxu1 %v5067_v13  ;;  %5474 = vmatprep.mubr.f32.mxu0 %v4893_v10  ;;  %v12343_v13 = vpop.f32.mrf.mxu0  ;;  %v5063_v10 = vld [vmem:[%s13648_s9 + $0x390] sm:$0xff] }
 0x568   :  { %5395 = vmatmul.mubr.f32.gmra.mxu1 %v4870_v54  ;;  %5617 = vmatprep.subr.mxu1 %v12130_v62  ;;  %v5064_v54 = vld [vmem:[%s13648_s9 + $0x398] sm:$0xff] }
 0x569   :  { %5399 = vmatprep.mubr.f32.mxu1 %v4873_v38  ;;  %5618 = vmatpush2.msra.mxu1 %v5066_v23  ;;  %v5168_v23 = vpop.f32.mrf.mxu0  ;;  %v5062_v38 = vld [vmem:[%s13648_s9 + $0x388] sm:$0xff] }
 0x56a   :  { %5619 = vmatprep.subr.mxu1 %v12130_v62  ;;  %7622 = vmatmul.mubr.msk.f32.vlgmr.msra.gmra.mxu0 %vm13876_vm14, %v4765_v24  ;;  %v13877_v24 = vld [vmem:[#allocation37_spill] sm:$0xff]  ;;  %vm13878_vm14 = vcmp.eq.s32.totalorder %v9913_v57, 1  ;;  %v4914_v23 = vld [vmem:[#allocation4 + $0x2d] sm:$0xff] }
 0x56b   :  { %5620 = vmatpush2.msra.mxu1 %v5065_v16  ;;  %5479 = vmatprep.mubr.f32.mxu0 %v4894_v58  ;;  %v12354_v16 = vpop.f32.mrf.mxu0  ;;  %v4895_v58 = vld [vmem:[#allocation4 + $0x24] sm:$0xff] }
 0x56c   :  { %5400 = vmatmul.mubr.f32.gmra.mxu1 %v4871_v41  ;;  %5621 = vmatprep.subr.mxu1 %v12130_v62  ;;  %v5091_v41 = vld [vmem:[%s13648_s9 + $0x470] sm:$0xff] }
 0x56d   :  { %5404 = vmatprep.mubr.f32.mxu1 %v4874_v60  ;;  %5622 = vmatpush2.msra.mxu1 %v5064_v54  ;;  %v5173_v54 = vpop.f32.mrf.mxu0  ;;  %v4913_v60 = vld [vmem:[#allocation4 + $0x25] sm:$0xff] }
 0x56e   :  { %7423 = vmatpush3.msra.mxu0 %v13877_v24  ;;  %5623 = vmatprep.subr.mxu1 %v12130_v62  ;;  %v5089_v24 = vld [vmem:[%s13648_s9 + $0x460] sm:$0xff]  ;;  %v4916_v54 = vld [vmem:[#allocation4 + $0x3d] sm:$0xff] }
 0x56f   :  { %5624 = vmatpush2.msra.mxu1 %v5063_v10  ;;  %7623 = vmatmul.mubr.msk.f32.gmra.mxu0 %vm2528_vm11, %v4766_v48  ;;  %v5061_v10 = vld [vmem:[%s13648_s9 + $0x380] sm:$0xff]  ;;  %v5090_v48 = vld [vmem:[%s13648_s9 + $0x468] sm:$0xff] }
 0x570   :  { %5405 = vmatmul.mubr.f32.gmra.mxu1 %v4872_v17  ;;  %5625 = vmatprep.subr.mxu1 %v12130_v62  ;;  %v4896_v17 = vld [vmem:[#allocation4 + $0x2c] sm:$0xff] }
 0x571   :  { %5484 = vmatprep.mubr.f32.mxu0 %v4895_v58  ;;  %5626 = vmatpush2.msra.mxu1 %v5062_v38  ;;  %v4897_v38 = vld [vmem:[#allocation4 + $0x34] sm:$0xff] }
 0x572   :  { %5629 = vmatprep.mubr.f32.mxu1 %v4913_v60  ;;  %7424 = vmatprep.subr.mxu0 %v5091_v41  ;;  %v4899_v60 = vld [vmem:[#allocation4 + $0x44] sm:$0xff] }
 0x573   :  { %5627 = vmatprep.subr.mxu1 %v12130_v62  ;;  %7425 = vmatpush3.msra.mxu0 %v5091_v41  ;;  %v4915_v41 = vld [vmem:[#allocation4 + $0x35] sm:$0xff] }
 0x574   :  { %5628 = vmatpush2.msra.mxu1 %v5061_v10  ;;  %7624 = vmatmul.mubr.msk.f32.gmra.mxu0 %vm13878_vm14, %v4767_v51  ;;  %v5088_v51 = vld [vmem:[%s13648_s9 + $0x458] sm:$0xff]  ;;  %vm13880_vm14 = vcmp.eq.s32.totalorder %v13874_v37, 1 }
 0x575   :  { %5630 = vmatmul.mubr.f32.vlgmr.msra.gmra.mxu1 %v4895_v58  ;;  %5489 = vmatprep.mubr.f32.mxu0 %v4896_v17  ;;  %v4898_v58 = vld [vmem:[#allocation4 + $0x3c] sm:$0xff]  ;;  %v4917_v10 = vld [vmem:[#allocation4 + $0x45] sm:$0xff] }
 0x576   :  { %5634 = vmatprep.mubr.f32.mxu1 %v4914_v23  ;;  %7426 = vmatprep.subr.mxu0 %v5090_v48  ;;  %v4901_v23 = vld [vmem:[#allocation4 + $0x54] sm:$0xff] }
 0x577   :  { %7427 = vmatpush3.msra.mxu0 %v5090_v48  ;;  %6210 = vmatprep.subr.mxu1 %v12130_v62  ;;  %v4900_v48 = vld [vmem:[#allocation4 + $0x4c] sm:$0xff] }
 0x578   :  { %7625 = vmatmul.mubr.msk.f32.gmra.mxu0 %vm2530_vm1, %v4768_v63  ;;  %7428 = vmatprep.subr.mxu0 %v5089_v24  ;;  %v5087_v63 = vld [vmem:[%s13648_s9 + $0x450] sm:$0xff] }
 0x579   :  { %5635 = vmatmul.mubr.f32.gmra.mxu1 %v4896_v17  ;;  %5494 = vmatprep.mubr.f32.mxu0 %v4897_v38  ;;  %v4918_v17 = vld [vmem:[#allocation4 + $0x4d] sm:$0xff] }
 0x57a   :  { %5639 = vmatprep.mubr.f32.mxu1 %v4915_v41  ;;  %7429 = vmatpush3.msra.mxu0 %v5089_v24  ;;  %v4919_v24 = vld [vmem:[#allocation4 + $0x55] sm:$0xff]  ;;  %v4903_v41 = vld [vmem:[#allocation4 + $0x64] sm:$0xff] }
 0x57b   :  { %7430 = vmatprep.subr.mxu0 %v5088_v51 }
 0x57c   :  { %7626 = vmatmul.mubr.msk.f32.gmra.mxu0 %vm2531_vm4, %v4769_v1  ;;  %v5086_v1 = vld [vmem:[%s13648_s9 + $0x448] sm:$0xff] }
 0x57d   :  { %5640 = vmatmul.mubr.f32.gmra.mxu1 %v4897_v38  ;;  %5499 = vmatprep.mubr.f32.mxu0 %v4898_v58  ;;  %v4902_v38 = vld [vmem:[#allocation4 + $0x5c] sm:$0xff] }
 0x57e   :  { %5644 = vmatprep.mubr.f32.mxu1 %v4916_v54  ;;  %7431 = vmatpush3.msra.mxu0 %v5088_v51  ;;  %v4920_v51 = vld [vmem:[#allocation4 + $0x5d] sm:$0xff]  ;;  %v4922_v54 = vld [vmem:[#allocation4 + $0x6d] sm:$0xff] }
 0x57f   :  { %7432 = vmatprep.subr.mxu0 %v5087_v63 }
 0x580   :  { %7627 = vmatmul.mubr.msk.f32.gmra.mxu0 %vm2532_vm7, %v4770_v8  ;;  %v5085_v8 = vld [vmem:[%s13648_s9 + $0x440] sm:$0xff] }
 0x581   :  { %5645 = vmatmul.mubr.f32.gmra.mxu1 %v4898_v58  ;;  %5504 = vmatprep.mubr.f32.mxu0 %v4899_v60  ;;  %v4921_v58 = vld [vmem:[#allocation4 + $0x65] sm:$0xff] }
 0x582   :  { %5649 = vmatprep.mubr.f32.mxu1 %v4917_v10  ;;  %7433 = vmatpush3.msra.mxu0 %v5087_v63  ;;  %v4904_v63 = vld [vmem:[#allocation4 + $0x6c] sm:$0xff]  ;;  %v4906_v10 = vld [vmem:[#allocation4 + $0x7c] sm:$0xff] }
 0x583   :  { %7434 = vmatprep.subr.mxu0 %v5086_v1 }
 0x584   :  { %7628 = vmatmul.mubr.msk.f32.gmra.mxu0 %vm2533_vm15, %v4771_v42  ;;  %v5084_v42 = vld [vmem:[%s13648_s9 + $0x438] sm:$0xff] }
 0x585   :  { %5650 = vmatmul.mubr.f32.gmra.mxu1 %v4899_v60  ;;  %5509 = vmatprep.mubr.f32.mxu0 %v4900_v48  ;;  %v4905_v60 = vld [vmem:[#allocation4 + $0x74] sm:$0xff] }
 0x586   :  { %5654 = vmatprep.mubr.f32.mxu1 %v4918_v17  ;;  %7435 = vmatpush3.msra.mxu0 %v5086_v1  ;;  %v4923_v1 = vld [vmem:[#allocation4 + $0x75] sm:$0xff]  ;;  %v4925_v17 = vld [vmem:[#allocation4 + $0x85] sm:$0xff] }
 0x587   :  { %7436 = vmatprep.subr.mxu0 %v5085_v8 }
 0x588   :  { %7629 = vmatmul.mubr.msk.f32.gmra.mxu0 %vm2534_vm3, %v4772_v44  ;;  %v5083_v44 = vld [vmem:[%s13648_s9 + $0x430] sm:$0xff] }
 0x589   :  { %5655 = vmatmul.mubr.f32.gmra.mxu1 %v4900_v48  ;;  %5514 = vmatprep.mubr.f32.mxu0 %v4901_v23  ;;  %v4924_v48 = vld [vmem:[#allocation4 + $0x7d] sm:$0xff] }
 0x58a   :  { %5659 = vmatprep.mubr.f32.mxu1 %v4919_v24  ;;  %7437 = vmatpush3.msra.mxu0 %v5085_v8  ;;  %v4907_v8 = vld [vmem:[#allocation4 + $0x84] sm:$0xff]  ;;  %v13879_v24 = vmax.f32 %v12201_v25, 0.0 }
 0x58b   :  { %7438 = vmatprep.subr.mxu0 %v5084_v42 }
 0x58c   :  { %7630 = vmatmul.mubr.msk.f32.gmra.mxu0 %vm2535_vm9, %v4773_v26  ;;  %v5082_v26 = vld [vmem:[%s13648_s9 + $0x428] sm:$0xff] }
 0x58d   :  { %5660 = vmatmul.mubr.f32.gmra.mxu1 %v4901_v23  ;;  %5519 = vmatprep.mubr.f32.mxu0 %v4902_v38  ;;  %v4908_v23 = vld [vmem:[#allocation4 + $0x8c] sm:$0xff] }
 0x58e   :  { %5664 = vmatprep.mubr.f32.mxu1 %v4920_v51  ;;  %7439 = vmatpush3.msra.mxu0 %v5084_v42  ;;  %v4926_v42 = vld [vmem:[#allocation4 + $0x8d] sm:$0xff]  ;;  %v4928_v51 = vld [vmem:[#allocation4 + $0x9d] sm:$0xff] }
 0x58f   :  { %7440 = vmatprep.subr.mxu0 %v5083_v44 }
 0x590   :  { %7631 = vmatmul.mubr.msk.f32.gmra.mxu0 %vm2536_vm10, %v4774_v7  ;;  %v5081_v7 = vld [vmem:[%s13648_s9 + $0x420] sm:$0xff] }
 0x591   :  { %5665 = vmatmul.mubr.f32.gmra.mxu1 %v4902_v38  ;;  %5524 = vmatprep.mubr.f32.mxu0 %v4903_v41  ;;  %v4909_v38 = vld [vmem:[#allocation4 + $0x94] sm:$0xff] }
 0x592   :  { %5669 = vmatprep.mubr.f32.mxu1 %v4921_v58  ;;  %7441 = vmatpush3.msra.mxu0 %v5083_v44  ;;  %v4910_v44 = vld [vmem:[#allocation4 + $0x9c] sm:$0xff]  ;;  %v4911_v58 = vld [vmem:[#allocation4 + $0xa4] sm:$0xff] }
 0x593   :  { %7442 = vmatprep.subr.mxu0 %v5082_v26 }
 0x594   :  { %7632 = vmatmul.mubr.msk.f32.gmra.mxu0 %vm2537_vm12, %v4775_v32  ;;  %v5080_v32 = vld [vmem:[%s13648_s9 + $0x418] sm:$0xff] }
 0x595   :  { %5670 = vmatmul.mubr.f32.gmra.mxu1 %v4903_v41  ;;  %5529 = vmatprep.mubr.f32.mxu0 %v4904_v63  ;;  %v4929_v41 = vld [vmem:[#allocation4 + $0xa5] sm:$0xff] }
 0x596   :  { %5674 = vmatprep.mubr.f32.mxu1 %v4922_v54  ;;  %7443 = vmatpush3.msra.mxu0 %v5082_v26  ;;  %v4931_v26 = vld [vmem:[#allocation4 + $0x26] sm:$0xff] }
 0x597   :  { %7444 = vmatprep.subr.mxu0 %v5081_v7  ;;  %v4912_v54 = vld [vmem:[#allocation4 + $0xac] sm:$0xff] }
 0x598   :  { %7633 = vmatmul.mubr.msk.f32.gmra.mxu0 %vm2538_vm13, %v4776_v61  ;;  %v5079_v61 = vld [vmem:[%s13648_s9 + $0x410] sm:$0xff] }
 0x599   :  { %5675 = vmatmul.mubr.f32.gmra.mxu1 %v4904_v63  ;;  %5534 = vmatprep.mubr.f32.mxu0 %v4905_v60  ;;  %v4932_v63 = vld [vmem:[#allocation4 + $0x2e] sm:$0xff] }
 0x59a   :  { %5679 = vmatprep.mubr.f32.mxu1 %v4923_v1  ;;  %7445 = vmatpush3.msra.mxu0 %v5081_v7  ;;  %v4930_v7 = vld [vmem:[#allocation4 + $0xad] sm:$0xff]  ;;  %v6073_v1 = vld [vmem:[%s13650_s11 + $0x70] sm:$0xff] }
 0x59b   :  { %7446 = vmatprep.subr.mxu0 %v5080_v32 }
 0x59c   :  { %7634 = vmatmul.mubr.msk.f32.gmra.mxu0 %vm2539_vm0, %v4777_v6  ;;  %v5078_v6 = vld [vmem:[%s13648_s9 + $0x408] sm:$0xff] }
 0x59d   :  { %5680 = vmatmul.mubr.f32.gmra.mxu1 %v4905_v60  ;;  %5539 = vmatprep.mubr.f32.mxu0 %v4906_v10  ;;  %v4934_v60 = vld [vmem:[#allocation4 + $0x3e] sm:$0xff] }
 0x59e   :  { %5684 = vmatprep.mubr.f32.mxu1 %v4924_v48  ;;  %7447 = vmatpush3.msra.mxu0 %v5080_v32  ;;  %v4935_v32 = vld [vmem:[#allocation4 + $0x46] sm:$0xff]  ;;  %v4937_v48 = vld [vmem:[#allocation4 + $0x56] sm:$0xff] }
 0x59f   :  { %7448 = vmatprep.subr.mxu0 %v5079_v61 }
 0x5a0   :  { %7635 = vmatmul.mubr.msk.f32.gmra.mxu0 %vm2540_vm2, %v4778_v35  ;;  %v5077_v35 = vld [vmem:[%s13648_s9 + $0x400] sm:$0xff] }
 0x5a1   :  { %5685 = vmatmul.mubr.f32.gmra.mxu1 %v4906_v10  ;;  %5544 = vmatprep.mubr.f32.mxu0 %v4907_v8  ;;  %v4936_v10 = vld [vmem:[#allocation4 + $0x4e] sm:$0xff] }
 0x5a2   :  { %5689 = vmatprep.mubr.f32.mxu1 %v4925_v17  ;;  %7449 = vmatpush3.msra.mxu0 %v5079_v61  ;;  %v6072_v61 = vld [vmem:[%s13650_s11 + $0x68] sm:$0xff]  ;;  %v6070_v17 = vld [vmem:[%s13650_s11 + $0x58] sm:$0xff] }
 0x5a3   :  { %7450 = vmatprep.subr.mxu0 %v5078_v6 }
 0x5a4   :  { %7636 = vmatmul.mubr.msk.f32.gmra.mxu0 %vm2541_vm5, %v4779_v21  ;;  %v4927_v21 = vld [vmem:[#allocation4 + $0x95] sm:$0xff] }
 0x5a5   :  { %5690 = vmatmul.mubr.f32.gmra.mxu1 %v4907_v8  ;;  %5549 = vmatprep.mubr.f32.mxu0 %v4908_v23  ;;  %v6071_v8 = vld [vmem:[%s13650_s11 + $0x60] sm:$0xff] }
 0x5a6   :  { %5694 = vmatprep.mubr.f32.mxu1 %v4926_v42  ;;  %7451 = vmatpush3.msra.mxu0 %v5078_v6  ;;  %v4938_v6 = vld [vmem:[#allocation4 + $0x5e] sm:$0xff] }
 0x5a7   :  { %7452 = vmatprep.subr.mxu0 %v5077_v35  ;;  %v6069_v42 = vld [vmem:[%s13650_s11 + $0x50] sm:$0xff] }
 0x5a8   :  { %7637 = vmatmul.mubr.msk.f32.gmra.mxu0 %vm2542_vm6, %v13879_v24  ;;  %v4941_v24 = vld [vmem:[#allocation4 + $0x76] sm:$0xff] }
 0x5a9   :  { %5695 = vmatmul.mubr.f32.gmra.mxu1 %v4908_v23  ;;  %5554 = vmatprep.mubr.f32.mxu0 %v4909_v38  ;;  %v4939_v23 = vld [vmem:[#allocation4 + $0x66] sm:$0xff] }
 0x5aa   :  { %5699 = vmatprep.mubr.f32.mxu1 %v4927_v21  ;;  %7453 = vmatpush3.msra.mxu0 %v5077_v35  ;;  %v4940_v35 = vld [vmem:[#allocation4 + $0x6e] sm:$0xff]  ;;  %v4942_v21 = vld [vmem:[#allocation4 + $0x7e] sm:$0xff] }
 0x5ab   :  { %6365 = vmatprep.subr.mxu0 %v12130_v62 }
 0x5ac   :  { %7638 = vmatmul.mubr.msk.f32.gmra.mxu0 %vm13880_vm14, %v4781_v29  ;;  %v4933_v29 = vld [vmem:[#allocation4 + $0x36] sm:$0xff]  ;;  %vm13890_vm14 = vcmp.eq.s32.totalorder %v9861_v33, 1 }
 0x5ad   :  { %5700 = vmatmul.mubr.f32.gmra.mxu1 %v4909_v38  ;;  %5559 = vmatprep.mubr.f32.mxu0 %v4910_v44  ;;  %v6068_v38 = vld [vmem:[%s13650_s11 + $0x48] sm:$0xff] }
 0x5ae   :  { %5704 = vmatprep.mubr.f32.mxu1 %v4928_v51  ;;  %v6106_v51 = vld [vmem:[%s13650_s11 + $0x178] sm:$0xff] }
 0x5b0   :  { %7639 = vmatmul.mubr.msk.f32.gmra.mxu0 %vm2544_vm8, %v4782_v39  ;;  %v6074_v39 = vld [vmem:[%s13650_s11 + $0x78] sm:$0xff] }
 0x5b1   :  { %5705 = vmatmul.mubr.f32.gmra.mxu1 %v4910_v44  ;;  %7454 = vmatprep.mubr.f32.mxu0 %v4931_v26  ;;  %v6067_v44 = vld [vmem:[%s13650_s11 + $0x40] sm:$0xff]  ;;  %v6066_v26 = vld [vmem:[%s13650_s11 + $0x38] sm:$0xff] }
 0x5b2   :  { %5709 = vmatprep.mubr.f32.mxu1 %v4929_v41  ;;  %6211 = vmatpush1.msra.mxu1 %v6074_v39  ;;  %v4943_v41 = vld [vmem:[#allocation4 + $0x86] sm:$0xff]  ;;  %v4946_v39 = vld [vmem:[#allocation4 + $0x9e] sm:$0xff] }
 0x5b3   :  { %6212 = vmatprep.subr.mxu1 %v12130_v62 }
 0x5b4   :  { %7455 = vmatmul.mubr.f32.vlgmr.msra.gmra.mxu0 %v4932_v63  ;;  %6213 = vmatpush1.msra.mxu1 %v6073_v1  ;;  %v4944_v63 = vld [vmem:[#allocation4 + $0x8e] sm:$0xff]  ;;  %v6064_v1 = vld [vmem:[%s13650_s11 + $0x28] sm:$0xff] }
 0x5b5   :  { %5710 = vmatmul.mubr.f32.gmra.mxu1 %v4911_v58  ;;  %7457 = vmatprep.mubr.f32.mxu0 %v4933_v29  ;;  %v6105_v58 = vld [vmem:[%s13650_s11 + $0x170] sm:$0xff]  ;;  %v4945_v29 = vld [vmem:[#allocation4 + $0x96] sm:$0xff] }
 0x5b6   :  { %5714 = vmatprep.mubr.f32.mxu1 %v4930_v7  ;;  %6214 = vmatprep.subr.mxu1 %v12130_v62  ;;  %v6065_v7 = vld [vmem:[%s13650_s11 + $0x30] sm:$0xff] }
 0x5b7   :  { %6215 = vmatpush1.msra.mxu1 %v6072_v61  ;;  %6366 = vmatpush1.msra.mxu0 %v6106_v51  ;;  %v4948_v61 = vld [vmem:[#allocation4 + $0xae] sm:$0xff]  ;;  %v6096_v51 = vld [vmem:[%s13650_s11 + $0x128] sm:$0xff] }
 0x5b8   :  { %7458 = vmatmul.mubr.f32.gmra.mxu0 %v4934_v60  ;;  %6216 = vmatprep.subr.mxu1 %v12130_v62  ;;  %v4947_v60 = vld [vmem:[#allocation4 + $0xa6] sm:$0xff] }
 0x5b9   :  { %5715 = vmatmul.mubr.f32.gmra.mxu1 %v4912_v54  ;;  %7460 = vmatprep.mubr.f32.mxu0 %v4935_v32  ;;  %v6104_v54 = vld [vmem:[%s13650_s11 + $0x168] sm:$0xff]  ;;  %v6103_v32 = vld [vmem:[%s13650_s11 + $0x160] sm:$0xff] }
 0x5ba   :  { %6217 = vmatpush1.msra.mxu1 %v6071_v8  ;;  %6367 = vmatprep.subr.mxu0 %v12130_v62  ;;  %v6101_v8 = vld [vmem:[%s13650_s11 + $0x150] sm:$0xff] }
 0x5bb   :  { %6218 = vmatprep.subr.mxu1 %v12130_v62  ;;  %6368 = vmatpush1.msra.mxu0 %v6105_v58  ;;  %v6088_v58 = vld [vmem:[%s13650_s11 + $0xe8] sm:$0xff] }
 0x5bc   :  { %7461 = vmatmul.mubr.f32.gmra.mxu0 %v4936_v10  ;;  %6219 = vmatpush1.msra.mxu1 %v6070_v17  ;;  %v6102_v10 = vld [vmem:[%s13650_s11 + $0x158] sm:$0xff]  ;;  %v6100_v17 = vld [vmem:[%s13650_s11 + $0x148] sm:$0xff] }
 0x5bd   :  { %7463 = vmatprep.mubr.f32.mxu0 %v4937_v48  ;;  %6220 = vmatprep.subr.mxu1 %v12130_v62  ;;  %v6063_v48 = vld [vmem:[%s13650_s11 + $0x20] sm:$0xff] }
 0x5be   :  { %6221 = vmatpush1.msra.mxu1 %v6069_v42  ;;  %6369 = vmatprep.subr.mxu0 %v12130_v62  ;;  %v6060_v42 = vld [vmem:[%s13650_s11 + $0x8] sm:$0xff] }
 0x5bf   :  { %6222 = vmatprep.subr.mxu1 %v12130_v62  ;;  %6370 = vmatpush1.msra.mxu0 %v6104_v54  ;;  %v6086_v54 = vld [vmem:[%s13650_s11 + $0xd8] sm:$0xff] }
 0x5c0   :  { %7464 = vmatmul.mubr.f32.gmra.mxu0 %v4938_v6  ;;  %6223 = vmatpush1.msra.mxu1 %v6068_v38  ;;  %v6062_v6 = vld [vmem:[%s13650_s11 + $0x18] sm:$0xff]  ;;  %v6059_v38 = vld [vmem:[%s13650_s11] sm:$0xff] }
 0x5c1   :  { %7466 = vmatprep.mubr.f32.mxu0 %v4939_v23  ;;  %6224 = vmatprep.subr.mxu1 %v12130_v62  ;;  %v6061_v23 = vld [vmem:[%s13650_s11 + $0x10] sm:$0xff] }
 0x5c2   :  { %6225 = vmatpush1.msra.mxu1 %v6067_v44  ;;  %6371 = vmatprep.subr.mxu0 %v12130_v62  ;;  %v6090_v44 = vld [vmem:[%s13650_s11 + $0xf8] sm:$0xff] }
 0x5c3   :  { %6226 = vmatprep.subr.mxu1 %v12130_v62  ;;  %6372 = vmatpush1.msra.mxu0 %v6103_v32  ;;  %v12622_v32 = vld [vmem:[%s13651_s10] ss:$0 sm:$0xff] }
 0x5c4   :  { %7467 = vmatmul.mubr.f32.gmra.mxu0 %v4940_v35  ;;  %6227 = vmatpush1.msra.mxu1 %v6066_v26  ;;  %v12556_v35 = vld [vmem:[#allocation4] sm:$0xff]  ;;  %v6095_v26 = vld [vmem:[%s13650_s11 + $0x120] sm:$0xff] }
 0x5c5   :  { %7469 = vmatprep.mubr.f32.mxu0 %v4941_v24  ;;  %6228 = vmatprep.subr.mxu1 %v12130_v62  ;;  %v6098_v24 = vld [vmem:[%s13650_s11 + $0x138] sm:$0xff] }
 0x5c6   :  { %6229 = vmatpush1.msra.mxu1 %v6065_v7  ;;  %6373 = vmatprep.subr.mxu0 %v12130_v62  ;;  %v6087_v7 = vld [vmem:[%s13650_s11 + $0xe0] sm:$0xff] }
 0x5c7   :  { %6230 = vmatprep.subr.mxu1 %v12130_v62  ;;  %6374 = vmatpush1.msra.mxu0 %v6102_v10  ;;  %v5167_v10 = vadd.f32 %v12622_v32, %v12343_v13  ;;  %v6121_v13 = vld [vmem:[%s13650_s11 + $0x1f0] sm:$0xff] }
 0x5c8   :  { %7470 = vmatmul.mubr.f32.gmra.mxu0 %v4942_v21  ;;  %6231 = vmatpush1.msra.mxu1 %v6064_v1  ;;  %v6097_v21 = vld [vmem:[%s13650_s11 + $0x130] sm:$0xff] }
 0x5c9   :  { %7472 = vmatprep.mubr.f32.mxu0 %v4943_v41  ;;  %6232 = vmatprep.subr.mxu1 %v12130_v62  ;;  %v6089_v41 = vld [vmem:[%s13650_s11 + $0xf0] sm:$0xff] }
 0x5ca   :  { %6233 = vmatpush1.msra.mxu1 %v6063_v48  ;;  %6375 = vmatprep.subr.mxu0 %v12130_v62  ;;  %v6085_v1 = vld [vmem:[%s13650_s11 + $0xd0] sm:$0xff] }
 0x5cb   :  { %6234 = vmatprep.subr.mxu1 %v12130_v62  ;;  %6376 = vmatpush1.msra.mxu0 %v6101_v8  ;;  %v6099_v62 = vld [vmem:[%s13650_s11 + $0x140] sm:$0xff] }
 0x5cc   :  { %7473 = vmatmul.mubr.f32.gmra.mxu0 %v4944_v63  ;;  %6235 = vmatpush1.msra.mxu1 %v6062_v6  ;;  %v6094_v63 = vld [vmem:[%s13650_s11 + $0x118] sm:$0xff]  ;;  %v6084_v6 = vld [vmem:[%s13650_s11 + $0xc8] sm:$0xff] }
 0x5cd   :  { %7475 = vmatprep.mubr.f32.mxu0 %v4945_v29  ;;  %6377 = vmatprep.subr.mxu0 %v12556_v35  ;;  %v6093_v29 = vld [vmem:[%s13650_s11 + $0x110] sm:$0xff] }
 0x5ce   :  { %6236 = vmatprep.subr.mxu1 %v12556_v35  ;;  %6378 = vmatpush1.msra.mxu0 %v6100_v17 }
 0x5cf   :  { %6237 = vmatpush1.msra.mxu1 %v6061_v23  ;;  %6379 = vmatprep.subr.mxu0 %v12556_v35  ;;  %v6083_v23 = vld [vmem:[%s13650_s11 + $0xc0] sm:$0xff] }
 0x5d0   :  { %7476 = vmatmul.mubr.f32.gmra.mxu0 %v4946_v39  ;;  %6238 = vmatprep.subr.mxu1 %v12556_v35  ;;  %v6091_v39 = vld [vmem:[%s13650_s11 + $0x100] sm:$0xff] }
 0x5d1   :  { %7478 = vmatprep.mubr.f32.mxu0 %v4947_v60  ;;  %6380 = vmatpush1.msra.mxu0 %v6099_v62  ;;  %v6092_v60 = vld [vmem:[%s13650_s11 + $0x108] sm:$0xff] }
 0x5d2   :  { %6239 = vmatpush1.msra.mxu1 %v6060_v42  ;;  %6381 = vmatprep.subr.mxu0 %v12556_v35 }
 0x5d3   :  { %6240 = vmatprep.subr.mxu1 %v12556_v35  ;;  %6382 = vmatpush1.msra.mxu0 %v6098_v24  ;;  %v5172_v24 = vadd.f32 %v12622_v32, %v12354_v16  ;;  %v6119_v16 = vld [vmem:[%s13650_s11 + $0x1e0] sm:$0xff] }
 0x5d4   :  { %7479 = vmatmul.mubr.f32.gmra.mxu0 %v4948_v61  ;;  %6241 = vmatpush1.msra.mxu1 %v6059_v38  ;;  %v6122_v61 = vld [vmem:[%s13650_s11 + $0x1f8] sm:$0xff]  ;;  %v6120_v38 = vld [vmem:[%s13650_s11 + $0x1e8] sm:$0xff] }
 0x5d5   :  { %6383 = vmatprep.subr.mxu0 %v12556_v35  ;;  %6242 = vmatprep.subr.mxu1 %v12556_v35 }
 0x5d6   :  { %6384 = vmatpush1.msra.mxu0 %v6097_v21  ;;  %6243 = vmatpush2.msra.mxu1 %v6090_v44 }
 0x5d7   :  { %6385 = vmatprep.subr.mxu0 %v12556_v35  ;;  %6244 = vmatprep.subr.mxu1 %v12556_v35 }
 0x5d8   :  { %6386 = vmatpush1.msra.mxu0 %v6096_v51  ;;  %6245 = vmatpush2.msra.mxu1 %v6089_v41  ;;  %v6082_v51 = vld [vmem:[%s13650_s11 + $0xb8] sm:$0xff] }
 0x5d9   :  { %6387 = vmatprep.subr.mxu0 %v12556_v35  ;;  %6246 = vmatprep.subr.mxu1 %v12556_v35 }
 0x5da   :  { %6388 = vmatpush1.msra.mxu0 %v6095_v26  ;;  %6247 = vmatpush2.msra.mxu1 %v6088_v58  ;;  %v6081_v26 = vld [vmem:[%s13650_s11 + $0xb0] sm:$0xff] }
 0x5db   :  { %6389 = vmatprep.subr.mxu0 %v12556_v35  ;;  %6248 = vmatprep.subr.mxu1 %v12556_v35 }
 0x5dc   :  { %6390 = vmatpush1.msra.mxu0 %v6094_v63  ;;  %6249 = vmatpush2.msra.mxu1 %v6087_v7 }
 0x5dd   :  { %6391 = vmatprep.subr.mxu0 %v12556_v35  ;;  %6250 = vmatprep.subr.mxu1 %v12556_v35 }
 0x5de   :  { %6392 = vmatpush1.msra.mxu0 %v6093_v29  ;;  %6251 = vmatpush2.msra.mxu1 %v6086_v54  ;;  %v6118_v29 = vld [vmem:[%s13650_s11 + $0x1d8] sm:$0xff] }
 0x5df   :  { %6393 = vmatprep.subr.mxu0 %v12556_v35  ;;  %6252 = vmatprep.subr.mxu1 %v12556_v35 }
 0x5e0   :  { %6394 = vmatpush1.msra.mxu0 %v6092_v60  ;;  %6253 = vmatpush2.msra.mxu1 %v6085_v1 }
 0x5e1   :  { %6395 = vmatprep.subr.mxu0 %v12556_v35  ;;  %6254 = vmatprep.subr.mxu1 %v12556_v35 }
 0x5e2   :  { %6396 = vmatpush1.msra.mxu0 %v6091_v39  ;;  %6255 = vmatpush2.msra.mxu1 %v6084_v6  ;;  %v6080_v39 = vld [vmem:[%s13650_s11 + $0xa8] sm:$0xff] }
 0x5e3   :  { %6397 = vmatprep.subr.mxu0 %v12556_v35  ;;  %6256 = vmatprep.subr.mxu1 %v12556_v35 }
 0x5e4   :  { %6398 = vmatpush2.msra.mxu0 %v6122_v61  ;;  %6257 = vmatpush2.msra.mxu1 %v6083_v23  ;;  %v6079_v61 = vld [vmem:[%s13650_s11 + $0xa0] sm:$0xff] }
 0x5e5   :  { %6399 = vmatprep.subr.mxu0 %v12556_v35  ;;  %6258 = vmatprep.subr.mxu1 %v12556_v35 }
 0x5e6   :  { %6400 = vmatpush2.msra.mxu0 %v6121_v13  ;;  %6259 = vmatpush2.msra.mxu1 %v6082_v51  ;;  %v6116_v13 = vld [vmem:[%s13650_s11 + $0x1c8] sm:$0xff] }
 0x5e7   :  { %6401 = vmatprep.subr.mxu0 %v12556_v35  ;;  %6260 = vmatprep.subr.mxu1 %v12556_v35 }
 0x5e8   :  { %6402 = vmatpush2.msra.mxu0 %v6120_v38  ;;  %6261 = vmatpush2.msra.mxu1 %v6081_v26  ;;  %v6078_v26 = vld [vmem:[%s13650_s11 + $0x98] sm:$0xff] }
 0x5e9   :  { %6403 = vmatprep.subr.mxu0 %v12556_v35  ;;  %6262 = vmatprep.subr.mxu1 %v12556_v35 }
 0x5ea   :  { %v5176_v48 = vpop.f32.mrf.mxu0  ;;  %v5321_v8 = vpop.f32.mrf.mxu1  ;;  %6404 = vmatpush2.msra.mxu0 %v6119_v16  ;;  %6263 = vmatpush2.msra.mxu1 %v6080_v39  ;;  %v6115_v16 = vld [vmem:[%s13650_s11 + $0x1c0] sm:$0xff] }
 0x5eb   :  { %v12642_v17 = vadd.f32 %v5321_v8, %v5167_v10  ;;  %v5177_v7 = vadd.f32 %v12622_v32, %v5176_v48  ;;  %6405 = vmatprep.subr.mxu0 %v12556_v35  ;;  %v6117_v10 = vld [vmem:[%s13650_s11 + $0x1d0] sm:$0xff]  ;;  %6264 = vmatprep.subr.mxu1 %v12556_v35 }
 0x5ec   :  { %v5178_v62 = vpop.f32.mrf.mxu0  ;;  %v5323_v42 = vpop.f32.mrf.mxu1  ;;  %6406 = vmatpush2.msra.mxu0 %v6118_v29  ;;  %6265 = vmatpush2.msra.mxu1 %v6079_v61  ;;  %v6114_v29 = vld [vmem:[%s13650_s11 + $0x1b8] sm:$0xff]  ;;  %v6076_v61 = vld [vmem:[%s13650_s11 + $0x88] sm:$0xff] }
 0x5ed   :  { %6407 = vmatprep.subr.mxu0 %v12556_v35  ;;  %6266 = vmatprep.subr.mxu1 %v12556_v35 }
 0x5ee   :  { %v5181_v21 = vpop.f32.mrf.mxu0  ;;  %v5326_v44 = vpop.f32.mrf.mxu1  ;;  %6408 = vmatpush2.msra.mxu0 %v6117_v10  ;;  %6267 = vmatpush2.msra.mxu1 %v6078_v26  ;;  %v6113_v10 = vld [vmem:[%s13650_s11 + $0x1b0] sm:$0xff] }
 0x5ef   :  { %v12662_v41 = vadd.f32 %v5326_v44, %v5172_v24  ;;  %v5182_v6 = vadd.f32 %v12622_v32, %v5181_v21  ;;  %6409 = vmatprep.subr.mxu0 %v12556_v35  ;;  %6268 = vmatprep.subr.mxu1 %v12556_v35 }
 0x5f0   :  { %v5183_v58 = vpop.f32.mrf.mxu0  ;;  %v5328_v63 = vpop.f32.mrf.mxu1  ;;  %6410 = vmatpush2.msra.mxu0 %v6116_v13  ;;  %v6112_v13 = vld [vmem:[%s13650_s11 + $0x1a8] sm:$0xff] }
 0x5f1   :  { %6411 = vmatprep.subr.mxu0 %v12556_v35 }
 0x5f2   :  { %v5186_v54 = vpop.f32.mrf.mxu0  ;;  %v5331_v60 = vpop.f32.mrf.mxu1  ;;  %6412 = vmatpush2.msra.mxu0 %v6115_v16 }
 0x5f3   :  { %v12681_v1 = vadd.f32 %v5331_v60, %v5177_v7  ;;  %v5187_v21 = vadd.f32 %v12622_v32, %v5186_v54  ;;  %6413 = vmatprep.subr.mxu0 %v12556_v35  ;;  %v6077_v54 = vld [vmem:[%s13650_s11 + $0x90] sm:$0xff] }
 0x5f4   :  { %v5188_v48 = vpop.f32.mrf.mxu0  ;;  %v5333_v8 = vpop.f32.mrf.mxu1  ;;  %6414 = vmatpush2.msra.mxu0 %v6114_v29  ;;  %6269 = vmatpush2.msra.mxu1 %v6077_v54  ;;  %v5948_v29 = vld [vmem:[#allocation4 + $0x9] sm:$0xff] }
 0x5f5   :  { %6415 = vmatprep.subr.mxu0 %v12556_v35  ;;  %6270 = vmatprep.subr.mxu1 %v12556_v35 }
 0x5f6   :  { %v5191_v23 = vpop.f32.mrf.mxu0  ;;  %v5336_v62 = vpop.f32.mrf.mxu1  ;;  %6416 = vmatpush2.msra.mxu0 %v6113_v10  ;;  %6271 = vmatpush2.msra.mxu1 %v6076_v61  ;;  %v6109_v10 = vld [vmem:[%s13650_s11 + $0x190] sm:$0xff] }
 0x5f7   :  { %v12697_v42 = vadd.f32 %v5336_v62, %v5182_v6  ;;  %v5192_v60 = vadd.f32 %v12622_v32, %v5191_v23  ;;  %6417 = vmatprep.subr.mxu0 %v12556_v35  ;;  %6272 = vmatprep.subr.mxu1 %v12556_v35  ;;  %v6075_v23 = vld [vmem:[%s13650_s11 + $0x80] sm:$0xff]  ;;  %v5947_v62 = vld [vmem:[#allocation4 + $0x1] sm:$0xff] }
 0x5f8   :  { %v5193_v24 = vpop.f32.mrf.mxu0  ;;  %v5338_v38 = vpop.f32.mrf.mxu1  ;;  %6418 = vmatpush2.msra.mxu0 %v6112_v13  ;;  %6273 = vmatpush2.msra.mxu1 %v6075_v23  ;;  %v6137_v61 = vld [vmem:[%s13650_s11 + $0x270] sm:$0xff]  ;;  %v6108_v23 = vld [vmem:[%s13650_s11 + $0x188] sm:$0xff] }
 0x5f9   :  { %6274 = vmatprep.mubr.f32.mxu1 %v5947_v62  ;;  %6419 = vmatprep.subr.mxu0 %v12556_v35  ;;  %v6136_v62 = vld [vmem:[%s13650_s11 + $0x268] sm:$0xff] }
 0x5fa   :  { %v5196_v44 = vpop.f32.mrf.mxu0  ;;  %v5341_v51 = vpop.f32.mrf.mxu1  ;;  %6275 = vmatmul.mubr.f32.vlgmr.msra.gmra.mxu1 %v12556_v35  ;;  %6520 = vmatprep.subr.mxu1 %v12556_v35 }
 0x5fb   :  { %v12708_v58 = vadd.f32 %v5341_v51, %v5187_v21  ;;  %v6111_v21 = vld [vmem:[%s13650_s11 + $0x1a0] sm:$0xff]  ;;  %v5197_v51 = vadd.f32 %v12622_v32, %v5196_v44  ;;  %6279 = vmatprep.mubr.f32.mxu1 %v5948_v29  ;;  %v6134_v29 = vld [vmem:[%s13650_s11 + $0x258] sm:$0xff] }
 0x5fc   :  { %v5198_v63 = vpop.f32.mrf.mxu0  ;;  %v5343_v7 = vpop.f32.mrf.mxu1  ;;  %6420 = vmatpush2.msra.mxu0 %v6111_v21 }
 0x5fd   :  { %6421 = vmatprep.subr.mxu0 %v12556_v35  ;;  %v6110_v63 = vld [vmem:[%s13650_s11 + $0x198] sm:$0xff] }
 0x5fe   :  { %v5201_v39 = vpop.f32.mrf.mxu0  ;;  %v6138_v7 = vld [vmem:[%s13650_s11 + $0x278] sm:$0xff]  ;;  %6422 = vmatpush2.msra.mxu0 %v6110_v63  ;;  %6280 = vmatmul.mubr.f32.gmra.mxu1 %v12556_v35 }
 0x5ff   :  { %v5346_v48 = vpop.f32.mrf.mxu1  ;;  %6521 = vmatpush1.msra.mxu1 %v6138_v7  ;;  %6423 = vmatprep.subr.mxu0 %v12556_v35 }
 0x600   :  { %v12727_v8 = vadd.f32 %v5346_v48, %v5192_v60  ;;  %v5203_v6 = vpop.f32.mrf.mxu0  ;;  %v5202_v48 = vadd.f32 %v12622_v32, %v5201_v39  ;;  %6424 = vmatpush2.msra.mxu0 %v6109_v10  ;;  %6522 = vmatprep.subr.mxu1 %v12556_v35 }
 0x601   :  { %v5348_v24 = vpop.f32.mrf.mxu1  ;;  %6425 = vmatprep.subr.mxu0 %v12556_v35  ;;  %6523 = vmatpush1.msra.mxu1 %v6137_v61 }
 0x602   :  { %v5206_v38 = vpop.f32.mrf.mxu0  ;;  %6426 = vmatpush2.msra.mxu0 %v6108_v23  ;;  %6524 = vmatprep.subr.mxu1 %v12556_v35 }
 0x603   :  { %6427 = vmatprep.subr.mxu0 %v12556_v35  ;;  %6525 = vmatpush1.msra.mxu1 %v6136_v62 }
 0x604   :  { %v5351_v16 = vpop.f32.mrf.mxu1  ;;  %v5208_v26 = vpop.f32.mrf.mxu0  ;;  %6526 = vmatprep.subr.mxu1 %v12556_v35 }
 0x605   :  { %v12751_v54 = vadd.f32 %v5351_v16, %v5197_v51  ;;  %v6107_v51 = vld [vmem:[%s13650_s11 + $0x180] sm:$0xff]  ;;  %v5207_v26 = vadd.f32 %v12622_v32, %v5206_v38 }
 0x606   :  { %v5353_v44 = vpop.f32.mrf.mxu1  ;;  %v5211_v60 = vpop.f32.mrf.mxu0  ;;  %v6135_v16 = vld [vmem:[%s13650_s11 + $0x260] sm:$0xff]  ;;  %6428 = vmatpush2.msra.mxu0 %v6107_v51 }
 0x607   :  { %6675 = vmatprep.subr.mxu0 %v12556_v35  ;;  %6527 = vmatpush1.msra.mxu1 %v6135_v16  ;;  %v5212_v38 = vadd.f32 %v12622_v32, %v5211_v60  ;;  %v6132_v60 = vld [vmem:[%s13650_s11 + $0x248] sm:$0xff] }
 0x608   :  { %v5356_v6 = vpop.f32.mrf.mxu1  ;;  %v5213_v13 = vpop.f32.mrf.mxu0  ;;  %6528 = vmatprep.subr.mxu1 %v12556_v35 }
 0x609   :  { %v12770_v24 = vadd.f32 %v5356_v6, %v5202_v48  ;;  %6529 = vmatpush1.msra.mxu1 %v6134_v29  ;;  %v6133_v13 = vld [vmem:[%s13650_s11 + $0x250] sm:$0xff] }
 0x60a   :  { %v5358_v39 = vpop.f32.mrf.mxu1  ;;  %v5216_v21 = vpop.f32.mrf.mxu0  ;;  %6530 = vmatprep.subr.mxu1 %v12556_v35 }
 0x60b   :  { %6531 = vmatpush1.msra.mxu1 %v6133_v13  ;;  %v5217_v51 = vadd.f32 %v12622_v32, %v5216_v21  ;;  %v6130_v21 = vld [vmem:[%s13650_s11 + $0x238] sm:$0xff]  ;;  %v6129_v13 = vld [vmem:[%s13650_s11 + $0x230] sm:$0xff] }
 0x60c   :  { %v5361_v63 = vpop.f32.mrf.mxu1  ;;  %v5218_v7 = vpop.f32.mrf.mxu0  ;;  %6532 = vmatprep.subr.mxu1 %v12556_v35 }
 0x60d   :  { %v12786_v44 = vadd.f32 %v5361_v63, %v5207_v26  ;;  %6533 = vmatpush1.msra.mxu1 %v6132_v60  ;;  %v6131_v63 = vld [vmem:[%s13650_s11 + $0x240] sm:$0xff] }
 0x60e   :  { %v5363_v10 = vpop.f32.mrf.mxu1  ;;  %v5221_v61 = vpop.f32.mrf.mxu0  ;;  %6534 = vmatprep.subr.mxu1 %v12556_v35 }
 0x60f   :  { %6535 = vmatpush1.msra.mxu1 %v6131_v63 }
 0x610   :  { %v5366_v48 = vpop.f32.mrf.mxu1  ;;  %v5223_v6 = vpop.f32.mrf.mxu0  ;;  %6536 = vmatprep.subr.mxu1 %v12556_v35 }
 0x611   :  { %v12794_v23 = vadd.f32 %v5366_v48, %v5212_v38  ;;  %v5222_v38 = vadd.f32 %v12622_v32, %v5221_v61  ;;  %6537 = vmatpush1.msra.mxu1 %v6130_v21  ;;  %v6128_v61 = vld [vmem:[%s13650_s11 + $0x228] sm:$0xff] }
 0x612   :  { %v5368_v62 = vpop.f32.mrf.mxu1  ;;  %v5226_v39 = vpop.f32.mrf.mxu0  ;;  %6538 = vmatprep.subr.mxu1 %v12556_v35 }
 0x613   :  { %6539 = vmatpush1.msra.mxu1 %v6129_v13 }
 0x614   :  { %v5371_v16 = vpop.f32.mrf.mxu1  ;;  %v5228_v26 = vpop.f32.mrf.mxu0  ;;  %6540 = vmatprep.subr.mxu1 %v12556_v35 }
 0x615   :  { %v12805_v7 = vadd.f32 %v5371_v16, %v5217_v51  ;;  %v5227_v16 = vadd.f32 %v12622_v32, %v5226_v39  ;;  %6541 = vmatpush1.msra.mxu1 %v6128_v61  ;;  %v6125_v39 = vld [vmem:[%s13650_s11 + $0x210] sm:$0xff] }
 0x616   :  { %v5373_v29 = vpop.f32.mrf.mxu1  ;;  %v5231_v10 = vpop.f32.mrf.mxu0  ;;  %6542 = vmatprep.subr.mxu1 %v12556_v35 }
 0x617   :  { %v6127_v29 = vld [vmem:[%s13650_s11 + $0x220] sm:$0xff]  ;;  %v5232_v13 = vadd.f32 %v12622_v32, %v5231_v10 }
 0x618   :  { %v5376_v48 = vpop.f32.mrf.mxu1  ;;  %v5233_v6 = vpop.f32.mrf.mxu0  ;;  %6543 = vmatpush1.msra.mxu1 %v6127_v29  ;;  %v6123_v10 = vld [vmem:[%s13650_s11 + $0x200] sm:$0xff] }
 0x619   :  { %v12816_v62 = vadd.f32 %v5376_v48, %v5222_v38  ;;  %v6126_v38 = vld [vmem:[%s13650_s11 + $0x218] sm:$0xff]  ;;  %6544 = vmatprep.subr.mxu1 %v12556_v35 }
 0x61a   :  { %v5378_v60 = vpop.f32.mrf.mxu1  ;;  %v5236_v51 = vpop.f32.mrf.mxu0  ;;  %6545 = vmatpush1.msra.mxu1 %v6126_v38 }
 0x61b   :  { %6546 = vmatprep.subr.mxu1 %v12556_v35  ;;  %v5237_v38 = vadd.f32 %v12622_v32, %v5236_v51  ;;  %v6153_v51 = vld [vmem:[%s13650_s11 + $0x2f0] sm:$0xff] }
 0x61c   :  { %v5381_v26 = vpop.f32.mrf.mxu1  ;;  %v5238_v63 = vpop.f32.mrf.mxu0  ;;  %6547 = vmatpush1.msra.mxu1 %v6125_v39 }
 0x61d   :  { %v12827_v21 = vadd.f32 %v5381_v26, %v5227_v16  ;;  %v6124_v16 = vld [vmem:[%s13650_s11 + $0x208] sm:$0xff]  ;;  %6548 = vmatprep.subr.mxu1 %v12556_v35 }
 0x61e   :  { %v5383_v48 = vpop.f32.mrf.mxu1  ;;  %v5241_v6 = vpop.f32.mrf.mxu0  ;;  %6549 = vmatpush1.msra.mxu1 %v6124_v16 }
 0x61f   :  { %6550 = vmatprep.subr.mxu1 %v12556_v35  ;;  %v5242_v31 = vadd.f32 %v12622_v32, %v5241_v6 }
 0x620   :  { %v5386_v60 = vpop.f32.mrf.mxu1  ;;  %v5243_v61 = vpop.f32.mrf.mxu0  ;;  %6551 = vmatpush1.msra.mxu1 %v6123_v10 }
 0x621   :  { %v12841_v26 = vadd.f32 %v5386_v60, %v5232_v13  ;;  %v6154_v13 = vld [vmem:[%s13650_s11 + $0x2f8] sm:$0xff]  ;;  %6552 = vmatprep.subr.mxu1 %v12556_v35 }
 0x622   :  { %v5388_v63 = vpop.f32.mrf.mxu1  ;;  %v5246_v29 = vpop.f32.mrf.mxu0  ;;  %6553 = vmatpush2.msra.mxu1 %v6154_v13 }
 0x623   :  { %6554 = vmatprep.subr.mxu1 %v12556_v35  ;;  %v5247_v6 = vadd.f32 %v12622_v32, %v5246_v29 }
 0x624   :  { %v5391_v48 = vpop.f32.mrf.mxu1  ;;  %v5248_v61 = vpop.f32.mrf.mxu0  ;;  %6555 = vmatpush2.msra.mxu1 %v6153_v51 }
 0x625   :  { %v12852_v39 = vadd.f32 %v5391_v48, %v5237_v38  ;;  %v6152_v38 = vld [vmem:[%s13650_s11 + $0x2e8] sm:$0xff]  ;;  %6556 = vmatprep.subr.mxu1 %v12556_v35 }
 0x626   :  { %v5393_v60 = vpop.f32.mrf.mxu1  ;;  %v5251_v63 = vpop.f32.mrf.mxu0  ;;  %6557 = vmatpush2.msra.mxu1 %v6152_v38 }
 0x627   :  { %13881 = vst [vmem:[#allocation36_spill] sm:$0xff] %v12852_v39  ;;  %6558 = vmatprep.subr.mxu1 %v12556_v35 }
 0x628   :  { %v5396_v16 = vpop.f32.mrf.mxu1  ;;  %v5253_v61 = vpop.f32.mrf.mxu0 }
 0x629   :  { %v12863_v10 = vadd.f32 %v5396_v16, %v5242_v31  ;;  %v6151_v61 = vld [vmem:[%s13650_s11 + $0x2e0] sm:$0xff]  ;;  %v6150_v31 = vld [vmem:[%s13650_s11 + $0x2d8] sm:$0xff] }
 0x62a   :  { %v5398_v48 = vpop.f32.mrf.mxu1  ;;  %v5476_v60 = vpop.f32.mrf.mxu0  ;;  %6559 = vmatpush2.msra.mxu1 %v6151_v61  ;;  %v6146_v61 = vld [vmem:[%s13650_s11 + $0x2b8] sm:$0xff] }
 0x62b   :  { %v12868_v13 = vadd.f32 %v5476_v60, %v12642_v17  ;;  %6560 = vmatprep.subr.mxu1 %v12556_v35  ;;  %v5252_v17 = vadd.f32 %v12622_v32, %v5251_v63  ;;  %v6147_v63 = vld [vmem:[%s13650_s11 + $0x2c0] sm:$0xff] }
 0x62c   :  { %v5401_v28 = vpop.f32.mrf.mxu1  ;;  %v5478_v52 = vpop.f32.mrf.mxu0  ;;  %6561 = vmatpush2.msra.mxu1 %v6150_v31 }
 0x62d   :  { %v12877_v51 = vadd.f32 %v5401_v28, %v5247_v6  ;;  %6562 = vmatprep.subr.mxu1 %v12556_v35  ;;  %v6149_v52 = vld [vmem:[%s13650_s11 + $0x2d0] sm:$0xff]  ;;  %v6148_v28 = vld [vmem:[%s13650_s11 + $0x2c8] sm:$0xff] }
 0x62e   :  { %v5403_v29 = vpop.f32.mrf.mxu1  ;;  %6563 = vmatpush2.msra.mxu1 %v6149_v52  ;;  %v6145_v52 = vld [vmem:[%s13650_s11 + $0x2b0] sm:$0xff] }
 0x62f   :  { %13882 = vst [vmem:[#allocation22_spill] sm:$0xff] %v12877_v51  ;;  %v5481_v16 = vpop.f32.mrf.mxu0  ;;  %6564 = vmatprep.subr.mxu1 %v12556_v35 }
 0x630   :  { %v5406_v38 = vpop.f32.mrf.mxu1  ;;  %v12882_v48 = vadd.f32 %v5481_v16, %v12662_v41  ;;  %6565 = vmatpush2.msra.mxu1 %v6148_v28 }
 0x631   :  { %v12891_v60 = vadd.f32 %v5406_v38, %v5252_v17  ;;  %v5483_v6 = vpop.f32.mrf.mxu0  ;;  %6566 = vmatprep.subr.mxu1 %v12556_v35 }
 0x632   :  { %v5408_v32 = vpop.f32.mrf.mxu1  ;;  %6567 = vmatpush2.msra.mxu1 %v6147_v63  ;;  %v6143_v63 = vld [vmem:[%s13650_s11 + $0x2a0] sm:$0xff] }
 0x633   :  { %13883 = vst [vmem:[#allocation35_spill] sm:$0xff] %v12891_v60  ;;  %6568 = vmatprep.subr.mxu1 %v12556_v35  ;;  %v6144_v32 = vld [vmem:[%s13650_s11 + $0x2a8] sm:$0xff] }
 0x634   :  { %v5486_v41 = vpop.f32.mrf.mxu0  ;;  %6569 = vmatpush2.msra.mxu1 %v6146_v61 }
 0x635   :  { %v12902_v31 = vadd.f32 %v5486_v41, %v12681_v1  ;;  %v12904_v29 = vpop.f32.mrf.mxu1  ;;  %6570 = vmatprep.subr.mxu1 %v12556_v35 }
 0x636   :  { %v5488_v17 = vpop.f32.mrf.mxu0  ;;  %6571 = vmatpush2.msra.mxu1 %v6145_v52  ;;  %v6142_v52 = vld [vmem:[%s13650_s11 + $0x298] sm:$0xff] }
 0x637   :  { %v5633_v16 = vpop.f32.mrf.mxu1  ;;  %6572 = vmatprep.subr.mxu1 %v12556_v35 }
 0x638   :  { %v12907_v38 = vpop.f32.mrf.mxu0  ;;  %6573 = vmatpush2.msra.mxu1 %v6144_v32 }
 0x639   :  { %v12913_v28 = vpop.f32.mrf.mxu1  ;;  %6574 = vmatprep.subr.mxu1 %v12556_v35 }
 0x63a   :  { %v5493_v1 = vpop.f32.mrf.mxu0  ;;  %6575 = vmatpush2.msra.mxu1 %v6143_v63 }
 0x63b   :  { %v5638_v6 = vpop.f32.mrf.mxu1  ;;  %6576 = vmatprep.subr.mxu1 %v12556_v35 }
 0x63c   :  { %v12919_v41 = vpop.f32.mrf.mxu0  ;;  %6577 = vmatpush2.msra.mxu1 %v6142_v52  ;;  %v6141_v6 = vld [vmem:[%s13650_s11 + $0x290] sm:$0xff]  ;;  %v6139_v52 = vld [vmem:[%s13650_s11 + $0x280] sm:$0xff] }
 0x63d   :  { %v12924_v61 = vpop.f32.mrf.mxu1  ;;  %6578 = vmatprep.subr.mxu1 %v12556_v35 }
 0x63e   :  { %v5498_v17 = vpop.f32.mrf.mxu0  ;;  %6579 = vmatpush2.msra.mxu1 %v6141_v6 }
 0x63f   :  { %v5643_v16 = vpop.f32.mrf.mxu1  ;;  %6580 = vmatprep.subr.mxu1 %v12556_v35 }
 0x640   :  { %v12931_v1 = vpop.f32.mrf.mxu0  ;;  %6581 = vmatpush2.msra.mxu1 %v6140_v47 }
 0x641   :  { %v12936_v32 = vpop.f32.mrf.mxu1  ;;  %6582 = vmatprep.subr.mxu1 %v12556_v35 }
 0x642   :  { %v5503_v17 = vpop.f32.mrf.mxu0  ;;  %6583 = vmatpush2.msra.mxu1 %v6139_v52 }
 0x643   :  { %v5648_v63 = vpop.f32.mrf.mxu1  ;;  %v12954_v17 = vld [vmem:[%s13650_s11 + $0x478] sm:$0xff] }
 0x644   :  { %v12940_v16 = vpop.f32.mrf.mxu0  ;;  %13884 = vst [vmem:[#allocation38_spill] sm:$0xff] %v12954_v17  ;;  %7540 = vmatprep.subr.mxu1 %v12954_v17 }
 0x645   :  { %v12948_v40 = vpop.f32.mrf.mxu1 }
 0x646   :  { %v5508_v25 = vpop.f32.mrf.mxu0 }
 0x647   :  { %v5653_v6 = vpop.f32.mrf.mxu1 }
 0x648   :  { %v12956_v63 = vpop.f32.mrf.mxu0 }
 0x649   :  { %v12959_v34 = vpop.f32.mrf.mxu1 }
 0x64a   :  { %v5513_v20 = vpop.f32.mrf.mxu0 }
 0x64b   :  { %v5658_v46 = vpop.f32.mrf.mxu1 }
 0x64c   :  { %v12961_v4 = vpop.f32.mrf.mxu0 }
 0x64d   :  { %v12963_v25 = vpop.f32.mrf.mxu1 }
 0x64e   :  { %v5518_v47 = vpop.f32.mrf.mxu0 }
 0x64f   :  { %v5663_v6 = vpop.f32.mrf.mxu1 }
 0x650   :  { %v12965_v52 = vpop.f32.mrf.mxu0 }
 0x651   :  { %v12967_v59 = vpop.f32.mrf.mxu1 }
 0x652   :  { %v5523_v27 = vpop.f32.mrf.mxu0 }
 0x653   :  { %v5668_v5 = vpop.f32.mrf.mxu1 }
 0x654   :  { %v12969_v9 = vpop.f32.mrf.mxu0 }
 0x655   :  { %v12971_v3 = vpop.f32.mrf.mxu1 }
 0x656   :  { %v5528_v18 = vpop.f32.mrf.mxu0 }
 0x657   :  { %v5673_v12 = vpop.f32.mrf.mxu1 }
 0x658   :  { %v12973_v20 = vpop.f32.mrf.mxu0 }
 0x659   :  { %v12975_v46 = vpop.f32.mrf.mxu1 }
 0x65a   :  { %v5533_v53 = vpop.f32.mrf.mxu0 }
 0x65b   :  { %v5678_v17 = vpop.f32.mrf.mxu1 }
 0x65c   :  { %v12977_v47 = vpop.f32.mrf.mxu0 }
 0x65d   :  { %v12979_v6 = vpop.f32.mrf.mxu1 }
 0x65e   :  { %v5538_v37 = vpop.f32.mrf.mxu0 }
 0x65f   :  { %v5683_v30 = vpop.f32.mrf.mxu1 }
 0x660   :  { %v12981_v27 = vpop.f32.mrf.mxu0 }
 0x661   :  { %v12983_v5 = vpop.f32.mrf.mxu1 }
 0x662   :  { %v5543_v43 = vpop.f32.mrf.mxu0 }
 0x663   :  { %v5688_v45 = vpop.f32.mrf.mxu1 }
 0x664   :  { %v12985_v18 = vpop.f32.mrf.mxu0 }
 0x665   :  { %13885 = vst [vmem:[#allocation26_spill] sm:$0xff] %v12985_v18  ;;  %v12987_v12 = vpop.f32.mrf.mxu1 }
 0x666   :  { %v5548_v56 = vpop.f32.mrf.mxu0 }
 0x667   :  { %v5693_v51 = vpop.f32.mrf.mxu1  ;;  %v5637_v56 = vadd.f32 %v12913_v28, %v12882_v48  ;;  %v5642_v48 = vadd.f32 %v12924_v61, %v12902_v31 }
 0x668   :  { %v12989_v53 = vpop.f32.mrf.mxu0 }
 0x669   :  { %v12991_v17 = vpop.f32.mrf.mxu1 }
 0x66a   :  { %v5553_v15 = vpop.f32.mrf.mxu0 }
 0x66b   :  { %v5698_v60 = vpop.f32.mrf.mxu1  ;;  %v5632_v15 = vadd.f32 %v12904_v29, %v12868_v13  ;;  %v5502_v13 = vadd.f32 %v12931_v1, %v12727_v8 }
 0x66c   :  { %v12993_v37 = vpop.f32.mrf.mxu0  ;;  %v5492_v60 = vadd.f32 %v12907_v38, %v12697_v42 }
 0x66d   :  { %13886 = vst [vmem:[#allocation25_spill] sm:$0xff] %v12993_v37  ;;  %v12995_v30 = vpop.f32.mrf.mxu1  ;;  %v5657_v61 = vadd.f32 %v12959_v34, %v5502_v13 }
 0x66e   :  { %13887 = vst [vmem:[#allocation30_spill] sm:$0xff] %v12995_v30  ;;  %v5558_v11 = vpop.f32.mrf.mxu0 }
 0x66f   :  { %v5703_v39 = vpop.f32.mrf.mxu1 }
 0x670   :  { %v12997_v43 = vpop.f32.mrf.mxu0 }
 0x671   :  { %13888 = vst [vmem:[#allocation28_spill] sm:$0xff] %v12997_v43  ;;  %v12999_v45 = vpop.f32.mrf.mxu1  ;;  %v5647_v43 = vadd.f32 %v12936_v32, %v5492_v60  ;;  %v5497_v32 = vadd.f32 %v12919_v41, %v12708_v58  ;;  %v5512_v58 = vadd.f32 %v12956_v63, %v12770_v24  ;;  %v5507_v60 = vadd.f32 %v12940_v16, %v12751_v54 }
 0x672   :  { %13889 = vst [vmem:[#allocation37_spill] sm:$0xff] %v12999_v45  ;;  %v5563_v18 = vpop.f32.mrf.mxu0  ;;  %v5522_v54 = vadd.f32 %v12965_v52, %v12794_v23 }
 0x673   :  { %v5708_v51 = vpop.f32.mrf.mxu1 }
 0x674   :  { %v7456_v0 = vpop.f32.mrf.mxu0 }
 0x675   :  { %v13007_v37 = vpop.f32.mrf.mxu1  ;;  %v13009_v11 = vadd.f32 %v7456_v0, %v5637_v56 }
 0x676   :  { %v5786_v39 = vpop.f32.mrf.mxu0 }
 0x677   :  { %v5876_v18 = vmax.f32 %v13009_v11, 0.0  ;;  %v5713_v30 = vpop.f32.mrf.mxu1  ;;  %v13013_v45 = vadd.f32 %v5786_v39, %v5632_v15 }
 0x678   :  { %v7459_v28 = vpop.f32.mrf.mxu0 }
 0x679   :  { %v5894_v0 = vsel %vm2528_vm11, %v5876_v18, 0.0  ;;  %v5875_v42 = vmax.f32 %v13013_v45, 0.0  ;;  %v13024_v29 = vpop.f32.mrf.mxu1  ;;  %v13026_v38 = vadd.f32 %v7459_v28, %v5647_v43  ;;  %v5652_v43 = vadd.f32 %v12948_v40, %v5497_v32 }
 0x67a   :  { %5912 = vst [vmem:[#allocation4 + $0x1b] sm:$0xff] %v5894_v0  ;;  %v5796_v31 = vpop.f32.mrf.mxu0  ;;  %v5667_v40 = vadd.f32 %v12967_v59, %v5512_v58  ;;  %v5662_v28 = vadd.f32 %v12963_v25, %v5507_v60  ;;  %v5517_v32 = vadd.f32 %v12961_v4, %v12786_v44  ;;  %v5965_v25 = vld [vmem:[#allocation4 + $0x2] sm:$0xff] }
 0x67b   :  { %v5893_v8 = vsel %vm13890_vm14, %v5875_v42, 0.0  ;;  %v5878_v1 = vmax.f32 %v13026_v38, 0.0  ;;  %v13036_v30 = vadd.f32 %v5796_v31, %v5642_v48  ;;  %v5718_v56 = vpop.f32.mrf.mxu1  ;;  %vm13891_vm14 = vcmp.eq.s32.totalorder %v9913_v57, 1  ;;  %v6170_v44 = vld [vmem:[%s13650_s11 + $0x378] sm:$0xff] }
 0x67c   :  { %5911 = vst [vmem:[#allocation4 + $0x13] sm:$0xff] %v5893_v8  ;;  %v7462_v51 = vpop.f32.mrf.mxu0  ;;  %v5672_v58 = vadd.f32 %v12971_v3, %v5517_v32 }
 0x67d   :  { %v5896_v34 = vsel %vm2530_vm1, %v5878_v1, 0.0  ;;  %v5877_v41 = vmax.f32 %v13036_v30, 0.0  ;;  %v13046_v15 = vadd.f32 %v7462_v51, %v5657_v61  ;;  %v5677_v61 = vadd.f32 %v12975_v46, %v5522_v54 }
 0x67e   :  { %5914 = vst [vmem:[#allocation4 + $0x2b] sm:$0xff] %v5896_v34  ;;  %v5806_v39 = vpop.f32.mrf.mxu0  ;;  %v5532_v46 = vadd.f32 %v12973_v20, %v12816_v62  ;;  %v5966_v62 = vld [vmem:[#allocation4 + $0xa] sm:$0xff] }
 0x67f   :  { %v5895_v24 = vsel %vm13891_vm14, %v5877_v41, 0.0  ;;  %v5880_v63 = vmax.f32 %v13046_v15, 0.0  ;;  %v13056_v48 = vadd.f32 %v5806_v39, %v5652_v43 }
 0x680   :  { %5913 = vst [vmem:[#allocation4 + $0x23] sm:$0xff] %v5895_v24  ;;  %v7465_v13 = vpop.f32.mrf.mxu0  ;;  %v5527_v24 = vadd.f32 %v12969_v9, %v12805_v7  ;;  %v5687_v20 = vadd.f32 %v12983_v5, %v5532_v46  ;;  %v6169_v5 = vld [vmem:[%s13650_s11 + $0x370] sm:$0xff] }
 0x681   :  { %v5898_v59 = vsel %vm2532_vm7, %v5880_v63, 0.0  ;;  %v5879_v16 = vmax.f32 %v13056_v48, 0.0  ;;  %v13066_v0 = vadd.f32 %v7465_v13, %v5667_v40  ;;  %v13132_v46 = vld [vmem:[#allocation4] sm:$0xff] }
 0x682   :  { %5916 = vst [vmem:[#allocation4 + $0x3b] sm:$0xff] %v5898_v59  ;;  %v5816_v31 = vpop.f32.mrf.mxu0  ;;  %v5682_v9 = vadd.f32 %v12979_v6, %v5527_v24 }
 0x683   :  { %v5897_v23 = vsel %vm2531_vm4, %v5879_v16, 0.0  ;;  %v5882_v52 = vmax.f32 %v13066_v0, 0.0  ;;  %v13076_v8 = vadd.f32 %v5816_v31, %v5662_v28  ;;  %v5949_v56 = vld [vmem:[#allocation4 + $0x11] sm:$0xff]  ;;  %v5950_v3 = vld [vmem:[#allocation4 + $0x19] sm:$0xff]  ;;  %v5542_v31 = vadd.f32 %v12981_v27, %v12841_v26 }
 0x684   :  { %v5967_v43 = vld [vmem:[#allocation4 + $0x12] sm:$0xff]  ;;  %5915 = vst [vmem:[#allocation4 + $0x33] sm:$0xff] %v5897_v23  ;;  %v7468_v4 = vpop.f32.mrf.mxu0  ;;  %6284 = vmatprep.mubr.f32.mxu1 %v5949_v56  ;;  %v13091_v40 = vld [vmem:[#allocation4 + $0x1a] sm:$0xff]  ;;  %v5537_v56 = vadd.f32 %v12977_v47, %v12827_v21 }
 0x685   :  { %v5931_v51 = vld [vmem:[#allocation4 + $0x10] sm:$0xff]  ;;  %6429 = vmatprep.mubr.f32.mxu0 %v5967_v43  ;;  %v5900_v34 = vsel %vm2534_vm3, %v5882_v52, 0.0  ;;  %v5881_v60 = vmax.f32 %v13076_v8, 0.0  ;;  %v13089_v39 = vadd.f32 %v7468_v4, %v5677_v61  ;;  %v5932_v32 = vld [vmem:[#allocation4 + $0x18] sm:$0xff]  ;;  %v5697_v26 = vadd.f32 %v12991_v17, %v5542_v31 }
 0x686   :  { %6285 = vmatmul.mubr.f32.gmra.mxu1 %v5931_v51  ;;  %6430 = vmatmul.mubr.f32.vlgmr.msra.gmra.mxu0 %v5965_v25  ;;  %5918 = vst [vmem:[#allocation4 + $0x4b] sm:$0xff] %v5900_v34  ;;  %v5826_v28 = vpop.f32.mrf.mxu0  ;;  %v6168_v17 = vld [vmem:[%s13650_s11 + $0x368] sm:$0xff]  ;;  %v5552_v34 = vadd.f32 %v12989_v53, %v12863_v10 }
 0x687   :  { %6289 = vmatprep.mubr.f32.mxu1 %v5950_v3  ;;  %6434 = vmatprep.mubr.f32.mxu0 %v13091_v40  ;;  %v5899_v13 = vsel %vm2533_vm15, %v5881_v60, 0.0  ;;  %v5884_v54 = vmax.f32 %v13089_v39, 0.0  ;;  %v13102_v59 = vadd.f32 %v5826_v28, %v5672_v58  ;;  %v5951_v23 = vld [vmem:[#allocation4 + $0x21] sm:$0xff]  ;;  %v13895_v10 = vld [vmem:[#allocation37_spill] sm:$0xff] }
 0x688   :  { %6676 = vmatpush1.msra.mxu0 %v6170_v44  ;;  %5917 = vst [vmem:[#allocation4 + $0x43] sm:$0xff] %v5899_v13  ;;  %v7471_v7 = vpop.f32.mrf.mxu0  ;;  %v5692_v44 = vadd.f32 %v12987_v12, %v5537_v56  ;;  %v5933_v47 = vld [vmem:[#allocation4 + $0x20] sm:$0xff]  ;;  %v13893_v13 = vld [vmem:[#allocation36_spill] sm:$0xff]  ;;  %v5707_v53 = vadd.f32 %v13895_v10, %v5552_v34 }
 0x689   :  { %6677 = vmatprep.subr.mxu0 %v12556_v35  ;;  %v5902_v25 = vsel %vm2536_vm10, %v5884_v54, 0.0  ;;  %v5883_v61 = vmax.f32 %v13102_v59, 0.0  ;;  %v13116_v6 = vadd.f32 %v7471_v7, %v5687_v20  ;;  %v13118_v35 = vld [vmem:[#allocation4 + $0x22] sm:$0xff]  ;;  %v13147_v20 = vld [vmem:[#allocation4 + $0x2a] sm:$0xff] }
 0x68a   :  { %6290 = vmatmul.mubr.f32.gmra.mxu1 %v5932_v32  ;;  %6435 = vmatmul.mubr.f32.gmra.mxu0 %v5966_v62  ;;  %5920 = vst [vmem:[#allocation4 + $0x5b] sm:$0xff] %v5902_v25  ;;  %v5836_v51 = vpop.f32.mrf.mxu0  ;;  %v5952_v62 = vld [vmem:[#allocation4 + $0x29] sm:$0xff]  ;;  %v13897_v56 = vld [vmem:[#allocation30_spill] sm:$0xff] }
 0x68b   :  { %6294 = vmatprep.mubr.f32.mxu1 %v5951_v23  ;;  %6439 = vmatprep.mubr.f32.mxu0 %v13118_v35  ;;  %v5901_v27 = vsel %vm2535_vm9, %v5883_v61, 0.0  ;;  %v5886_v58 = vmax.f32 %v13116_v6, 0.0  ;;  %v13129_v4 = vadd.f32 %v5836_v51, %v5682_v9  ;;  %v13894_v9 = vld [vmem:[#allocation26_spill] sm:$0xff]  ;;  %v6167_v23 = vld [vmem:[%s13650_s11 + $0x360] sm:$0xff] }
 0x68c   :  { %6678 = vmatpush1.msra.mxu0 %v6169_v5  ;;  %5919 = vst [vmem:[#allocation4 + $0x53] sm:$0xff] %v5901_v27  ;;  %v7474_v21 = vpop.f32.mrf.mxu0  ;;  %v5547_v7 = vadd.f32 %v13894_v9, %v13893_v13  ;;  %v5934_v27 = vld [vmem:[#allocation4 + $0x28] sm:$0xff]  ;;  %v5953_v13 = vld [vmem:[#allocation4 + $0x31] sm:$0xff]  ;;  %v6189_v3 = vld [vmem:[%s13650_s11 + $0x410] sm:$0xff] }
 0x68d   :  { %6679 = vmatprep.subr.mxu0 %v13132_v46  ;;  %v5904_v24 = vsel %vm2538_vm13, %v5886_v58, 0.0  ;;  %v5885_v12 = vmax.f32 %v13129_v4, 0.0  ;;  %v13145_v28 = vadd.f32 %v7474_v21, %v5697_v26  ;;  %v13898_v21 = vld [vmem:[#allocation35_spill] sm:$0xff]  ;;  %v6025_v30 = vld [vmem:[#allocation4 + $0x35] sm:$0xff] }
 0x68e   :  { %6295 = vmatmul.mubr.f32.gmra.mxu1 %v5933_v47  ;;  %6440 = vmatmul.mubr.f32.gmra.mxu0 %v5967_v43  ;;  %5922 = vst [vmem:[#allocation4 + $0x6b] sm:$0xff] %v5904_v24  ;;  %v5846_v32 = vpop.f32.mrf.mxu0  ;;  %v5702_v51 = vadd.f32 %v13897_v56, %v5547_v7  ;;  %v13899_v47 = vld [vmem:[#allocation28_spill] sm:$0xff]  ;;  %v6166_v9 = vld [vmem:[%s13650_s11 + $0x358] sm:$0xff]  ;;  %v13901_v7 = vld [vmem:[#allocation22_spill] sm:$0xff] }
 0x68f   :  { %6299 = vmatprep.mubr.f32.mxu1 %v5952_v62  ;;  %6444 = vmatprep.mubr.f32.mxu0 %v13147_v20  ;;  %v5903_v31 = vsel %vm2537_vm12, %v5885_v12, 0.0  ;;  %v5888_v43 = vmax.f32 %v13145_v28, 0.0  ;;  %v13158_v25 = vadd.f32 %v5846_v32, %v5692_v44  ;;  %v5562_v34 = vadd.f32 %v13899_v47, %v13898_v21  ;;  %v13902_v32 = vld [vmem:[#allocation25_spill] sm:$0xff]  ;;  %v5935_v47 = vld [vmem:[#allocation4 + $0x30] sm:$0xff]  ;;  %v6005_v45 = vld [vmem:[#allocation4 + $0x24] sm:$0xff] }
 0x690   :  { %6680 = vmatpush1.msra.mxu0 %v6168_v17  ;;  %5921 = vst [vmem:[#allocation4 + $0x63] sm:$0xff] %v5903_v31  ;;  %v7477_v26 = vpop.f32.mrf.mxu0  ;;  %v5557_v10 = vadd.f32 %v13902_v32, %v13901_v7  ;;  %v5971_v56 = vld [vmem:[#allocation4 + $0x32] sm:$0xff]  ;;  %v6008_v22 = vld [vmem:[#allocation4 + $0x3c] sm:$0xff]  ;;  %v6009_v2 = vld [vmem:[#allocation4 + $0x44] sm:$0xff] }
 0x691   :  { %6681 = vmatprep.subr.mxu0 %v13132_v46  ;;  %v5906_v44 = vsel %vm2540_vm2, %v5888_v43, 0.0  ;;  %v5887_v17 = vmax.f32 %v13158_v25, 0.0  ;;  %v13172_v62 = vadd.f32 %v7477_v26, %v5707_v53  ;;  %v5717_v21 = vadd.f32 %v13024_v29, %v5562_v34  ;;  %v6165_v29 = vld [vmem:[%s13650_s11 + $0x350] sm:$0xff]  ;;  %v6006_v11 = vld [vmem:[#allocation4 + $0x2c] sm:$0xff]  ;;  %v6188_v53 = vld [vmem:[%s13650_s11 + $0x408] sm:$0xff] }
 0x692   :  { %6300 = vmatmul.mubr.f32.gmra.mxu1 %v5934_v27  ;;  %6445 = vmatmul.mubr.f32.gmra.mxu0 %v13091_v40  ;;  %5924 = vst [vmem:[#allocation4 + $0x7b] sm:$0xff] %v5906_v44  ;;  %v5856_v31 = vpop.f32.mrf.mxu0  ;;  %v5712_v34 = vadd.f32 %v13007_v37, %v5557_v10  ;;  %v6164_v37 = vld [vmem:[%s13650_s11 + $0x348] sm:$0xff]  ;;  %v6027_v48 = vld [vmem:[#allocation4 + $0x45] sm:$0xff]  ;;  %v6187_v24 = vld [vmem:[%s13650_s11 + $0x400] sm:$0xff] }
 0x693   :  { %6682 = vmatpush1.msra.mxu0 %v6167_v23  ;;  %6304 = vmatprep.mubr.f32.mxu1 %v5953_v13  ;;  %v5905_v40 = vsel %vm2539_vm0, %v5887_v17, 0.0  ;;  %v5890_v26 = vmax.f32 %v13172_v62, 0.0  ;;  %v13186_v27 = vadd.f32 %v5856_v31, %v5702_v51  ;;  %v5972_v31 = vld [vmem:[#allocation4 + $0x3a] sm:$0xff]  ;;  %v6010_v49 = vld [vmem:[#allocation4 + $0x4c] sm:$0xff] }
 0x694   :  { %6449 = vmatprep.mubr.f32.mxu0 %v5971_v56  ;;  %6683 = vmatprep.subr.mxu0 %v13132_v46  ;;  %5923 = vst [vmem:[#allocation4 + $0x73] sm:$0xff] %v5905_v40  ;;  %v7480_v23 = vpop.f32.mrf.mxu0  ;;  %v6026_v38 = vld [vmem:[#allocation4 + $0x3d] sm:$0xff]  ;;  %v6028_v15 = vld [vmem:[#allocation4 + $0x4d] sm:$0xff]  ;;  %v6029_v8 = vld [vmem:[#allocation4 + $0x55] sm:$0xff] }
 0x695   :  { %6684 = vmatpush1.msra.mxu0 %v6166_v9  ;;  %v5908_v13 = vsel %vm2542_vm6, %v5890_v26, 0.0  ;;  %v5889_v51 = vmax.f32 %v13186_v27, 0.0  ;;  %v13198_v7 = vadd.f32 %v7480_v23, %v5717_v21  ;;  %v5954_v9 = vld [vmem:[#allocation4 + $0x39] sm:$0xff]  ;;  %v6190_v5 = vld [vmem:[%s13650_s11 + $0x418] sm:$0xff] }
 0x696   :  { %6305 = vmatmul.mubr.f32.gmra.mxu1 %v5935_v47  ;;  %6450 = vmatmul.mubr.f32.gmra.mxu0 %v13118_v35  ;;  %5926 = vst [vmem:[#allocation4 + $0x8b] sm:$0xff] %v5908_v13  ;;  %v5866_v32 = vpop.f32.mrf.mxu0  ;;  %v5936_v35 = vld [vmem:[#allocation4 + $0x38] sm:$0xff]  ;;  %v6041_v47 = vld [vmem:[#allocation4 + $0x26] sm:$0xff] }
 0x697   :  { %6685 = vmatprep.subr.mxu0 %v13132_v46  ;;  %6309 = vmatprep.mubr.f32.mxu1 %v5954_v9  ;;  %v5907_v21 = vsel %vm2541_vm5, %v5889_v51, 0.0  ;;  %v13732_v40 = vmax.f32 %v13198_v7, 0.0  ;;  %v13210_v23 = vadd.f32 %v5866_v32, %v5712_v34  ;;  %v6163_v34 = vld [vmem:[%s13650_s11 + $0x340] sm:$0xff]  ;;  %v5973_v32 = vld [vmem:[#allocation4 + $0x42] sm:$0xff]  ;;  %v13914_v44 = vmax.f32 %v13198_v7, 0.0 }
 0x698   :  { %6454 = vmatprep.mubr.f32.mxu0 %v5972_v31  ;;  %6686 = vmatpush1.msra.mxu0 %v6165_v29  ;;  %5925 = vst [vmem:[#allocation4 + $0x83] sm:$0xff] %v5907_v21  ;;  %v5955_v29 = vld [vmem:[#allocation4 + $0x41] sm:$0xff]  ;;  %v6011_v55 = vld [vmem:[#allocation4 + $0x54] sm:$0xff] }
 0x699   :  { %6687 = vmatprep.subr.mxu0 %v13132_v46  ;;  %v5910_v13 = vsel %vm2544_vm8, %v13732_v40, 0.0  ;;  %v13733_v9 = vmax.f32 %v13210_v23, 0.0  ;;  %v13907_v21 = vld [vmem:[#allocation27_spill] sm:$0xff]  ;;  %v6012_v19 = vld [vmem:[#allocation4 + $0x5c] sm:$0xff]  ;;  %v13912_v10 = vmax.f32 %v13210_v23, 0.0 }
 0x69a   :  { %6688 = vmatpush1.msra.mxu0 %v6164_v37  ;;  %6310 = vmatmul.mubr.f32.gmra.mxu1 %v5936_v35  ;;  %5928 = vst [vmem:[#allocation4 + $0x9b] sm:$0xff] %v5910_v13  ;;  %vm13908_vm14 = vcmp.eq.s32.totalorder %v13907_v21, 1  ;;  %v6162_v37 = vld [vmem:[%s13650_s11 + $0x338] sm:$0xff]  ;;  %v5937_v35 = vld [vmem:[#allocation4 + $0x40] sm:$0xff] }
 0x69b   :  { %6455 = vmatmul.mubr.f32.gmra.mxu0 %v13147_v20  ;;  %6689 = vmatprep.subr.mxu0 %v13132_v46  ;;  %v5909_v40 = vsel %vm13908_vm14, %v13733_v9, 0.0  ;;  %v5956_v20 = vld [vmem:[#allocation4 + $0x49] sm:$0xff]  ;;  %v6161_v13 = vld [vmem:[%s13650_s11 + $0x330] sm:$0xff]  ;;  %vm13909_vm14 = vcmp.eq.s32.totalorder %v9861_v33, 1  ;;  %v6015_v4 = vld [vmem:[#allocation4 + $0x74] sm:$0xff] }
 0x69c   :  { %6314 = vmatprep.mubr.f32.mxu1 %v5955_v29  ;;  %6459 = vmatprep.mubr.f32.mxu0 %v5973_v32  ;;  %5927 = vst [vmem:[#allocation4 + $0x93] sm:$0xff] %v5909_v40  ;;  %v5974_v29 = vld [vmem:[#allocation4 + $0x4a] sm:$0xff]  ;;  %v6160_v40 = vld [vmem:[%s13650_s11 + $0x328] sm:$0xff]  ;;  %v13910_v9 = vld [vmem:[#allocation38_spill] sm:$0xff] }
 0x69d   :  { %6690 = vmatpush1.msra.mxu0 %v6163_v34  ;;  %v5938_v34 = vld [vmem:[#allocation4 + $0x48] sm:$0xff]  ;;  %v6201_v33 = vld [vmem:[%s13650_s11 + $0x470] sm:$0xff]  ;;  %v6051_v7 = vld [vmem:[#allocation4 + $0x76] sm:$0xff] }
 0x69e   :  { %6691 = vmatprep.subr.mxu0 %v13132_v46  ;;  %6315 = vmatmul.mubr.f32.gmra.mxu1 %v5937_v35  ;;  %v5957_v35 = vld [vmem:[#allocation4 + $0x51] sm:$0xff]  ;;  %v6030_v0 = vld [vmem:[#allocation4 + $0x5d] sm:$0xff]  ;;  %v6031_v59 = vld [vmem:[#allocation4 + $0x65] sm:$0xff] }
 0x69f   :  { %6692 = vmatpush1.msra.mxu0 %v6162_v37  ;;  %6319 = vmatprep.mubr.f32.mxu1 %v5956_v20  ;;  %v6159_v37 = vld [vmem:[%s13650_s11 + $0x320] sm:$0xff]  ;;  %v6158_v20 = vld [vmem:[%s13650_s11 + $0x318] sm:$0xff]  ;;  %v6016_v6 = vld [vmem:[#allocation4 + $0x7c] sm:$0xff] }
 0x6a0   :  { %6460 = vmatmul.mubr.f32.gmra.mxu0 %v5971_v56  ;;  %6693 = vmatprep.subr.mxu0 %v13132_v46  ;;  %v5975_v56 = vld [vmem:[#allocation4 + $0x52] sm:$0xff]  ;;  %v6013_v36 = vld [vmem:[#allocation4 + $0x64] sm:$0xff] }
 0x6a1   :  { %6464 = vmatprep.mubr.f32.mxu0 %v5974_v29  ;;  %6694 = vmatpush1.msra.mxu0 %v6161_v13  ;;  %v5939_v13 = vld [vmem:[#allocation4 + $0x50] sm:$0xff]  ;;  %v6017_v25 = vld [vmem:[#allocation4 + $0x84] sm:$0xff] }
 0x6a2   :  { %6695 = vmatprep.subr.mxu0 %v13132_v46  ;;  %6320 = vmatmul.mubr.f32.gmra.mxu1 %v5938_v34  ;;  %v5958_v34 = vld [vmem:[#allocation4 + $0x59] sm:$0xff]  ;;  %v6014_v50 = vld [vmem:[#allocation4 + $0x6c] sm:$0xff]  ;;  %v6021_v23 = vld [vmem:[#allocation4 + $0xa4] sm:$0xff] }
 0x6a3   :  { %6696 = vmatpush1.msra.mxu0 %v6160_v40  ;;  %6324 = vmatprep.mubr.f32.mxu1 %v5957_v35  ;;  %v6157_v40 = vld [vmem:[%s13650_s11 + $0x310] sm:$0xff]  ;;  %v6156_v35 = vld [vmem:[%s13650_s11 + $0x308] sm:$0xff]  ;;  %v6032_v39 = vld [vmem:[#allocation4 + $0x6d] sm:$0xff] }
 0x6a4   :  { %6465 = vmatmul.mubr.f32.gmra.mxu0 %v5972_v31  ;;  %6697 = vmatprep.subr.mxu0 %v13132_v46  ;;  %v5976_v31 = vld [vmem:[#allocation4 + $0x5a] sm:$0xff]  ;;  %v6018_v28 = vld [vmem:[#allocation4 + $0x8c] sm:$0xff] }
 0x6a5   :  { %6469 = vmatprep.mubr.f32.mxu0 %v5975_v56  ;;  %6698 = vmatpush1.msra.mxu0 %v6159_v37  ;;  %v5940_v37 = vld [vmem:[#allocation4 + $0x58] sm:$0xff] }
 0x6a6   :  { %6699 = vmatprep.subr.mxu0 %v13132_v46  ;;  %6325 = vmatmul.mubr.f32.gmra.mxu1 %v5939_v13  ;;  %v5959_v13 = vld [vmem:[#allocation4 + $0x61] sm:$0xff]  ;;  %v6019_v27 = vld [vmem:[#allocation4 + $0x94] sm:$0xff] }
 0x6a7   :  { %6700 = vmatpush1.msra.mxu0 %v6158_v20  ;;  %6329 = vmatprep.mubr.f32.mxu1 %v5958_v34  ;;  %v6155_v20 = vld [vmem:[%s13650_s11 + $0x300] sm:$0xff]  ;;  %v6186_v34 = vld [vmem:[%s13650_s11 + $0x3f8] sm:$0xff]  ;;  %v6038_v62 = vld [vmem:[#allocation4 + $0x9d] sm:$0xff] }
 0x6a8   :  { %6470 = vmatmul.mubr.f32.gmra.mxu0 %v5973_v32  ;;  %6701 = vmatprep.subr.mxu0 %v13132_v46  ;;  %v5977_v32 = vld [vmem:[#allocation4 + $0x62] sm:$0xff] }
 0x6a9   :  { %6474 = vmatprep.mubr.f32.mxu0 %v5976_v31  ;;  %6702 = vmatpush1.msra.mxu0 %v6157_v40  ;;  %v5941_v40 = vld [vmem:[#allocation4 + $0x60] sm:$0xff] }
 0x6aa   :  { %6330 = vmatmul.mubr.f32.gmra.mxu1 %v5940_v37  ;;  %6703 = vmatprep.subr.mxu0 %v13132_v46  ;;  %v5960_v37 = vld [vmem:[#allocation4 + $0x69] sm:$0xff] }
 0x6ab   :  { %6334 = vmatprep.mubr.f32.mxu1 %v5959_v13  ;;  %6704 = vmatpush1.msra.mxu0 %v6156_v35  ;;  %v6185_v13 = vld [vmem:[%s13650_s11 + $0x3f0] sm:$0xff]  ;;  %v6184_v35 = vld [vmem:[%s13650_s11 + $0x3e8] sm:$0xff] }
 0x6ac   :  { %6475 = vmatmul.mubr.f32.gmra.mxu0 %v5974_v29  ;;  %6705 = vmatprep.subr.mxu0 %v13132_v46  ;;  %v5978_v29 = vld [vmem:[#allocation4 + $0x6a] sm:$0xff] }
 0x6ad   :  { %6479 = vmatprep.mubr.f32.mxu0 %v5977_v32  ;;  %6706 = vmatpush1.msra.mxu0 %v6155_v20  ;;  %v5942_v20 = vld [vmem:[#allocation4 + $0x68] sm:$0xff] }
 0x6ae   :  { %6335 = vmatmul.mubr.f32.gmra.mxu1 %v5941_v40  ;;  %6707 = vmatprep.subr.mxu0 %v13132_v46  ;;  %v5961_v40 = vld [vmem:[#allocation4 + $0x71] sm:$0xff] }
 0x6af   :  { %6339 = vmatprep.mubr.f32.mxu1 %v5960_v37  ;;  %6708 = vmatpush2.msra.mxu0 %v6186_v34  ;;  %v6183_v37 = vld [vmem:[%s13650_s11 + $0x3e0] sm:$0xff]  ;;  %v6182_v34 = vld [vmem:[%s13650_s11 + $0x3d8] sm:$0xff] }
 0x6b0   :  { %6480 = vmatmul.mubr.f32.gmra.mxu0 %v5975_v56  ;;  %6709 = vmatprep.subr.mxu0 %v13132_v46  ;;  %v5979_v56 = vld [vmem:[#allocation4 + $0x72] sm:$0xff] }
 0x6b1   :  { %6484 = vmatprep.mubr.f32.mxu0 %v5978_v29  ;;  %6710 = vmatpush2.msra.mxu0 %v6185_v13  ;;  %v5943_v13 = vld [vmem:[#allocation4 + $0x70] sm:$0xff] }
 0x6b2   :  { %6340 = vmatmul.mubr.f32.gmra.mxu1 %v5942_v20  ;;  %6711 = vmatprep.subr.mxu0 %v13132_v46  ;;  %v5962_v20 = vld [vmem:[#allocation4 + $0x79] sm:$0xff] }
 0x6b3   :  { %6344 = vmatprep.mubr.f32.mxu1 %v5961_v40  ;;  %6712 = vmatpush2.msra.mxu0 %v6184_v35  ;;  %v6181_v40 = vld [vmem:[%s13650_s11 + $0x3d0] sm:$0xff]  ;;  %v6180_v35 = vld [vmem:[%s13650_s11 + $0x3c8] sm:$0xff] }
 0x6b4   :  { %6485 = vmatmul.mubr.f32.gmra.mxu0 %v5976_v31  ;;  %6713 = vmatprep.subr.mxu0 %v13132_v46  ;;  %v5980_v31 = vld [vmem:[#allocation4 + $0x7a] sm:$0xff] }
 0x6b5   :  { %6489 = vmatprep.mubr.f32.mxu0 %v5979_v56  ;;  %6714 = vmatpush2.msra.mxu0 %v6183_v37  ;;  %v5944_v37 = vld [vmem:[#allocation4 + $0x78] sm:$0xff] }
 0x6b6   :  { %6345 = vmatmul.mubr.f32.gmra.mxu1 %v5943_v13  ;;  %6715 = vmatprep.subr.mxu0 %v13132_v46  ;;  %v5963_v13 = vld [vmem:[#allocation4 + $0x81] sm:$0xff] }
 0x6b7   :  { %6349 = vmatprep.mubr.f32.mxu1 %v5962_v20  ;;  %6716 = vmatpush2.msra.mxu0 %v6182_v34  ;;  %v6179_v20 = vld [vmem:[%s13650_s11 + $0x3c0] sm:$0xff]  ;;  %v6178_v34 = vld [vmem:[%s13650_s11 + $0x3b8] sm:$0xff] }
 0x6b8   :  { %6490 = vmatmul.mubr.f32.gmra.mxu0 %v5977_v32  ;;  %6717 = vmatprep.subr.mxu0 %v13132_v46  ;;  %v5981_v32 = vld [vmem:[#allocation4 + $0x82] sm:$0xff] }
 0x6b9   :  { %6494 = vmatprep.mubr.f32.mxu0 %v5980_v31  ;;  %6718 = vmatpush2.msra.mxu0 %v6181_v40  ;;  %v5945_v40 = vld [vmem:[#allocation4 + $0x80] sm:$0xff] }
 0x6ba   :  { %6350 = vmatmul.mubr.f32.gmra.mxu1 %v5944_v37  ;;  %6719 = vmatprep.subr.mxu0 %v13132_v46  ;;  %v5964_v37 = vld [vmem:[#allocation4 + $0x89] sm:$0xff] }
 0x6bb   :  { %6354 = vmatprep.mubr.f32.mxu1 %v5963_v13  ;;  %6720 = vmatpush2.msra.mxu0 %v6180_v35  ;;  %v6177_v13 = vld [vmem:[%s13650_s11 + $0x3b0] sm:$0xff]  ;;  %v6176_v35 = vld [vmem:[%s13650_s11 + $0x3a8] sm:$0xff] }
 0x6bc   :  { %6495 = vmatmul.mubr.f32.gmra.mxu0 %v5978_v29  ;;  %6721 = vmatprep.subr.mxu0 %v13132_v46  ;;  %v5982_v29 = vld [vmem:[#allocation4 + $0x8a] sm:$0xff] }
 0x6bd   :  { %6499 = vmatprep.mubr.f32.mxu0 %v5981_v32  ;;  %6722 = vmatpush2.msra.mxu0 %v6179_v20  ;;  %v5946_v20 = vld [vmem:[#allocation4 + $0x88] sm:$0xff] }
 0x6be   :  { %6355 = vmatmul.mubr.f32.gmra.mxu1 %v5945_v40  ;;  %6723 = vmatprep.subr.mxu0 %v13132_v46  ;;  %v6003_v40 = vld [vmem:[#allocation4 + $0x14] sm:$0xff] }
 0x6bf   :  { %6359 = vmatprep.mubr.f32.mxu1 %v5964_v37  ;;  %6724 = vmatpush2.msra.mxu0 %v6178_v34  ;;  %v6175_v37 = vld [vmem:[%s13650_s11 + $0x3a0] sm:$0xff]  ;;  %v6174_v34 = vld [vmem:[%s13650_s11 + $0x398] sm:$0xff] }
 0x6c0   :  { %6500 = vmatmul.mubr.f32.gmra.mxu0 %v5979_v56  ;;  %6725 = vmatprep.subr.mxu0 %v13132_v46  ;;  %v5983_v56 = vld [vmem:[#allocation4 + $0x92] sm:$0xff] }
 0x6c1   :  { %6504 = vmatprep.mubr.f32.mxu0 %v5982_v29  ;;  %6726 = vmatpush2.msra.mxu0 %v6177_v13  ;;  %v13310_v13 = vpop.f32.mrf.mxu1 }
 0x6c2   :  { %6360 = vmatmul.mubr.f32.gmra.mxu1 %v5946_v20  ;;  %6727 = vmatprep.subr.mxu0 %v13132_v46  ;;  %v6173_v20 = vld [vmem:[%s13650_s11 + $0x390] sm:$0xff] }
 0x6c3   :  { %6584 = vmatprep.mubr.f32.mxu1 %v6003_v40  ;;  %6728 = vmatpush2.msra.mxu0 %v6176_v35  ;;  %v6004_v35 = vld [vmem:[#allocation4 + $0x1c] sm:$0xff] }
 0x6c4   :  { %6505 = vmatmul.mubr.f32.gmra.mxu0 %v5980_v31  ;;  %6729 = vmatprep.subr.mxu0 %v13132_v46  ;;  %v6278_v31 = vpop.f32.mrf.mxu1  ;;  %v5984_v40 = vld [vmem:[#allocation4 + $0x9a] sm:$0xff] }
 0x6c5   :  { %6509 = vmatprep.mubr.f32.mxu0 %v5983_v56  ;;  %6730 = vmatpush2.msra.mxu0 %v6175_v37  ;;  %v6023_v56 = vld [vmem:[#allocation4 + $0x25] sm:$0xff] }
 0x6c6   :  { %7640 = vmatmul.mubr.msk.f32.vlgmr.msra.gmra.mxu1 %vm13909_vm14, %v5875_v42  ;;  %6731 = vmatprep.subr.mxu0 %v13132_v46  ;;  %v13321_v37 = vpop.f32.mrf.mxu1  ;;  %v6172_v42 = vld [vmem:[%s13650_s11 + $0x388] sm:$0xff]  ;;  %v6049_v31 = vld [vmem:[#allocation4 + $0x66] sm:$0xff] }
 0x6c7   :  { %6589 = vmatprep.mubr.f32.mxu1 %v6004_v35  ;;  %6732 = vmatpush2.msra.mxu0 %v6174_v34  ;;  %v6171_v34 = vld [vmem:[%s13650_s11 + $0x380] sm:$0xff] }
 0x6c8   :  { %6510 = vmatmul.mubr.f32.gmra.mxu0 %v5981_v32  ;;  %7556 = vmatpush3.msra.mxu1 %v13910_v9  ;;  %v6283_v32 = vpop.f32.mrf.mxu1  ;;  %v6040_v35 = vld [vmem:[#allocation4 + $0xad] sm:$0xff] }
 0x6c9   :  { %6514 = vmatprep.mubr.f32.mxu0 %v5984_v40  ;;  %6733 = vmatprep.subr.mxu0 %v13132_v46  ;;  %v6050_v40 = vld [vmem:[#allocation4 + $0x6e] sm:$0xff]  ;;  %v6043_v32 = vld [vmem:[#allocation4 + $0x36] sm:$0xff] }
 0x6ca   :  { %6734 = vmatpush2.msra.mxu0 %v6173_v20  ;;  %7641 = vmatmul.mubr.msk.f32.gmra.mxu1 %vm2528_vm11, %v5876_v18  ;;  %vm13911_vm11 = vcmp.eq.s32.totalorder %v9913_v57, 1  ;;  %v6024_v18 = vld [vmem:[#allocation4 + $0x2d] sm:$0xff] }
 0x6cb   :  { %6735 = vmatprep.subr.mxu0 %v13132_v46  ;;  %6594 = vmatprep.mubr.f32.mxu1 %v6005_v45  ;;  %v6007_v57 = vld [vmem:[#allocation4 + $0x34] sm:$0xff]  ;;  %v6022_v20 = vld [vmem:[#allocation4 + $0xac] sm:$0xff] }
 0x6cc   :  { %6515 = vmatmul.mubr.f32.gmra.mxu0 %v5982_v29  ;;  %7541 = vmatprep.subr.mxu1 %v6201_v33  ;;  %v6047_v29 = vld [vmem:[#allocation4 + $0x56] sm:$0xff] }
 0x6cd   :  { %6736 = vmatpush2.msra.mxu0 %v6172_v42  ;;  %6739 = vmatprep.mubr.f32.mxu0 %v6023_v56  ;;  %v6053_v42 = vld [vmem:[#allocation4 + $0x86] sm:$0xff]  ;;  %v6054_v56 = vld [vmem:[#allocation4 + $0x8e] sm:$0xff] }
 0x6ce   :  { %6737 = vmatprep.subr.mxu0 %v13132_v46  ;;  %7557 = vmatpush3.msra.mxu1 %v6201_v33  ;;  %v6199_v46 = vld [vmem:[%s13650_s11 + $0x460] sm:$0xff] }
 0x6cf   :  { %6738 = vmatpush2.msra.mxu0 %v6171_v34  ;;  %7642 = vmatmul.mubr.msk.f32.gmra.mxu1 %vm13911_vm11, %v5877_v41  ;;  %v6198_v41 = vld [vmem:[%s13650_s11 + $0x458] sm:$0xff]  ;;  %v6044_v34 = vld [vmem:[#allocation4 + $0x3e] sm:$0xff] }
 0x6d0   :  { %6740 = vmatmul.mubr.f32.vlgmr.msra.gmra.mxu0 %v6005_v45  ;;  %6599 = vmatprep.mubr.f32.mxu1 %v6006_v11  ;;  %v6042_v45 = vld [vmem:[#allocation4 + $0x2e] sm:$0xff] }
 0x6d1   :  { %6744 = vmatprep.mubr.f32.mxu0 %v6024_v18  ;;  %7542 = vmatprep.subr.mxu1 %v6200_v14  ;;  %v6057_v18 = vld [vmem:[#allocation4 + $0xa6] sm:$0xff] }
 0x6d2   :  { %7558 = vmatpush3.msra.mxu1 %v6200_v14  ;;  %7481 = vmatprep.subr.mxu0 %v13910_v9 }
 0x6d3   :  { %7643 = vmatmul.mubr.msk.f32.gmra.mxu1 %vm2530_vm1, %v5878_v1  ;;  %7482 = vmatpush3.msra.mxu0 %v13910_v9  ;;  %v6197_v1 = vld [vmem:[%s13650_s11 + $0x450] sm:$0xff]  ;;  %vm13913_vm1 = vcmp.eq.s32.totalorder %v13907_v21, 1 }
 0x6d4   :  { %6745 = vmatmul.mubr.f32.gmra.mxu0 %v6006_v11  ;;  %6604 = vmatprep.mubr.f32.mxu1 %v6007_v57  ;;  %v6020_v9 = vld [vmem:[#allocation4 + $0x9c] sm:$0xff]  ;;  %v6045_v11 = vld [vmem:[#allocation4 + $0x46] sm:$0xff] }
 0x6d5   :  { %6749 = vmatprep.mubr.f32.mxu0 %v6025_v30  ;;  %7543 = vmatprep.subr.mxu1 %v6199_v46  ;;  %v6048_v21 = vld [vmem:[#allocation4 + $0x5e] sm:$0xff]  ;;  %v6058_v30 = vld [vmem:[#allocation4 + $0xae] sm:$0xff] }
 0x6d6   :  { %7559 = vmatpush3.msra.mxu1 %v6199_v46  ;;  %7483 = vmatprep.subr.mxu0 %v6201_v33 }
 0x6d7   :  { %7644 = vmatmul.mubr.msk.f32.gmra.mxu1 %vm2531_vm4, %v5879_v16  ;;  %7484 = vmatpush3.msra.mxu0 %v6201_v33  ;;  %v6196_v16 = vld [vmem:[%s13650_s11 + $0x448] sm:$0xff] }
 0x6d8   :  { %6750 = vmatmul.mubr.f32.gmra.mxu0 %v6007_v57  ;;  %6609 = vmatprep.mubr.f32.mxu1 %v6008_v22  ;;  %v6052_v33 = vld [vmem:[#allocation4 + $0x7e] sm:$0xff]  ;;  %v6046_v57 = vld [vmem:[#allocation4 + $0x4e] sm:$0xff] }
 0x6d9   :  { %6754 = vmatprep.mubr.f32.mxu0 %v6026_v38  ;;  %7544 = vmatprep.subr.mxu1 %v6198_v41 }
 0x6da   :  { %7560 = vmatpush3.msra.mxu1 %v6198_v41  ;;  %7485 = vmatprep.subr.mxu0 %v6200_v14 }
 0x6db   :  { %7645 = vmatmul.mubr.msk.f32.gmra.mxu1 %vm2532_vm7, %v5880_v63  ;;  %7486 = vmatpush3.msra.mxu0 %v6200_v14  ;;  %v6195_v63 = vld [vmem:[%s13650_s11 + $0x440] sm:$0xff] }
 0x6dc   :  { %6755 = vmatmul.mubr.f32.gmra.mxu0 %v6008_v22  ;;  %6614 = vmatprep.mubr.f32.mxu1 %v6009_v2  ;;  %v6055_v14 = vld [vmem:[#allocation4 + $0x96] sm:$0xff] }
 0x6dd   :  { %6759 = vmatprep.mubr.f32.mxu0 %v6027_v48  ;;  %7545 = vmatprep.subr.mxu1 %v6197_v1 }
 0x6de   :  { %7561 = vmatpush3.msra.mxu1 %v6197_v1  ;;  %7487 = vmatprep.subr.mxu0 %v6199_v46 }
 0x6df   :  { %7646 = vmatmul.mubr.msk.f32.gmra.mxu1 %vm2533_vm15, %v5881_v60  ;;  %7488 = vmatpush3.msra.mxu0 %v6199_v46  ;;  %v6194_v60 = vld [vmem:[%s13650_s11 + $0x438] sm:$0xff]  ;;  %v6056_v46 = vld [vmem:[#allocation4 + $0x9e] sm:$0xff] }
 0x6e0   :  { %6760 = vmatmul.mubr.f32.gmra.mxu0 %v6009_v2  ;;  %6619 = vmatprep.mubr.f32.mxu1 %v6010_v49 }
 0x6e1   :  { %6764 = vmatprep.mubr.f32.mxu0 %v6028_v15  ;;  %7546 = vmatprep.subr.mxu1 %v6196_v16 }
 0x6e2   :  { %7562 = vmatpush3.msra.mxu1 %v6196_v16  ;;  %7489 = vmatprep.subr.mxu0 %v6198_v41 }
 0x6e3   :  { %7647 = vmatmul.mubr.msk.f32.gmra.mxu1 %vm2534_vm3, %v5882_v52  ;;  %7490 = vmatpush3.msra.mxu0 %v6198_v41  ;;  %v6193_v52 = vld [vmem:[%s13650_s11 + $0x430] sm:$0xff]  ;;  %v13450_v41 = vld [vmem:[%s13652_s12] ss:$0 sm:$0xff] }
 0x6e4   :  { %6765 = vmatmul.mubr.f32.gmra.mxu0 %v6010_v49  ;;  %6624 = vmatprep.mubr.f32.mxu1 %v6011_v55  ;;  %v6277_v22 = vadd.f32 %v13450_v41, %v13310_v13  ;;  %v6282_v49 = vadd.f32 %v13450_v41, %v13321_v37 }
 0x6e5   :  { %6769 = vmatprep.mubr.f32.mxu0 %v6029_v8  ;;  %7547 = vmatprep.subr.mxu1 %v6195_v63 }
 0x6e6   :  { %7563 = vmatpush3.msra.mxu1 %v6195_v63  ;;  %7491 = vmatprep.subr.mxu0 %v6197_v1 }
 0x6e7   :  { %7648 = vmatmul.mubr.msk.f32.gmra.mxu1 %vm2535_vm9, %v5883_v61  ;;  %7492 = vmatpush3.msra.mxu0 %v6197_v1  ;;  %v6192_v61 = vld [vmem:[%s13650_s11 + $0x428] sm:$0xff] }
 0x6e8   :  { %6770 = vmatmul.mubr.f32.gmra.mxu0 %v6011_v55  ;;  %6629 = vmatprep.mubr.f32.mxu1 %v6012_v19 }
 0x6e9   :  { %6774 = vmatprep.mubr.f32.mxu0 %v6030_v0  ;;  %7548 = vmatprep.subr.mxu1 %v6194_v60 }
 0x6ea   :  { %7564 = vmatpush3.msra.mxu1 %v6194_v60  ;;  %7493 = vmatprep.subr.mxu0 %v6196_v16 }
 0x6eb   :  { %7649 = vmatmul.mubr.msk.f32.gmra.mxu1 %vm2536_vm10, %v5884_v54  ;;  %7494 = vmatpush3.msra.mxu0 %v6196_v16  ;;  %v6191_v54 = vld [vmem:[%s13650_s11 + $0x420] sm:$0xff] }
 0x6ec   :  { %6775 = vmatmul.mubr.f32.gmra.mxu0 %v6012_v19  ;;  %6634 = vmatprep.mubr.f32.mxu1 %v6013_v36 }
 0x6ed   :  { %6779 = vmatprep.mubr.f32.mxu0 %v6031_v59  ;;  %7549 = vmatprep.subr.mxu1 %v6193_v52 }
 0x6ee   :  { %7565 = vmatpush3.msra.mxu1 %v6193_v52  ;;  %7495 = vmatprep.subr.mxu0 %v6195_v63 }
 0x6ef   :  { %7650 = vmatmul.mubr.msk.f32.gmra.mxu1 %vm2537_vm12, %v5885_v12  ;;  %7496 = vmatpush3.msra.mxu0 %v6195_v63  ;;  %v6033_v12 = vld [vmem:[#allocation4 + $0x75] sm:$0xff] }
 0x6f0   :  { %6780 = vmatmul.mubr.f32.gmra.mxu0 %v6013_v36  ;;  %6639 = vmatprep.mubr.f32.mxu1 %v6014_v50 }
 0x6f1   :  { %6784 = vmatprep.mubr.f32.mxu0 %v6032_v39  ;;  %7550 = vmatprep.subr.mxu1 %v6192_v61 }
 0x6f2   :  { %7566 = vmatpush3.msra.mxu1 %v6192_v61  ;;  %7497 = vmatprep.subr.mxu0 %v6194_v60 }
 0x6f3   :  { %7651 = vmatmul.mubr.msk.f32.gmra.mxu1 %vm2538_vm13, %v5886_v58  ;;  %7498 = vmatpush3.msra.mxu0 %v6194_v60  ;;  %v6034_v58 = vld [vmem:[#allocation4 + $0x7d] sm:$0xff] }
 0x6f4   :  { %6785 = vmatmul.mubr.f32.gmra.mxu0 %v6014_v50  ;;  %6644 = vmatprep.mubr.f32.mxu1 %v6015_v4 }
 0x6f5   :  { %6789 = vmatprep.mubr.f32.mxu0 %v6033_v12  ;;  %7551 = vmatprep.subr.mxu1 %v6191_v54 }
 0x6f6   :  { %7567 = vmatpush3.msra.mxu1 %v6191_v54  ;;  %7499 = vmatprep.subr.mxu0 %v6193_v52 }
 0x6f7   :  { %7652 = vmatmul.mubr.msk.f32.gmra.mxu1 %vm2539_vm0, %v5887_v17  ;;  %7500 = vmatpush3.msra.mxu0 %v6193_v52  ;;  %v6035_v17 = vld [vmem:[#allocation4 + $0x85] sm:$0xff] }
 0x6f8   :  { %6790 = vmatmul.mubr.f32.gmra.mxu0 %v6015_v4  ;;  %6649 = vmatprep.mubr.f32.mxu1 %v6016_v6 }
 0x6f9   :  { %6794 = vmatprep.mubr.f32.mxu0 %v6034_v58  ;;  %7552 = vmatprep.subr.mxu1 %v6190_v5 }
 0x6fa   :  { %7568 = vmatpush3.msra.mxu1 %v6190_v5  ;;  %7501 = vmatprep.subr.mxu0 %v6192_v61 }
 0x6fb   :  { %7653 = vmatmul.mubr.msk.f32.gmra.mxu1 %vm2540_vm2, %v5888_v43  ;;  %7502 = vmatpush3.msra.mxu0 %v6192_v61  ;;  %v6036_v43 = vld [vmem:[#allocation4 + $0x8d] sm:$0xff] }
 0x6fc   :  { %6795 = vmatmul.mubr.f32.gmra.mxu0 %v6016_v6  ;;  %6654 = vmatprep.mubr.f32.mxu1 %v6017_v25 }
 0x6fd   :  { %6799 = vmatprep.mubr.f32.mxu0 %v6035_v17  ;;  %7553 = vmatprep.subr.mxu1 %v6189_v3 }
 0x6fe   :  { %7569 = vmatpush3.msra.mxu1 %v6189_v3  ;;  %7503 = vmatprep.subr.mxu0 %v6191_v54 }
 0x6ff   :  { %7654 = vmatmul.mubr.msk.f32.gmra.mxu1 %vm2541_vm5, %v5889_v51  ;;  %7504 = vmatpush3.msra.mxu0 %v6191_v54  ;;  %v6037_v51 = vld [vmem:[#allocation4 + $0x95] sm:$0xff] }
 0x700   :  { %6800 = vmatmul.mubr.f32.gmra.mxu0 %v6017_v25  ;;  %6659 = vmatprep.mubr.f32.mxu1 %v6018_v28 }
 0x701   :  { %6804 = vmatprep.mubr.f32.mxu0 %v6036_v43  ;;  %7554 = vmatprep.subr.mxu1 %v6188_v53 }
 0x702   :  { %7570 = vmatpush3.msra.mxu1 %v6188_v53  ;;  %7505 = vmatprep.subr.mxu0 %v6190_v5 }
 0x703   :  { %7655 = vmatmul.mubr.msk.f32.gmra.mxu1 %vm2542_vm6, %v5890_v26  ;;  %7506 = vmatpush3.msra.mxu0 %v6190_v5  ;;  %v6039_v26 = vld [vmem:[#allocation4 + $0xa5] sm:$0xff] }
 0x704   :  { %6805 = vmatmul.mubr.f32.gmra.mxu0 %v6018_v28  ;;  %6664 = vmatprep.mubr.f32.mxu1 %v6019_v27 }
 0x705   :  { %6809 = vmatprep.mubr.f32.mxu0 %v6037_v51  ;;  %7555 = vmatprep.subr.mxu1 %v6187_v24 }
 0x706   :  { %7571 = vmatpush3.msra.mxu1 %v6187_v24  ;;  %7507 = vmatprep.subr.mxu0 %v6189_v3 }
 0x707   :  { %7656 = vmatmul.mubr.msk.f32.gmra.mxu1 %vm13913_vm1, %v13912_v10  ;;  %7508 = vmatpush3.msra.mxu0 %v6189_v3 }
 0x708   :  { %6810 = vmatmul.mubr.f32.gmra.mxu0 %v6019_v27  ;;  %6669 = vmatprep.mubr.f32.mxu1 %v6020_v9 }
 0x709   :  { %6814 = vmatprep.mubr.f32.mxu0 %v6038_v62  ;;  %7509 = vmatprep.subr.mxu0 %v6188_v53 }
 0x70a   :  { %7510 = vmatpush3.msra.mxu0 %v6188_v53 }
 0x70b   :  { %7657 = vmatmul.mubr.msk.f32.gmra.mxu1 %vm2544_vm8, %v13914_v44  ;;  %7511 = vmatprep.subr.mxu0 %v6187_v24 }
 0x70c   :  { %6815 = vmatmul.mubr.f32.gmra.mxu0 %v6020_v9  ;;  %7522 = vmatprep.mubr.f32.mxu1 %v6047_v29 }
 0x70d   :  { %6819 = vmatprep.mubr.f32.mxu0 %v6039_v26  ;;  %7512 = vmatpush3.msra.mxu0 %v6187_v24 }
 0x70f   :  { %7523 = vmatmul.mubr.f32.vlgmr.msra.gmra.mxu1 %v6048_v21 }
 0x710   :  { %6820 = vmatmul.mubr.f32.gmra.mxu0 %v6021_v23  ;;  %7525 = vmatprep.mubr.f32.mxu1 %v6049_v31 }
 0x711   :  { %6824 = vmatprep.mubr.f32.mxu0 %v6040_v35 }
 0x713   :  { %7526 = vmatmul.mubr.f32.gmra.mxu1 %v6050_v40 }
 0x714   :  { %6825 = vmatmul.mubr.f32.gmra.mxu0 %v6022_v20  ;;  %7528 = vmatprep.mubr.f32.mxu1 %v6051_v7 }
 0x715   :  { %7513 = vmatprep.mubr.f32.mxu0 %v6041_v47 }
 0x717   :  { %7529 = vmatmul.mubr.f32.gmra.mxu1 %v6052_v33 }
 0x718   :  { %7514 = vmatmul.mubr.f32.vlgmr.msra.gmra.mxu0 %v6042_v45  ;;  %7531 = vmatprep.mubr.f32.mxu1 %v6053_v42 }
 0x719   :  { %7516 = vmatprep.mubr.f32.mxu0 %v6043_v32 }
 0x71b   :  { %7532 = vmatmul.mubr.f32.gmra.mxu1 %v6054_v56 }
 0x71c   :  { %7517 = vmatmul.mubr.f32.gmra.mxu0 %v6044_v34  ;;  %7534 = vmatprep.mubr.f32.mxu1 %v6055_v14 }
 0x71d   :  { %7519 = vmatprep.mubr.f32.mxu0 %v6045_v11 }
 0x71f   :  { %7535 = vmatmul.mubr.f32.gmra.mxu1 %v6056_v46 }
 0x720   :  { %7520 = vmatmul.mubr.f32.gmra.mxu0 %v6046_v57  ;;  %7537 = vmatprep.mubr.f32.mxu1 %v6057_v18 }
 0x723   :  { %7538 = vmatmul.mubr.f32.gmra.mxu1 %v6058_v30 }
 0x746   :  { %v6286_v38 = vpop.f32.mrf.mxu1  ;;  %v6431_v1 = vpop.f32.mrf.mxu0 }
 0x747   :  { %v13454_v2 = vadd.f32 %v6431_v1, %v6277_v22  ;;  %v6287_v19 = vadd.f32 %v13450_v41, %v6286_v38 }
 0x748   :  { %v6288_v48 = vpop.f32.mrf.mxu1  ;;  %v6433_v16 = vpop.f32.mrf.mxu0 }
 0x74a   :  { %v6291_v15 = vpop.f32.mrf.mxu1  ;;  %v6436_v63 = vpop.f32.mrf.mxu0 }
 0x74b   :  { %v13458_v55 = vadd.f32 %v6436_v63, %v6282_v49  ;;  %v6292_v61 = vadd.f32 %v13450_v41, %v6291_v15 }
 0x74c   :  { %v6293_v8 = vpop.f32.mrf.mxu1  ;;  %v6438_v60 = vpop.f32.mrf.mxu0 }
 0x74e   :  { %v6296_v0 = vpop.f32.mrf.mxu1  ;;  %v6441_v52 = vpop.f32.mrf.mxu0 }
 0x74f   :  { %v13461_v13 = vadd.f32 %v6441_v52, %v6287_v19  ;;  %v6297_v12 = vadd.f32 %v13450_v41, %v6296_v0 }
 0x750   :  { %v6298_v36 = vpop.f32.mrf.mxu1  ;;  %v6443_v59 = vpop.f32.mrf.mxu0 }
 0x752   :  { %v6301_v50 = vpop.f32.mrf.mxu1  ;;  %v6446_v39 = vpop.f32.mrf.mxu0 }
 0x753   :  { %v13464_v54 = vadd.f32 %v6446_v39, %v6292_v61  ;;  %v6302_v17 = vadd.f32 %v13450_v41, %v6301_v50 }
 0x754   :  { %v6303_v37 = vpop.f32.mrf.mxu1  ;;  %v6448_v4 = vpop.f32.mrf.mxu0 }
 0x756   :  { %v6306_v5 = vpop.f32.mrf.mxu1  ;;  %v6451_v6 = vpop.f32.mrf.mxu0 }
 0x757   :  { %v13467_v58 = vadd.f32 %v6451_v6, %v6297_v12  ;;  %v6307_v10 = vadd.f32 %v13450_v41, %v6306_v5 }
 0x758   :  { %v6308_v3 = vpop.f32.mrf.mxu1  ;;  %v6453_v25 = vpop.f32.mrf.mxu0 }
 0x75a   :  { %v6311_v53 = vpop.f32.mrf.mxu1 }
 0x75b   :  { %v6456_v28 = vpop.f32.mrf.mxu0  ;;  %v6312_v23 = vadd.f32 %v13450_v41, %v6311_v53 }
 0x75c   :  { %v13470_v43 = vadd.f32 %v6456_v28, %v6302_v17  ;;  %v6313_v24 = vpop.f32.mrf.mxu1 }
 0x75d   :  { %v6458_v27 = vpop.f32.mrf.mxu0 }
 0x75e   :  { %v6316_v51 = vpop.f32.mrf.mxu1 }
 0x75f   :  { %v6317_v7 = vadd.f32 %v13450_v41, %v6316_v51 }
 0x760   :  { %v6461_v9 = vpop.f32.mrf.mxu0  ;;  %v6318_v62 = vpop.f32.mrf.mxu1 }
 0x761   :  { %v13473_v26 = vadd.f32 %v6461_v9, %v6307_v10 }
 0x762   :  { %v6463_v44 = vpop.f32.mrf.mxu0  ;;  %v6321_v29 = vpop.f32.mrf.mxu1 }
 0x763   :  { %v6322_v56 = vadd.f32 %v13450_v41, %v6321_v29 }
 0x764   :  { %v6466_v21 = vpop.f32.mrf.mxu0  ;;  %v6323_v35 = vpop.f32.mrf.mxu1 }
 0x765   :  { %v13476_v31 = vadd.f32 %v6466_v21, %v6312_v23 }
 0x766   :  { %v6468_v20 = vpop.f32.mrf.mxu0  ;;  %v6326_v40 = vpop.f32.mrf.mxu1 }
 0x767   :  { %v6327_v57 = vadd.f32 %v13450_v41, %v6326_v40 }
 0x768   :  { %v6471_v47 = vpop.f32.mrf.mxu0  ;;  %v6328_v33 = vpop.f32.mrf.mxu1 }
 0x769   :  { %v13479_v45 = vadd.f32 %v6471_v47, %v6317_v7 }
 0x76a   :  { %v6473_v42 = vpop.f32.mrf.mxu0  ;;  %v6331_v32 = vpop.f32.mrf.mxu1 }
 0x76b   :  { %v6332_v16 = vadd.f32 %v13450_v41, %v6331_v32 }
 0x76c   :  { %v6476_v34 = vpop.f32.mrf.mxu0  ;;  %v6333_v14 = vpop.f32.mrf.mxu1 }
 0x76d   :  { %v13482_v11 = vadd.f32 %v6476_v34, %v6322_v56 }
 0x76e   :  { %v6478_v18 = vpop.f32.mrf.mxu0  ;;  %v6336_v46 = vpop.f32.mrf.mxu1 }
 0x76f   :  { %v6337_v19 = vadd.f32 %v13450_v41, %v6336_v46 }
 0x770   :  { %v6481_v30 = vpop.f32.mrf.mxu0  ;;  %v6338_v22 = vpop.f32.mrf.mxu1 }
 0x771   :  { %v13485_v38 = vadd.f32 %v6481_v30, %v6327_v57 }
 0x772   :  { %v6483_v1 = vpop.f32.mrf.mxu0  ;;  %v6341_v48 = vpop.f32.mrf.mxu1 }
 0x773   :  { %v6342_v50 = vadd.f32 %v13450_v41, %v6341_v48 }
 0x774   :  { %v6486_v49 = vpop.f32.mrf.mxu0  ;;  %v6343_v15 = vpop.f32.mrf.mxu1 }
 0x775   :  { %v13488_v63 = vadd.f32 %v6486_v49, %v6332_v16 }
 0x776   :  { %v6488_v8 = vpop.f32.mrf.mxu0  ;;  %v6346_v60 = vpop.f32.mrf.mxu1 }
 0x777   :  { %v6347_v6 = vadd.f32 %v13450_v41, %v6346_v60 }
 0x778   :  { %v6491_v0 = vpop.f32.mrf.mxu0  ;;  %v6348_v52 = vpop.f32.mrf.mxu1 }
 0x779   :  { %v13491_v36 = vadd.f32 %v6491_v0, %v6337_v19 }
 0x77a   :  { %v6493_v59 = vpop.f32.mrf.mxu0  ;;  %v6351_v61 = vpop.f32.mrf.mxu1 }
 0x77b   :  { %v6352_v24 = vadd.f32 %v13450_v41, %v6351_v61 }
 0x77c   :  { %v6496_v39 = vpop.f32.mrf.mxu0  ;;  %v6353_v37 = vpop.f32.mrf.mxu1 }
 0x77d   :  { %v13494_v4 = vadd.f32 %v6496_v39, %v6342_v50 }
 0x77e   :  { %v6498_v12 = vpop.f32.mrf.mxu0  ;;  %v6356_v5 = vpop.f32.mrf.mxu1 }
 0x77f   :  { %v6357_v44 = vadd.f32 %v13450_v41, %v6356_v5 }
 0x780   :  { %v6501_v3 = vpop.f32.mrf.mxu0  ;;  %v6358_v25 = vpop.f32.mrf.mxu1 }
 0x781   :  { %v13497_v17 = vadd.f32 %v6501_v3, %v6347_v6 }
 0x782   :  { %v6503_v53 = vpop.f32.mrf.mxu0  ;;  %v6361_v28 = vpop.f32.mrf.mxu1 }
 0x783   :  { %v6362_v7 = vadd.f32 %v13450_v41, %v6361_v28 }
 0x784   :  { %v6506_v27 = vpop.f32.mrf.mxu0  ;;  %v6363_v51 = vpop.f32.mrf.mxu1 }
 0x785   :  { %v13500_v10 = vadd.f32 %v6506_v27, %v6352_v24 }
 0x786   :  { %v6508_v9 = vpop.f32.mrf.mxu0  ;;  %v6586_v62 = vpop.f32.mrf.mxu1 }
 0x787   :  { %v6587_v29 = vadd.f32 %v6586_v62, %v13454_v2 }
 0x788   :  { %v6511_v23 = vpop.f32.mrf.mxu0  ;;  %v6588_v21 = vpop.f32.mrf.mxu1 }
 0x789   :  { %v13504_v35 = vadd.f32 %v6511_v23, %v6357_v44 }
 0x78a   :  { %v6513_v20 = vpop.f32.mrf.mxu0  ;;  %v6591_v40 = vpop.f32.mrf.mxu1 }
 0x78b   :  { %v6592_v47 = vadd.f32 %v6591_v40, %v13458_v55 }
 0x78c   :  { %v6516_v33 = vpop.f32.mrf.mxu0  ;;  %v6593_v42 = vpop.f32.mrf.mxu1 }
 0x78d   :  { %v13508_v32 = vadd.f32 %v6516_v33, %v6362_v7 }
 0x78e   :  { %v6518_v56 = vpop.f32.mrf.mxu0 }
 0x78f   :  { %v6596_v34 = vpop.f32.mrf.mxu1 }
 0x790   :  { %v6597_v14 = vadd.f32 %v6596_v34, %v13461_v13  ;;  %v6741_v18 = vpop.f32.mrf.mxu0 }
 0x791   :  { %v13511_v2 = vadd.f32 %v6741_v18, %v6587_v29  ;;  %v6598_v46 = vpop.f32.mrf.mxu1 }
 0x792   :  { %v6743_v57 = vpop.f32.mrf.mxu0 }
 0x793   :  { %v6601_v30 = vpop.f32.mrf.mxu1 }
 0x794   :  { %v13514_v22 = vadd.f32 %v6601_v30, %v13464_v54  ;;  %v6746_v41 = vpop.f32.mrf.mxu0 }
 0x795   :  { %v13516_v1 = vadd.f32 %v6746_v41, %v6592_v47  ;;  %v6603_v55 = vpop.f32.mrf.mxu1 }
 0x796   :  { %v6748_v48 = vpop.f32.mrf.mxu0 }
 0x797   :  { %v6606_v16 = vpop.f32.mrf.mxu1 }
 0x798   :  { %v6607_v49 = vadd.f32 %v6606_v16, %v13467_v58  ;;  %v6751_v15 = vpop.f32.mrf.mxu0 }
 0x799   :  { %v13519_v8 = vadd.f32 %v6751_v15, %v6597_v14  ;;  %v6608_v13 = vpop.f32.mrf.mxu1 }
 0x79a   :  { %v6753_v60 = vpop.f32.mrf.mxu0 }
 0x79b   :  { %v6611_v19 = vpop.f32.mrf.mxu1 }
 0x79c   :  { %v13522_v0 = vadd.f32 %v6611_v19, %v13470_v43  ;;  %v13524_v52 = vpop.f32.mrf.mxu0 }
 0x79d   :  { %v6613_v54 = vpop.f32.mrf.mxu1 }
 0x79e   :  { %v6758_v59 = vpop.f32.mrf.mxu0 }
 0x79f   :  { %v6616_v61 = vpop.f32.mrf.mxu1 }
 0x7a0   :  { %v6761_v50 = vpop.f32.mrf.mxu0 }
 0x7a1   :  { %v13526_v39 = vadd.f32 %v6761_v50, %v6607_v49  ;;  %v6618_v37 = vpop.f32.mrf.mxu1 }
 0x7a2   :  { %v6763_v12 = vpop.f32.mrf.mxu0 }
 0x7a3   :  { %v6621_v58 = vpop.f32.mrf.mxu1 }
 0x7a4   :  { %v13528_v5 = vpop.f32.mrf.mxu0  ;;  %v6622_v50 = vadd.f32 %v6621_v58, %v13476_v31 }
 0x7a5   :  { %v6623_v6 = vpop.f32.mrf.mxu1 }
 0x7a6   :  { %v6768_v3 = vpop.f32.mrf.mxu0  ;;  %v6617_v6 = vadd.f32 %v6616_v61, %v13473_v26 }
 0x7a7   :  { %v6626_v25 = vpop.f32.mrf.mxu1 }
 0x7a8   :  { %v6771_v53 = vpop.f32.mrf.mxu0 }
 0x7a9   :  { %v6628_v28 = vpop.f32.mrf.mxu1 }
 0x7aa   :  { %v6773_v43 = vpop.f32.mrf.mxu0 }
 0x7ab   :  { %v6631_v24 = vpop.f32.mrf.mxu1 }
 0x7ac   :  { %v6776_v27 = vpop.f32.mrf.mxu0 }
 0x7ad   :  { %v6633_v51 = vpop.f32.mrf.mxu1  ;;  %v6777_v3 = vadd.f32 %v6776_v27, %v6622_v50 }
 0x7ae   :  { %v6778_v9 = vpop.f32.mrf.mxu0  ;;  %v6772_v51 = vadd.f32 %v6771_v53, %v6617_v6 }
 0x7af   :  { %v6636_v62 = vpop.f32.mrf.mxu1  ;;  %v6632_v9 = vadd.f32 %v6631_v24, %v13482_v11  ;;  %v13916_v11 = vld [vmem:[#allocation9_spill] sm:$0xff] }
 0x7b0   :  { %v6781_v44 = vpop.f32.mrf.mxu0 }
 0x7b1   :  { %v6638_v29 = vpop.f32.mrf.mxu1 }
 0x7b2   :  { %v6783_v23 = vpop.f32.mrf.mxu0 }
 0x7b3   :  { %v6641_v21 = vpop.f32.mrf.mxu1 }
 0x7b4   :  { %v6786_v20 = vpop.f32.mrf.mxu0  ;;  %v6642_v26 = vadd.f32 %v6641_v21, %v13488_v63 }
 0x7b5   :  { %v6643_v40 = vpop.f32.mrf.mxu1 }
 0x7b6   :  { %v6788_v7 = vpop.f32.mrf.mxu0 }
 0x7b7   :  { %v6646_v47 = vpop.f32.mrf.mxu1  ;;  %v6627_v7 = vadd.f32 %v6626_v25, %v13479_v45  ;;  %v6637_v45 = vadd.f32 %v6636_v62, %v13485_v38 }
 0x7b8   :  { %v6791_v33 = vpop.f32.mrf.mxu0 }
 0x7b9   :  { %v6648_v42 = vpop.f32.mrf.mxu1 }
 0x7ba   :  { %v6793_v56 = vpop.f32.mrf.mxu0  ;;  %v6787_v42 = vadd.f32 %v6786_v20, %v6632_v9  ;;  %v13917_v20 = vld [vmem:[#allocation17_spill] sm:$0xff] }
 0x7bb   :  { %v6651_v34 = vpop.f32.mrf.mxu1  ;;  %v13915_v56 = vld [vmem:[#allocation11_spill] sm:$0xff] }
 0x7bc   :  { %v6796_v14 = vpop.f32.mrf.mxu0 }
 0x7bd   :  { %v6653_v18 = vpop.f32.mrf.mxu1  ;;  %v6797_v25 = vadd.f32 %v6796_v14, %v6642_v26 }
 0x7be   :  { %v6798_v46 = vpop.f32.mrf.mxu0 }
 0x7bf   :  { %v13530_v57 = vpop.f32.mrf.mxu1 }
 0x7c0   :  { %v13532_v30 = vpop.f32.mrf.mxu0 }
 0x7c1   :  { %v6658_v41 = vpop.f32.mrf.mxu1 }
 0x7c2   :  { %v6803_v55 = vpop.f32.mrf.mxu0  ;;  %v6782_v41 = vadd.f32 %v6781_v44, %v6627_v7 }
 0x7c3   :  { %v6661_v48 = vpop.f32.mrf.mxu1 }
 0x7c4   :  { %v6806_v16 = vpop.f32.mrf.mxu0 }
 0x7c5   :  { %v6663_v49 = vpop.f32.mrf.mxu1 }
 0x7c6   :  { %v6808_v15 = vpop.f32.mrf.mxu0  ;;  %v6792_v49 = vadd.f32 %v6791_v33, %v6637_v45  ;;  %v13919_v33 = vld [vmem:[#allocation21_spill] sm:$0xff] }
 0x7c7   :  { %v13534_v13 = vpop.f32.mrf.mxu1  ;;  %v6652_v15 = vadd.f32 %v6651_v34, %v13494_v4 }
 0x7c8   :  { %v13536_v60 = vpop.f32.mrf.mxu0 }
 0x7c9   :  { %v6668_v19 = vpop.f32.mrf.mxu1  ;;  %v6807_v6 = vadd.f32 %v6806_v16, %v6652_v15 }
 0x7ca   :  { %v6813_v54 = vpop.f32.mrf.mxu0  ;;  %v13918_v19 = vld [vmem:[#allocation13_spill] sm:$0xff] }
 0x7cb   :  { %v13538_v59 = vpop.f32.mrf.mxu1 }
 0x7cc   :  { %v6816_v37 = vpop.f32.mrf.mxu0  ;;  %v6672_v26 = vadd.f32 %v13538_v59, %v13508_v32  ;;  %v13927_v59 = vld [vmem:[#allocation34_spill] sm:$0xff] }
 0x7cd   :  { %v6673_v12 = vpop.f32.mrf.mxu1 }
 0x7ce   :  { %v6818_v28 = vpop.f32.mrf.mxu0  ;;  %v6647_v12 = vadd.f32 %v6646_v47, %v13491_v36  ;;  %v6662_v36 = vadd.f32 %v6661_v48, %v13500_v10  ;;  %v13921_v47 = vld [vmem:[#allocation20_spill] sm:$0xff]  ;;  %v13923_v48 = vld [vmem:[#allocation31_spill] sm:$0xff] }
 0x7cf   :  { %v7524_v43 = vpop.f32.mrf.mxu1  ;;  %v6757_v28 = vadd.f32 %v13524_v52, %v13514_v22  ;;  %v13922_v22 = vld [vmem:[#allocation14_spill] sm:$0xff] }
 0x7d0   :  { %v13543_v29 = vpop.f32.mrf.mxu0  ;;  %v6932_v23 = vadd.f32 %v7524_v43, %v6777_v3  ;;  %v13920_v43 = vld [vmem:[#allocation15_spill] sm:$0xff]  ;;  %v6817_v10 = vadd.f32 %v6816_v37, %v6662_v36 }
 0x7d1   :  { %v6926_v40 = vpop.f32.mrf.mxu1 }
 0x7d2   :  { %v6992_v18 = vadd.f32 %v6932_v23, %v13915_v56  ;;  %v6823_v31 = vpop.f32.mrf.mxu0  ;;  %v6927_v58 = vadd.f32 %v6926_v40, %v6772_v51  ;;  %v6802_v23 = vadd.f32 %v13532_v30, %v6647_v12  ;;  %v6657_v30 = vadd.f32 %v13530_v57, %v13497_v17 }
 0x7d3   :  { %v7527_v46 = vpop.f32.mrf.mxu1 }
 0x7d4   :  { %7010 = vst [vmem:[%s13653_s13 + $0x38] sm:$0xff] %v6992_v18  ;;  %v6991_v61 = vadd.f32 %v6927_v58, %v13916_v11  ;;  %v6826_v53 = vpop.f32.mrf.mxu0  ;;  %v6942_v24 = vadd.f32 %v7527_v46, %v6787_v42  ;;  %v6767_v58 = vadd.f32 %v13528_v5, %v13522_v0  ;;  %v13924_v46 = vld [vmem:[#allocation6_spill] sm:$0xff]  ;;  %v6812_v37 = vadd.f32 %v13536_v60, %v6657_v30  ;;  %v13925_v11 = vld [vmem:[#allocation33_spill] sm:$0xff] }
 0x7d5   :  { %v6936_v27 = vpop.f32.mrf.mxu1  ;;  %v6667_v60 = vadd.f32 %v13534_v13, %v13504_v35  ;;  %v6827_v32 = vadd.f32 %v6826_v53, %v6672_v26  ;;  %v13929_v13 = vld [vmem:[#allocation24_spill] sm:$0xff] }
 0x7d6   :  { %7009 = vst [vmem:[%s13653_s13 + $0x30] sm:$0xff] %v6991_v61  ;;  %v6994_v44 = vadd.f32 %v6942_v24, %v13917_v20  ;;  %v6828_v55 = vpop.f32.mrf.mxu0  ;;  %v6937_v63 = vadd.f32 %v6936_v27, %v6782_v41  ;;  %v13926_v24 = vld [vmem:[#allocation16_spill] sm:$0xff] }
 0x7d7   :  { %v7530_v21 = vpop.f32.mrf.mxu1  ;;  %v13928_v55 = vld [vmem:[#allocation7_spill] sm:$0xff]  ;;  %v6822_v35 = vadd.f32 %v13543_v29, %v6667_v60 }
 0x7d8   :  { %7012 = vst [vmem:[%s13653_s13 + $0x48] sm:$0xff] %v6994_v44  ;;  %v6993_v54 = vadd.f32 %v6937_v63, %v13918_v19  ;;  %v7515_v38 = vpop.f32.mrf.mxu0  ;;  %v6952_v62 = vadd.f32 %v7530_v21, %v6797_v25  ;;  %v13930_v19 = vld [vmem:[#allocation8_spill] sm:$0xff] }
 0x7d9   :  { %v6902_v14 = vadd.f32 %v7515_v38, %v13516_v1  ;;  %v6946_v50 = vpop.f32.mrf.mxu1 }
 0x7da   :  { %7011 = vst [vmem:[%s13653_s13 + $0x40] sm:$0xff] %v6993_v54  ;;  %v6996_v4 = vadd.f32 %v6952_v62, %v13919_v33  ;;  %v6896_v34 = vpop.f32.mrf.mxu0  ;;  %v6947_v3 = vadd.f32 %v6946_v50, %v6792_v49 }
 0x7db   :  { %v6986_v51 = vadd.f32 %v6902_v14, %v13920_v43  ;;  %v6897_v9 = vadd.f32 %v6896_v34, %v13511_v2  ;;  %v7533_v1 = vpop.f32.mrf.mxu1  ;;  %v13932_v14 = vld [vmem:[#allocation39_spill] sm:$0xff] }
 0x7dc   :  { %7014 = vst [vmem:[%s13653_s13 + $0x58] sm:$0xff] %v6996_v4  ;;  %v6995_v16 = vadd.f32 %v6947_v3, %v13921_v47  ;;  %v7518_v40 = vpop.f32.mrf.mxu0  ;;  %v6962_v7 = vadd.f32 %v7533_v1, %v6807_v6 }
 0x7dd   :  { %7004 = vst [vmem:[%s13653_s13 + $0x8] sm:$0xff] %v6986_v51  ;;  %v6985_v52 = vadd.f32 %v6897_v9, %v13922_v22  ;;  %v6912_v2 = vadd.f32 %v7518_v40, %v6757_v28  ;;  %v6956_v42 = vpop.f32.mrf.mxu1 }
 0x7de   :  { %7013 = vst [vmem:[%s13653_s13 + $0x50] sm:$0xff] %v6995_v16  ;;  %v6998_v56 = vadd.f32 %v6962_v7, %v13923_v48  ;;  %v6906_v18 = vpop.f32.mrf.mxu0  ;;  %v6957_v31 = vadd.f32 %v6956_v42, %v6802_v23 }
 0x7df   :  { %7003 = vst [vmem:[%s13653_s13] sm:$0xff] %v6985_v52  ;;  %v6988_v41 = vadd.f32 %v6912_v2, %v13924_v46  ;;  %v6907_v17 = vadd.f32 %v6906_v18, %v13519_v8  ;;  %v7536_v57 = vpop.f32.mrf.mxu1 }
 0x7e0   :  { %7016 = vst [vmem:[%s13653_s13 + $0x68] sm:$0xff] %v6998_v56  ;;  %v6997_v0 = vadd.f32 %v6957_v31, %v13925_v11  ;;  %v7521_v5 = vpop.f32.mrf.mxu0  ;;  %v6972_v61 = vadd.f32 %v7536_v57, %v6817_v10 }
 0x7e1   :  { %7006 = vst [vmem:[%s13653_s13 + $0x18] sm:$0xff] %v6988_v41  ;;  %v6987_v8 = vadd.f32 %v6907_v17, %v13926_v24  ;;  %v6922_v27 = vadd.f32 %v7521_v5, %v6767_v58  ;;  %v6966_v45 = vpop.f32.mrf.mxu1 }
 0x7e2   :  { %7015 = vst [vmem:[%s13653_s13 + $0x60] sm:$0xff] %v6997_v0  ;;  %v7000_v25 = vadd.f32 %v6972_v61, %v13927_v59  ;;  %v6916_v20 = vpop.f32.mrf.mxu0  ;;  %v6967_v44 = vadd.f32 %v6966_v45, %v6812_v37 }
 0x7e3   :  { %7005 = vst [vmem:[%s13653_s13 + $0x10] sm:$0xff] %v6987_v8  ;;  %v6990_v63 = vadd.f32 %v6922_v27, %v13928_v55  ;;  %v6917_v21 = vadd.f32 %v6916_v20, %v13526_v39  ;;  %v7539_v49 = vpop.f32.mrf.mxu1  ;;  %v13931_v39 = vld [vmem:[#allocation32_spill] sm:$0xff] }
 0x7e4   :  { %7018 = vst [vmem:[%s13653_s13 + $0x78] sm:$0xff] %v7000_v25  ;;  %v6999_v53 = vadd.f32 %v6967_v44, %v13929_v13  ;;  %v6982_v15 = vadd.f32 %v7539_v49, %v6827_v32 }
 0x7e5   :  { %7008 = vst [vmem:[%s13653_s13 + $0x28] sm:$0xff] %v6990_v63  ;;  %v6989_v54 = vadd.f32 %v6917_v21, %v13930_v19  ;;  %v6976_v38 = vpop.f32.mrf.mxu1 }
 0x7e6   :  { %7017 = vst [vmem:[%s13653_s13 + $0x70] sm:$0xff] %v6999_v53  ;;  %v7002_v29 = vadd.f32 %v6982_v15, %v13931_v39  ;;  %v6977_v62 = vadd.f32 %v6976_v38, %v6822_v35 }
 0x7e7   :  { %7007 = vst [vmem:[%s13653_s13 + $0x20] sm:$0xff] %v6989_v54 }
 0x7e8   :  { %7020 = vst [vmem:[%s13653_s13 + $0x88] sm:$0xff] %v7002_v29  ;;  %v7001_v50 = vadd.f32 %v6977_v62, %v13932_v14 }
 0x7ea   :  { %7019 = vst [vmem:[%s13653_s13 + $0x80] sm:$0xff] %v7001_v50 }

</bundles_post_ra>
